<compile_context>
chip_gen: v5e
topology: v5e:2x2
jax: 0.10.0
libtpu: 0.0.40
codegen_flags: <defaults>
</compile_context>

<pallas_src>
import functools

import jax
import jax.numpy as jnp
from jax.experimental import pallas as pl
from jax.experimental.pallas import tpu as pltpu


COMPUTE_DTYPE = jnp.bfloat16   # MXU-native operand dtype (fp32 accumulation)


def _round_up(x, m):
    return ((x + m - 1) // m) * m


@functools.lru_cache(maxsize=None)
def _gemm_tuning():
    """Per-generation (tm_cap, vmem_limit_bytes) for the GEMM tiles."""
    try:
        vmem = int(getattr(pltpu.get_tpu_info(), "vmem_capacity_bytes",
                           64 << 20))
    except Exception:  # pragma: no cover - conservative fallback
        vmem = 64 << 20
    if vmem >= (96 << 20):       # v5e / v6e: 128 MiB VMEM -> go big
        return 1024, 64 << 20
    return 512, 32 << 20         # v7x: 64 MiB VMEM -> stay at scoped default


# ----------------------------------------------------------------------------
# Pallas GEMM + bias + (optional) ReLU kernel — the hot path of every layer.
# ----------------------------------------------------------------------------
def _gemm_bias_act_kernel(x_ref, w_ref, b_ref, o_ref, *, relu):
    acc = jnp.dot(x_ref[...], w_ref[...], preferred_element_type=jnp.float32)
    acc = acc + b_ref[...]                 # (1, tn) broadcasts over rows
    if relu:
        acc = jnp.maximum(acc, 0.0)
    o_ref[...] = acc.astype(o_ref.dtype)


def pallas_gemm(x, w, b, *, relu, out_dtype):
    """Y = act(X @ W + b).

    X: [M, K] bf16, W: [K, Np] bf16 with Np % 128 == 0 (pre-padded at prep
    time), b: [1, Np] f32.  Returns [M, Np] in `out_dtype`.
    """
    M, K = x.shape
    K2, Np = w.shape
    assert K == K2 and Np % 128 == 0 and b.shape == (1, Np)

    tm_cap, vmem_limit = _gemm_tuning()
    tm = min(tm_cap, _round_up(M, 8))      # multiple of 8 (sublane)
    Mp = _round_up(M, tm)
    if Mp != M:
        x = jnp.pad(x, ((0, Mp - M), (0, 0)))
    tn = Np if Np <= 256 else 256          # lane-dense, 128-multiple tiles
    grid = (Mp // tm, Np // tn)

    out = pl.pallas_call(
        functools.partial(_gemm_bias_act_kernel, relu=relu),
        out_shape=jax.ShapeDtypeStruct((Mp, Np), out_dtype),
        grid=grid,
        in_specs=[
            # X tile changes with i only -> stays resident across the N axis.
            pl.BlockSpec((tm, K), lambda i, j: (i, 0)),
            # W tile changes with j only -> stays resident across the M axis.
            pl.BlockSpec((K, tn), lambda i, j: (0, j)),
            pl.BlockSpec((1, tn), lambda i, j: (0, j)),
        ],
        out_specs=pl.BlockSpec((tm, tn), lambda i, j: (i, j)),
        compiler_params=pltpu.CompilerParams(
            dimension_semantics=("parallel", "parallel"),
            vmem_limit_bytes=vmem_limit),
    )(x, w, b)
    return out if Mp == M else out[:M]


# ----------------------------------------------------------------------------
# Conv2dSame (PyTorch-style "same" padding) via NHWC im2col + Pallas GEMM.
# ----------------------------------------------------------------------------
def conv2d_same(x, w_mat, b, *, cout, k, stride, relu, out_dtype):
    """x: [N, H, W, Cin] (NHWC).  w_mat: [k*k*Cin, Np] bf16, b: [1, Np] f32."""
    n, h, w_, c = x.shape
    # Conv2dSame padding: total = k-1, left/top = total//2, right/bottom rest.
    p0 = (k - 1) // 2
    p1 = (k - 1) - p0
    xp = jnp.pad(x, ((0, 0), (p0, p1), (p0, p1), (0, 0)))
    hp, wp = h + k - 1, w_ + k - 1
    ho = (hp - k) // stride + 1
    wo = (wp - k) // stride + 1

    # Patch extraction: tap ordering (i outer, j inner, channel last) matches
    # the weight reshape [kh, kw, Cin, Cout] -> [kh*kw*Cin, Cout].
    taps = []
    for i in range(k):
        for j in range(k):
            taps.append(xp[:, i:i + stride * ho:stride,
                           j:j + stride * wo:stride, :])
    cols = taps[0] if len(taps) == 1 else jnp.concatenate(taps, axis=-1)
    xm = cols.reshape(n * ho * wo, k * k * c)            # no transpose needed

    ym = pallas_gemm(xm, w_mat, b, relu=relu, out_dtype=out_dtype)
    return ym[:, :cout].reshape(n, ho, wo, cout)


def upsample2_nearest(x):
    """nn.Upsample(scale_factor=2, mode='nearest') on NHWC."""
    return jnp.repeat(jnp.repeat(x, 2, axis=1), 2, axis=2)


# ----------------------------------------------------------------------------
# Layer table / parameter construction / one-time device-layout preparation.
# ----------------------------------------------------------------------------
def _conv_table(in_channel):
    # name: (cin, cout, kernel, stride)
    return {
        "conv1": (in_channel * 2, 32, 3, 1),
        "conv2": (32, 32, 3, 2),
        "conv3": (32, 64, 3, 2),
        "conv4": (64, 128, 3, 2),
        "conv5": (128, 256, 3, 2),
        "up6": (256, 128, 2, 1),
        "conv6": (256, 128, 3, 1),
        "up7": (128, 64, 2, 1),
        "conv7": (128, 64, 3, 1),
        "up8": (64, 32, 2, 1),
        "conv8": (64, 32, 3, 1),
        "up9": (32, 32, 2, 1),
        "conv9": (64 + in_channel * 2, 32, 3, 1),
        "residual": (32, in_channel, 1, 1),
    }


def _uniform(key, shape, fan_in):
    bound = 1.0 / jnp.sqrt(jnp.float32(fan_in))
    return jax.random.uniform(key, shape, jnp.float32, -bound, bound)


def init_params(key, secret_size, height, width, in_channel):
    """PyTorch-layout parameters (Linear [out,in]; Conv [Cout,Cin,kh,kw])."""
    table = _conv_table(in_channel)
    params = {}
    keys = jax.random.split(key, 2 * (len(table) + 1))
    ki = 0
    out_f = height * width * in_channel
    params["fc_w"] = _uniform(keys[ki], (out_f, secret_size), secret_size); ki += 1
    params["fc_b"] = _uniform(keys[ki], (out_f,), secret_size); ki += 1
    for name, (cin, cout, k, _stride) in table.items():
        fan_in = cin * k * k
        params[name + "_w"] = _uniform(keys[ki], (cout, cin, k, k), fan_in); ki += 1
        params[name + "_b"] = _uniform(keys[ki], (cout,), fan_in); ki += 1
    return params


def prepare_params(params, secret_size, height, width, in_channel):
    """One-time reshape / N-pad / bf16 cast of all weights (no per-call glue)."""
    prepped = {}

    # secret_dense: permute the output ordering (C,H,W) -> (H,W,C) so the GEMM
    # result reshapes straight to NHWC, then store as [K, Np] bf16.
    out_f = height * width * in_channel
    fc_w = params["fc_w"].reshape(in_channel, height, width, secret_size)
    fc_w = fc_w.transpose(1, 2, 0, 3).reshape(out_f, secret_size).T   # [S, HWC]
    fc_b = params["fc_b"].reshape(in_channel, height, width)
    fc_b = fc_b.transpose(1, 2, 0).reshape(1, out_f)
    np_fc = _round_up(out_f, 128)
    prepped["fc_w"] = jnp.pad(fc_w, ((0, 0), (0, np_fc - out_f))).astype(COMPUTE_DTYPE)
    prepped["fc_b"] = jnp.pad(fc_b, ((0, 0), (0, np_fc - out_f))).astype(jnp.float32)

    for name, (cin, cout, k, _stride) in _conv_table(in_channel).items():
        w = params[name + "_w"]                             # [Cout, Cin, kh, kw]
        w_mat = w.transpose(2, 3, 1, 0).reshape(k * k * cin, cout)
        np_ = _round_up(cout, 128)
        prepped[name + "_w"] = jnp.pad(
            w_mat, ((0, 0), (0, np_ - cout))).astype(COMPUTE_DTYPE)
        prepped[name + "_b"] = jnp.pad(
            params[name + "_b"].reshape(1, cout),
            ((0, 0), (0, np_ - cout))).astype(jnp.float32)
    return prepped


# ----------------------------------------------------------------------------
# StegaStampEncoder forward (NHWC internally, NCHW at the module boundary).
# ----------------------------------------------------------------------------
def stegastamp_encoder_forward(prepped, secret, image, *, height, width,
                               in_channel):
    table = _conv_table(in_channel)

    def conv(name, x, relu=True, out_dtype=COMPUTE_DTYPE):
        _cin, cout, k, stride = table[name]
        return conv2d_same(x, prepped[name + "_w"], prepped[name + "_b"],
                           cout=cout, k=k, stride=stride, relu=relu,
                           out_dtype=out_dtype)

    secret = (secret - 0.5).astype(COMPUTE_DTYPE)
    image_nhwc = (image - 0.5).astype(COMPUTE_DTYPE).transpose(0, 2, 3, 1)

    # secret_dense (Linear + ReLU) -> already in NHWC ordering (see prep).
    out_f = height * width * in_channel
    s = pallas_gemm(secret, prepped["fc_w"], prepped["fc_b"],
                    relu=True, out_dtype=COMPUTE_DTYPE)
    s = s[:, :out_f].reshape(-1, height, width, in_channel)

    inputs = jnp.concatenate([s, image_nhwc], axis=-1)

    conv1 = conv("conv1", inputs)
    conv2 = conv("conv2", conv1)
    conv3 = conv("conv3", conv2)
    conv4 = conv("conv4", conv3)
    conv5 = conv("conv5", conv4)

    up6 = conv("up6", upsample2_nearest(conv5))
    conv6 = conv("conv6", jnp.concatenate([conv4, up6], axis=-1))
    up7 = conv("up7", upsample2_nearest(conv6))
    conv7 = conv("conv7", jnp.concatenate([conv3, up7], axis=-1))
    up8 = conv("up8", upsample2_nearest(conv7))
    conv8 = conv("conv8", jnp.concatenate([conv2, up8], axis=-1))
    up9 = conv("up9", upsample2_nearest(conv8))
    conv9 = conv("conv9", jnp.concatenate([conv1, up9, inputs], axis=-1))

    residual = conv("residual", conv9, relu=False, out_dtype=jnp.float32)
    return residual.transpose(0, 3, 1, 2)          # back to NCHW


# ----------------------------------------------------------------------------
if __name__ == "__main__":
    # Small shapes consistent with the module (spatial divisible by 16 so the
    # four stride-2 downsamples / four x2 upsamples round-trip cleanly).
    batch, secret_size, height, width, in_channel = 2, 8, 16, 16, 3

    key = jax.random.PRNGKey(0)
    k_param, k_secret, k_image = jax.random.split(key, 3)

    params = init_params(k_param, secret_size, height, width, in_channel)
    prepped = prepare_params(params, secret_size, height, width, in_channel)

    secret = jax.random.uniform(k_secret, (batch, secret_size), jnp.float32)
    image = jax.random.uniform(
        k_image, (batch, in_channel, height, width), jnp.float32)

    fwd = jax.jit(functools.partial(
        stegastamp_encoder_forward, height=height, width=width,
        in_channel=in_channel))
    out = jax.block_until_ready(fwd(prepped, secret, image))

    assert out.shape == (batch, in_channel, height, width), out.shape
    assert out.dtype == jnp.float32
    print("KERNEL_OK")
</pallas_src>

<mosaic_0001>
module attributes {stable_mosaic.version = 11 : i64} {
  func.func @_gemm_bias_act_kernel(%arg0: i32, %arg1: i32, %arg2: memref<8x8xbf16, #tpu.memory_space<vmem>>, %arg3: memref<8x256xbf16, #tpu.memory_space<vmem>>, %arg4: memref<1x256xf32, #tpu.memory_space<vmem>>, %arg5: memref<8x256xbf16, #tpu.memory_space<vmem>>) attributes {dimension_semantics = [#tpu.dimension_semantics<parallel>, #tpu.dimension_semantics<parallel>], iteration_bounds = array<i64: 1, 3>, scalar_prefetch = 0 : i64, scratch_operands = 0 : i64, tpu.core_type = #tpu.core_type<tc>, window_params = [{transform_indices = @transform_0, window_bounds = array<i64: 8, 8>}, {transform_indices = @transform_1, window_bounds = array<i64: 8, 256>}, {transform_indices = @transform_2, window_bounds = array<i64: 1, 256>}, {transform_indices = @transform_3, window_bounds = array<i64: 8, 256>}]} {
    %c0 = arith.constant 0 : index
    %c0_0 = arith.constant 0 : index
    %0 = vector.load %arg2[%c0, %c0_0] : memref<8x8xbf16, #tpu.memory_space<vmem>>, vector<8x8xbf16>
    %c0_1 = arith.constant 0 : index
    %c0_2 = arith.constant 0 : index
    %1 = vector.load %arg3[%c0_1, %c0_2] : memref<8x256xbf16, #tpu.memory_space<vmem>>, vector<8x256xbf16>
    %cst = arith.constant dense<0.000000e+00> : vector<8x256xf32>
    %2 = tpu.matmul %0, %1, %cst {dimension_numbers = #tpu.dot_dimension_numbers<[1], [0], [0], [1], [0, 0, 1, 1], [], []>} : vector<8x8xbf16>, vector<8x256xbf16>, vector<8x256xf32> -> vector<8x256xf32>
    %c0_3 = arith.constant 0 : index
    %c0_4 = arith.constant 0 : index
    %3 = vector.load %arg4[%c0_3, %c0_4] : memref<1x256xf32, #tpu.memory_space<vmem>>, vector<1x256xf32>
    %4 = vector.broadcast %3 : vector<1x256xf32> to vector<8x256xf32>
    %5 = arith.addf %2, %4 : vector<8x256xf32>
    %cst_5 = arith.constant 0.000000e+00 : f32
    %6 = vector.broadcast %cst_5 : f32 to vector<8x256xf32>
    %7 = arith.maximumf %5, %6 : vector<8x256xf32>
    %8 = arith.truncf %7 : vector<8x256xf32> to vector<8x256xbf16>
    %c0_6 = arith.constant 0 : index
    %c0_7 = arith.constant 0 : index
    %9 = vector.load %arg5[%c0_6, %c0_7] : memref<8x256xbf16, #tpu.memory_space<vmem>>, vector<8x256xbf16>
    tpu.vector_store %arg5[%c0_6, %c0_7], %8 {strides = array<i32>} : memref<8x256xbf16, #tpu.memory_space<vmem>>, vector<8x256xbf16>,
    return
  }
  func.func @transform_0(%arg0: i32, %arg1: i32) -> (i32, i32) {
    %c0_i32 = arith.constant 0 : i32
    %c0_i32_0 = arith.constant 0 : i32
    return %arg0, %c0_i32 : i32, i32
  }
  func.func @transform_1(%arg0: i32, %arg1: i32) -> (i32, i32) {
    %c0_i32 = arith.constant 0 : i32
    %c0_i32_0 = arith.constant 0 : i32
    return %c0_i32, %arg1 : i32, i32
  }
  func.func @transform_2(%arg0: i32, %arg1: i32) -> (i32, i32) {
    %c0_i32 = arith.constant 0 : i32
    %c0_i32_0 = arith.constant 0 : i32
    return %c0_i32, %arg1 : i32, i32
  }
  func.func @transform_3(%arg0: i32, %arg1: i32) -> (i32, i32) {
    %c0_i32 = arith.constant 0 : i32
    return %arg0, %arg1 : i32, i32
  }
}

module attributes {stable_mosaic.version = 11 : i64} {
  func.func @_gemm_bias_act_kernel(%arg0: i32, %arg1: i32, %arg2: memref<512x54xbf16, #tpu.memory_space<vmem>>, %arg3: memref<54x128xbf16, #tpu.memory_space<vmem>>, %arg4: memref<1x128xf32, #tpu.memory_space<vmem>>, %arg5: memref<512x128xbf16, #tpu.memory_space<vmem>>) attributes {dimension_semantics = [#tpu.dimension_semantics<parallel>, #tpu.dimension_semantics<parallel>], iteration_bounds = array<i64: 1, 1>, scalar_prefetch = 0 : i64, scratch_operands = 0 : i64, tpu.core_type = #tpu.core_type<tc>, window_params = [{transform_indices = @transform_0, window_bounds = array<i64: 512, 54>}, {transform_indices = @transform_1, window_bounds = array<i64: 54, 128>}, {transform_indices = @transform_2, window_bounds = array<i64: 1, 128>}, {transform_indices = @transform_3, window_bounds = array<i64: 512, 128>}]} {
    %c0 = arith.constant 0 : index
    %c0_0 = arith.constant 0 : index
    %0 = vector.load %arg2[%c0, %c0_0] : memref<512x54xbf16, #tpu.memory_space<vmem>>, vector<512x54xbf16>
    %c0_1 = arith.constant 0 : index
    %c0_2 = arith.constant 0 : index
    %1 = vector.load %arg3[%c0_1, %c0_2] : memref<54x128xbf16, #tpu.memory_space<vmem>>, vector<54x128xbf16>
    %cst = arith.constant dense<0.000000e+00> : vector<512x128xf32>
    %2 = tpu.matmul %0, %1, %cst {dimension_numbers = #tpu.dot_dimension_numbers<[1], [0], [0], [1], [0, 0, 1, 1], [], []>} : vector<512x54xbf16>, vector<54x128xbf16>, vector<512x128xf32> -> vector<512x128xf32>
    %c0_3 = arith.constant 0 : index
    %c0_4 = arith.constant 0 : index
    %3 = vector.load %arg4[%c0_3, %c0_4] : memref<1x128xf32, #tpu.memory_space<vmem>>, vector<1x128xf32>
    %4 = vector.broadcast %3 : vector<1x128xf32> to vector<512x128xf32>
    %5 = arith.addf %2, %4 : vector<512x128xf32>
    %cst_5 = arith.constant 0.000000e+00 : f32
    %6 = vector.broadcast %cst_5 : f32 to vector<512x128xf32>
    %7 = arith.maximumf %5, %6 : vector<512x128xf32>
    %8 = arith.truncf %7 : vector<512x128xf32> to vector<512x128xbf16>
    %c0_6 = arith.constant 0 : index
    %c0_7 = arith.constant 0 : index
    %9 = vector.load %arg5[%c0_6, %c0_7] : memref<512x128xbf16, #tpu.memory_space<vmem>>, vector<512x128xbf16>
    tpu.vector_store %arg5[%c0_6, %c0_7], %8 {strides = array<i32>} : memref<512x128xbf16, #tpu.memory_space<vmem>>, vector<512x128xbf16>,
    return
  }
  func.func @transform_0(%arg0: i32, %arg1: i32) -> (i32, i32) {
    %c0_i32 = arith.constant 0 : i32
    %c0_i32_0 = arith.constant 0 : i32
    return %arg0, %c0_i32 : i32, i32
  }
  func.func @transform_1(%arg0: i32, %arg1: i32) -> (i32, i32) {
    %c0_i32 = arith.constant 0 : i32
    %c0_i32_0 = arith.constant 0 : i32
    return %c0_i32, %arg1 : i32, i32
  }
  func.func @transform_2(%arg0: i32, %arg1: i32) -> (i32, i32) {
    %c0_i32 = arith.constant 0 : i32
    %c0_i32_0 = arith.constant 0 : i32
    return %c0_i32, %arg1 : i32, i32
  }
  func.func @transform_3(%arg0: i32, %arg1: i32) -> (i32, i32) {
    %c0_i32 = arith.constant 0 : i32
    return %arg0, %arg1 : i32, i32
  }
}

module attributes {stable_mosaic.version = 11 : i64} {
  func.func @_gemm_bias_act_kernel(%arg0: i32, %arg1: i32, %arg2: memref<128x288xbf16, #tpu.memory_space<vmem>>, %arg3: memref<288x128xbf16, #tpu.memory_space<vmem>>, %arg4: memref<1x128xf32, #tpu.memory_space<vmem>>, %arg5: memref<128x128xbf16, #tpu.memory_space<vmem>>) attributes {dimension_semantics = [#tpu.dimension_semantics<parallel>, #tpu.dimension_semantics<parallel>], iteration_bounds = array<i64: 1, 1>, scalar_prefetch = 0 : i64, scratch_operands = 0 : i64, tpu.core_type = #tpu.core_type<tc>, window_params = [{transform_indices = @transform_0, window_bounds = array<i64: 128, 288>}, {transform_indices = @transform_1, window_bounds = array<i64: 288, 128>}, {transform_indices = @transform_2, window_bounds = array<i64: 1, 128>}, {transform_indices = @transform_3, window_bounds = array<i64: 128, 128>}]} {
    %c0 = arith.constant 0 : index
    %c0_0 = arith.constant 0 : index
    %0 = vector.load %arg2[%c0, %c0_0] : memref<128x288xbf16, #tpu.memory_space<vmem>>, vector<128x288xbf16>
    %c0_1 = arith.constant 0 : index
    %c0_2 = arith.constant 0 : index
    %1 = vector.load %arg3[%c0_1, %c0_2] : memref<288x128xbf16, #tpu.memory_space<vmem>>, vector<288x128xbf16>
    %cst = arith.constant dense<0.000000e+00> : vector<128x128xf32>
    %2 = tpu.matmul %0, %1, %cst {dimension_numbers = #tpu.dot_dimension_numbers<[1], [0], [0], [1], [0, 0, 1, 1], [], []>} : vector<128x288xbf16>, vector<288x128xbf16>, vector<128x128xf32> -> vector<128x128xf32>
    %c0_3 = arith.constant 0 : index
    %c0_4 = arith.constant 0 : index
    %3 = vector.load %arg4[%c0_3, %c0_4] : memref<1x128xf32, #tpu.memory_space<vmem>>, vector<1x128xf32>
    %4 = vector.broadcast %3 : vector<1x128xf32> to vector<128x128xf32>
    %5 = arith.addf %2, %4 : vector<128x128xf32>
    %cst_5 = arith.constant 0.000000e+00 : f32
    %6 = vector.broadcast %cst_5 : f32 to vector<128x128xf32>
    %7 = arith.maximumf %5, %6 : vector<128x128xf32>
    %8 = arith.truncf %7 : vector<128x128xf32> to vector<128x128xbf16>
    %c0_6 = arith.constant 0 : index
    %c0_7 = arith.constant 0 : index
    %9 = vector.load %arg5[%c0_6, %c0_7] : memref<128x128xbf16, #tpu.memory_space<vmem>>, vector<128x128xbf16>
    tpu.vector_store %arg5[%c0_6, %c0_7], %8 {strides = array<i32>} : memref<128x128xbf16, #tpu.memory_space<vmem>>, vector<128x128xbf16>,
    return
  }
  func.func @transform_0(%arg0: i32, %arg1: i32) -> (i32, i32) {
    %c0_i32 = arith.constant 0 : i32
    %c0_i32_0 = arith.constant 0 : i32
    return %arg0, %c0_i32 : i32, i32
  }
  func.func @transform_1(%arg0: i32, %arg1: i32) -> (i32, i32) {
    %c0_i32 = arith.constant 0 : i32
    %c0_i32_0 = arith.constant 0 : i32
    return %c0_i32, %arg1 : i32, i32
  }
  func.func @transform_2(%arg0: i32, %arg1: i32) -> (i32, i32) {
    %c0_i32 = arith.constant 0 : i32
    %c0_i32_0 = arith.constant 0 : i32
    return %c0_i32, %arg1 : i32, i32
  }
  func.func @transform_3(%arg0: i32, %arg1: i32) -> (i32, i32) {
    %c0_i32 = arith.constant 0 : i32
    return %arg0, %arg1 : i32, i32
  }
}

module attributes {stable_mosaic.version = 11 : i64} {
  func.func @_gemm_bias_act_kernel(%arg0: i32, %arg1: i32, %arg2: memref<32x288xbf16, #tpu.memory_space<vmem>>, %arg3: memref<288x128xbf16, #tpu.memory_space<vmem>>, %arg4: memref<1x128xf32, #tpu.memory_space<vmem>>, %arg5: memref<32x128xbf16, #tpu.memory_space<vmem>>) attributes {dimension_semantics = [#tpu.dimension_semantics<parallel>, #tpu.dimension_semantics<parallel>], iteration_bounds = array<i64: 1, 1>, scalar_prefetch = 0 : i64, scratch_operands = 0 : i64, tpu.core_type = #tpu.core_type<tc>, window_params = [{transform_indices = @transform_0, window_bounds = array<i64: 32, 288>}, {transform_indices = @transform_1, window_bounds = array<i64: 288, 128>}, {transform_indices = @transform_2, window_bounds = array<i64: 1, 128>}, {transform_indices = @transform_3, window_bounds = array<i64: 32, 128>}]} {
    %c0 = arith.constant 0 : index
    %c0_0 = arith.constant 0 : index
    %0 = vector.load %arg2[%c0, %c0_0] : memref<32x288xbf16, #tpu.memory_space<vmem>>, vector<32x288xbf16>
    %c0_1 = arith.constant 0 : index
    %c0_2 = arith.constant 0 : index
    %1 = vector.load %arg3[%c0_1, %c0_2] : memref<288x128xbf16, #tpu.memory_space<vmem>>, vector<288x128xbf16>
    %cst = arith.constant dense<0.000000e+00> : vector<32x128xf32>
    %2 = tpu.matmul %0, %1, %cst {dimension_numbers = #tpu.dot_dimension_numbers<[1], [0], [0], [1], [0, 0, 1, 1], [], []>} : vector<32x288xbf16>, vector<288x128xbf16>, vector<32x128xf32> -> vector<32x128xf32>
    %c0_3 = arith.constant 0 : index
    %c0_4 = arith.constant 0 : index
    %3 = vector.load %arg4[%c0_3, %c0_4] : memref<1x128xf32, #tpu.memory_space<vmem>>, vector<1x128xf32>
    %4 = vector.broadcast %3 : vector<1x128xf32> to vector<32x128xf32>
    %5 = arith.addf %2, %4 : vector<32x128xf32>
    %cst_5 = arith.constant 0.000000e+00 : f32
    %6 = vector.broadcast %cst_5 : f32 to vector<32x128xf32>
    %7 = arith.maximumf %5, %6 : vector<32x128xf32>
    %8 = arith.truncf %7 : vector<32x128xf32> to vector<32x128xbf16>
    %c0_6 = arith.constant 0 : index
    %c0_7 = arith.constant 0 : index
    %9 = vector.load %arg5[%c0_6, %c0_7] : memref<32x128xbf16, #tpu.memory_space<vmem>>, vector<32x128xbf16>
    tpu.vector_store %arg5[%c0_6, %c0_7], %8 {strides = array<i32>} : memref<32x128xbf16, #tpu.memory_space<vmem>>, vector<32x128xbf16>,
    return
  }
  func.func @transform_0(%arg0: i32, %arg1: i32) -> (i32, i32) {
    %c0_i32 = arith.constant 0 : i32
    %c0_i32_0 = arith.constant 0 : i32
    return %arg0, %c0_i32 : i32, i32
  }
  func.func @transform_1(%arg0: i32, %arg1: i32) -> (i32, i32) {
    %c0_i32 = arith.constant 0 : i32
    %c0_i32_0 = arith.constant 0 : i32
    return %c0_i32, %arg1 : i32, i32
  }
  func.func @transform_2(%arg0: i32, %arg1: i32) -> (i32, i32) {
    %c0_i32 = arith.constant 0 : i32
    %c0_i32_0 = arith.constant 0 : i32
    return %c0_i32, %arg1 : i32, i32
  }
  func.func @transform_3(%arg0: i32, %arg1: i32) -> (i32, i32) {
    %c0_i32 = arith.constant 0 : i32
    return %arg0, %arg1 : i32, i32
  }
}

module attributes {stable_mosaic.version = 11 : i64} {
  func.func @_gemm_bias_act_kernel(%arg0: i32, %arg1: i32, %arg2: memref<8x576xbf16, #tpu.memory_space<vmem>>, %arg3: memref<576x128xbf16, #tpu.memory_space<vmem>>, %arg4: memref<1x128xf32, #tpu.memory_space<vmem>>, %arg5: memref<8x128xbf16, #tpu.memory_space<vmem>>) attributes {dimension_semantics = [#tpu.dimension_semantics<parallel>, #tpu.dimension_semantics<parallel>], iteration_bounds = array<i64: 1, 1>, scalar_prefetch = 0 : i64, scratch_operands = 0 : i64, tpu.core_type = #tpu.core_type<tc>, window_params = [{transform_indices = @transform_0, window_bounds = array<i64: 8, 576>}, {transform_indices = @transform_1, window_bounds = array<i64: 576, 128>}, {transform_indices = @transform_2, window_bounds = array<i64: 1, 128>}, {transform_indices = @transform_3, window_bounds = array<i64: 8, 128>}]} {
    %c0 = arith.constant 0 : index
    %c0_0 = arith.constant 0 : index
    %0 = vector.load %arg2[%c0, %c0_0] : memref<8x576xbf16, #tpu.memory_space<vmem>>, vector<8x576xbf16>
    %c0_1 = arith.constant 0 : index
    %c0_2 = arith.constant 0 : index
    %1 = vector.load %arg3[%c0_1, %c0_2] : memref<576x128xbf16, #tpu.memory_space<vmem>>, vector<576x128xbf16>
    %cst = arith.constant dense<0.000000e+00> : vector<8x128xf32>
    %2 = tpu.matmul %0, %1, %cst {dimension_numbers = #tpu.dot_dimension_numbers<[1], [0], [0], [1], [0, 0, 1, 1], [], []>} : vector<8x576xbf16>, vector<576x128xbf16>, vector<8x128xf32> -> vector<8x128xf32>
    %c0_3 = arith.constant 0 : index
    %c0_4 = arith.constant 0 : index
    %3 = vector.load %arg4[%c0_3, %c0_4] : memref<1x128xf32, #tpu.memory_space<vmem>>, vector<1x128xf32>
    %4 = vector.broadcast %3 : vector<1x128xf32> to vector<8x128xf32>
    %5 = arith.addf %2, %4 : vector<8x128xf32>
    %cst_5 = arith.constant 0.000000e+00 : f32
    %6 = vector.broadcast %cst_5 : f32 to vector<8x128xf32>
    %7 = arith.maximumf %5, %6 : vector<8x128xf32>
    %8 = arith.truncf %7 : vector<8x128xf32> to vector<8x128xbf16>
    %c0_6 = arith.constant 0 : index
    %c0_7 = arith.constant 0 : index
    %9 = vector.load %arg5[%c0_6, %c0_7] : memref<8x128xbf16, #tpu.memory_space<vmem>>, vector<8x128xbf16>
    tpu.vector_store %arg5[%c0_6, %c0_7], %8 {strides = array<i32>} : memref<8x128xbf16, #tpu.memory_space<vmem>>, vector<8x128xbf16>,
    return
  }
  func.func @transform_0(%arg0: i32, %arg1: i32) -> (i32, i32) {
    %c0_i32 = arith.constant 0 : i32
    %c0_i32_0 = arith.constant 0 : i32
    return %arg0, %c0_i32 : i32, i32
  }
  func.func @transform_1(%arg0: i32, %arg1: i32) -> (i32, i32) {
    %c0_i32 = arith.constant 0 : i32
    %c0_i32_0 = arith.constant 0 : i32
    return %c0_i32, %arg1 : i32, i32
  }
  func.func @transform_2(%arg0: i32, %arg1: i32) -> (i32, i32) {
    %c0_i32 = arith.constant 0 : i32
    %c0_i32_0 = arith.constant 0 : i32
    return %c0_i32, %arg1 : i32, i32
  }
  func.func @transform_3(%arg0: i32, %arg1: i32) -> (i32, i32) {
    %c0_i32 = arith.constant 0 : i32
    return %arg0, %arg1 : i32, i32
  }
}

module attributes {stable_mosaic.version = 11 : i64} {
  func.func @_gemm_bias_act_kernel(%arg0: i32, %arg1: i32, %arg2: memref<8x1152xbf16, #tpu.memory_space<vmem>>, %arg3: memref<1152x256xbf16, #tpu.memory_space<vmem>>, %arg4: memref<1x256xf32, #tpu.memory_space<vmem>>, %arg5: memref<8x256xbf16, #tpu.memory_space<vmem>>) attributes {dimension_semantics = [#tpu.dimension_semantics<parallel>, #tpu.dimension_semantics<parallel>], iteration_bounds = array<i64: 1, 1>, scalar_prefetch = 0 : i64, scratch_operands = 0 : i64, tpu.core_type = #tpu.core_type<tc>, window_params = [{transform_indices = @transform_0, window_bounds = array<i64: 8, 1152>}, {transform_indices = @transform_1, window_bounds = array<i64: 1152, 256>}, {transform_indices = @transform_2, window_bounds = array<i64: 1, 256>}, {transform_indices = @transform_3, window_bounds = array<i64: 8, 256>}]} {
    %c0 = arith.constant 0 : index
    %c0_0 = arith.constant 0 : index
    %0 = vector.load %arg2[%c0, %c0_0] : memref<8x1152xbf16, #tpu.memory_space<vmem>>, vector<8x1152xbf16>
    %c0_1 = arith.constant 0 : index
    %c0_2 = arith.constant 0 : index
    %1 = vector.load %arg3[%c0_1, %c0_2] : memref<1152x256xbf16, #tpu.memory_space<vmem>>, vector<1152x256xbf16>
    %cst = arith.constant dense<0.000000e+00> : vector<8x256xf32>
    %2 = tpu.matmul %0, %1, %cst {dimension_numbers = #tpu.dot_dimension_numbers<[1], [0], [0], [1], [0, 0, 1, 1], [], []>} : vector<8x1152xbf16>, vector<1152x256xbf16>, vector<8x256xf32> -> vector<8x256xf32>
    %c0_3 = arith.constant 0 : index
    %c0_4 = arith.constant 0 : index
    %3 = vector.load %arg4[%c0_3, %c0_4] : memref<1x256xf32, #tpu.memory_space<vmem>>, vector<1x256xf32>
    %4 = vector.broadcast %3 : vector<1x256xf32> to vector<8x256xf32>
    %5 = arith.addf %2, %4 : vector<8x256xf32>
    %cst_5 = arith.constant 0.000000e+00 : f32
    %6 = vector.broadcast %cst_5 : f32 to vector<8x256xf32>
    %7 = arith.maximumf %5, %6 : vector<8x256xf32>
    %8 = arith.truncf %7 : vector<8x256xf32> to vector<8x256xbf16>
    %c0_6 = arith.constant 0 : index
    %c0_7 = arith.constant 0 : index
    %9 = vector.load %arg5[%c0_6, %c0_7] : memref<8x256xbf16, #tpu.memory_space<vmem>>, vector<8x256xbf16>
    tpu.vector_store %arg5[%c0_6, %c0_7], %8 {strides = array<i32>} : memref<8x256xbf16, #tpu.memory_space<vmem>>, vector<8x256xbf16>,
    return
  }
  func.func @transform_0(%arg0: i32, %arg1: i32) -> (i32, i32) {
    %c0_i32 = arith.constant 0 : i32
    %c0_i32_0 = arith.constant 0 : i32
    return %arg0, %c0_i32 : i32, i32
  }
  func.func @transform_1(%arg0: i32, %arg1: i32) -> (i32, i32) {
    %c0_i32 = arith.constant 0 : i32
    %c0_i32_0 = arith.constant 0 : i32
    return %c0_i32, %arg1 : i32, i32
  }
  func.func @transform_2(%arg0: i32, %arg1: i32) -> (i32, i32) {
    %c0_i32 = arith.constant 0 : i32
    %c0_i32_0 = arith.constant 0 : i32
    return %c0_i32, %arg1 : i32, i32
  }
  func.func @transform_3(%arg0: i32, %arg1: i32) -> (i32, i32) {
    %c0_i32 = arith.constant 0 : i32
    return %arg0, %arg1 : i32, i32
  }
}

module attributes {stable_mosaic.version = 11 : i64} {
  func.func @_gemm_bias_act_kernel(%arg0: i32, %arg1: i32, %arg2: memref<8x1024xbf16, #tpu.memory_space<vmem>>, %arg3: memref<1024x128xbf16, #tpu.memory_space<vmem>>, %arg4: memref<1x128xf32, #tpu.memory_space<vmem>>, %arg5: memref<8x128xbf16, #tpu.memory_space<vmem>>) attributes {dimension_semantics = [#tpu.dimension_semantics<parallel>, #tpu.dimension_semantics<parallel>], iteration_bounds = array<i64: 1, 1>, scalar_prefetch = 0 : i64, scratch_operands = 0 : i64, tpu.core_type = #tpu.core_type<tc>, window_params = [{transform_indices = @transform_0, window_bounds = array<i64: 8, 1024>}, {transform_indices = @transform_1, window_bounds = array<i64: 1024, 128>}, {transform_indices = @transform_2, window_bounds = array<i64: 1, 128>}, {transform_indices = @transform_3, window_bounds = array<i64: 8, 128>}]} {
    %c0 = arith.constant 0 : index
    %c0_0 = arith.constant 0 : index
    %0 = vector.load %arg2[%c0, %c0_0] : memref<8x1024xbf16, #tpu.memory_space<vmem>>, vector<8x1024xbf16>
    %c0_1 = arith.constant 0 : index
    %c0_2 = arith.constant 0 : index
    %1 = vector.load %arg3[%c0_1, %c0_2] : memref<1024x128xbf16, #tpu.memory_space<vmem>>, vector<1024x128xbf16>
    %cst = arith.constant dense<0.000000e+00> : vector<8x128xf32>
    %2 = tpu.matmul %0, %1, %cst {dimension_numbers = #tpu.dot_dimension_numbers<[1], [0], [0], [1], [0, 0, 1, 1], [], []>} : vector<8x1024xbf16>, vector<1024x128xbf16>, vector<8x128xf32> -> vector<8x128xf32>
    %c0_3 = arith.constant 0 : index
    %c0_4 = arith.constant 0 : index
    %3 = vector.load %arg4[%c0_3, %c0_4] : memref<1x128xf32, #tpu.memory_space<vmem>>, vector<1x128xf32>
    %4 = vector.broadcast %3 : vector<1x128xf32> to vector<8x128xf32>
    %5 = arith.addf %2, %4 : vector<8x128xf32>
    %cst_5 = arith.constant 0.000000e+00 : f32
    %6 = vector.broadcast %cst_5 : f32 to vector<8x128xf32>
    %7 = arith.maximumf %5, %6 : vector<8x128xf32>
    %8 = arith.truncf %7 : vector<8x128xf32> to vector<8x128xbf16>
    %c0_6 = arith.constant 0 : index
    %c0_7 = arith.constant 0 : index
    %9 = vector.load %arg5[%c0_6, %c0_7] : memref<8x128xbf16, #tpu.memory_space<vmem>>, vector<8x128xbf16>
    tpu.vector_store %arg5[%c0_6, %c0_7], %8 {strides = array<i32>} : memref<8x128xbf16, #tpu.memory_space<vmem>>, vector<8x128xbf16>,
    return
  }
  func.func @transform_0(%arg0: i32, %arg1: i32) -> (i32, i32) {
    %c0_i32 = arith.constant 0 : i32
    %c0_i32_0 = arith.constant 0 : i32
    return %arg0, %c0_i32 : i32, i32
  }
  func.func @transform_1(%arg0: i32, %arg1: i32) -> (i32, i32) {
    %c0_i32 = arith.constant 0 : i32
    %c0_i32_0 = arith.constant 0 : i32
    return %c0_i32, %arg1 : i32, i32
  }
  func.func @transform_2(%arg0: i32, %arg1: i32) -> (i32, i32) {
    %c0_i32 = arith.constant 0 : i32
    %c0_i32_0 = arith.constant 0 : i32
    return %c0_i32, %arg1 : i32, i32
  }
  func.func @transform_3(%arg0: i32, %arg1: i32) -> (i32, i32) {
    %c0_i32 = arith.constant 0 : i32
    return %arg0, %arg1 : i32, i32
  }
}

module attributes {stable_mosaic.version = 11 : i64} {
  func.func @_gemm_bias_act_kernel(%arg0: i32, %arg1: i32, %arg2: memref<8x2304xbf16, #tpu.memory_space<vmem>>, %arg3: memref<2304x128xbf16, #tpu.memory_space<vmem>>, %arg4: memref<1x128xf32, #tpu.memory_space<vmem>>, %arg5: memref<8x128xbf16, #tpu.memory_space<vmem>>) attributes {dimension_semantics = [#tpu.dimension_semantics<parallel>, #tpu.dimension_semantics<parallel>], iteration_bounds = array<i64: 1, 1>, scalar_prefetch = 0 : i64, scratch_operands = 0 : i64, tpu.core_type = #tpu.core_type<tc>, window_params = [{transform_indices = @transform_0, window_bounds = array<i64: 8, 2304>}, {transform_indices = @transform_1, window_bounds = array<i64: 2304, 128>}, {transform_indices = @transform_2, window_bounds = array<i64: 1, 128>}, {transform_indices = @transform_3, window_bounds = array<i64: 8, 128>}]} {
    %c0 = arith.constant 0 : index
    %c0_0 = arith.constant 0 : index
    %0 = vector.load %arg2[%c0, %c0_0] : memref<8x2304xbf16, #tpu.memory_space<vmem>>, vector<8x2304xbf16>
    %c0_1 = arith.constant 0 : index
    %c0_2 = arith.constant 0 : index
    %1 = vector.load %arg3[%c0_1, %c0_2] : memref<2304x128xbf16, #tpu.memory_space<vmem>>, vector<2304x128xbf16>
    %cst = arith.constant dense<0.000000e+00> : vector<8x128xf32>
    %2 = tpu.matmul %0, %1, %cst {dimension_numbers = #tpu.dot_dimension_numbers<[1], [0], [0], [1], [0, 0, 1, 1], [], []>} : vector<8x2304xbf16>, vector<2304x128xbf16>, vector<8x128xf32> -> vector<8x128xf32>
    %c0_3 = arith.constant 0 : index
    %c0_4 = arith.constant 0 : index
    %3 = vector.load %arg4[%c0_3, %c0_4] : memref<1x128xf32, #tpu.memory_space<vmem>>, vector<1x128xf32>
    %4 = vector.broadcast %3 : vector<1x128xf32> to vector<8x128xf32>
    %5 = arith.addf %2, %4 : vector<8x128xf32>
    %cst_5 = arith.constant 0.000000e+00 : f32
    %6 = vector.broadcast %cst_5 : f32 to vector<8x128xf32>
    %7 = arith.maximumf %5, %6 : vector<8x128xf32>
    %8 = arith.truncf %7 : vector<8x128xf32> to vector<8x128xbf16>
    %c0_6 = arith.constant 0 : index
    %c0_7 = arith.constant 0 : index
    %9 = vector.load %arg5[%c0_6, %c0_7] : memref<8x128xbf16, #tpu.memory_space<vmem>>, vector<8x128xbf16>
    tpu.vector_store %arg5[%c0_6, %c0_7], %8 {strides = array<i32>} : memref<8x128xbf16, #tpu.memory_space<vmem>>, vector<8x128xbf16>,
    return
  }
  func.func @transform_0(%arg0: i32, %arg1: i32) -> (i32, i32) {
    %c0_i32 = arith.constant 0 : i32
    %c0_i32_0 = arith.constant 0 : i32
    return %arg0, %c0_i32 : i32, i32
  }
  func.func @transform_1(%arg0: i32, %arg1: i32) -> (i32, i32) {
    %c0_i32 = arith.constant 0 : i32
    %c0_i32_0 = arith.constant 0 : i32
    return %c0_i32, %arg1 : i32, i32
  }
  func.func @transform_2(%arg0: i32, %arg1: i32) -> (i32, i32) {
    %c0_i32 = arith.constant 0 : i32
    %c0_i32_0 = arith.constant 0 : i32
    return %c0_i32, %arg1 : i32, i32
  }
  func.func @transform_3(%arg0: i32, %arg1: i32) -> (i32, i32) {
    %c0_i32 = arith.constant 0 : i32
    return %arg0, %arg1 : i32, i32
  }
}

module attributes {stable_mosaic.version = 11 : i64} {
  func.func @_gemm_bias_act_kernel(%arg0: i32, %arg1: i32, %arg2: memref<32x512xbf16, #tpu.memory_space<vmem>>, %arg3: memref<512x128xbf16, #tpu.memory_space<vmem>>, %arg4: memref<1x128xf32, #tpu.memory_space<vmem>>, %arg5: memref<32x128xbf16, #tpu.memory_space<vmem>>) attributes {dimension_semantics = [#tpu.dimension_semantics<parallel>, #tpu.dimension_semantics<parallel>], iteration_bounds = array<i64: 1, 1>, scalar_prefetch = 0 : i64, scratch_operands = 0 : i64, tpu.core_type = #tpu.core_type<tc>, window_params = [{transform_indices = @transform_0, window_bounds = array<i64: 32, 512>}, {transform_indices = @transform_1, window_bounds = array<i64: 512, 128>}, {transform_indices = @transform_2, window_bounds = array<i64: 1, 128>}, {transform_indices = @transform_3, window_bounds = array<i64: 32, 128>}]} {
    %c0 = arith.constant 0 : index
    %c0_0 = arith.constant 0 : index
    %0 = vector.load %arg2[%c0, %c0_0] : memref<32x512xbf16, #tpu.memory_space<vmem>>, vector<32x512xbf16>
    %c0_1 = arith.constant 0 : index
    %c0_2 = arith.constant 0 : index
    %1 = vector.load %arg3[%c0_1, %c0_2] : memref<512x128xbf16, #tpu.memory_space<vmem>>, vector<512x128xbf16>
    %cst = arith.constant dense<0.000000e+00> : vector<32x128xf32>
    %2 = tpu.matmul %0, %1, %cst {dimension_numbers = #tpu.dot_dimension_numbers<[1], [0], [0], [1], [0, 0, 1, 1], [], []>} : vector<32x512xbf16>, vector<512x128xbf16>, vector<32x128xf32> -> vector<32x128xf32>
    %c0_3 = arith.constant 0 : index
    %c0_4 = arith.constant 0 : index
    %3 = vector.load %arg4[%c0_3, %c0_4] : memref<1x128xf32, #tpu.memory_space<vmem>>, vector<1x128xf32>
    %4 = vector.broadcast %3 : vector<1x128xf32> to vector<32x128xf32>
    %5 = arith.addf %2, %4 : vector<32x128xf32>
    %cst_5 = arith.constant 0.000000e+00 : f32
    %6 = vector.broadcast %cst_5 : f32 to vector<32x128xf32>
    %7 = arith.maximumf %5, %6 : vector<32x128xf32>
    %8 = arith.truncf %7 : vector<32x128xf32> to vector<32x128xbf16>
    %c0_6 = arith.constant 0 : index
    %c0_7 = arith.constant 0 : index
    %9 = vector.load %arg5[%c0_6, %c0_7] : memref<32x128xbf16, #tpu.memory_space<vmem>>, vector<32x128xbf16>
    tpu.vector_store %arg5[%c0_6, %c0_7], %8 {strides = array<i32>} : memref<32x128xbf16, #tpu.memory_space<vmem>>, vector<32x128xbf16>,
    return
  }
  func.func @transform_0(%arg0: i32, %arg1: i32) -> (i32, i32) {
    %c0_i32 = arith.constant 0 : i32
    %c0_i32_0 = arith.constant 0 : i32
    return %arg0, %c0_i32 : i32, i32
  }
  func.func @transform_1(%arg0: i32, %arg1: i32) -> (i32, i32) {
    %c0_i32 = arith.constant 0 : i32
    %c0_i32_0 = arith.constant 0 : i32
    return %c0_i32, %arg1 : i32, i32
  }
  func.func @transform_2(%arg0: i32, %arg1: i32) -> (i32, i32) {
    %c0_i32 = arith.constant 0 : i32
    %c0_i32_0 = arith.constant 0 : i32
    return %c0_i32, %arg1 : i32, i32
  }
  func.func @transform_3(%arg0: i32, %arg1: i32) -> (i32, i32) {
    %c0_i32 = arith.constant 0 : i32
    return %arg0, %arg1 : i32, i32
  }
}

module attributes {stable_mosaic.version = 11 : i64} {
  func.func @_gemm_bias_act_kernel(%arg0: i32, %arg1: i32, %arg2: memref<32x1152xbf16, #tpu.memory_space<vmem>>, %arg3: memref<1152x128xbf16, #tpu.memory_space<vmem>>, %arg4: memref<1x128xf32, #tpu.memory_space<vmem>>, %arg5: memref<32x128xbf16, #tpu.memory_space<vmem>>) attributes {dimension_semantics = [#tpu.dimension_semantics<parallel>, #tpu.dimension_semantics<parallel>], iteration_bounds = array<i64: 1, 1>, scalar_prefetch = 0 : i64, scratch_operands = 0 : i64, tpu.core_type = #tpu.core_type<tc>, window_params = [{transform_indices = @transform_0, window_bounds = array<i64: 32, 1152>}, {transform_indices = @transform_1, window_bounds = array<i64: 1152, 128>}, {transform_indices = @transform_2, window_bounds = array<i64: 1, 128>}, {transform_indices = @transform_3, window_bounds = array<i64: 32, 128>}]} {
    %c0 = arith.constant 0 : index
    %c0_0 = arith.constant 0 : index
    %0 = vector.load %arg2[%c0, %c0_0] : memref<32x1152xbf16, #tpu.memory_space<vmem>>, vector<32x1152xbf16>
    %c0_1 = arith.constant 0 : index
    %c0_2 = arith.constant 0 : index
    %1 = vector.load %arg3[%c0_1, %c0_2] : memref<1152x128xbf16, #tpu.memory_space<vmem>>, vector<1152x128xbf16>
    %cst = arith.constant dense<0.000000e+00> : vector<32x128xf32>
    %2 = tpu.matmul %0, %1, %cst {dimension_numbers = #tpu.dot_dimension_numbers<[1], [0], [0], [1], [0, 0, 1, 1], [], []>} : vector<32x1152xbf16>, vector<1152x128xbf16>, vector<32x128xf32> -> vector<32x128xf32>
    %c0_3 = arith.constant 0 : index
    %c0_4 = arith.constant 0 : index
    %3 = vector.load %arg4[%c0_3, %c0_4] : memref<1x128xf32, #tpu.memory_space<vmem>>, vector<1x128xf32>
    %4 = vector.broadcast %3 : vector<1x128xf32> to vector<32x128xf32>
    %5 = arith.addf %2, %4 : vector<32x128xf32>
    %cst_5 = arith.constant 0.000000e+00 : f32
    %6 = vector.broadcast %cst_5 : f32 to vector<32x128xf32>
    %7 = arith.maximumf %5, %6 : vector<32x128xf32>
    %8 = arith.truncf %7 : vector<32x128xf32> to vector<32x128xbf16>
    %c0_6 = arith.constant 0 : index
    %c0_7 = arith.constant 0 : index
    %9 = vector.load %arg5[%c0_6, %c0_7] : memref<32x128xbf16, #tpu.memory_space<vmem>>, vector<32x128xbf16>
    tpu.vector_store %arg5[%c0_6, %c0_7], %8 {strides = array<i32>} : memref<32x128xbf16, #tpu.memory_space<vmem>>, vector<32x128xbf16>,
    return
  }
  func.func @transform_0(%arg0: i32, %arg1: i32) -> (i32, i32) {
    %c0_i32 = arith.constant 0 : i32
    %c0_i32_0 = arith.constant 0 : i32
    return %arg0, %c0_i32 : i32, i32
  }
  func.func @transform_1(%arg0: i32, %arg1: i32) -> (i32, i32) {
    %c0_i32 = arith.constant 0 : i32
    %c0_i32_0 = arith.constant 0 : i32
    return %c0_i32, %arg1 : i32, i32
  }
  func.func @transform_2(%arg0: i32, %arg1: i32) -> (i32, i32) {
    %c0_i32 = arith.constant 0 : i32
    %c0_i32_0 = arith.constant 0 : i32
    return %c0_i32, %arg1 : i32, i32
  }
  func.func @transform_3(%arg0: i32, %arg1: i32) -> (i32, i32) {
    %c0_i32 = arith.constant 0 : i32
    return %arg0, %arg1 : i32, i32
  }
}

module attributes {stable_mosaic.version = 11 : i64} {
  func.func @_gemm_bias_act_kernel(%arg0: i32, %arg1: i32, %arg2: memref<128x256xbf16, #tpu.memory_space<vmem>>, %arg3: memref<256x128xbf16, #tpu.memory_space<vmem>>, %arg4: memref<1x128xf32, #tpu.memory_space<vmem>>, %arg5: memref<128x128xbf16, #tpu.memory_space<vmem>>) attributes {dimension_semantics = [#tpu.dimension_semantics<parallel>, #tpu.dimension_semantics<parallel>], iteration_bounds = array<i64: 1, 1>, scalar_prefetch = 0 : i64, scratch_operands = 0 : i64, tpu.core_type = #tpu.core_type<tc>, window_params = [{transform_indices = @transform_0, window_bounds = array<i64: 128, 256>}, {transform_indices = @transform_1, window_bounds = array<i64: 256, 128>}, {transform_indices = @transform_2, window_bounds = array<i64: 1, 128>}, {transform_indices = @transform_3, window_bounds = array<i64: 128, 128>}]} {
    %c0 = arith.constant 0 : index
    %c0_0 = arith.constant 0 : index
    %0 = vector.load %arg2[%c0, %c0_0] : memref<128x256xbf16, #tpu.memory_space<vmem>>, vector<128x256xbf16>
    %c0_1 = arith.constant 0 : index
    %c0_2 = arith.constant 0 : index
    %1 = vector.load %arg3[%c0_1, %c0_2] : memref<256x128xbf16, #tpu.memory_space<vmem>>, vector<256x128xbf16>
    %cst = arith.constant dense<0.000000e+00> : vector<128x128xf32>
    %2 = tpu.matmul %0, %1, %cst {dimension_numbers = #tpu.dot_dimension_numbers<[1], [0], [0], [1], [0, 0, 1, 1], [], []>} : vector<128x256xbf16>, vector<256x128xbf16>, vector<128x128xf32> -> vector<128x128xf32>
    %c0_3 = arith.constant 0 : index
    %c0_4 = arith.constant 0 : index
    %3 = vector.load %arg4[%c0_3, %c0_4] : memref<1x128xf32, #tpu.memory_space<vmem>>, vector<1x128xf32>
    %4 = vector.broadcast %3 : vector<1x128xf32> to vector<128x128xf32>
    %5 = arith.addf %2, %4 : vector<128x128xf32>
    %cst_5 = arith.constant 0.000000e+00 : f32
    %6 = vector.broadcast %cst_5 : f32 to vector<128x128xf32>
    %7 = arith.maximumf %5, %6 : vector<128x128xf32>
    %8 = arith.truncf %7 : vector<128x128xf32> to vector<128x128xbf16>
    %c0_6 = arith.constant 0 : index
    %c0_7 = arith.constant 0 : index
    %9 = vector.load %arg5[%c0_6, %c0_7] : memref<128x128xbf16, #tpu.memory_space<vmem>>, vector<128x128xbf16>
    tpu.vector_store %arg5[%c0_6, %c0_7], %8 {strides = array<i32>} : memref<128x128xbf16, #tpu.memory_space<vmem>>, vector<128x128xbf16>,
    return
  }
  func.func @transform_0(%arg0: i32, %arg1: i32) -> (i32, i32) {
    %c0_i32 = arith.constant 0 : i32
    %c0_i32_0 = arith.constant 0 : i32
    return %arg0, %c0_i32 : i32, i32
  }
  func.func @transform_1(%arg0: i32, %arg1: i32) -> (i32, i32) {
    %c0_i32 = arith.constant 0 : i32
    %c0_i32_0 = arith.constant 0 : i32
    return %c0_i32, %arg1 : i32, i32
  }
  func.func @transform_2(%arg0: i32, %arg1: i32) -> (i32, i32) {
    %c0_i32 = arith.constant 0 : i32
    %c0_i32_0 = arith.constant 0 : i32
    return %c0_i32, %arg1 : i32, i32
  }
  func.func @transform_3(%arg0: i32, %arg1: i32) -> (i32, i32) {
    %c0_i32 = arith.constant 0 : i32
    return %arg0, %arg1 : i32, i32
  }
}

module attributes {stable_mosaic.version = 11 : i64} {
  func.func @_gemm_bias_act_kernel(%arg0: i32, %arg1: i32, %arg2: memref<128x576xbf16, #tpu.memory_space<vmem>>, %arg3: memref<576x128xbf16, #tpu.memory_space<vmem>>, %arg4: memref<1x128xf32, #tpu.memory_space<vmem>>, %arg5: memref<128x128xbf16, #tpu.memory_space<vmem>>) attributes {dimension_semantics = [#tpu.dimension_semantics<parallel>, #tpu.dimension_semantics<parallel>], iteration_bounds = array<i64: 1, 1>, scalar_prefetch = 0 : i64, scratch_operands = 0 : i64, tpu.core_type = #tpu.core_type<tc>, window_params = [{transform_indices = @transform_0, window_bounds = array<i64: 128, 576>}, {transform_indices = @transform_1, window_bounds = array<i64: 576, 128>}, {transform_indices = @transform_2, window_bounds = array<i64: 1, 128>}, {transform_indices = @transform_3, window_bounds = array<i64: 128, 128>}]} {
    %c0 = arith.constant 0 : index
    %c0_0 = arith.constant 0 : index
    %0 = vector.load %arg2[%c0, %c0_0] : memref<128x576xbf16, #tpu.memory_space<vmem>>, vector<128x576xbf16>
    %c0_1 = arith.constant 0 : index
    %c0_2 = arith.constant 0 : index
    %1 = vector.load %arg3[%c0_1, %c0_2] : memref<576x128xbf16, #tpu.memory_space<vmem>>, vector<576x128xbf16>
    %cst = arith.constant dense<0.000000e+00> : vector<128x128xf32>
    %2 = tpu.matmul %0, %1, %cst {dimension_numbers = #tpu.dot_dimension_numbers<[1], [0], [0], [1], [0, 0, 1, 1], [], []>} : vector<128x576xbf16>, vector<576x128xbf16>, vector<128x128xf32> -> vector<128x128xf32>
    %c0_3 = arith.constant 0 : index
    %c0_4 = arith.constant 0 : index
    %3 = vector.load %arg4[%c0_3, %c0_4] : memref<1x128xf32, #tpu.memory_space<vmem>>, vector<1x128xf32>
    %4 = vector.broadcast %3 : vector<1x128xf32> to vector<128x128xf32>
    %5 = arith.addf %2, %4 : vector<128x128xf32>
    %cst_5 = arith.constant 0.000000e+00 : f32
    %6 = vector.broadcast %cst_5 : f32 to vector<128x128xf32>
    %7 = arith.maximumf %5, %6 : vector<128x128xf32>
    %8 = arith.truncf %7 : vector<128x128xf32> to vector<128x128xbf16>
    %c0_6 = arith.constant 0 : index
    %c0_7 = arith.constant 0 : index
    %9 = vector.load %arg5[%c0_6, %c0_7] : memref<128x128xbf16, #tpu.memory_space<vmem>>, vector<128x128xbf16>
    tpu.vector_store %arg5[%c0_6, %c0_7], %8 {strides = array<i32>} : memref<128x128xbf16, #tpu.memory_space<vmem>>, vector<128x128xbf16>,
    return
  }
  func.func @transform_0(%arg0: i32, %arg1: i32) -> (i32, i32) {
    %c0_i32 = arith.constant 0 : i32
    %c0_i32_0 = arith.constant 0 : i32
    return %arg0, %c0_i32 : i32, i32
  }
  func.func @transform_1(%arg0: i32, %arg1: i32) -> (i32, i32) {
    %c0_i32 = arith.constant 0 : i32
    %c0_i32_0 = arith.constant 0 : i32
    return %c0_i32, %arg1 : i32, i32
  }
  func.func @transform_2(%arg0: i32, %arg1: i32) -> (i32, i32) {
    %c0_i32 = arith.constant 0 : i32
    %c0_i32_0 = arith.constant 0 : i32
    return %c0_i32, %arg1 : i32, i32
  }
  func.func @transform_3(%arg0: i32, %arg1: i32) -> (i32, i32) {
    %c0_i32 = arith.constant 0 : i32
    return %arg0, %arg1 : i32, i32
  }
}

module attributes {stable_mosaic.version = 11 : i64} {
  func.func @_gemm_bias_act_kernel(%arg0: i32, %arg1: i32, %arg2: memref<512x128xbf16, #tpu.memory_space<vmem>>, %arg3: memref<128x128xbf16, #tpu.memory_space<vmem>>, %arg4: memref<1x128xf32, #tpu.memory_space<vmem>>, %arg5: memref<512x128xbf16, #tpu.memory_space<vmem>>) attributes {dimension_semantics = [#tpu.dimension_semantics<parallel>, #tpu.dimension_semantics<parallel>], iteration_bounds = array<i64: 1, 1>, scalar_prefetch = 0 : i64, scratch_operands = 0 : i64, tpu.core_type = #tpu.core_type<tc>, window_params = [{transform_indices = @transform_0, window_bounds = array<i64: 512, 128>}, {transform_indices = @transform_1, window_bounds = array<i64: 128, 128>}, {transform_indices = @transform_2, window_bounds = array<i64: 1, 128>}, {transform_indices = @transform_3, window_bounds = array<i64: 512, 128>}]} {
    %c0 = arith.constant 0 : index
    %c0_0 = arith.constant 0 : index
    %0 = vector.load %arg2[%c0, %c0_0] : memref<512x128xbf16, #tpu.memory_space<vmem>>, vector<512x128xbf16>
    %c0_1 = arith.constant 0 : index
    %c0_2 = arith.constant 0 : index
    %1 = vector.load %arg3[%c0_1, %c0_2] : memref<128x128xbf16, #tpu.memory_space<vmem>>, vector<128x128xbf16>
    %cst = arith.constant dense<0.000000e+00> : vector<512x128xf32>
    %2 = tpu.matmul %0, %1, %cst {dimension_numbers = #tpu.dot_dimension_numbers<[1], [0], [0], [1], [0, 0, 1, 1], [], []>} : vector<512x128xbf16>, vector<128x128xbf16>, vector<512x128xf32> -> vector<512x128xf32>
    %c0_3 = arith.constant 0 : index
    %c0_4 = arith.constant 0 : index
    %3 = vector.load %arg4[%c0_3, %c0_4] : memref<1x128xf32, #tpu.memory_space<vmem>>, vector<1x128xf32>
    %4 = vector.broadcast %3 : vector<1x128xf32> to vector<512x128xf32>
    %5 = arith.addf %2, %4 : vector<512x128xf32>
    %cst_5 = arith.constant 0.000000e+00 : f32
    %6 = vector.broadcast %cst_5 : f32 to vector<512x128xf32>
    %7 = arith.maximumf %5, %6 : vector<512x128xf32>
    %8 = arith.truncf %7 : vector<512x128xf32> to vector<512x128xbf16>
    %c0_6 = arith.constant 0 : index
    %c0_7 = arith.constant 0 : index
    %9 = vector.load %arg5[%c0_6, %c0_7] : memref<512x128xbf16, #tpu.memory_space<vmem>>, vector<512x128xbf16>
    tpu.vector_store %arg5[%c0_6, %c0_7], %8 {strides = array<i32>} : memref<512x128xbf16, #tpu.memory_space<vmem>>, vector<512x128xbf16>,
    return
  }
  func.func @transform_0(%arg0: i32, %arg1: i32) -> (i32, i32) {
    %c0_i32 = arith.constant 0 : i32
    %c0_i32_0 = arith.constant 0 : i32
    return %arg0, %c0_i32 : i32, i32
  }
  func.func @transform_1(%arg0: i32, %arg1: i32) -> (i32, i32) {
    %c0_i32 = arith.constant 0 : i32
    %c0_i32_0 = arith.constant 0 : i32
    return %c0_i32, %arg1 : i32, i32
  }
  func.func @transform_2(%arg0: i32, %arg1: i32) -> (i32, i32) {
    %c0_i32 = arith.constant 0 : i32
    %c0_i32_0 = arith.constant 0 : i32
    return %c0_i32, %arg1 : i32, i32
  }
  func.func @transform_3(%arg0: i32, %arg1: i32) -> (i32, i32) {
    %c0_i32 = arith.constant 0 : i32
    return %arg0, %arg1 : i32, i32
  }
}

module attributes {stable_mosaic.version = 11 : i64} {
  func.func @_gemm_bias_act_kernel(%arg0: i32, %arg1: i32, %arg2: memref<512x630xbf16, #tpu.memory_space<vmem>>, %arg3: memref<630x128xbf16, #tpu.memory_space<vmem>>, %arg4: memref<1x128xf32, #tpu.memory_space<vmem>>, %arg5: memref<512x128xbf16, #tpu.memory_space<vmem>>) attributes {dimension_semantics = [#tpu.dimension_semantics<parallel>, #tpu.dimension_semantics<parallel>], iteration_bounds = array<i64: 1, 1>, scalar_prefetch = 0 : i64, scratch_operands = 0 : i64, tpu.core_type = #tpu.core_type<tc>, window_params = [{transform_indices = @transform_0, window_bounds = array<i64: 512, 630>}, {transform_indices = @transform_1, window_bounds = array<i64: 630, 128>}, {transform_indices = @transform_2, window_bounds = array<i64: 1, 128>}, {transform_indices = @transform_3, window_bounds = array<i64: 512, 128>}]} {
    %c0 = arith.constant 0 : index
    %c0_0 = arith.constant 0 : index
    %0 = vector.load %arg2[%c0, %c0_0] : memref<512x630xbf16, #tpu.memory_space<vmem>>, vector<512x630xbf16>
    %c0_1 = arith.constant 0 : index
    %c0_2 = arith.constant 0 : index
    %1 = vector.load %arg3[%c0_1, %c0_2] : memref<630x128xbf16, #tpu.memory_space<vmem>>, vector<630x128xbf16>
    %cst = arith.constant dense<0.000000e+00> : vector<512x128xf32>
    %2 = tpu.matmul %0, %1, %cst {dimension_numbers = #tpu.dot_dimension_numbers<[1], [0], [0], [1], [0, 0, 1, 1], [], []>} : vector<512x630xbf16>, vector<630x128xbf16>, vector<512x128xf32> -> vector<512x128xf32>
    %c0_3 = arith.constant 0 : index
    %c0_4 = arith.constant 0 : index
    %3 = vector.load %arg4[%c0_3, %c0_4] : memref<1x128xf32, #tpu.memory_space<vmem>>, vector<1x128xf32>
    %4 = vector.broadcast %3 : vector<1x128xf32> to vector<512x128xf32>
    %5 = arith.addf %2, %4 : vector<512x128xf32>
    %cst_5 = arith.constant 0.000000e+00 : f32
    %6 = vector.broadcast %cst_5 : f32 to vector<512x128xf32>
    %7 = arith.maximumf %5, %6 : vector<512x128xf32>
    %8 = arith.truncf %7 : vector<512x128xf32> to vector<512x128xbf16>
    %c0_6 = arith.constant 0 : index
    %c0_7 = arith.constant 0 : index
    %9 = vector.load %arg5[%c0_6, %c0_7] : memref<512x128xbf16, #tpu.memory_space<vmem>>, vector<512x128xbf16>
    tpu.vector_store %arg5[%c0_6, %c0_7], %8 {strides = array<i32>} : memref<512x128xbf16, #tpu.memory_space<vmem>>, vector<512x128xbf16>,
    return
  }
  func.func @transform_0(%arg0: i32, %arg1: i32) -> (i32, i32) {
    %c0_i32 = arith.constant 0 : i32
    %c0_i32_0 = arith.constant 0 : i32
    return %arg0, %c0_i32 : i32, i32
  }
  func.func @transform_1(%arg0: i32, %arg1: i32) -> (i32, i32) {
    %c0_i32 = arith.constant 0 : i32
    %c0_i32_0 = arith.constant 0 : i32
    return %c0_i32, %arg1 : i32, i32
  }
  func.func @transform_2(%arg0: i32, %arg1: i32) -> (i32, i32) {
    %c0_i32 = arith.constant 0 : i32
    %c0_i32_0 = arith.constant 0 : i32
    return %c0_i32, %arg1 : i32, i32
  }
  func.func @transform_3(%arg0: i32, %arg1: i32) -> (i32, i32) {
    %c0_i32 = arith.constant 0 : i32
    return %arg0, %arg1 : i32, i32
  }
}

module attributes {stable_mosaic.version = 11 : i64} {
  func.func @_gemm_bias_act_kernel(%arg0: i32, %arg1: i32, %arg2: memref<512x32xbf16, #tpu.memory_space<vmem>>, %arg3: memref<32x128xbf16, #tpu.memory_space<vmem>>, %arg4: memref<1x128xf32, #tpu.memory_space<vmem>>, %arg5: memref<512x128xf32, #tpu.memory_space<vmem>>) attributes {dimension_semantics = [#tpu.dimension_semantics<parallel>, #tpu.dimension_semantics<parallel>], iteration_bounds = array<i64: 1, 1>, scalar_prefetch = 0 : i64, scratch_operands = 0 : i64, tpu.core_type = #tpu.core_type<tc>, window_params = [{transform_indices = @transform_0, window_bounds = array<i64: 512, 32>}, {transform_indices = @transform_1, window_bounds = array<i64: 32, 128>}, {transform_indices = @transform_2, window_bounds = array<i64: 1, 128>}, {transform_indices = @transform_3, window_bounds = array<i64: 512, 128>}]} {
    %c0 = arith.constant 0 : index
    %c0_0 = arith.constant 0 : index
    %0 = vector.load %arg2[%c0, %c0_0] : memref<512x32xbf16, #tpu.memory_space<vmem>>, vector<512x32xbf16>
    %c0_1 = arith.constant 0 : index
    %c0_2 = arith.constant 0 : index
    %1 = vector.load %arg3[%c0_1, %c0_2] : memref<32x128xbf16, #tpu.memory_space<vmem>>, vector<32x128xbf16>
    %cst = arith.constant dense<0.000000e+00> : vector<512x128xf32>
    %2 = tpu.matmul %0, %1, %cst {dimension_numbers = #tpu.dot_dimension_numbers<[1], [0], [0], [1], [0, 0, 1, 1], [], []>} : vector<512x32xbf16>, vector<32x128xbf16>, vector<512x128xf32> -> vector<512x128xf32>
    %c0_3 = arith.constant 0 : index
    %c0_4 = arith.constant 0 : index
    %3 = vector.load %arg4[%c0_3, %c0_4] : memref<1x128xf32, #tpu.memory_space<vmem>>, vector<1x128xf32>
    %4 = vector.broadcast %3 : vector<1x128xf32> to vector<512x128xf32>
    %5 = arith.addf %2, %4 : vector<512x128xf32>
    %c0_5 = arith.constant 0 : index
    %c0_6 = arith.constant 0 : index
    %6 = vector.load %arg5[%c0_5, %c0_6] : memref<512x128xf32, #tpu.memory_space<vmem>>, vector<512x128xf32>
    tpu.vector_store %arg5[%c0_5, %c0_6], %5 {strides = array<i32>} : memref<512x128xf32, #tpu.memory_space<vmem>>, vector<512x128xf32>,
    return
  }
  func.func @transform_0(%arg0: i32, %arg1: i32) -> (i32, i32) {
    %c0_i32 = arith.constant 0 : i32
    %c0_i32_0 = arith.constant 0 : i32
    return %arg0, %c0_i32 : i32, i32
  }
  func.func @transform_1(%arg0: i32, %arg1: i32) -> (i32, i32) {
    %c0_i32 = arith.constant 0 : i32
    %c0_i32_0 = arith.constant 0 : i32
    return %c0_i32, %arg1 : i32, i32
  }
  func.func @transform_2(%arg0: i32, %arg1: i32) -> (i32, i32) {
    %c0_i32 = arith.constant 0 : i32
    %c0_i32_0 = arith.constant 0 : i32
    return %c0_i32, %arg1 : i32, i32
  }
  func.func @transform_3(%arg0: i32, %arg1: i32) -> (i32, i32) {
    %c0_i32 = arith.constant 0 : i32
    return %arg0, %arg1 : i32, i32
  }
}

</mosaic_0001>

<bundles_post_ra>
// kernel: stegastamp_encoder_forward.15
= control target key start
LH: loop header
LB: loop body
LE: loop exit
PB: predicated region body
PF: predicated region fallthrough
CT: control target
= control target key end

     0   :  { %8 = vsyncpa [#allocation3], 0  ;;  %s690_s0 = inlined_call_operand.vmem [shape: bf16[8,8], index: 0, kind: input, shape index: {}]   ;;  %s691_s1 = inlined_call_operand.hbm [shape: bf16[8,768], index: 1, kind: input, shape index: {}]   ;;  %s692_s2 = inlined_call_operand.vmem [shape: f32[1,768], index: 2, kind: input, shape index: {}]   ;;  %s693_s3 = inlined_call_operand.vmem [shape: bf16[8,768], index: 3, kind: output, shape index: {}]  }
   0x1   :  { %10 = vsyncpa [#allocation3 + $0x1], 0  ;;  %s597_s12 = smov 0   ;;  %s599_s13 = smov 0  }
   0x2   :  { %s601_s14 = smov 0   ;;  %s603_s15 = smov 0  }
   0x3   :  { %s605_s16 = smov 0   ;;  %s607_s17 = smov 0  }
   0x4 LB: > { %s422_s18 = sadd.s32 4294967295, %s575_s17   ;;  %s25_s19 = sadd.s32 1, %s571_s16  ;;  %s575_s17 = sphi %s607_s17, %s16_s17   ;;  %s571_s16 = sphi %s605_s16, %s700_s16   ;;  %s567_s15 = sphi %s603_s15, %s699_s15   ;;  %s563_s14 = sphi %s601_s14, %s698_s14   ;;  %s559_s13 = sphi %s599_s13, %s697_s13   ;;  %s555_s12 = sphi %s597_s12, %s696_s12  }
   0x5   : > { %p26_p0 = scmp.ge.s32.totalorder %s25_s19, 3  ;;  %s61_s20 = sadd.s32 1, %s563_s14 }
   0x6   : > { %p68_p1 = scmp.ne.s32.totalorder %s563_s14, %s559_s13  ;;  %p69_p2 = scmp.eq.s32.totalorder %s575_s17, 0 }
   0x7   : > { %s702_s19 = smov (%p26_p0, %s25_s19), 0  ;;  %p74_p4 = scmp.ne.s32.totalorder %s559_s13, %s555_s12 }
   0x8   : > { %p633_p3 = por %p69_p2, %p68_p1  ;;  %s58_s22 = ssub.s32 %s571_s16, %s702_s19 }
   0x9   : > { %p75_p5 = scmp.eq.s32.totalorder %s422_s18, 0  ;;  %p59_p6 = scmp.eq.s32.totalorder %s58_s22, 0 }
   0xa   : > { %p446_p8 = scmp.lt.s32.totalorder %s575_s17, 3  ;;  %s159_s25 = sand.u32 1, %s563_s14  }
   0xb   : > { %p640_p7 = por %p75_p5, %p74_p4  ;;  %s439_s26 = sshll.u32 %s571_s16, 3 }
   0xc   : > { %s646_s24 = scalar_select %p59_p6, %s563_s14, %s61_s20  }
   0xd   : > { %s427_s27 = sshll.u32 %s159_s25, 3  ;;  %s168_s30 = scalar_lea.hbm %s691_s1, %s439_s26 }
   0xe   : > { %s170_s4 = sshll.u32 %s168_s30, 4  ;;  %s163_s5 = scalar_lea.vmem [#allocation2], %s427_s27  ;;  %s171_s4 = int_to_ptr.hbm [resolvable:$true] %s170_s4 }
   0xf   : > { %s172_s6 = sshll.u32 %s163_s5, 4  ;;  %p443_p9 = pnand %p446_p8, %p633_p3  ;;  %s173_s6 = int_to_ptr.vmem [resolvable:$true] %s172_s6 }
  0x10   : > { %p430_p10 = scmp.ge.s32.totalorder %s575_s17, 1  ;;  %p185_p11 = scmp.lt.s32.totalorder %s575_s17, 4 }
  0x11   : > { %s160_s7 = scalar_lea.sflag [#allocation3], %s159_s25 }
  0x12   : > { %445 = dma.hbm_to_vmem [thread:$0]  (!%p443_p9), %s171_s4, 128, %s173_s6, %s160_s7  }
  0x13   : > { %p186_p12 = pnand %p430_p10, %p185_p11 }
  0x14   : > { %s191_s8 = sand.u32 (!%p186_p12), 1, %s559_s13  }
  0x15   : > { %189 = sbr.rel (%p186_p12) target bundleno = 170 (0xaa), region = 32  ;;  %s431_s9 = sshll.u32 (!%p186_p12), %s191_s8, 3 }
  0x16   : > { %s192_s10 = scalar_lea.sflag (!%p186_p12), [#allocation3], %s191_s8  ;;  %s195_s11 = scalar_lea.vmem (!%p186_p12), [#allocation2], %s431_s9 }
  0x1a   : > { %550 = dma.done.wait (%p640_p7), %s192_s10, 128  }
  0x1b   : > { %552 = vsyncadd (%p640_p7), %s192_s10, 4294967168  ;;  %v253_v0 = vld [vmem:[%s195_s11] sm:$0xff]  ;;  %vm269_vm0 = vcmask 1043456   ;;  %vm265_vm1 = vcmask 64512   ;;  %s432_s20 = sshll.u32 %s567_s15, 1 }
  0x1c   : > { %v261_v1 = vunpack.c.l.b16 %v253_v0  ;;  %v262_v2 = vunpack.c.h.b16 %v253_v0  ;;  %v252_v7 = vld [vmem:[%s690_s0] sm:$0xf]  ;;  %p237_p13 = scmp.lt.s32.totalorder %s432_s20, 5 }
  0x1e   : > { %v263_v3 = vpack.c.b16 %v261_v1, %v261_v1  ;;  %v264_v4 = vpack.c.b16 %v262_v2, %v262_v2  ;;  %s704_s20 = smov (!%p237_p13, %s432_s20), 5 }
  0x1f   : > { %s239_s23 = scalar_lea.vmem %s692_s2, %s704_s20  ;;  %s434_s25 = sshll.u32 %s704_s20, 2 }
  0x20   : > { %v271_v5 = vsel %vm269_vm0, %v263_v3, 0  ;;  %v274_v6 = vsel %vm269_vm0, %v264_v4, 0  ;;  %v254_v8 = vld [vmem:[%s239_s23] sm:$0x3]  ;;  %s249_s15 = scalar_lea.vmem %s693_s3, %s434_s25 }
  0x21   : > { %283 = vmatpush.bf16.msra.mxu0 %v271_v5  ;;  %296 = vmatpush.bf16.msra.mxu1 %v274_v6  ;;  %v256_v9 = vperm.slane %v254_v8, 0  ;;  %v257_v10 = vperm.slane %v254_v8, 1 }
  0x24   : > { %435 = vmatmul.msk.bf16.vlgmr.msra.gmra.mxu0 %vm265_vm1, %v252_v7  ;;  %436 = vmatmul.msk.bf16.vlgmr.msra.gmra.mxu1 %vm265_vm1, %v252_v7 }
  0xa1   : > { %v285_v11 = vpop.f32.mrf.mxu0  ;;  %v298_v12 = vpop.f32.mrf.mxu1 }
  0xa2   : > { %v286_v13 = vadd.f32 %v285_v11, %v256_v9  ;;  %v299_v14 = vadd.f32 %v298_v12, %v257_v10 }
  0xa4   : > { %v302_v15 = vmax.f32 %v286_v13, 0.0  ;;  %v303_v16 = vmax.f32 %v299_v14, 0.0 }
  0xa6   : > { %v304_v17 = vpack.c.bf16 %v303_v16, %v302_v15 }
  0xa8   : > { %305 = vst [vmem:[%s249_s15] sm:$0xff] %v304_v17 }
  0xa9   : > { %v287_v18 = vpop.f32.mrf.mxu0  ;;  %v300_v19 = vpop.f32.mrf.mxu1 }
  0xaa PF: > { %s16_s17 = sadd.s32 1, %s575_s17   ;;  %s696_s12 = smov %s559_s13 }
  0xab   : > { %p13_p0 = scmp.ge.s32.totalorder %s16_s17, 5   ;;  %s697_s13 = smov %s563_s14 }
  0xac   : > { %s698_s14 = smov %s646_s24  ;;  %s699_s15 = smov %s571_s16 }
  0xad   : > { %s700_s16 = smov %s702_s19  ;;  %15 = sbr.rel (!%p13_p0) target bundleno = 4 (0x4), region = 78 }
  0xb2   :  { %336 = vsyncpa [#allocation3], 1 }
  0xb3   :  { %338 = vsyncpa [#allocation3 + $0x1], 1 }

// kernel: stegastamp_encoder_forward.16
= control target key start
LH: loop header
LB: loop body
LE: loop exit
PB: predicated region body
PF: predicated region fallthrough
CT: control target
= control target key end

     0   :  { %vm368_vm0 = vcmask 1042432   ;;  %vm271_vm1 = vcmask 441344   ;;  %s1473_s1 = inlined_call_operand.vmem [shape: bf16[54,128], index: 1, kind: input, shape index: {}]   ;;  %s1474_s2 = inlined_call_operand.vmem [shape: f32[1,128], index: 2, kind: input, shape index: {}]   ;;  %s1475_s0 = inlined_call_operand.vmem [shape: bf16[512,54], index: 0, kind: input, shape index: {}]   ;;  %s1476_s3 = inlined_call_operand.vmem [shape: bf16[512,128], index: 3, kind: output, shape index: {}]  }
   0x1   :  { %v85_v0 = vld [vmem:[%s1473_s1 + $0x18] sm:$0x7]  ;;  %v943_v4 = vld [vmem:[%s1473_s1 + $0x10] sm:$0xff]  ;;  %v942_v5 = vld [vmem:[%s1473_s1 + $0x8] sm:$0xff] }
   0x2   :  { %v263_v1 = vunpack.c.l.b16 %v85_v0  ;;  %v941_v6 = vld [vmem:[%s1473_s1] sm:$0xff]  ;;  %v910_v11 = vld [vmem:[%s1475_s0 + $0x8] sm:$0xff]  ;;  %v911_v15 = vld [vmem:[%s1475_s0 + $0x10] sm:$0xff] }
   0x3   :  { %v909_v7 = vld [vmem:[%s1475_s0] sm:$0xff]  ;;  %v918_v12 = vld [vmem:[%s1475_s0 + $0x48] sm:$0xff]  ;;  %v919_v16 = vld [vmem:[%s1475_s0 + $0x50] sm:$0xff] }
   0x4   :  { %v267_v2 = vpack.c.b16 %v263_v1, %v263_v1  ;;  %v917_v8 = vld [vmem:[%s1475_s0 + $0x40] sm:$0xff]  ;;  %v926_v13 = vld [vmem:[%s1475_s0 + $0x88] sm:$0xff]  ;;  %v927_v17 = vld [vmem:[%s1475_s0 + $0x90] sm:$0xff] }
   0x5   :  { %v925_v9 = vld [vmem:[%s1475_s0 + $0x80] sm:$0xff]  ;;  %v934_v14 = vld [vmem:[%s1475_s0 + $0xc8] sm:$0xff]  ;;  %v935_v18 = vld [vmem:[%s1475_s0 + $0xd0] sm:$0xff] }
   0x6   :  { %v370_v3 = vsel %vm368_vm0, %v267_v2, 0  ;;  %v933_v10 = vld [vmem:[%s1475_s0 + $0xc0] sm:$0xff]  ;;  %v912_v19 = vld [vmem:[%s1475_s0 + $0x18] sm:$0xff]  ;;  %v914_v27 = vld [vmem:[%s1475_s0 + $0x28] sm:$0xff] }
   0x7   :  { %376 = vmatpush.bf16.msra.mxu0 %v370_v3  ;;  %1135 = vmatpush.bf16.msra.mxu1 %v370_v3  ;;  %v920_v20 = vld [vmem:[%s1475_s0 + $0x58] sm:$0xff]  ;;  %v913_v23 = vld [vmem:[%s1475_s0 + $0x20] sm:$0xff]  ;;  %v922_v28 = vld [vmem:[%s1475_s0 + $0x68] sm:$0xff] }
   0x8   :  { %1136 = vmatpush.bf16.msra.mxu2 %v370_v3  ;;  %1137 = vmatpush.bf16.msra.mxu3 %v370_v3  ;;  %v928_v21 = vld [vmem:[%s1475_s0 + $0x98] sm:$0xff]  ;;  %v921_v24 = vld [vmem:[%s1475_s0 + $0x60] sm:$0xff]  ;;  %v930_v29 = vld [vmem:[%s1475_s0 + $0xa8] sm:$0xff] }
   0x9   :  { %v936_v22 = vld [vmem:[%s1475_s0 + $0xd8] sm:$0xff]  ;;  %v929_v25 = vld [vmem:[%s1475_s0 + $0xa0] sm:$0xff]  ;;  %v938_v30 = vld [vmem:[%s1475_s0 + $0xe8] sm:$0xff] }
   0xa   :  { %v937_v26 = vld [vmem:[%s1475_s0 + $0xe0] sm:$0xff]  ;;  %v915_v31 = vld [vmem:[%s1475_s0 + $0x30] sm:$0xff]  ;;  %v916_v35 = vld [vmem:[%s1475_s0 + $0x38] sm:$0xff] }
   0xb   :  { %377 = vmatpush.bf16.msra.mxu0 %v943_v4  ;;  %1138 = vmatpush.bf16.msra.mxu1 %v943_v4  ;;  %v923_v32 = vld [vmem:[%s1475_s0 + $0x70] sm:$0xff]  ;;  %v924_v36 = vld [vmem:[%s1475_s0 + $0x78] sm:$0xff]  ;;  %v1311_v41 = vld [vmem:[%s1474_s2] ss:$0 sm:$0xff] }
   0xc   :  { %1139 = vmatpush.bf16.msra.mxu2 %v943_v4  ;;  %1140 = vmatpush.bf16.msra.mxu3 %v943_v4  ;;  %v931_v33 = vld [vmem:[%s1475_s0 + $0xb0] sm:$0xff]  ;;  %v932_v37 = vld [vmem:[%s1475_s0 + $0xb8] sm:$0xff] }
   0xd   :  { %v939_v34 = vld [vmem:[%s1475_s0 + $0xf0] sm:$0xff]  ;;  %v940_v38 = vld [vmem:[%s1475_s0 + $0xf8] sm:$0xff] }
   0xf   :  { %378 = vmatpush.bf16.msra.mxu0 %v942_v5  ;;  %1141 = vmatpush.bf16.msra.mxu1 %v942_v5 }
  0x10   :  { %1142 = vmatpush.bf16.msra.mxu2 %v942_v5  ;;  %1143 = vmatpush.bf16.msra.mxu3 %v942_v5 }
  0x13   :  { %379 = vmatpush.bf16.msra.mxu0 %v941_v6  ;;  %1144 = vmatpush.bf16.msra.mxu1 %v941_v6 }
  0x14   :  { %1145 = vmatpush.bf16.msra.mxu2 %v941_v6  ;;  %1146 = vmatpush.bf16.msra.mxu3 %v941_v6 }
  0x16   :  { %877 = vmatmul.msk.bf16.vlgmr.msra.gmra.mxu0 %vm271_vm1, %v909_v7  ;;  %885 = vmatmul.msk.bf16.vlgmr.msra.gmra.mxu1 %vm271_vm1, %v917_v8 }
  0x17   :  { %893 = vmatmul.msk.bf16.vlgmr.msra.gmra.mxu2 %vm271_vm1, %v925_v9  ;;  %901 = vmatmul.msk.bf16.vlgmr.msra.gmra.mxu3 %vm271_vm1, %v933_v10 }
  0x26   :  { %878 = vmatmul.msk.bf16.gmra.mxu0 %vm271_vm1, %v910_v11  ;;  %886 = vmatmul.msk.bf16.gmra.mxu1 %vm271_vm1, %v918_v12 }
  0x27   :  { %894 = vmatmul.msk.bf16.gmra.mxu2 %vm271_vm1, %v926_v13  ;;  %902 = vmatmul.msk.bf16.gmra.mxu3 %vm271_vm1, %v934_v14 }
  0x36   :  { %879 = vmatmul.msk.bf16.gmra.mxu0 %vm271_vm1, %v911_v15  ;;  %887 = vmatmul.msk.bf16.gmra.mxu1 %vm271_vm1, %v919_v16 }
  0x37   :  { %895 = vmatmul.msk.bf16.gmra.mxu2 %vm271_vm1, %v927_v17  ;;  %903 = vmatmul.msk.bf16.gmra.mxu3 %vm271_vm1, %v935_v18 }
  0x46   :  { %880 = vmatmul.msk.bf16.gmra.mxu0 %vm271_vm1, %v912_v19  ;;  %888 = vmatmul.msk.bf16.gmra.mxu1 %vm271_vm1, %v920_v20 }
  0x47   :  { %896 = vmatmul.msk.bf16.gmra.mxu2 %vm271_vm1, %v928_v21  ;;  %904 = vmatmul.msk.bf16.gmra.mxu3 %vm271_vm1, %v936_v22 }
  0x56   :  { %881 = vmatmul.msk.bf16.gmra.mxu0 %vm271_vm1, %v913_v23  ;;  %889 = vmatmul.msk.bf16.gmra.mxu1 %vm271_vm1, %v921_v24 }
  0x57   :  { %897 = vmatmul.msk.bf16.gmra.mxu2 %vm271_vm1, %v929_v25  ;;  %905 = vmatmul.msk.bf16.gmra.mxu3 %vm271_vm1, %v937_v26 }
  0x66   :  { %882 = vmatmul.msk.bf16.gmra.mxu0 %vm271_vm1, %v914_v27  ;;  %890 = vmatmul.msk.bf16.gmra.mxu1 %vm271_vm1, %v922_v28 }
  0x67   :  { %898 = vmatmul.msk.bf16.gmra.mxu2 %vm271_vm1, %v930_v29  ;;  %906 = vmatmul.msk.bf16.gmra.mxu3 %vm271_vm1, %v938_v30 }
  0x76   :  { %883 = vmatmul.msk.bf16.gmra.mxu0 %vm271_vm1, %v915_v31  ;;  %891 = vmatmul.msk.bf16.gmra.mxu1 %vm271_vm1, %v923_v32 }
  0x77   :  { %899 = vmatmul.msk.bf16.gmra.mxu2 %vm271_vm1, %v931_v33  ;;  %907 = vmatmul.msk.bf16.gmra.mxu3 %vm271_vm1, %v939_v34 }
  0x86   :  { %884 = vmatmul.msk.bf16.gmra.mxu0 %vm271_vm1, %v916_v35  ;;  %892 = vmatmul.msk.bf16.gmra.mxu1 %vm271_vm1, %v924_v36 }
  0x87   :  { %900 = vmatmul.msk.bf16.gmra.mxu2 %vm271_vm1, %v932_v37  ;;  %908 = vmatmul.msk.bf16.gmra.mxu3 %vm271_vm1, %v940_v38 }
  0x93   :  { %v381_v39 = vpop.f32.mrf.mxu0  ;;  %v421_v40 = vpop.f32.mrf.mxu1 }
  0x94   :  { %v382_v42 = vadd.f32 %v1311_v41, %v381_v39  ;;  %v422_v43 = vadd.f32 %v1311_v41, %v421_v40 }
  0x96   :  { %v541_v50 = vmax.f32 %v382_v42, 0.0  ;;  %v557_v51 = vmax.f32 %v422_v43, 0.0 }
  0x9a   :  { %v461_v44 = vpop.f32.mrf.mxu2  ;;  %v501_v45 = vpop.f32.mrf.mxu3 }
  0x9b   :  { %v383_v46 = vpop.f32.mrf.mxu0  ;;  %v423_v47 = vpop.f32.mrf.mxu1  ;;  %v462_v56 = vadd.f32 %v1311_v41, %v461_v44  ;;  %v502_v57 = vadd.f32 %v1311_v41, %v501_v45 }
  0x9c   :  { %v384_v48 = vadd.f32 %v1311_v41, %v383_v46  ;;  %v424_v49 = vadd.f32 %v1311_v41, %v423_v47 }
  0x9d   :  { %v573_v0 = vmax.f32 %v462_v56, 0.0  ;;  %v589_v1 = vmax.f32 %v502_v57, 0.0 }
  0x9e   :  { %v542_v52 = vmax.f32 %v384_v48, 0.0  ;;  %v558_v53 = vmax.f32 %v424_v49, 0.0 }
  0xa0   :  { %v947_v54 = vpack.c.bf16 %v542_v52, %v541_v50  ;;  %v987_v55 = vpack.c.bf16 %v558_v53, %v557_v51 }
  0xa2   :  { %948 = vst [vmem:[%s1476_s3] sm:$0xff] %v947_v54   ;;  %v463_v58 = vpop.f32.mrf.mxu2  ;;  %v503_v59 = vpop.f32.mrf.mxu3 }
  0xa3   :  { %1111 = vst [vmem:[%s1476_s3 + $0x40] sm:$0xff] %v987_v55   ;;  %v464_v60 = vadd.f32 %v1311_v41, %v463_v58  ;;  %v504_v61 = vadd.f32 %v1311_v41, %v503_v59  ;;  %v386_v62 = vpop.f32.mrf.mxu0  ;;  %v426_v63 = vpop.f32.mrf.mxu1 }
  0xa4   :  { %v387_v6 = vadd.f32 %v1311_v41, %v386_v62  ;;  %v427_v7 = vadd.f32 %v1311_v41, %v426_v63 }
  0xa5   :  { %v574_v2 = vmax.f32 %v464_v60, 0.0  ;;  %v590_v3 = vmax.f32 %v504_v61, 0.0 }
  0xa6   :  { %v543_v14 = vmax.f32 %v387_v6, 0.0  ;;  %v559_v15 = vmax.f32 %v427_v7, 0.0 }
  0xa7   :  { %v1027_v4 = vpack.c.bf16 %v574_v2, %v573_v0  ;;  %v1067_v5 = vpack.c.bf16 %v590_v3, %v589_v1 }
  0xa9   :  { %1119 = vst [vmem:[%s1476_s3 + $0x80] sm:$0xff] %v1027_v4  }
  0xaa   :  { %1127 = vst [vmem:[%s1476_s3 + $0xc0] sm:$0xff] %v1067_v5   ;;  %v466_v8 = vpop.f32.mrf.mxu2  ;;  %v506_v9 = vpop.f32.mrf.mxu3 }
  0xab   :  { %v388_v10 = vpop.f32.mrf.mxu0  ;;  %v428_v11 = vpop.f32.mrf.mxu1  ;;  %v467_v20 = vadd.f32 %v1311_v41, %v466_v8  ;;  %v507_v21 = vadd.f32 %v1311_v41, %v506_v9 }
  0xac   :  { %v389_v12 = vadd.f32 %v1311_v41, %v388_v10  ;;  %v429_v13 = vadd.f32 %v1311_v41, %v428_v11 }
  0xad   :  { %v575_v28 = vmax.f32 %v467_v20, 0.0  ;;  %v591_v29 = vmax.f32 %v507_v21, 0.0 }
  0xae   :  { %v544_v16 = vmax.f32 %v389_v12, 0.0  ;;  %v560_v17 = vmax.f32 %v429_v13, 0.0 }
  0xb0   :  { %v952_v18 = vpack.c.bf16 %v544_v16, %v543_v14  ;;  %v992_v19 = vpack.c.bf16 %v560_v17, %v559_v15 }
  0xb2   :  { %1104 = vst [vmem:[%s1476_s3 + $0x8] sm:$0xff] %v952_v18   ;;  %v468_v22 = vpop.f32.mrf.mxu2  ;;  %v508_v23 = vpop.f32.mrf.mxu3 }
  0xb3   :  { %1112 = vst [vmem:[%s1476_s3 + $0x48] sm:$0xff] %v992_v19   ;;  %v469_v24 = vadd.f32 %v1311_v41, %v468_v22  ;;  %v509_v25 = vadd.f32 %v1311_v41, %v508_v23  ;;  %v391_v26 = vpop.f32.mrf.mxu0  ;;  %v431_v27 = vpop.f32.mrf.mxu1 }
  0xb4   :  { %v392_v34 = vadd.f32 %v1311_v41, %v391_v26  ;;  %v432_v35 = vadd.f32 %v1311_v41, %v431_v27 }
  0xb5   :  { %v576_v30 = vmax.f32 %v469_v24, 0.0  ;;  %v592_v31 = vmax.f32 %v509_v25, 0.0 }
  0xb6   :  { %v545_v43 = vmax.f32 %v392_v34, 0.0  ;;  %v561_v44 = vmax.f32 %v432_v35, 0.0 }
  0xb7   :  { %v1032_v32 = vpack.c.bf16 %v576_v30, %v575_v28  ;;  %v1072_v33 = vpack.c.bf16 %v592_v31, %v591_v29 }
  0xb9   :  { %1120 = vst [vmem:[%s1476_s3 + $0x88] sm:$0xff] %v1032_v32  }
  0xba   :  { %1128 = vst [vmem:[%s1476_s3 + $0xc8] sm:$0xff] %v1072_v33   ;;  %v471_v36 = vpop.f32.mrf.mxu2  ;;  %v511_v37 = vpop.f32.mrf.mxu3 }
  0xbb   :  { %v393_v38 = vpop.f32.mrf.mxu0  ;;  %v433_v39 = vpop.f32.mrf.mxu1  ;;  %v472_v49 = vadd.f32 %v1311_v41, %v471_v36  ;;  %v512_v50 = vadd.f32 %v1311_v41, %v511_v37 }
  0xbc   :  { %v394_v40 = vadd.f32 %v1311_v41, %v393_v38  ;;  %v434_v42 = vadd.f32 %v1311_v41, %v433_v39 }
  0xbd   :  { %v577_v57 = vmax.f32 %v472_v49, 0.0  ;;  %v593_v58 = vmax.f32 %v512_v50, 0.0 }
  0xbe   :  { %v546_v45 = vmax.f32 %v394_v40, 0.0  ;;  %v562_v46 = vmax.f32 %v434_v42, 0.0 }
  0xc0   :  { %v957_v47 = vpack.c.bf16 %v546_v45, %v545_v43  ;;  %v997_v48 = vpack.c.bf16 %v562_v46, %v561_v44 }
  0xc2   :  { %1105 = vst [vmem:[%s1476_s3 + $0x10] sm:$0xff] %v957_v47   ;;  %v473_v51 = vpop.f32.mrf.mxu2  ;;  %v513_v52 = vpop.f32.mrf.mxu3 }
  0xc3   :  { %1113 = vst [vmem:[%s1476_s3 + $0x50] sm:$0xff] %v997_v48   ;;  %v474_v53 = vadd.f32 %v1311_v41, %v473_v51  ;;  %v514_v54 = vadd.f32 %v1311_v41, %v513_v52  ;;  %v396_v55 = vpop.f32.mrf.mxu0  ;;  %v436_v56 = vpop.f32.mrf.mxu1 }
  0xc4   :  { %v397_v63 = vadd.f32 %v1311_v41, %v396_v55  ;;  %v437_v0 = vadd.f32 %v1311_v41, %v436_v56 }
  0xc5   :  { %v578_v59 = vmax.f32 %v474_v53, 0.0  ;;  %v594_v60 = vmax.f32 %v514_v54, 0.0 }
  0xc6   :  { %v547_v7 = vmax.f32 %v397_v63, 0.0  ;;  %v563_v8 = vmax.f32 %v437_v0, 0.0 }
  0xc7   :  { %v1037_v61 = vpack.c.bf16 %v578_v59, %v577_v57  ;;  %v1077_v62 = vpack.c.bf16 %v594_v60, %v593_v58 }
  0xc9   :  { %1121 = vst [vmem:[%s1476_s3 + $0x90] sm:$0xff] %v1037_v61  }
  0xca   :  { %1129 = vst [vmem:[%s1476_s3 + $0xd0] sm:$0xff] %v1077_v62   ;;  %v476_v1 = vpop.f32.mrf.mxu2  ;;  %v516_v2 = vpop.f32.mrf.mxu3 }
  0xcb   :  { %v398_v3 = vpop.f32.mrf.mxu0  ;;  %v438_v4 = vpop.f32.mrf.mxu1  ;;  %v477_v13 = vadd.f32 %v1311_v41, %v476_v1  ;;  %v517_v14 = vadd.f32 %v1311_v41, %v516_v2 }
  0xcc   :  { %v399_v5 = vadd.f32 %v1311_v41, %v398_v3  ;;  %v439_v6 = vadd.f32 %v1311_v41, %v438_v4 }
  0xcd   :  { %v579_v21 = vmax.f32 %v477_v13, 0.0  ;;  %v595_v22 = vmax.f32 %v517_v14, 0.0 }
  0xce   :  { %v548_v9 = vmax.f32 %v399_v5, 0.0  ;;  %v564_v10 = vmax.f32 %v439_v6, 0.0 }
  0xd0   :  { %v962_v11 = vpack.c.bf16 %v548_v9, %v547_v7  ;;  %v1002_v12 = vpack.c.bf16 %v564_v10, %v563_v8 }
  0xd2   :  { %1106 = vst [vmem:[%s1476_s3 + $0x18] sm:$0xff] %v962_v11   ;;  %v478_v15 = vpop.f32.mrf.mxu2  ;;  %v518_v16 = vpop.f32.mrf.mxu3 }
  0xd3   :  { %1114 = vst [vmem:[%s1476_s3 + $0x58] sm:$0xff] %v1002_v12   ;;  %v479_v17 = vadd.f32 %v1311_v41, %v478_v15  ;;  %v519_v18 = vadd.f32 %v1311_v41, %v518_v16  ;;  %v401_v19 = vpop.f32.mrf.mxu0  ;;  %v441_v20 = vpop.f32.mrf.mxu1 }
  0xd4   :  { %v402_v27 = vadd.f32 %v1311_v41, %v401_v19  ;;  %v442_v28 = vadd.f32 %v1311_v41, %v441_v20 }
  0xd5   :  { %v580_v23 = vmax.f32 %v479_v17, 0.0  ;;  %v596_v24 = vmax.f32 %v519_v18, 0.0 }
  0xd6   :  { %v549_v35 = vmax.f32 %v402_v27, 0.0  ;;  %v565_v36 = vmax.f32 %v442_v28, 0.0 }
  0xd7   :  { %v1042_v25 = vpack.c.bf16 %v580_v23, %v579_v21  ;;  %v1082_v26 = vpack.c.bf16 %v596_v24, %v595_v22 }
  0xd9   :  { %1122 = vst [vmem:[%s1476_s3 + $0x98] sm:$0xff] %v1042_v25  }
  0xda   :  { %1130 = vst [vmem:[%s1476_s3 + $0xd8] sm:$0xff] %v1082_v26   ;;  %v481_v29 = vpop.f32.mrf.mxu2  ;;  %v521_v30 = vpop.f32.mrf.mxu3 }
  0xdb   :  { %v403_v31 = vpop.f32.mrf.mxu0  ;;  %v443_v32 = vpop.f32.mrf.mxu1  ;;  %v482_v42 = vadd.f32 %v1311_v41, %v481_v29  ;;  %v522_v43 = vadd.f32 %v1311_v41, %v521_v30 }
  0xdc   :  { %v404_v33 = vadd.f32 %v1311_v41, %v403_v31  ;;  %v444_v34 = vadd.f32 %v1311_v41, %v443_v32 }
  0xdd   :  { %v581_v50 = vmax.f32 %v482_v42, 0.0  ;;  %v597_v51 = vmax.f32 %v522_v43, 0.0 }
  0xde   :  { %v550_v37 = vmax.f32 %v404_v33, 0.0  ;;  %v566_v38 = vmax.f32 %v444_v34, 0.0 }
  0xe0   :  { %v967_v39 = vpack.c.bf16 %v550_v37, %v549_v35  ;;  %v1007_v40 = vpack.c.bf16 %v566_v38, %v565_v36 }
  0xe2   :  { %1107 = vst [vmem:[%s1476_s3 + $0x20] sm:$0xff] %v967_v39   ;;  %v483_v44 = vpop.f32.mrf.mxu2  ;;  %v523_v45 = vpop.f32.mrf.mxu3 }
  0xe3   :  { %1115 = vst [vmem:[%s1476_s3 + $0x60] sm:$0xff] %v1007_v40   ;;  %v484_v46 = vadd.f32 %v1311_v41, %v483_v44  ;;  %v524_v47 = vadd.f32 %v1311_v41, %v523_v45  ;;  %v406_v48 = vpop.f32.mrf.mxu0  ;;  %v446_v49 = vpop.f32.mrf.mxu1 }
  0xe4   :  { %v407_v56 = vadd.f32 %v1311_v41, %v406_v48  ;;  %v447_v57 = vadd.f32 %v1311_v41, %v446_v49 }
  0xe5   :  { %v582_v52 = vmax.f32 %v484_v46, 0.0  ;;  %v598_v53 = vmax.f32 %v524_v47, 0.0 }
  0xe6   :  { %v551_v0 = vmax.f32 %v407_v56, 0.0  ;;  %v567_v1 = vmax.f32 %v447_v57, 0.0 }
  0xe7   :  { %v1047_v54 = vpack.c.bf16 %v582_v52, %v581_v50  ;;  %v1087_v55 = vpack.c.bf16 %v598_v53, %v597_v51 }
  0xe9   :  { %1123 = vst [vmem:[%s1476_s3 + $0xa0] sm:$0xff] %v1047_v54  }
  0xea   :  { %1131 = vst [vmem:[%s1476_s3 + $0xe0] sm:$0xff] %v1087_v55   ;;  %v486_v58 = vpop.f32.mrf.mxu2  ;;  %v526_v59 = vpop.f32.mrf.mxu3 }
  0xeb   :  { %v408_v60 = vpop.f32.mrf.mxu0  ;;  %v448_v61 = vpop.f32.mrf.mxu1  ;;  %v487_v6 = vadd.f32 %v1311_v41, %v486_v58  ;;  %v527_v7 = vadd.f32 %v1311_v41, %v526_v59 }
  0xec   :  { %v409_v62 = vadd.f32 %v1311_v41, %v408_v60  ;;  %v449_v63 = vadd.f32 %v1311_v41, %v448_v61 }
  0xed   :  { %v583_v14 = vmax.f32 %v487_v6, 0.0  ;;  %v599_v15 = vmax.f32 %v527_v7, 0.0 }
  0xee   :  { %v552_v2 = vmax.f32 %v409_v62, 0.0  ;;  %v568_v3 = vmax.f32 %v449_v63, 0.0 }
  0xf0   :  { %v972_v4 = vpack.c.bf16 %v552_v2, %v551_v0  ;;  %v1012_v5 = vpack.c.bf16 %v568_v3, %v567_v1 }
  0xf2   :  { %1108 = vst [vmem:[%s1476_s3 + $0x28] sm:$0xff] %v972_v4   ;;  %v488_v8 = vpop.f32.mrf.mxu2  ;;  %v528_v9 = vpop.f32.mrf.mxu3 }
  0xf3   :  { %1116 = vst [vmem:[%s1476_s3 + $0x68] sm:$0xff] %v1012_v5   ;;  %v489_v10 = vadd.f32 %v1311_v41, %v488_v8  ;;  %v529_v11 = vadd.f32 %v1311_v41, %v528_v9  ;;  %v411_v12 = vpop.f32.mrf.mxu0  ;;  %v451_v13 = vpop.f32.mrf.mxu1 }
  0xf4   :  { %v412_v20 = vadd.f32 %v1311_v41, %v411_v12  ;;  %v452_v21 = vadd.f32 %v1311_v41, %v451_v13 }
  0xf5   :  { %v584_v16 = vmax.f32 %v489_v10, 0.0  ;;  %v600_v17 = vmax.f32 %v529_v11, 0.0 }
  0xf6   :  { %v553_v28 = vmax.f32 %v412_v20, 0.0  ;;  %v569_v29 = vmax.f32 %v452_v21, 0.0 }
  0xf7   :  { %v1052_v18 = vpack.c.bf16 %v584_v16, %v583_v14  ;;  %v1092_v19 = vpack.c.bf16 %v600_v17, %v599_v15 }
  0xf9   :  { %1124 = vst [vmem:[%s1476_s3 + $0xa8] sm:$0xff] %v1052_v18  }
  0xfa   :  { %1132 = vst [vmem:[%s1476_s3 + $0xe8] sm:$0xff] %v1092_v19   ;;  %v491_v22 = vpop.f32.mrf.mxu2  ;;  %v531_v23 = vpop.f32.mrf.mxu3 }
  0xfb   :  { %v413_v24 = vpop.f32.mrf.mxu0  ;;  %v453_v25 = vpop.f32.mrf.mxu1  ;;  %v492_v34 = vadd.f32 %v1311_v41, %v491_v22  ;;  %v532_v35 = vadd.f32 %v1311_v41, %v531_v23 }
  0xfc   :  { %v414_v26 = vadd.f32 %v1311_v41, %v413_v24  ;;  %v454_v27 = vadd.f32 %v1311_v41, %v453_v25 }
  0xfd   :  { %v585_v43 = vmax.f32 %v492_v34, 0.0  ;;  %v601_v44 = vmax.f32 %v532_v35, 0.0 }
  0xfe   :  { %v554_v30 = vmax.f32 %v414_v26, 0.0  ;;  %v570_v31 = vmax.f32 %v454_v27, 0.0 }
 0x100   :  { %v977_v32 = vpack.c.bf16 %v554_v30, %v553_v28  ;;  %v1017_v33 = vpack.c.bf16 %v570_v31, %v569_v29 }
 0x102   :  { %1109 = vst [vmem:[%s1476_s3 + $0x30] sm:$0xff] %v977_v32   ;;  %v493_v36 = vpop.f32.mrf.mxu2  ;;  %v533_v37 = vpop.f32.mrf.mxu3 }
 0x103   :  { %1117 = vst [vmem:[%s1476_s3 + $0x70] sm:$0xff] %v1017_v33   ;;  %v494_v38 = vadd.f32 %v1311_v41, %v493_v36  ;;  %v534_v39 = vadd.f32 %v1311_v41, %v533_v37  ;;  %v416_v40 = vpop.f32.mrf.mxu0  ;;  %v456_v42 = vpop.f32.mrf.mxu1 }
 0x104   :  { %v417_v49 = vadd.f32 %v1311_v41, %v416_v40  ;;  %v457_v50 = vadd.f32 %v1311_v41, %v456_v42 }
 0x105   :  { %v586_v45 = vmax.f32 %v494_v38, 0.0  ;;  %v602_v46 = vmax.f32 %v534_v39, 0.0 }
 0x106   :  { %v555_v57 = vmax.f32 %v417_v49, 0.0  ;;  %v571_v58 = vmax.f32 %v457_v50, 0.0 }
 0x107   :  { %v1057_v47 = vpack.c.bf16 %v586_v45, %v585_v43  ;;  %v1097_v48 = vpack.c.bf16 %v602_v46, %v601_v44 }
 0x109   :  { %1125 = vst [vmem:[%s1476_s3 + $0xb0] sm:$0xff] %v1057_v47  }
 0x10a   :  { %1133 = vst [vmem:[%s1476_s3 + $0xf0] sm:$0xff] %v1097_v48   ;;  %v496_v51 = vpop.f32.mrf.mxu2  ;;  %v536_v52 = vpop.f32.mrf.mxu3 }
 0x10b   :  { %v418_v53 = vpop.f32.mrf.mxu0  ;;  %v458_v54 = vpop.f32.mrf.mxu1  ;;  %v497_v63 = vadd.f32 %v1311_v41, %v496_v51  ;;  %v537_v0 = vadd.f32 %v1311_v41, %v536_v52 }
 0x10c   :  { %v419_v55 = vadd.f32 %v1311_v41, %v418_v53  ;;  %v459_v56 = vadd.f32 %v1311_v41, %v458_v54 }
 0x10d   :  { %v587_v5 = vmax.f32 %v497_v63, 0.0  ;;  %v603_v6 = vmax.f32 %v537_v0, 0.0 }
 0x10e   :  { %v556_v59 = vmax.f32 %v419_v55, 0.0  ;;  %v572_v60 = vmax.f32 %v459_v56, 0.0 }
 0x110   :  { %v982_v61 = vpack.c.bf16 %v556_v59, %v555_v57  ;;  %v1022_v62 = vpack.c.bf16 %v572_v60, %v571_v58 }
 0x112   :  { %1110 = vst [vmem:[%s1476_s3 + $0x38] sm:$0xff] %v982_v61   ;;  %v498_v1 = vpop.f32.mrf.mxu2  ;;  %v538_v2 = vpop.f32.mrf.mxu3 }
 0x113   :  { %1118 = vst [vmem:[%s1476_s3 + $0x78] sm:$0xff] %v1022_v62   ;;  %v499_v3 = vadd.f32 %v1311_v41, %v498_v1  ;;  %v539_v4 = vadd.f32 %v1311_v41, %v538_v2 }
 0x115   :  { %v588_v7 = vmax.f32 %v499_v3, 0.0  ;;  %v604_v8 = vmax.f32 %v539_v4, 0.0 }
 0x117   :  { %v1062_v9 = vpack.c.bf16 %v588_v7, %v587_v5  ;;  %v1102_v10 = vpack.c.bf16 %v604_v8, %v603_v6 }
 0x119   :  { %1126 = vst [vmem:[%s1476_s3 + $0xb8] sm:$0xff] %v1062_v9  }
 0x11a   :  { %1134 = vst [vmem:[%s1476_s3 + $0xf8] sm:$0xff] %v1102_v10  }

// kernel: stegastamp_encoder_forward.17
= control target key start
LH: loop header
LB: loop body
LE: loop exit
PB: predicated region body
PF: predicated region fallthrough
CT: control target
= control target key end

     0   :  { %vm315_vm0 = vcmask 261120   ;;  %s1092_s1 = inlined_call_operand.vmem [shape: bf16[288,128], index: 1, kind: input, shape index: {}]   ;;  %s1093_s0 = inlined_call_operand.vmem [shape: bf16[128,288], index: 0, kind: input, shape index: {}]   ;;  %s1094_s2 = inlined_call_operand.vmem [shape: f32[1,128], index: 2, kind: input, shape index: {}]   ;;  %s1095_s3 = inlined_call_operand.vmem [shape: bf16[128,128], index: 3, kind: output, shape index: {}]  }
   0x1   :  { %v746_v0 = vld [vmem:[%s1092_s1 + $0x38] sm:$0xff]  ;;  %v756_v1 = vld [vmem:[%s1092_s1 + $0x88] sm:$0xff]  ;;  %v745_v3 = vld [vmem:[%s1092_s1 + $0x30] sm:$0xff] }
   0x2   :  { %v754_v2 = vld [vmem:[%s1092_s1 + $0x78] sm:$0xff]  ;;  %340 = vmatpush.bf16.msra.mxu0 %v746_v0  ;;  %804 = vmatpush.bf16.msra.mxu3 %v746_v0  ;;  %v755_v4 = vld [vmem:[%s1092_s1 + $0x80] sm:$0xff]  ;;  %v753_v5 = vld [vmem:[%s1092_s1 + $0x70] sm:$0xff] }
   0x3   :  { %444 = vmatpush.bf16.msra.mxu2 %v756_v1  ;;  %389 = vmatpush.bf16.msra.mxu1 %v754_v2  ;;  %v549_v6 = vld [vmem:[%s1093_s0 + $0x8] sm:$0xf]  ;;  %v717_v7 = vld [vmem:[%s1093_s0 + $0x10] sm:$0xf0]  ;;  %v743_v11 = vld [vmem:[%s1092_s1 + $0x20] sm:$0xff] }
   0x4   :  { %v550_v8 = vor.u32 %v717_v7, %v549_v6  ;;  %v744_v9 = vld [vmem:[%s1092_s1 + $0x28] sm:$0xff]  ;;  %v751_v12 = vld [vmem:[%s1092_s1 + $0x60] sm:$0xff]  ;;  %v742_v13 = vld [vmem:[%s1092_s1 + $0x18] sm:$0xff] }
   0x5   :  { %v752_v10 = vld [vmem:[%s1092_s1 + $0x68] sm:$0xff]  ;;  %v750_v14 = vld [vmem:[%s1092_s1 + $0x58] sm:$0xff]  ;;  %v741_v15 = vld [vmem:[%s1092_s1 + $0x10] sm:$0xff] }
   0x6   :  { %341 = vmatpush.bf16.msra.mxu0 %v745_v3  ;;  %805 = vmatpush.bf16.msra.mxu3 %v745_v3  ;;  %v749_v16 = vld [vmem:[%s1092_s1 + $0x50] sm:$0xff]  ;;  %v561_v17 = vld [vmem:[%s1093_s0 + $0x20] sm:$0xf]  ;;  %v720_v18 = vld [vmem:[%s1093_s0 + $0x28] sm:$0xf0] }
   0x7   :  { %445 = vmatpush.bf16.msra.mxu2 %v755_v4  ;;  %390 = vmatpush.bf16.msra.mxu1 %v753_v5  ;;  %v562_v19 = vor.u32 %v720_v18, %v561_v17  ;;  %v740_v20 = vld [vmem:[%s1092_s1 + $0x8] sm:$0xff]  ;;  %v739_v22 = vld [vmem:[%s1092_s1] sm:$0xff]  ;;  %v613_v26 = vld [vmem:[%s1093_s0 + $0x90] sm:$0xf] }
   0x8   :  { %v748_v21 = vld [vmem:[%s1092_s1 + $0x48] sm:$0xff]  ;;  %v747_v23 = vld [vmem:[%s1092_s1 + $0x40] sm:$0xff]  ;;  %v734_v27 = vld [vmem:[%s1093_s0 + $0x98] sm:$0xf0] }
   0x9   :  { %v541_v24 = vld [vmem:[%s1093_s0] sm:$0xf]  ;;  %v716_v25 = vld [vmem:[%s1093_s0 + $0x8] sm:$0xf0]  ;;  %v715_v28 = vld [vmem:[%s1093_s0 + $0x4] sm:$0xf]  ;;  %v614_v31 = vor.u32 %v734_v27, %v613_v26 }
   0xa   :  { %707 = vmatmul.msk.bf16.vlgmr.msra.gmra.mxu2 %vm315_vm0, %v550_v8  ;;  %342 = vmatpush.bf16.msra.mxu0 %v744_v9  ;;  %v543_v29 = vld [vmem:[%s1093_s0 + $0xc] sm:$0xf0]  ;;  %v542_v30 = vor.u32 %v716_v25, %v541_v24  ;;  %v573_v33 = vld [vmem:[%s1093_s0 + $0x38] sm:$0xf]  ;;  %v723_v34 = vld [vmem:[%s1093_s0 + $0x40] sm:$0xf0] }
   0xb   :  { %806 = vmatpush.bf16.msra.mxu3 %v744_v9  ;;  %391 = vmatpush.bf16.msra.mxu1 %v752_v10  ;;  %v546_v32 = vor.u32 %v715_v28, %v543_v29  ;;  %v574_v35 = vor.u32 %v723_v34, %v573_v33  ;;  %v553_v36 = vld [vmem:[%s1093_s0 + $0x18] sm:$0xf]  ;;  %v719_v37 = vld [vmem:[%s1093_s0 + $0x20] sm:$0xf0]  ;;  %v625_v38 = vld [vmem:[%s1093_s0 + $0xa8] sm:$0xf] }
   0xc   :  { %v737_v39 = vld [vmem:[%s1093_s0 + $0xb0] sm:$0xf0]  ;;  %v718_v40 = vld [vmem:[%s1093_s0 + $0x1c] sm:$0xf]  ;;  %v555_v41 = vld [vmem:[%s1093_s0 + $0x24] sm:$0xf0]  ;;  %v554_v42 = vor.u32 %v719_v37, %v553_v36 }
   0xd   :  { %v626_v43 = vor.u32 %v737_v39, %v625_v38  ;;  %v558_v44 = vor.u32 %v718_v40, %v555_v41  ;;  %v585_v45 = vld [vmem:[%s1093_s0 + $0x50] sm:$0xf]  ;;  %v726_v46 = vld [vmem:[%s1093_s0 + $0x58] sm:$0xf0]  ;;  %v733_v50 = vld [vmem:[%s1093_s0 + $0x94] sm:$0xf] }
   0xe   :  { %343 = vmatpush.bf16.msra.mxu0 %v743_v11  ;;  %v586_v47 = vor.u32 %v726_v46, %v585_v45  ;;  %v565_v48 = vld [vmem:[%s1093_s0 + $0x30] sm:$0xf]  ;;  %v722_v49 = vld [vmem:[%s1093_s0 + $0x38] sm:$0xf0]  ;;  %v615_v51 = vld [vmem:[%s1093_s0 + $0x9c] sm:$0xf0] }
   0xf   :  { %807 = vmatpush.bf16.msra.mxu3 %v743_v11  ;;  %392 = vmatpush.bf16.msra.mxu1 %v751_v12  ;;  %v721_v52 = vld [vmem:[%s1093_s0 + $0x34] sm:$0xf]  ;;  %v567_v53 = vld [vmem:[%s1093_s0 + $0x3c] sm:$0xf0]  ;;  %v566_v54 = vor.u32 %v722_v49, %v565_v48  ;;  %v618_v55 = vor.u32 %v733_v50, %v615_v51  ;;  %v597_v57 = vld [vmem:[%s1093_s0 + $0x68] sm:$0xf] }
  0x10   :  { %v570_v56 = vor.u32 %v721_v52, %v567_v53  ;;  %v729_v58 = vld [vmem:[%s1093_s0 + $0x70] sm:$0xf0]  ;;  %v577_v60 = vld [vmem:[%s1093_s0 + $0x48] sm:$0xf]  ;;  %v736_v62 = vld [vmem:[%s1093_s0 + $0xac] sm:$0xf] }
  0x11   :  { %v598_v59 = vor.u32 %v729_v58, %v597_v57  ;;  %v725_v61 = vld [vmem:[%s1093_s0 + $0x50] sm:$0xf0]  ;;  %v627_v63 = vld [vmem:[%s1093_s0 + $0xb4] sm:$0xf0]  ;;  %v724_v0 = vld [vmem:[%s1093_s0 + $0x4c] sm:$0xf] }
  0x12   :  { %344 = vmatpush.bf16.msra.mxu0 %v742_v13  ;;  %v579_v1 = vld [vmem:[%s1093_s0 + $0x54] sm:$0xf0]  ;;  %v630_v3 = vor.u32 %v736_v62, %v627_v63  ;;  %v732_v6 = vld [vmem:[%s1093_s0 + $0x88] sm:$0xf0]  ;;  %v589_v8 = vld [vmem:[%s1093_s0 + $0x60] sm:$0xf] }
  0x13   :  { %808 = vmatpush.bf16.msra.mxu3 %v742_v13  ;;  %393 = vmatpush.bf16.msra.mxu1 %v750_v14  ;;  %v582_v4 = vor.u32 %v724_v0, %v579_v1  ;;  %v728_v9 = vld [vmem:[%s1093_s0 + $0x68] sm:$0xf0]  ;;  %v591_v11 = vld [vmem:[%s1093_s0 + $0x6c] sm:$0xf0]  ;;  %v601_v17 = vld [vmem:[%s1093_s0 + $0x78] sm:$0xf] }
  0x14   :  { %v731_v18 = vld [vmem:[%s1093_s0 + $0x80] sm:$0xf0]  ;;  %v738_v24 = vld [vmem:[%s1093_s0 + $0xb8] sm:$0xf0]  ;;  %v1050_v29 = vld [vmem:[%s1094_s2] ss:$0 sm:$0xff] }
  0x16   :  { %345 = vmatpush.bf16.msra.mxu0 %v741_v15 }
  0x17   :  { %809 = vmatpush.bf16.msra.mxu3 %v741_v15  ;;  %394 = vmatpush.bf16.msra.mxu1 %v749_v16  ;;  %v735_v15 = vld [vmem:[%s1093_s0 + $0xa0] sm:$0xf0] }
  0x1a   :  { %708 = vmatmul.msk.bf16.gmra.mxu2 %vm315_vm0, %v562_v19  ;;  %346 = vmatpush.bf16.msra.mxu0 %v740_v20  ;;  %v730_v19 = vld [vmem:[%s1093_s0 + $0x7c] sm:$0xf] }
  0x1b   :  { %810 = vmatpush.bf16.msra.mxu3 %v740_v20  ;;  %395 = vmatpush.bf16.msra.mxu1 %v748_v21  ;;  %v603_v20 = vld [vmem:[%s1093_s0 + $0x84] sm:$0xf0] }
  0x1e   :  { %347 = vmatpush.bf16.msra.mxu0 %v739_v22 }
  0x1f   :  { %811 = vmatpush.bf16.msra.mxu3 %v739_v22  ;;  %396 = vmatpush.bf16.msra.mxu1 %v747_v23  ;;  %v606_v22 = vor.u32 %v730_v19, %v603_v20 }
  0x21   :  { %348 = vmatmul.bf16.vlgmr.msra.gmra.mxu0 %v542_v30 }
  0x22   :  { %378 = vmatmul.bf16.vlgmr.msra.gmra.mxu3 %v614_v31  ;;  %397 = vmatmul.bf16.vlgmr.msra.gmra.mxu1 %v546_v32 }
  0x23   :  { %812 = vmatpush.bf16.msrb.mxu3 %v754_v2  ;;  %v578_v2 = vor.u32 %v725_v61, %v577_v60 }
  0x27   :  { %813 = vmatpush.bf16.msrb.mxu3 %v753_v5  ;;  %v609_v5 = vld [vmem:[%s1093_s0 + $0x80] sm:$0xf] }
  0x28   :  { %v610_v7 = vor.u32 %v732_v6, %v609_v5 }
  0x2a   :  { %709 = vmatmul.msk.bf16.gmra.mxu2 %vm315_vm0, %v574_v35 }
  0x2b   :  { %814 = vmatpush.bf16.msrb.mxu3 %v752_v10  ;;  %v727_v10 = vld [vmem:[%s1093_s0 + $0x64] sm:$0xf] }
  0x2c   :  { %v594_v13 = vor.u32 %v727_v10, %v591_v11 }
  0x2f   :  { %815 = vmatpush.bf16.msrb.mxu3 %v751_v12  ;;  %v590_v12 = vor.u32 %v728_v9, %v589_v8 }
  0x31   :  { %353 = vmatmul.bf16.gmra.mxu0 %v554_v42 }
  0x32   :  { %383 = vmatmul.bf16.gmra.mxu3 %v626_v43  ;;  %402 = vmatmul.bf16.gmra.mxu1 %v558_v44 }
  0x33   :  { %816 = vmatpush.bf16.msrb.mxu3 %v750_v14  ;;  %v621_v14 = vld [vmem:[%s1093_s0 + $0x98] sm:$0xf] }
  0x37   :  { %817 = vmatpush.bf16.msrb.mxu3 %v749_v16  ;;  %v622_v16 = vor.u32 %v735_v15, %v621_v14 }
  0x3a   :  { %710 = vmatmul.msk.bf16.gmra.mxu2 %vm315_vm0, %v586_v47 }
  0x3b   :  { %818 = vmatpush.bf16.msrb.mxu3 %v748_v21  ;;  %v602_v21 = vor.u32 %v731_v18, %v601_v17 }
  0x3f   :  { %819 = vmatpush.bf16.msrb.mxu3 %v747_v23  ;;  %v633_v23 = vld [vmem:[%s1093_s0 + $0xb0] sm:$0xf] }
  0x40   :  { %v634_v25 = vor.u32 %v738_v24, %v633_v23 }
  0x41   :  { %358 = vmatmul.bf16.gmra.mxu0 %v566_v54 }
  0x42   :  { %427 = vmatmul.bf16.vlgmr.msrb.gmra.mxu3 %v618_v55  ;;  %407 = vmatmul.bf16.gmra.mxu1 %v570_v56 }
  0x4a   :  { %711 = vmatmul.msk.bf16.gmra.mxu2 %vm315_vm0, %v598_v59 }
  0x51   :  { %363 = vmatmul.bf16.gmra.mxu0 %v578_v2 }
  0x52   :  { %432 = vmatmul.bf16.gmra.mxu3 %v630_v3  ;;  %412 = vmatmul.bf16.gmra.mxu1 %v582_v4 }
  0x5a   :  { %712 = vmatmul.msk.bf16.gmra.mxu2 %vm315_vm0, %v610_v7 }
  0x61   :  { %368 = vmatmul.bf16.gmra.mxu0 %v590_v12 }
  0x62   :  { %417 = vmatmul.bf16.gmra.mxu1 %v594_v13 }
  0x6a   :  { %713 = vmatmul.msk.bf16.gmra.mxu2 %vm315_vm0, %v622_v16 }
  0x71   :  { %373 = vmatmul.bf16.gmra.mxu0 %v602_v21 }
  0x72   :  { %422 = vmatmul.bf16.gmra.mxu1 %v606_v22 }
  0x7a   :  { %714 = vmatmul.msk.bf16.gmra.mxu2 %vm315_vm0, %v634_v25 }
  0x8d   :  { %v447_v26 = vpop.f32.mrf.mxu2 }
  0x95   :  { %v449_v27 = vpop.f32.mrf.mxu2 }
  0x9d   :  { %v452_v28 = vpop.f32.mrf.mxu2 }
  0x9e   :  { %v349_v30 = vpop.f32.mrf.mxu0 }
  0x9f   :  { %v398_v31 = vpop.f32.mrf.mxu1  ;;  %v350_v32 = vadd.f32 %v1050_v29, %v349_v30 }
  0xa1   :  { %v399_v33 = vadd.f32 %v398_v31, %v350_v32 }
  0xa3   :  { %v448_v38 = vadd.f32 %v447_v26, %v399_v33 }
  0xa5   :  { %v454_v34 = vpop.f32.mrf.mxu2  ;;  %v487_v41 = vmax.f32 %v448_v38, 0.0  ;;  %v379_v55 = vpop.f32.mrf.mxu3 }
  0xa6   :  { %v351_v35 = vpop.f32.mrf.mxu0 }
  0xa7   :  { %v352_v36 = vadd.f32 %v1050_v29, %v351_v35  ;;  %v400_v37 = vpop.f32.mrf.mxu1 }
  0xa9   :  { %v401_v39 = vadd.f32 %v400_v37, %v352_v36 }
  0xab   :  { %v450_v40 = vadd.f32 %v449_v27, %v401_v39 }
  0xad   :  { %v488_v42 = vmax.f32 %v450_v40, 0.0  ;;  %v457_v43 = vpop.f32.mrf.mxu2  ;;  %v381_v0 = vpop.f32.mrf.mxu3 }
  0xae   :  { %v354_v44 = vpop.f32.mrf.mxu0 }
  0xaf   :  { %v760_v45 = vpack.c.bf16 %v488_v42, %v487_v41  ;;  %v403_v46 = vpop.f32.mrf.mxu1  ;;  %v355_v47 = vadd.f32 %v1050_v29, %v354_v44 }
  0xb1   :  { %761 = vst [vmem:[%s1095_s3] sm:$0xff] %v760_v45   ;;  %v404_v48 = vadd.f32 %v403_v46, %v355_v47  ;;  %v380_v47 = vadd.f32 %v1050_v29, %v379_v55 }
  0xb3   :  { %v453_v53 = vadd.f32 %v452_v28, %v404_v48 }
  0xb5   :  { %v459_v49 = vpop.f32.mrf.mxu2  ;;  %v489_v57 = vmax.f32 %v453_v53, 0.0  ;;  %v384_v13 = vpop.f32.mrf.mxu3 }
  0xb6   :  { %v356_v50 = vpop.f32.mrf.mxu0 }
  0xb7   :  { %v357_v51 = vadd.f32 %v1050_v29, %v356_v50  ;;  %v405_v52 = vpop.f32.mrf.mxu1 }
  0xb9   :  { %v406_v54 = vadd.f32 %v405_v52, %v357_v51  ;;  %v382_v51 = vadd.f32 %v1050_v29, %v381_v0 }
  0xbb   :  { %v455_v56 = vadd.f32 %v454_v34, %v406_v54 }
  0xbd   :  { %v490_v58 = vmax.f32 %v455_v56, 0.0  ;;  %v462_v59 = vpop.f32.mrf.mxu2  ;;  %v386_v22 = vpop.f32.mrf.mxu3 }
  0xbe   :  { %v359_v60 = vpop.f32.mrf.mxu0 }
  0xbf   :  { %v765_v61 = vpack.c.bf16 %v490_v58, %v489_v57  ;;  %v408_v62 = vpop.f32.mrf.mxu1  ;;  %v360_v63 = vadd.f32 %v1050_v29, %v359_v60 }
  0xc1   :  { %797 = vst [vmem:[%s1095_s3 + $0x8] sm:$0xff] %v765_v61   ;;  %v409_v1 = vadd.f32 %v408_v62, %v360_v63 }
  0xc3   :  { %v458_v6 = vadd.f32 %v457_v43, %v409_v1 }
  0xc5   :  { %v464_v2 = vpop.f32.mrf.mxu2  ;;  %v491_v9 = vmax.f32 %v458_v6, 0.0  ;;  %v428_v34 = vpop.f32.mrf.mxu3 }
  0xc6   :  { %v361_v3 = vpop.f32.mrf.mxu0  ;;  %v429_v53 = vadd.f32 %v428_v34, %v380_v47 }
  0xc7   :  { %v362_v4 = vadd.f32 %v1050_v29, %v361_v3  ;;  %v410_v5 = vpop.f32.mrf.mxu1 }
  0xc9   :  { %v411_v7 = vadd.f32 %v410_v5, %v362_v4 }
  0xcb   :  { %v460_v8 = vadd.f32 %v459_v49, %v411_v7 }
  0xcd   :  { %v492_v10 = vmax.f32 %v460_v8, 0.0  ;;  %v467_v11 = vpop.f32.mrf.mxu2  ;;  %v430_v43 = vpop.f32.mrf.mxu3  ;;  %v385_v8 = vadd.f32 %v1050_v29, %v384_v13 }
  0xce   :  { %v364_v12 = vpop.f32.mrf.mxu0  ;;  %v431_v54 = vadd.f32 %v430_v43, %v382_v51 }
  0xcf   :  { %v770_v14 = vpack.c.bf16 %v492_v10, %v491_v9  ;;  %v413_v15 = vpop.f32.mrf.mxu1  ;;  %v365_v16 = vadd.f32 %v1050_v29, %v364_v12  ;;  %v387_v10 = vadd.f32 %v1050_v29, %v386_v22 }
  0xd1   :  { %798 = vst [vmem:[%s1095_s3 + $0x10] sm:$0xff] %v770_v14   ;;  %v414_v17 = vadd.f32 %v413_v15, %v365_v16 }
  0xd3   :  { %v463_v23 = vadd.f32 %v462_v59, %v414_v17 }
  0xd5   :  { %v469_v18 = vpop.f32.mrf.mxu2  ;;  %v493_v26 = vmax.f32 %v463_v23, 0.0  ;;  %v433_v61 = vpop.f32.mrf.mxu3 }
  0xd6   :  { %v366_v19 = vpop.f32.mrf.mxu0  ;;  %v434_v12 = vadd.f32 %v433_v61, %v385_v8 }
  0xd7   :  { %v367_v20 = vadd.f32 %v1050_v29, %v366_v19  ;;  %v415_v21 = vpop.f32.mrf.mxu1 }
  0xd9   :  { %v416_v24 = vadd.f32 %v415_v21, %v367_v20 }
  0xdb   :  { %v465_v25 = vadd.f32 %v464_v2, %v416_v24 }
  0xdd   :  { %v494_v27 = vmax.f32 %v465_v25, 0.0  ;;  %v472_v28 = vpop.f32.mrf.mxu2 }
  0xde   :  { %v369_v30 = vpop.f32.mrf.mxu0 }
  0xdf   :  { %v775_v31 = vpack.c.bf16 %v494_v27, %v493_v26  ;;  %v418_v32 = vpop.f32.mrf.mxu1  ;;  %v370_v33 = vadd.f32 %v1050_v29, %v369_v30 }
  0xe1   :  { %799 = vst [vmem:[%s1095_s3 + $0x18] sm:$0xff] %v775_v31   ;;  %v419_v35 = vadd.f32 %v418_v32, %v370_v33 }
  0xe3   :  { %v468_v40 = vadd.f32 %v467_v11, %v419_v35  ;;  %v435_v11 = vpop.f32.mrf.mxu3 }
  0xe4   :  { %v436_v14 = vadd.f32 %v435_v11, %v387_v10 }
  0xe5   :  { %v474_v36 = vpop.f32.mrf.mxu2  ;;  %v495_v44 = vmax.f32 %v468_v40, 0.0 }
  0xe6   :  { %v371_v37 = vpop.f32.mrf.mxu0 }
  0xe7   :  { %v372_v38 = vadd.f32 %v1050_v29, %v371_v37  ;;  %v420_v39 = vpop.f32.mrf.mxu1 }
  0xe9   :  { %v421_v41 = vadd.f32 %v420_v39, %v372_v38 }
  0xeb   :  { %v470_v42 = vadd.f32 %v469_v18, %v421_v41 }
  0xed   :  { %v496_v45 = vmax.f32 %v470_v42, 0.0  ;;  %v477_v46 = vpop.f32.mrf.mxu2 }
  0xee   :  { %v374_v48 = vpop.f32.mrf.mxu0  ;;  %v478_v56 = vadd.f32 %v477_v46, %v429_v53 }
  0xef   :  { %v780_v49 = vpack.c.bf16 %v496_v45, %v495_v44  ;;  %v423_v50 = vpop.f32.mrf.mxu1  ;;  %v375_v52 = vadd.f32 %v1050_v29, %v374_v48 }
  0xf0   :  { %v499_v63 = vmax.f32 %v478_v56, 0.0 }
  0xf1   :  { %800 = vst [vmem:[%s1095_s3 + $0x20] sm:$0xff] %v780_v49   ;;  %v424_v57 = vadd.f32 %v423_v50, %v375_v52 }
  0xf3   :  { %v473_v0 = vadd.f32 %v472_v28, %v424_v57 }
  0xf5   :  { %v479_v58 = vpop.f32.mrf.mxu2  ;;  %v497_v5 = vmax.f32 %v473_v0, 0.0 }
  0xf6   :  { %v480_v59 = vadd.f32 %v479_v58, %v431_v54  ;;  %v376_v60 = vpop.f32.mrf.mxu0 }
  0xf7   :  { %v377_v55 = vadd.f32 %v1050_v29, %v376_v60  ;;  %v425_v62 = vpop.f32.mrf.mxu1 }
  0xf8   :  { %v500_v1 = vmax.f32 %v480_v59, 0.0 }
  0xf9   :  { %v426_v2 = vadd.f32 %v425_v62, %v377_v55 }
  0xfa   :  { %v790_v3 = vpack.c.bf16 %v500_v1, %v499_v63 }
  0xfb   :  { %v475_v4 = vadd.f32 %v474_v36, %v426_v2 }
  0xfc   :  { %802 = vst [vmem:[%s1095_s3 + $0x30] sm:$0xff] %v790_v3  }
  0xfd   :  { %v498_v6 = vmax.f32 %v475_v4, 0.0  ;;  %v482_v7 = vpop.f32.mrf.mxu2 }
  0xfe   :  { %v483_v15 = vadd.f32 %v482_v7, %v434_v12 }
  0xff   :  { %v785_v9 = vpack.c.bf16 %v498_v6, %v497_v5 }
 0x100   :  { %v501_v18 = vmax.f32 %v483_v15, 0.0 }
 0x101   :  { %801 = vst [vmem:[%s1095_s3 + $0x28] sm:$0xff] %v785_v9  }
 0x105   :  { %v484_v16 = vpop.f32.mrf.mxu2 }
 0x106   :  { %v485_v17 = vadd.f32 %v484_v16, %v436_v14 }
 0x108   :  { %v502_v19 = vmax.f32 %v485_v17, 0.0 }
 0x10a   :  { %v795_v20 = vpack.c.bf16 %v502_v19, %v501_v18 }
 0x10c   :  { %803 = vst [vmem:[%s1095_s3 + $0x38] sm:$0xff] %v795_v20  }

// kernel: stegastamp_encoder_forward.18
= control target key start
LH: loop header
LB: loop body
LE: loop exit
PB: predicated region body
PF: predicated region fallthrough
CT: control target
= control target key end

     0   :  { %vm201_vm0 = vcmask 261120   ;;  %s544_s1 = inlined_call_operand.vmem [shape: bf16[288,128], index: 1, kind: input, shape index: {}]   ;;  %s545_s0 = inlined_call_operand.vmem [shape: bf16[32,288], index: 0, kind: input, shape index: {}]   ;;  %s546_s2 = inlined_call_operand.vmem [shape: f32[1,128], index: 2, kind: input, shape index: {}]   ;;  %s547_s3 = inlined_call_operand.vmem [shape: bf16[32,128], index: 3, kind: output, shape index: {}]  }
   0x1   :  { %v392_v0 = vld [vmem:[%s544_s1 + $0x38] sm:$0xff]  ;;  %v391_v2 = vld [vmem:[%s544_s1 + $0x30] sm:$0xff]  ;;  %v402_v3 = vld [vmem:[%s544_s1 + $0x88] sm:$0xff] }
   0x2   :  { %v400_v1 = vld [vmem:[%s544_s1 + $0x78] sm:$0xff]  ;;  %208 = vmatpush.bf16.msra.mxu0 %v392_v0  ;;  %414 = vmatpush.bf16.msra.mxu3 %v392_v0  ;;  %v399_v4 = vld [vmem:[%s544_s1 + $0x70] sm:$0xff]  ;;  %v401_v5 = vld [vmem:[%s544_s1 + $0x80] sm:$0xff] }
   0x3   :  { %227 = vmatpush.bf16.msra.mxu1 %v400_v1  ;;  %252 = vmatpush.bf16.msra.mxu2 %v402_v3  ;;  %v291_v6 = vld [vmem:[%s545_s0 + $0x8] sm:$0xf]  ;;  %v381_v7 = vld [vmem:[%s545_s0 + $0x10] sm:$0xf0]  ;;  %v389_v11 = vld [vmem:[%s544_s1 + $0x20] sm:$0xff] }
   0x4   :  { %v390_v8 = vld [vmem:[%s544_s1 + $0x28] sm:$0xff]  ;;  %v292_v10 = vor.u32 %v381_v7, %v291_v6  ;;  %v397_v12 = vld [vmem:[%s544_s1 + $0x60] sm:$0xff]  ;;  %v388_v13 = vld [vmem:[%s544_s1 + $0x18] sm:$0xff] }
   0x5   :  { %v398_v9 = vld [vmem:[%s544_s1 + $0x68] sm:$0xff]  ;;  %v396_v14 = vld [vmem:[%s544_s1 + $0x58] sm:$0xff]  ;;  %v387_v15 = vld [vmem:[%s544_s1 + $0x10] sm:$0xff] }
   0x6   :  { %209 = vmatpush.bf16.msra.mxu0 %v391_v2  ;;  %415 = vmatpush.bf16.msra.mxu3 %v391_v2  ;;  %v395_v16 = vld [vmem:[%s544_s1 + $0x50] sm:$0xff]  ;;  %v303_v17 = vld [vmem:[%s545_s0 + $0x20] sm:$0xf]  ;;  %v384_v18 = vld [vmem:[%s545_s0 + $0x28] sm:$0xf0] }
   0x7   :  { %228 = vmatpush.bf16.msra.mxu1 %v399_v4  ;;  %253 = vmatpush.bf16.msra.mxu2 %v401_v5  ;;  %v386_v19 = vld [vmem:[%s544_s1 + $0x8] sm:$0xff]  ;;  %v304_v21 = vor.u32 %v384_v18, %v303_v17  ;;  %v385_v22 = vld [vmem:[%s544_s1] sm:$0xff]  ;;  %v295_v25 = vld [vmem:[%s545_s0 + $0x18] sm:$0xf] }
   0x8   :  { %v394_v20 = vld [vmem:[%s544_s1 + $0x48] sm:$0xff]  ;;  %v283_v23 = vld [vmem:[%s545_s0] sm:$0xf]  ;;  %v383_v26 = vld [vmem:[%s545_s0 + $0x20] sm:$0xf0] }
   0x9   :  { %v380_v24 = vld [vmem:[%s545_s0 + $0x8] sm:$0xf0]  ;;  %v393_v27 = vld [vmem:[%s544_s1 + $0x40] sm:$0xff]  ;;  %v285_v29 = vld [vmem:[%s545_s0 + $0xc] sm:$0xf0]  ;;  %v296_v31 = vor.u32 %v383_v26, %v295_v25 }
   0xa   :  { %210 = vmatpush.bf16.msra.mxu0 %v390_v8  ;;  %416 = vmatpush.bf16.msra.mxu3 %v390_v8  ;;  %v379_v28 = vld [vmem:[%s545_s0 + $0x4] sm:$0xf]  ;;  %v284_v30 = vor.u32 %v380_v24, %v283_v23  ;;  %v382_v33 = vld [vmem:[%s545_s0 + $0x1c] sm:$0xf]  ;;  %v297_v34 = vld [vmem:[%s545_s0 + $0x24] sm:$0xf0] }
   0xb   :  { %229 = vmatpush.bf16.msra.mxu1 %v398_v9  ;;  %377 = vmatmul.msk.bf16.vlgmr.msra.gmra.mxu2 %vm201_vm0, %v292_v10  ;;  %v288_v32 = vor.u32 %v379_v28, %v285_v29  ;;  %v300_v35 = vor.u32 %v382_v33, %v297_v34  ;;  %v422_v37 = vld [vmem:[%s546_s2] ss:$0 sm:$0xff] }
   0xe   :  { %211 = vmatpush.bf16.msra.mxu0 %v389_v11  ;;  %417 = vmatpush.bf16.msra.mxu3 %v389_v11 }
   0xf   :  { %230 = vmatpush.bf16.msra.mxu1 %v397_v12 }
  0x12   :  { %212 = vmatpush.bf16.msra.mxu0 %v388_v13  ;;  %418 = vmatpush.bf16.msra.mxu3 %v388_v13 }
  0x13   :  { %231 = vmatpush.bf16.msra.mxu1 %v396_v14 }
  0x16   :  { %213 = vmatpush.bf16.msra.mxu0 %v387_v15  ;;  %419 = vmatpush.bf16.msra.mxu3 %v387_v15 }
  0x17   :  { %232 = vmatpush.bf16.msra.mxu1 %v395_v16 }
  0x1a   :  { %214 = vmatpush.bf16.msra.mxu0 %v386_v19  ;;  %420 = vmatpush.bf16.msra.mxu3 %v386_v19 }
  0x1b   :  { %233 = vmatpush.bf16.msra.mxu1 %v394_v20  ;;  %378 = vmatmul.msk.bf16.gmra.mxu2 %vm201_vm0, %v304_v21 }
  0x1e   :  { %215 = vmatpush.bf16.msra.mxu0 %v385_v22  ;;  %421 = vmatpush.bf16.msra.mxu3 %v385_v22 }
  0x1f   :  { %234 = vmatpush.bf16.msra.mxu1 %v393_v27 }
  0x21   :  { %216 = vmatmul.bf16.vlgmr.msra.gmra.mxu0 %v284_v30  ;;  %221 = vmatmul.bf16.vlgmr.msra.gmra.mxu3 %v296_v31 }
  0x22   :  { %235 = vmatmul.bf16.vlgmr.msra.gmra.mxu1 %v288_v32 }
  0x32   :  { %240 = vmatmul.bf16.gmra.mxu1 %v300_v35 }
  0x8e   :  { %v255_v36 = vpop.f32.mrf.mxu2 }
  0x96   :  { %v257_v42 = vpop.f32.mrf.mxu2 }
  0x9e   :  { %v217_v38 = vpop.f32.mrf.mxu0  ;;  %v260_v53 = vpop.f32.mrf.mxu2 }
  0x9f   :  { %v236_v39 = vpop.f32.mrf.mxu1  ;;  %v218_v40 = vadd.f32 %v422_v37, %v217_v38 }
  0xa1   :  { %v237_v41 = vadd.f32 %v236_v39, %v218_v40 }
  0xa3   :  { %v256_v46 = vadd.f32 %v255_v36, %v237_v41 }
  0xa4   :  { %v222_v47 = vpop.f32.mrf.mxu3 }
  0xa5   :  { %v265_v50 = vmax.f32 %v256_v46, 0.0  ;;  %v223_v55 = vadd.f32 %v422_v37, %v222_v47 }
  0xa6   :  { %v219_v43 = vpop.f32.mrf.mxu0  ;;  %v262_v62 = vpop.f32.mrf.mxu2 }
  0xa7   :  { %v220_v44 = vadd.f32 %v422_v37, %v219_v43  ;;  %v238_v45 = vpop.f32.mrf.mxu1 }
  0xa9   :  { %v239_v48 = vadd.f32 %v238_v45, %v220_v44 }
  0xab   :  { %v258_v49 = vadd.f32 %v257_v42, %v239_v48 }
  0xac   :  { %v224_v56 = vpop.f32.mrf.mxu3 }
  0xad   :  { %v266_v51 = vmax.f32 %v258_v49, 0.0  ;;  %v225_v58 = vadd.f32 %v422_v37, %v224_v56 }
  0xaf   :  { %v406_v52 = vpack.c.bf16 %v266_v51, %v265_v50  ;;  %v241_v54 = vpop.f32.mrf.mxu1 }
  0xb0   :  { %v242_v57 = vadd.f32 %v241_v54, %v223_v55 }
  0xb1   :  { %407 = vst [vmem:[%s547_s3] sm:$0xff] %v406_v52  }
  0xb2   :  { %v261_v60 = vadd.f32 %v260_v53, %v242_v57 }
  0xb4   :  { %v267_v0 = vmax.f32 %v261_v60, 0.0 }
  0xb7   :  { %v243_v59 = vpop.f32.mrf.mxu1 }
  0xb8   :  { %v244_v61 = vadd.f32 %v243_v59, %v225_v58 }
  0xba   :  { %v263_v63 = vadd.f32 %v262_v62, %v244_v61 }
  0xbc   :  { %v268_v1 = vmax.f32 %v263_v63, 0.0 }
  0xbe   :  { %v411_v2 = vpack.c.bf16 %v268_v1, %v267_v0 }
  0xc0   :  { %413 = vst [vmem:[%s547_s3 + $0x8] sm:$0xff] %v411_v2  }

// kernel: stegastamp_encoder_forward.19
= control target key start
LH: loop header
LB: loop body
LE: loop exit
PB: predicated region body
PF: predicated region fallthrough
CT: control target
= control target key end

     0   :  { %vm327_vm0 = vcmask 523264   ;;  %s728_s1 = inlined_call_operand.vmem [shape: bf16[576,128], index: 1, kind: input, shape index: {}]   ;;  %s729_s2 = inlined_call_operand.vmem [shape: f32[1,128], index: 2, kind: input, shape index: {}]   ;;  %s730_s0 = inlined_call_operand.vmem [shape: bf16[8,576], index: 0, kind: input, shape index: {}]   ;;  %s731_s3 = inlined_call_operand.vmem [shape: bf16[8,128], index: 3, kind: output, shape index: {}]  }
   0x1   :  { %v555_v0 = vld [vmem:[%s728_s1 + $0x38] sm:$0xff]  ;;  %v554_v4 = vld [vmem:[%s728_s1 + $0x30] sm:$0xff]  ;;  %v553_v8 = vld [vmem:[%s728_s1 + $0x28] sm:$0xff] }
   0x2   :  { %v571_v1 = vld [vmem:[%s728_s1 + $0xb8] sm:$0xff]  ;;  %331 = vmatpush.bf16.msra.mxu0 %v555_v0  ;;  %v570_v5 = vld [vmem:[%s728_s1 + $0xb0] sm:$0xff]  ;;  %v569_v9 = vld [vmem:[%s728_s1 + $0xa8] sm:$0xff] }
   0x3   :  { %v579_v2 = vld [vmem:[%s728_s1 + $0xf8] sm:$0xff]  ;;  %357 = vmatpush.bf16.msra.mxu2 %v571_v1  ;;  %v578_v6 = vld [vmem:[%s728_s1 + $0xf0] sm:$0xff]  ;;  %v577_v10 = vld [vmem:[%s728_s1 + $0xe8] sm:$0xff] }
   0x4   :  { %v563_v3 = vld [vmem:[%s728_s1 + $0x78] sm:$0xff]  ;;  %370 = vmatpush.bf16.msra.mxu3 %v579_v2  ;;  %v562_v7 = vld [vmem:[%s728_s1 + $0x70] sm:$0xff]  ;;  %v561_v11 = vld [vmem:[%s728_s1 + $0x68] sm:$0xff] }
   0x5   :  { %344 = vmatpush.bf16.msra.mxu1 %v563_v3  ;;  %v552_v12 = vld [vmem:[%s728_s1 + $0x20] sm:$0xff]  ;;  %v551_v16 = vld [vmem:[%s728_s1 + $0x18] sm:$0xff]  ;;  %v550_v20 = vld [vmem:[%s728_s1 + $0x10] sm:$0xff] }
   0x6   :  { %332 = vmatpush.bf16.msra.mxu0 %v554_v4  ;;  %v568_v13 = vld [vmem:[%s728_s1 + $0xa0] sm:$0xff]  ;;  %v567_v17 = vld [vmem:[%s728_s1 + $0x98] sm:$0xff]  ;;  %v566_v21 = vld [vmem:[%s728_s1 + $0x90] sm:$0xff] }
   0x7   :  { %358 = vmatpush.bf16.msra.mxu2 %v570_v5  ;;  %v576_v14 = vld [vmem:[%s728_s1 + $0xe0] sm:$0xff]  ;;  %v575_v18 = vld [vmem:[%s728_s1 + $0xd8] sm:$0xff]  ;;  %v574_v22 = vld [vmem:[%s728_s1 + $0xd0] sm:$0xff] }
   0x8   :  { %371 = vmatpush.bf16.msra.mxu3 %v578_v6  ;;  %v560_v15 = vld [vmem:[%s728_s1 + $0x60] sm:$0xff]  ;;  %v559_v19 = vld [vmem:[%s728_s1 + $0x58] sm:$0xff]  ;;  %v558_v23 = vld [vmem:[%s728_s1 + $0x50] sm:$0xff] }
   0x9   :  { %345 = vmatpush.bf16.msra.mxu1 %v562_v7  ;;  %v549_v24 = vld [vmem:[%s728_s1 + $0x8] sm:$0xff]  ;;  %v15_v26 = vld [vmem:[%s730_s0] sm:$0xff]  ;;  %v583_v38 = vld [vmem:[%s728_s1 + $0x118] sm:$0xff] }
   0xa   :  { %333 = vmatpush.bf16.msra.mxu0 %v553_v8  ;;  %v565_v25 = vld [vmem:[%s728_s1 + $0x88] sm:$0xff]  ;;  %v97_v30 = vunpack.c.l.b16 %v15_v26  ;;  %v548_v32 = vld [vmem:[%s728_s1] sm:$0xff]  ;;  %v98_v35 = vunpack.c.h.b16 %v15_v26  ;;  %v582_v43 = vld [vmem:[%s728_s1 + $0x110] sm:$0xff] }
   0xb   :  { %359 = vmatpush.bf16.msra.mxu2 %v569_v9  ;;  %v16_v27 = vld [vmem:[%s730_s0 + $0x8] sm:$0xff]  ;;  %v564_v33 = vld [vmem:[%s728_s1 + $0x80] sm:$0xff]  ;;  %v17_v45 = vld [vmem:[%s730_s0 + $0x10] sm:$0xf] }
   0xc   :  { %372 = vmatpush.bf16.msra.mxu3 %v577_v10  ;;  %v573_v28 = vld [vmem:[%s728_s1 + $0xc8] sm:$0xff]  ;;  %v99_v31 = vunpack.c.l.b16 %v16_v27  ;;  %v100_v34 = vunpack.c.h.b16 %v16_v27  ;;  %v572_v36 = vld [vmem:[%s728_s1 + $0xc0] sm:$0xff]  ;;  %v102_v39 = vpack.c.b16 %v97_v30, %v97_v30  ;;  %v103_v42 = vpack.c.b16 %v98_v35, %v98_v35 }
   0xd   :  { %346 = vmatpush.bf16.msra.mxu1 %v561_v11  ;;  %v557_v29 = vld [vmem:[%s728_s1 + $0x48] sm:$0xff]  ;;  %v556_v37 = vld [vmem:[%s728_s1 + $0x40] sm:$0xff]  ;;  %v101_v47 = vunpack.c.l.b16 %v17_v45 }
   0xe   :  { %334 = vmatpush.bf16.msra.mxu0 %v552_v12  ;;  %v104_v40 = vpack.c.b16 %v99_v31, %v99_v31  ;;  %v105_v41 = vpack.c.b16 %v100_v34, %v100_v34  ;;  %v581_v44 = vld [vmem:[%s728_s1 + $0x108] sm:$0xff]  ;;  %v580_v46 = vld [vmem:[%s728_s1 + $0x100] sm:$0xff] }
   0xf   :  { %360 = vmatpush.bf16.msra.mxu2 %v568_v13  ;;  %v106_v48 = vpack.c.b16 %v101_v47, %v101_v47  ;;  %v584_v50 = vld [vmem:[%s729_s2] ss:$0 sm:$0xff] }
  0x10   :  { %373 = vmatpush.bf16.msra.mxu3 %v576_v14 }
  0x11   :  { %347 = vmatpush.bf16.msra.mxu1 %v560_v15 }
  0x12   :  { %335 = vmatpush.bf16.msra.mxu0 %v551_v16 }
  0x13   :  { %361 = vmatpush.bf16.msra.mxu2 %v567_v17 }
  0x14   :  { %374 = vmatpush.bf16.msra.mxu3 %v575_v18 }
  0x15   :  { %348 = vmatpush.bf16.msra.mxu1 %v559_v19 }
  0x16   :  { %336 = vmatpush.bf16.msra.mxu0 %v550_v20 }
  0x17   :  { %362 = vmatpush.bf16.msra.mxu2 %v566_v21 }
  0x18   :  { %375 = vmatpush.bf16.msra.mxu3 %v574_v22 }
  0x19   :  { %349 = vmatpush.bf16.msra.mxu1 %v558_v23 }
  0x1a   :  { %337 = vmatpush.bf16.msra.mxu0 %v549_v24 }
  0x1b   :  { %363 = vmatpush.bf16.msra.mxu2 %v565_v25 }
  0x1c   :  { %376 = vmatpush.bf16.msra.mxu3 %v573_v28 }
  0x1d   :  { %350 = vmatpush.bf16.msra.mxu1 %v557_v29 }
  0x1e   :  { %338 = vmatpush.bf16.msra.mxu0 %v548_v32 }
  0x1f   :  { %364 = vmatpush.bf16.msra.mxu2 %v564_v33 }
  0x20   :  { %377 = vmatpush.bf16.msra.mxu3 %v572_v36 }
  0x21   :  { %351 = vmatpush.bf16.msra.mxu1 %v556_v37  ;;  %339 = vmatmul.bf16.vlgmr.msra.gmra.mxu0 %v102_v39 }
  0x22   :  { %387 = vmatpush.bf16.msrb.mxu0 %v583_v38  ;;  %365 = vmatmul.bf16.vlgmr.msra.gmra.mxu2 %v104_v40 }
  0x23   :  { %378 = vmatmul.bf16.vlgmr.msra.gmra.mxu3 %v105_v41 }
  0x24   :  { %352 = vmatmul.bf16.vlgmr.msra.gmra.mxu1 %v103_v42 }
  0x26   :  { %388 = vmatpush.bf16.msrb.mxu0 %v582_v43 }
  0x2a   :  { %389 = vmatpush.bf16.msrb.mxu0 %v581_v44 }
  0x2e   :  { %390 = vmatpush.bf16.msrb.mxu0 %v580_v46 }
  0x31   :  { %547 = vmatmul.msk.bf16.vlgmr.msrb.gmra.mxu0 %vm327_vm0, %v106_v48 }
  0x9e   :  { %v340_v49 = vpop.f32.mrf.mxu0 }
  0x9f   :  { %v341_v52 = vadd.f32 %v584_v50, %v340_v49 }
  0xa1   :  { %v353_v51 = vpop.f32.mrf.mxu1 }
  0xa2   :  { %v354_v56 = vadd.f32 %v353_v51, %v341_v52 }
  0xa5   :  { %v366_v53 = vpop.f32.mrf.mxu2 }
  0xa6   :  { %v379_v54 = vpop.f32.mrf.mxu3  ;;  %v342_v55 = vpop.f32.mrf.mxu0  ;;  %v367_v58 = vadd.f32 %v366_v53, %v354_v56 }
  0xa8   :  { %v380_v60 = vadd.f32 %v379_v54, %v367_v58 }
  0xa9   :  { %v355_v57 = vpop.f32.mrf.mxu1 }
  0xad   :  { %v368_v59 = vpop.f32.mrf.mxu2 }
  0xae   :  { %v381_v61 = vpop.f32.mrf.mxu3  ;;  %v392_v62 = vpop.f32.mrf.mxu0 }
  0xaf   :  { %v393_v63 = vadd.f32 %v392_v62, %v380_v60 }
  0xb1   :  { %v396_v0 = vmax.f32 %v393_v63, 0.0 }
  0xb3   :  { %v397_v1 = vpack.c.bf16 %v396_v0, %v396_v0 }
  0xb5   :  { %398 = vst [vmem:[%s731_s3] sm:$0xf] %v397_v1 }
  0xb6   :  { %v394_v2 = vpop.f32.mrf.mxu0 }

// kernel: stegastamp_encoder_forward.20
= control target key start
LH: loop header
LB: loop body
LE: loop exit
PB: predicated region body
PF: predicated region fallthrough
CT: control target
= control target key end

     0   :  { %s2824_s1 = inlined_call_operand.vmem [shape: bf16[1152,256], index: 1, kind: input, shape index: {}]   ;;  %s2825_s0 = inlined_call_operand.vmem [shape: bf16[8,1152], index: 0, kind: input, shape index: {}]   ;;  %s2826_s2 = inlined_call_operand.vmem [shape: f32[1,256], index: 2, kind: input, shape index: {}]   ;;  %s2827_s3 = inlined_call_operand.vmem [shape: bf16[8,256], index: 3, kind: output, shape index: {}]  }
   0x1   :  { %v1221_v0 = vld [vmem:[%s2824_s1 + $0x70] sm:$0xf]  ;;  %v1754_v1 = vld [vmem:[%s2824_s1 + $0x74] sm:$0xf0]  ;;  %v1213_v9 = vld [vmem:[%s2824_s1 + $0x60] sm:$0xf] }
   0x2   :  { %v1285_v2 = vld [vmem:[%s2824_s1 + $0xf0] sm:$0xf]  ;;  %v1222_v3 = vor.u32 %v1754_v1, %v1221_v0  ;;  %v1770_v4 = vld [vmem:[%s2824_s1 + $0xf4] sm:$0xf0]  ;;  %v1752_v10 = vld [vmem:[%s2824_s1 + $0x64] sm:$0xf0] }
   0x3   :  { %v1349_v5 = vld [vmem:[%s2824_s1 + $0x170] sm:$0xf]  ;;  %v1786_v6 = vld [vmem:[%s2824_s1 + $0x174] sm:$0xf0]  ;;  %v1286_v7 = vor.u32 %v1770_v4, %v1285_v2  ;;  %v1277_v11 = vld [vmem:[%s2824_s1 + $0xe0] sm:$0xf]  ;;  %v1214_v12 = vor.u32 %v1752_v10, %v1213_v9 }
   0x4   :  { %v1350_v8 = vor.u32 %v1786_v6, %v1349_v5  ;;  %921 = vmatpush.bf16.msra.mxu0 %v1222_v3  ;;  %v1768_v13 = vld [vmem:[%s2824_s1 + $0xe4] sm:$0xf0]  ;;  %v1413_v14 = vld [vmem:[%s2824_s1 + $0x1f0] sm:$0xf]  ;;  %v1802_v15 = vld [vmem:[%s2824_s1 + $0x1f4] sm:$0xf0] }
   0x5   :  { %934 = vmatpush.bf16.msra.mxu1 %v1286_v7  ;;  %v1278_v16 = vor.u32 %v1768_v13, %v1277_v11  ;;  %v1414_v17 = vor.u32 %v1802_v15, %v1413_v14  ;;  %v1341_v18 = vld [vmem:[%s2824_s1 + $0x160] sm:$0xf]  ;;  %v1784_v19 = vld [vmem:[%s2824_s1 + $0x164] sm:$0xf0]  ;;  %v1205_v20 = vld [vmem:[%s2824_s1 + $0x50] sm:$0xf] }
   0x6   :  { %947 = vmatpush.bf16.msra.mxu2 %v1350_v8  ;;  %v1342_v21 = vor.u32 %v1784_v19, %v1341_v18  ;;  %v1750_v22 = vld [vmem:[%s2824_s1 + $0x54] sm:$0xf0]  ;;  %v1269_v23 = vld [vmem:[%s2824_s1 + $0xd0] sm:$0xf]  ;;  %v1405_v25 = vld [vmem:[%s2824_s1 + $0x1e0] sm:$0xf] }
   0x7   :  { %v1766_v24 = vld [vmem:[%s2824_s1 + $0xd4] sm:$0xf0]  ;;  %960 = vmatpush.bf16.msra.mxu3 %v1414_v17  ;;  %v1800_v26 = vld [vmem:[%s2824_s1 + $0x1e4] sm:$0xf0]  ;;  %v1333_v27 = vld [vmem:[%s2824_s1 + $0x150] sm:$0xf]  ;;  %v1206_v28 = vor.u32 %v1750_v22, %v1205_v20 }
   0x8   :  { %922 = vmatpush.bf16.msra.mxu0 %v1214_v12  ;;  %v1406_v29 = vor.u32 %v1800_v26, %v1405_v25  ;;  %v1782_v30 = vld [vmem:[%s2824_s1 + $0x154] sm:$0xf0]  ;;  %v1197_v31 = vld [vmem:[%s2824_s1 + $0x40] sm:$0xf]  ;;  %v1748_v32 = vld [vmem:[%s2824_s1 + $0x44] sm:$0xf0]  ;;  %v1270_v33 = vor.u32 %v1766_v24, %v1269_v23 }
   0x9   :  { %935 = vmatpush.bf16.msra.mxu1 %v1278_v16  ;;  %v1334_v34 = vor.u32 %v1782_v30, %v1333_v27  ;;  %v1261_v35 = vld [vmem:[%s2824_s1 + $0xc0] sm:$0xf]  ;;  %v1764_v36 = vld [vmem:[%s2824_s1 + $0xc4] sm:$0xf0]  ;;  %v1397_v37 = vld [vmem:[%s2824_s1 + $0x1d0] sm:$0xf]  ;;  %v1198_v42 = vor.u32 %v1748_v32, %v1197_v31 }
   0xa   :  { %948 = vmatpush.bf16.msra.mxu2 %v1342_v21  ;;  %v1798_v38 = vld [vmem:[%s2824_s1 + $0x1d4] sm:$0xf0]  ;;  %v1325_v39 = vld [vmem:[%s2824_s1 + $0x140] sm:$0xf]  ;;  %v1780_v40 = vld [vmem:[%s2824_s1 + $0x144] sm:$0xf0]  ;;  %v1262_v45 = vor.u32 %v1764_v36, %v1261_v35 }
   0xb   :  { %961 = vmatpush.bf16.msra.mxu3 %v1406_v29  ;;  %v1398_v41 = vor.u32 %v1798_v38, %v1397_v37  ;;  %v1389_v43 = vld [vmem:[%s2824_s1 + $0x1c0] sm:$0xf]  ;;  %v1796_v44 = vld [vmem:[%s2824_s1 + $0x1c4] sm:$0xf0]  ;;  %v1326_v46 = vor.u32 %v1780_v40, %v1325_v39  ;;  %v1189_v47 = vld [vmem:[%s2824_s1 + $0x30] sm:$0xf] }
   0xc   :  { %923 = vmatpush.bf16.msra.mxu0 %v1206_v28  ;;  %v1746_v48 = vld [vmem:[%s2824_s1 + $0x34] sm:$0xf0]  ;;  %v1253_v49 = vld [vmem:[%s2824_s1 + $0xb0] sm:$0xf]  ;;  %v1390_v53 = vor.u32 %v1796_v44, %v1389_v43  ;;  %v1181_v59 = vld [vmem:[%s2824_s1 + $0x20] sm:$0xf] }
   0xd   :  { %936 = vmatpush.bf16.msra.mxu1 %v1270_v33  ;;  %v1762_v50 = vld [vmem:[%s2824_s1 + $0xb4] sm:$0xf0]  ;;  %v1317_v51 = vld [vmem:[%s2824_s1 + $0x130] sm:$0xf]  ;;  %v1190_v54 = vor.u32 %v1746_v48, %v1189_v47  ;;  %v1744_v60 = vld [vmem:[%s2824_s1 + $0x24] sm:$0xf0] }
   0xe   :  { %949 = vmatpush.bf16.msra.mxu2 %v1334_v34  ;;  %v1778_v52 = vld [vmem:[%s2824_s1 + $0x134] sm:$0xf0]  ;;  %v1381_v55 = vld [vmem:[%s2824_s1 + $0x1b0] sm:$0xf]  ;;  %v1254_v57 = vor.u32 %v1762_v50, %v1253_v49  ;;  %v1245_v61 = vld [vmem:[%s2824_s1 + $0xa0] sm:$0xf]  ;;  %v1182_v2 = vor.u32 %v1744_v60, %v1181_v59 }
   0xf   :  { %962 = vmatpush.bf16.msra.mxu3 %v1398_v41  ;;  %v1794_v56 = vld [vmem:[%s2824_s1 + $0x1b4] sm:$0xf0]  ;;  %v1318_v58 = vor.u32 %v1778_v52, %v1317_v51  ;;  %v1760_v62 = vld [vmem:[%s2824_s1 + $0xa4] sm:$0xf0]  ;;  %v1309_v63 = vld [vmem:[%s2824_s1 + $0x120] sm:$0xf] }
  0x10   :  { %924 = vmatpush.bf16.msra.mxu0 %v1198_v42  ;;  %v1776_v0 = vld [vmem:[%s2824_s1 + $0x124] sm:$0xf0]  ;;  %v1382_v1 = vor.u32 %v1794_v56, %v1381_v55  ;;  %v1373_v3 = vld [vmem:[%s2824_s1 + $0x1a0] sm:$0xf]  ;;  %v1246_v5 = vor.u32 %v1760_v62, %v1245_v61  ;;  %v1173_v7 = vld [vmem:[%s2824_s1 + $0x10] sm:$0xf] }
  0x11   :  { %937 = vmatpush.bf16.msra.mxu1 %v1262_v45  ;;  %v1792_v4 = vld [vmem:[%s2824_s1 + $0x1a4] sm:$0xf0]  ;;  %v1310_v6 = vor.u32 %v1776_v0, %v1309_v63  ;;  %v1742_v8 = vld [vmem:[%s2824_s1 + $0x14] sm:$0xf0]  ;;  %v1237_v9 = vld [vmem:[%s2824_s1 + $0x90] sm:$0xf] }
  0x12   :  { %950 = vmatpush.bf16.msra.mxu2 %v1326_v46  ;;  %v1758_v10 = vld [vmem:[%s2824_s1 + $0x94] sm:$0xf0]  ;;  %v1301_v11 = vld [vmem:[%s2824_s1 + $0x110] sm:$0xf]  ;;  %v1374_v13 = vor.u32 %v1792_v4, %v1373_v3  ;;  %v1165_v14 = vld [vmem:[%s2824_s1] sm:$0xf]  ;;  %v1174_v15 = vor.u32 %v1742_v8, %v1173_v7 }
  0x13   :  { %963 = vmatpush.bf16.msra.mxu3 %v1390_v53  ;;  %v1774_v12 = vld [vmem:[%s2824_s1 + $0x114] sm:$0xf0]  ;;  %v1740_v16 = vld [vmem:[%s2824_s1 + $0x4] sm:$0xf0]  ;;  %v1365_v17 = vld [vmem:[%s2824_s1 + $0x190] sm:$0xf]  ;;  %v1238_v19 = vor.u32 %v1758_v10, %v1237_v9 }
  0x14   :  { %925 = vmatpush.bf16.msra.mxu0 %v1190_v54  ;;  %v1790_v18 = vld [vmem:[%s2824_s1 + $0x194] sm:$0xf0]  ;;  %v1302_v20 = vor.u32 %v1774_v12, %v1301_v11  ;;  %v1229_v21 = vld [vmem:[%s2824_s1 + $0x80] sm:$0xf]  ;;  %v1756_v22 = vld [vmem:[%s2824_s1 + $0x84] sm:$0xf0]  ;;  %v1166_v31 = vor.u32 %v1740_v16, %v1165_v14 }
  0x15   :  { %938 = vmatpush.bf16.msra.mxu1 %v1254_v57  ;;  %v1477_v23 = vld [vmem:[%s2824_s1 + $0x270] sm:$0xf]  ;;  %v1818_v24 = vld [vmem:[%s2824_s1 + $0x274] sm:$0xf0]  ;;  %v1366_v27 = vor.u32 %v1790_v18, %v1365_v17  ;;  %v1293_v28 = vld [vmem:[%s2824_s1 + $0x100] sm:$0xf]  ;;  %v1230_v35 = vor.u32 %v1756_v22, %v1229_v21 }
  0x16   :  { %951 = vmatpush.bf16.msra.mxu2 %v1318_v58  ;;  %v1541_v25 = vld [vmem:[%s2824_s1 + $0x2f0] sm:$0xf]  ;;  %v1834_v26 = vld [vmem:[%s2824_s1 + $0x2f4] sm:$0xf0]  ;;  %v1772_v29 = vld [vmem:[%s2824_s1 + $0x104] sm:$0xf0]  ;;  %v1478_v36 = vor.u32 %v1818_v24, %v1477_v23 }
  0x17   :  { %964 = vmatpush.bf16.msra.mxu3 %v1382_v1  ;;  %v1605_v30 = vld [vmem:[%s2824_s1 + $0x370] sm:$0xf]  ;;  %v1850_v32 = vld [vmem:[%s2824_s1 + $0x374] sm:$0xf0]  ;;  %v1357_v33 = vld [vmem:[%s2824_s1 + $0x180] sm:$0xf]  ;;  %v1542_v39 = vor.u32 %v1834_v26, %v1541_v25  ;;  %v1294_v40 = vor.u32 %v1772_v29, %v1293_v28 }
  0x18   :  { %926 = vmatpush.bf16.msra.mxu0 %v1182_v2  ;;  %v1788_v34 = vld [vmem:[%s2824_s1 + $0x184] sm:$0xf0]  ;;  %v1669_v37 = vld [vmem:[%s2824_s1 + $0x3f0] sm:$0xf]  ;;  %v1866_v38 = vld [vmem:[%s2824_s1 + $0x3f4] sm:$0xf0]  ;;  %v1606_v43 = vor.u32 %v1850_v32, %v1605_v30 }
  0x19   :  { %939 = vmatpush.bf16.msra.mxu1 %v1246_v5  ;;  %v1469_v41 = vld [vmem:[%s2824_s1 + $0x260] sm:$0xf]  ;;  %v1816_v42 = vld [vmem:[%s2824_s1 + $0x264] sm:$0xf0]  ;;  %v1358_v44 = vor.u32 %v1788_v34, %v1357_v33  ;;  %v1670_v47 = vor.u32 %v1866_v38, %v1669_v37  ;;  %v1461_v54 = vld [vmem:[%s2824_s1 + $0x250] sm:$0xf] }
  0x1a   :  { %952 = vmatpush.bf16.msra.mxu2 %v1310_v6  ;;  %v1533_v45 = vld [vmem:[%s2824_s1 + $0x2e0] sm:$0xf]  ;;  %v1832_v46 = vld [vmem:[%s2824_s1 + $0x2e4] sm:$0xf0]  ;;  %v1470_v50 = vor.u32 %v1816_v42, %v1469_v41  ;;  %v1814_v55 = vld [vmem:[%s2824_s1 + $0x254] sm:$0xf0] }
  0x1b   :  { %965 = vmatpush.bf16.msra.mxu3 %v1374_v13  ;;  %v1597_v48 = vld [vmem:[%s2824_s1 + $0x360] sm:$0xf]  ;;  %v1848_v49 = vld [vmem:[%s2824_s1 + $0x364] sm:$0xf0]  ;;  %v1534_v53 = vor.u32 %v1832_v46, %v1533_v45  ;;  %v1525_v58 = vld [vmem:[%s2824_s1 + $0x2d0] sm:$0xf]  ;;  %v1462_v4 = vor.u32 %v1814_v55, %v1461_v54 }
  0x1c   :  { %927 = vmatpush.bf16.msra.mxu0 %v1174_v15  ;;  %v1661_v51 = vld [vmem:[%s2824_s1 + $0x3e0] sm:$0xf]  ;;  %v1864_v52 = vld [vmem:[%s2824_s1 + $0x3e4] sm:$0xf0]  ;;  %v1598_v57 = vor.u32 %v1848_v49, %v1597_v48  ;;  %v1830_v59 = vld [vmem:[%s2824_s1 + $0x2d4] sm:$0xf0] }
  0x1d   :  { %940 = vmatpush.bf16.msra.mxu1 %v1238_v19  ;;  %v15_v56 = vld [vmem:[%s2825_s0 + $0x8] sm:$0xff]  ;;  %v14_v61 = vld [vmem:[%s2825_s0] sm:$0xff]  ;;  %v1662_v63 = vor.u32 %v1864_v52, %v1661_v51  ;;  %v1589_v0 = vld [vmem:[%s2824_s1 + $0x350] sm:$0xf]  ;;  %v1526_v9 = vor.u32 %v1830_v59, %v1525_v58 }
  0x1e   :  { %953 = vmatpush.bf16.msra.mxu2 %v1302_v20  ;;  %v176_v60 = vunpack.c.l.b16 %v15_v56  ;;  %v177_v62 = vunpack.c.h.b16 %v15_v56  ;;  %v1846_v1 = vld [vmem:[%s2824_s1 + $0x354] sm:$0xf0]  ;;  %v174_v2 = vunpack.c.l.b16 %v14_v61  ;;  %v175_v3 = vunpack.c.h.b16 %v14_v61  ;;  %v1653_v5 = vld [vmem:[%s2824_s1 + $0x3d0] sm:$0xf]  ;;  %v1453_v10 = vld [vmem:[%s2824_s1 + $0x240] sm:$0xf] }
  0x1f   :  { %966 = vmatpush.bf16.msra.mxu3 %v1366_v27  ;;  %v1862_v6 = vld [vmem:[%s2824_s1 + $0x3d4] sm:$0xf0]  ;;  %v1812_v11 = vld [vmem:[%s2824_s1 + $0x244] sm:$0xf0]  ;;  %v1590_v14 = vor.u32 %v1846_v1, %v1589_v0  ;;  %v1517_v15 = vld [vmem:[%s2824_s1 + $0x2c0] sm:$0xf] }
  0x20   :  { %928 = vmatpush.bf16.msra.mxu0 %v1166_v31  ;;  %v2173_v7 = vpack.c.b16 %v176_v60, %v176_v60  ;;  %v2175_v8 = vpack.c.b16 %v177_v62, %v177_v62  ;;  %v2183_v12 = vpack.c.b16 %v174_v2, %v174_v2  ;;  %v2185_v13 = vpack.c.b16 %v175_v3, %v175_v3  ;;  %v1828_v16 = vld [vmem:[%s2824_s1 + $0x2c4] sm:$0xf0]  ;;  %v1581_v18 = vld [vmem:[%s2824_s1 + $0x340] sm:$0xf]  ;;  %v1445_v24 = vld [vmem:[%s2824_s1 + $0x230] sm:$0xf] }
  0x21   :  { %941 = vmatpush.bf16.msra.mxu1 %v1230_v35  ;;  %v1654_v17 = vor.u32 %v1862_v6, %v1653_v5  ;;  %v1844_v19 = vld [vmem:[%s2824_s1 + $0x344] sm:$0xf0]  ;;  %v1454_v20 = vor.u32 %v1812_v11, %v1453_v10  ;;  %v1645_v21 = vld [vmem:[%s2824_s1 + $0x3c0] sm:$0xf]  ;;  %v1518_v23 = vor.u32 %v1828_v16, %v1517_v15  ;;  %v1810_v25 = vld [vmem:[%s2824_s1 + $0x234] sm:$0xf0] }
  0x22   :  { %954 = vmatpush.bf16.msra.mxu2 %v1294_v40  ;;  %v1860_v22 = vld [vmem:[%s2824_s1 + $0x3c4] sm:$0xf0]  ;;  %v1582_v26 = vor.u32 %v1844_v19, %v1581_v18  ;;  %v1509_v27 = vld [vmem:[%s2824_s1 + $0x2b0] sm:$0xf]  ;;  %v1826_v28 = vld [vmem:[%s2824_s1 + $0x2b4] sm:$0xf0]  ;;  %v1446_v32 = vor.u32 %v1810_v25, %v1445_v24 }
  0x23   :  { %967 = vmatpush.bf16.msra.mxu3 %v1358_v44  ;;  %929 = vmatmul.bf16.vlgmr.msra.gmra.mxu0 %v2183_v12  ;;  %v1646_v29 = vor.u32 %v1860_v22, %v1645_v21  ;;  %v1573_v30 = vld [vmem:[%s2824_s1 + $0x330] sm:$0xf]  ;;  %v1842_v31 = vld [vmem:[%s2824_s1 + $0x334] sm:$0xf0]  ;;  %v1510_v35 = vor.u32 %v1826_v28, %v1509_v27  ;;  %v1808_v37 = vld [vmem:[%s2824_s1 + $0x224] sm:$0xf0] }
  0x24   :  { %973 = vmatpush.bf16.msrb.mxu0 %v1478_v36  ;;  %942 = vmatmul.bf16.vlgmr.msra.gmra.mxu1 %v2185_v13  ;;  %v1637_v33 = vld [vmem:[%s2824_s1 + $0x3b0] sm:$0xf]  ;;  %v1858_v34 = vld [vmem:[%s2824_s1 + $0x3b4] sm:$0xf0]  ;;  %v1437_v36 = vld [vmem:[%s2824_s1 + $0x220] sm:$0xf]  ;;  %v1574_v38 = vor.u32 %v1842_v31, %v1573_v30 }
  0x25   :  { %986 = vmatpush.bf16.msrb.mxu1 %v1542_v39  ;;  %955 = vmatmul.bf16.vlgmr.msra.gmra.mxu2 %v2173_v7  ;;  %v1501_v39 = vld [vmem:[%s2824_s1 + $0x2a0] sm:$0xf]  ;;  %v1824_v40 = vld [vmem:[%s2824_s1 + $0x2a4] sm:$0xf0]  ;;  %v1638_v41 = vor.u32 %v1858_v34, %v1637_v33  ;;  %v1438_v44 = vor.u32 %v1808_v37, %v1437_v36  ;;  %v1429_v48 = vld [vmem:[%s2824_s1 + $0x210] sm:$0xf] }
  0x26   :  { %999 = vmatpush.bf16.msrb.mxu2 %v1606_v43  ;;  %968 = vmatmul.bf16.vlgmr.msra.gmra.mxu3 %v2175_v8  ;;  %v1565_v42 = vld [vmem:[%s2824_s1 + $0x320] sm:$0xf]  ;;  %v1840_v43 = vld [vmem:[%s2824_s1 + $0x324] sm:$0xf0]  ;;  %v1806_v49 = vld [vmem:[%s2824_s1 + $0x214] sm:$0xf0] }
  0x27   :  { %1012 = vmatpush.bf16.msrb.mxu3 %v1670_v47  ;;  %v1629_v45 = vld [vmem:[%s2824_s1 + $0x3a0] sm:$0xf]  ;;  %v1856_v46 = vld [vmem:[%s2824_s1 + $0x3a4] sm:$0xf0]  ;;  %v1502_v47 = vor.u32 %v1824_v40, %v1501_v39  ;;  %v1493_v51 = vld [vmem:[%s2824_s1 + $0x290] sm:$0xf]  ;;  %v1430_v58 = vor.u32 %v1806_v49, %v1429_v48 }
  0x28   :  { %974 = vmatpush.bf16.msrb.mxu0 %v1470_v50  ;;  %v1566_v50 = vor.u32 %v1840_v43, %v1565_v42  ;;  %v1822_v52 = vld [vmem:[%s2824_s1 + $0x294] sm:$0xf0]  ;;  %v1630_v54 = vor.u32 %v1856_v46, %v1629_v45  ;;  %v1421_v56 = vld [vmem:[%s2824_s1 + $0x200] sm:$0xf]  ;;  %v1820_v60 = vld [vmem:[%s2824_s1 + $0x284] sm:$0xf0] }
  0x29   :  { %987 = vmatpush.bf16.msrb.mxu1 %v1534_v53  ;;  %v1557_v53 = vld [vmem:[%s2824_s1 + $0x310] sm:$0xf]  ;;  %v1838_v55 = vld [vmem:[%s2824_s1 + $0x314] sm:$0xf0]  ;;  %v1485_v59 = vld [vmem:[%s2824_s1 + $0x280] sm:$0xf] }
  0x2a   :  { %1000 = vmatpush.bf16.msrb.mxu2 %v1598_v57  ;;  %v1804_v57 = vld [vmem:[%s2824_s1 + $0x204] sm:$0xf0]  ;;  %v1621_v61 = vld [vmem:[%s2824_s1 + $0x390] sm:$0xf]  ;;  %v1854_v62 = vld [vmem:[%s2824_s1 + $0x394] sm:$0xf0]  ;;  %v1558_v3 = vor.u32 %v1838_v55, %v1557_v53 }
  0x2b   :  { %1013 = vmatpush.bf16.msrb.mxu3 %v1662_v63  ;;  %v1494_v63 = vor.u32 %v1822_v52, %v1493_v51  ;;  %v1733_v0 = vld [vmem:[%s2824_s1 + $0x470] sm:$0xf]  ;;  %v1882_v1 = vld [vmem:[%s2824_s1 + $0x474] sm:$0xf0]  ;;  %v1223_v5 = vld [vmem:[%s2824_s1 + $0x78] sm:$0xf0]  ;;  %v1422_v15 = vor.u32 %v1804_v57, %v1421_v56 }
  0x2c   :  { %975 = vmatpush.bf16.msrb.mxu0 %v1462_v4  ;;  %v16_v2 = vld [vmem:[%s2825_s0 + $0x10] sm:$0xff]  ;;  %v17_v6 = vld [vmem:[%s2825_s0 + $0x18] sm:$0xff]  ;;  %v1549_v10 = vld [vmem:[%s2824_s1 + $0x300] sm:$0xf]  ;;  %v1734_v21 = vor.u32 %v1882_v1, %v1733_v0 }
  0x2d   :  { %988 = vmatpush.bf16.msrb.mxu1 %v1526_v9  ;;  %v1753_v4 = vld [vmem:[%s2824_s1 + $0x74] sm:$0xf]  ;;  %v1622_v9 = vor.u32 %v1854_v62, %v1621_v61  ;;  %v1836_v11 = vld [vmem:[%s2824_s1 + $0x304] sm:$0xf0]  ;;  %v1287_v16 = vld [vmem:[%s2824_s1 + $0xf8] sm:$0xf0]  ;;  %v178_v19 = vunpack.c.l.b16 %v16_v2  ;;  %v180_v24 = vunpack.c.l.b16 %v17_v6  ;;  %v179_v34 = vunpack.c.h.b16 %v16_v2 }
  0x2e   :  { %1001 = vmatpush.bf16.msrb.mxu2 %v1590_v14  ;;  %v1769_v14 = vld [vmem:[%s2824_s1 + $0xf4] sm:$0xf]  ;;  %v1852_v18 = vld [vmem:[%s2824_s1 + $0x384] sm:$0xf0]  ;;  %v1226_v25 = vor.u32 %v1753_v4, %v1223_v5  ;;  %v1725_v27 = vld [vmem:[%s2824_s1 + $0x460] sm:$0xf] }
  0x2f   :  { %1014 = vmatpush.bf16.msrb.mxu3 %v1654_v17  ;;  %v1613_v17 = vld [vmem:[%s2824_s1 + $0x380] sm:$0xf]  ;;  %v1785_v22 = vld [vmem:[%s2824_s1 + $0x174] sm:$0xf]  ;;  %v1880_v28 = vld [vmem:[%s2824_s1 + $0x464] sm:$0xf0]  ;;  %v1290_v30 = vor.u32 %v1769_v14, %v1287_v16  ;;  %v2355_v40 = vpack.c.b16 %v180_v24, %v180_v24 }
  0x30   :  { %976 = vmatpush.bf16.msrb.mxu0 %v1454_v20  ;;  %v1486_v20 = vor.u32 %v1820_v60, %v1485_v59  ;;  %v1614_v31 = vor.u32 %v1852_v18, %v1613_v17  ;;  %v1215_v33 = vld [vmem:[%s2824_s1 + $0x68] sm:$0xf0]  ;;  %v1767_v36 = vld [vmem:[%s2824_s1 + $0xe4] sm:$0xf]  ;;  %v1726_v39 = vor.u32 %v1880_v28, %v1725_v27  ;;  %v1717_v45 = vld [vmem:[%s2824_s1 + $0x450] sm:$0xf] }
  0x31   :  { %989 = vmatpush.bf16.msrb.mxu1 %v1518_v23  ;;  %v1351_v23 = vld [vmem:[%s2824_s1 + $0x178] sm:$0xf0]  ;;  %v1279_v37 = vld [vmem:[%s2824_s1 + $0xe8] sm:$0xf0]  ;;  %v1878_v46 = vld [vmem:[%s2824_s1 + $0x454] sm:$0xf0] }
  0x32   :  { %1002 = vmatpush.bf16.msrb.mxu2 %v1582_v26  ;;  %v1550_v26 = vor.u32 %v1836_v11, %v1549_v10  ;;  %v1343_v42 = vld [vmem:[%s2824_s1 + $0x168] sm:$0xf0]  ;;  %v1749_v48 = vld [vmem:[%s2824_s1 + $0x54] sm:$0xf]  ;;  %v1207_v49 = vld [vmem:[%s2824_s1 + $0x58] sm:$0xf0] }
  0x33   :  { %1015 = vmatpush.bf16.msrb.mxu3 %v1646_v29  ;;  %v181_v29 = vunpack.c.h.b16 %v17_v6  ;;  %v1765_v52 = vld [vmem:[%s2824_s1 + $0xd4] sm:$0xf]  ;;  %v1271_v53 = vld [vmem:[%s2824_s1 + $0xd8] sm:$0xf0]  ;;  %v1210_v57 = vor.u32 %v1749_v48, %v1207_v49  ;;  %v1876_v59 = vld [vmem:[%s2824_s1 + $0x444] sm:$0xf0] }
  0x34   :  { %977 = vmatpush.bf16.msrb.mxu0 %v1446_v32  ;;  %v1751_v32 = vld [vmem:[%s2824_s1 + $0x64] sm:$0xf]  ;;  %v1781_v55 = vld [vmem:[%s2824_s1 + $0x154] sm:$0xf]  ;;  %v1335_v56 = vld [vmem:[%s2824_s1 + $0x158] sm:$0xf0]  ;;  %v1274_v60 = vor.u32 %v1765_v52, %v1271_v53 }
  0x35   :  { %990 = vmatpush.bf16.msrb.mxu1 %v1510_v35  ;;  %v1354_v35 = vor.u32 %v1785_v22, %v1351_v23  ;;  %v1218_v43 = vor.u32 %v1751_v32, %v1215_v33  ;;  %v1747_v61 = vld [vmem:[%s2824_s1 + $0x44] sm:$0xf]  ;;  %v1199_v62 = vld [vmem:[%s2824_s1 + $0x48] sm:$0xf0]  ;;  %v1701_v6 = vld [vmem:[%s2824_s1 + $0x430] sm:$0xf] }
  0x36   :  { %1003 = vmatpush.bf16.msrb.mxu2 %v1574_v38  ;;  %v2353_v38 = vpack.c.b16 %v178_v19, %v178_v19  ;;  %v1763_v0 = vld [vmem:[%s2824_s1 + $0xc4] sm:$0xf]  ;;  %v1263_v1 = vld [vmem:[%s2824_s1 + $0xc8] sm:$0xf0]  ;;  %v1202_v5 = vor.u32 %v1747_v61, %v1199_v62  ;;  %v1745_v11 = vld [vmem:[%s2824_s1 + $0x34] sm:$0xf] }
  0x37   :  { %1016 = vmatpush.bf16.msrb.mxu3 %v1638_v41  ;;  %v1783_v41 = vld [vmem:[%s2824_s1 + $0x164] sm:$0xf]  ;;  %v1327_v4 = vld [vmem:[%s2824_s1 + $0x148] sm:$0xf0]  ;;  %v1266_v10 = vor.u32 %v1763_v0, %v1263_v1  ;;  %v1191_v14 = vld [vmem:[%s2824_s1 + $0x38] sm:$0xf0] }
  0x38   :  { %978 = vmatpush.bf16.msrb.mxu0 %v1438_v44  ;;  %v2363_v44 = vpack.c.b16 %v181_v29, %v181_v29  ;;  %v1346_v51 = vor.u32 %v1783_v41, %v1343_v42  ;;  %v1761_v16 = vld [vmem:[%s2824_s1 + $0xb4] sm:$0xf]  ;;  %v1255_v17 = vld [vmem:[%s2824_s1 + $0xb8] sm:$0xf0]  ;;  %v1693_v22 = vld [vmem:[%s2824_s1 + $0x420] sm:$0xf] }
  0x39   :  { %991 = vmatpush.bf16.msrb.mxu1 %v1502_v47  ;;  %v1282_v47 = vor.u32 %v1767_v36, %v1279_v37  ;;  %v1777_v19 = vld [vmem:[%s2824_s1 + $0x134] sm:$0xf]  ;;  %v1872_v23 = vld [vmem:[%s2824_s1 + $0x424] sm:$0xf0]  ;;  %v1258_v24 = vor.u32 %v1761_v16, %v1255_v17  ;;  %v1759_v28 = vld [vmem:[%s2824_s1 + $0xa4] sm:$0xf] }
  0x3a   :  { %1004 = vmatpush.bf16.msrb.mxu2 %v1566_v50  ;;  %v2377_v50 = vpack.c.b16 %v179_v34, %v179_v34  ;;  %v1247_v29 = vld [vmem:[%s2824_s1 + $0xa8] sm:$0xf0]  ;;  %v1685_v34 = vld [vmem:[%s2824_s1 + $0x410] sm:$0xf]  ;;  %v1741_v37 = vld [vmem:[%s2824_s1 + $0x14] sm:$0xf] }
  0x3b   :  { %1017 = vmatpush.bf16.msrb.mxu3 %v1630_v54  ;;  %v1718_v54 = vor.u32 %v1878_v46, %v1717_v45  ;;  %v1311_v32 = vld [vmem:[%s2824_s1 + $0x128] sm:$0xf0]  ;;  %v1250_v36 = vor.u32 %v1759_v28, %v1247_v29  ;;  %v1757_v42 = vld [vmem:[%s2824_s1 + $0x94] sm:$0xf]  ;;  %v1677_v45 = vld [vmem:[%s2824_s1 + $0x400] sm:$0xf] }
  0x3c   :  { %979 = vmatpush.bf16.msrb.mxu0 %v1430_v58  ;;  %v1709_v58 = vld [vmem:[%s2824_s1 + $0x440] sm:$0xf]  ;;  %v1303_v48 = vld [vmem:[%s2824_s1 + $0x118] sm:$0xf0]  ;;  %v1868_v52 = vld [vmem:[%s2824_s1 + $0x404] sm:$0xf0] }
  0x3d   :  { %992 = vmatpush.bf16.msrb.mxu1 %v1494_v63  ;;  %v1338_v63 = vor.u32 %v1781_v55, %v1335_v56  ;;  %v1710_v2 = vor.u32 %v1876_v59, %v1709_v58  ;;  %v18_v49 = vld [vmem:[%s2825_s0 + $0x20] sm:$0xf]  ;;  %v1739_v53 = vld [vmem:[%s2824_s1 + $0x4] sm:$0xf]  ;;  %v1801_v56 = vld [vmem:[%s2824_s1 + $0x1f4] sm:$0xf]  ;;  %v1678_v0 = vor.u32 %v1868_v52, %v1677_v45 }
  0x3e   :  { %1005 = vmatpush.bf16.msrb.mxu2 %v1558_v3  ;;  %v1779_v3 = vld [vmem:[%s2824_s1 + $0x144] sm:$0xf]  ;;  %v1817_v58 = vld [vmem:[%s2824_s1 + $0x274] sm:$0xf]  ;;  %v1231_v62 = vld [vmem:[%s2824_s1 + $0x88] sm:$0xf0] }
  0x3f   :  { %1018 = vmatpush.bf16.msrb.mxu3 %v1622_v9  ;;  %v1874_v9 = vld [vmem:[%s2824_s1 + $0x434] sm:$0xf0]  ;;  %v1755_v61 = vld [vmem:[%s2824_s1 + $0x84] sm:$0xf]  ;;  %v1833_v1 = vld [vmem:[%s2824_s1 + $0x2f4] sm:$0xf] }
  0x40   :  { %980 = vmatpush.bf16.msrb.mxu0 %v1422_v15  ;;  %v1330_v15 = vor.u32 %v1779_v3, %v1327_v4  ;;  %v1702_v18 = vor.u32 %v1874_v9, %v1701_v6  ;;  %v1295_v6 = vld [vmem:[%s2824_s1 + $0x108] sm:$0xf0]  ;;  %v1799_v9 = vld [vmem:[%s2824_s1 + $0x1e4] sm:$0xf]  ;;  %v1607_v16 = vld [vmem:[%s2824_s1 + $0x378] sm:$0xf0] }
  0x41   :  { %993 = vmatpush.bf16.msrb.mxu1 %v1486_v20  ;;  %v1319_v20 = vld [vmem:[%s2824_s1 + $0x138] sm:$0xf0]  ;;  %v1847_v29 = vld [vmem:[%s2824_s1 + $0x364] sm:$0xf]  ;;  %v1793_v52 = vld [vmem:[%s2824_s1 + $0x1b4] sm:$0xf] }
  0x42   :  { %1006 = vmatpush.bf16.msrb.mxu2 %v1550_v26  ;;  %v1183_v26 = vld [vmem:[%s2824_s1 + $0x28] sm:$0xf0]  ;;  %v1322_v27 = vor.u32 %v1777_v19, %v1319_v20  ;;  %v1815_v19 = vld [vmem:[%s2824_s1 + $0x264] sm:$0xf]  ;;  %v1399_v28 = vld [vmem:[%s2824_s1 + $0x1d8] sm:$0xf0] }
  0x43   :  { %1019 = vmatpush.bf16.msrb.mxu3 %v1614_v31  ;;  %981 = vmatmul.bf16.vlgmr.msrb.gmra.mxu0 %v2353_v38  ;;  %v1775_v31 = vld [vmem:[%s2824_s1 + $0x124] sm:$0xf]  ;;  %v1471_v20 = vld [vmem:[%s2824_s1 + $0x268] sm:$0xf0] }
  0x44   :  { %1025 = vmatpush.bf16.msra.mxu0 %v1734_v21  ;;  %994 = vmatmul.bf16.vlgmr.msrb.gmra.mxu1 %v2377_v50  ;;  %v1194_v21 = vor.u32 %v1745_v11, %v1191_v14  ;;  %v1314_v41 = vor.u32 %v1775_v31, %v1311_v32  ;;  %v1234_v11 = vor.u32 %v1755_v61, %v1231_v62  ;;  %v1407_v14 = vld [vmem:[%s2824_s1 + $0x1e8] sm:$0xf0]  ;;  %v1813_v32 = vld [vmem:[%s2824_s1 + $0x254] sm:$0xf] }
  0x45   :  { %1038 = vmatpush.bf16.msra.mxu1 %v1226_v25  ;;  %1007 = vmatmul.bf16.vlgmr.msrb.gmra.mxu2 %v2355_v40  ;;  %v1743_v25 = vld [vmem:[%s2824_s1 + $0x24] sm:$0xf] }
  0x46   :  { %1051 = vmatpush.bf16.msra.mxu2 %v1290_v30  ;;  %1020 = vmatmul.bf16.vlgmr.msrb.gmra.mxu3 %v2363_v44  ;;  %v1694_v30 = vor.u32 %v1872_v23, %v1693_v22  ;;  %v1186_v33 = vor.u32 %v1743_v25, %v1183_v26  ;;  %v1831_v22 = vld [vmem:[%s2824_s1 + $0x2e4] sm:$0xf]  ;;  %v1535_v23 = vld [vmem:[%s2824_s1 + $0x2e8] sm:$0xf0]  ;;  %v1797_v26 = vld [vmem:[%s2824_s1 + $0x1d4] sm:$0xf] }
  0x47   :  { %1064 = vmatpush.bf16.msra.mxu3 %v1354_v35  ;;  %v1870_v35 = vld [vmem:[%s2824_s1 + $0x414] sm:$0xf0]  ;;  %v1538_v31 = vor.u32 %v1831_v22, %v1535_v23  ;;  %v1805_v22 = vld [vmem:[%s2824_s1 + $0x214] sm:$0xf]  ;;  %v1431_v23 = vld [vmem:[%s2824_s1 + $0x218] sm:$0xf0] }
  0x48   :  { %1026 = vmatpush.bf16.msra.mxu0 %v1726_v39  ;;  %v1175_v39 = vld [vmem:[%s2824_s1 + $0x18] sm:$0xf0]  ;;  %v1686_v46 = vor.u32 %v1870_v35, %v1685_v34  ;;  %v1829_v34 = vld [vmem:[%s2824_s1 + $0x2d4] sm:$0xf] }
  0x49   :  { %1039 = vmatpush.bf16.msra.mxu1 %v1218_v43  ;;  %v1239_v43 = vld [vmem:[%s2824_s1 + $0x98] sm:$0xf0] }
  0x4a   :  { %1052 = vmatpush.bf16.msra.mxu2 %v1282_v47  ;;  %v1773_v47 = vld [vmem:[%s2824_s1 + $0x114] sm:$0xf]  ;;  %v1242_v55 = vor.u32 %v1757_v42, %v1239_v43  ;;  %v1527_v35 = vld [vmem:[%s2824_s1 + $0x2d8] sm:$0xf0]  ;;  %v1391_v42 = vld [vmem:[%s2824_s1 + $0x1c8] sm:$0xf0] }
  0x4b   :  { %1065 = vmatpush.bf16.msra.mxu3 %v1346_v51  ;;  %v1178_v51 = vor.u32 %v1741_v37, %v1175_v39  ;;  %v1306_v59 = vor.u32 %v1773_v47, %v1303_v48  ;;  %v1795_v39 = vld [vmem:[%s2824_s1 + $0x1c4] sm:$0xf]  ;;  %v1845_v43 = vld [vmem:[%s2824_s1 + $0x354] sm:$0xf]  ;;  %v1530_v45 = vor.u32 %v1829_v34, %v1527_v35  ;;  %v1455_v47 = vld [vmem:[%s2824_s1 + $0x248] sm:$0xf0] }
  0x4c   :  { %1027 = vmatpush.bf16.msra.mxu0 %v1718_v54  ;;  %v1167_v54 = vld [vmem:[%s2824_s1 + $0x8] sm:$0xf0]  ;;  %v1827_v48 = vld [vmem:[%s2824_s1 + $0x2c4] sm:$0xf]  ;;  %v1559_v34 = vld [vmem:[%s2824_s1 + $0x318] sm:$0xf0] }
  0x4d   :  { %1040 = vmatpush.bf16.msra.mxu1 %v1210_v57  ;;  %v1415_v57 = vld [vmem:[%s2824_s1 + $0x1f8] sm:$0xf0]  ;;  %v1170_v3 = vor.u32 %v1739_v53, %v1167_v54  ;;  %v1843_v54 = vld [vmem:[%s2824_s1 + $0x344] sm:$0xf] }
  0x4e   :  { %1053 = vmatpush.bf16.msra.mxu2 %v1274_v60  ;;  %v1479_v60 = vld [vmem:[%s2824_s1 + $0x278] sm:$0xf0]  ;;  %v1418_v4 = vor.u32 %v1801_v56, %v1415_v57  ;;  %v1809_v57 = vld [vmem:[%s2824_s1 + $0x234] sm:$0xf] }
  0x4f   :  { %1066 = vmatpush.bf16.msra.mxu3 %v1338_v63  ;;  %v182_v63 = vunpack.c.l.b16 %v18_v49  ;;  %v1394_v49 = vor.u32 %v1795_v39, %v1391_v42  ;;  %v1881_v39 = vld [vmem:[%s2824_s1 + $0x474] sm:$0xf]  ;;  %v1819_v42 = vld [vmem:[%s2824_s1 + $0x284] sm:$0xf] }
  0x50   :  { %1028 = vmatpush.bf16.msra.mxu0 %v1710_v2  ;;  %v1543_v2 = vld [vmem:[%s2824_s1 + $0x2f8] sm:$0xf0] }
  0x51   :  { %1041 = vmatpush.bf16.msra.mxu1 %v1202_v5  ;;  %v1771_v5 = vld [vmem:[%s2824_s1 + $0x104] sm:$0xf]  ;;  %v2548_v17 = vpack.c.b16 %v182_v63, %v182_v63 }
  0x52   :  { %1054 = vmatpush.bf16.msra.mxu2 %v1266_v10  ;;  %v1482_v10 = vor.u32 %v1817_v58, %v1479_v60  ;;  %v1447_v58 = vld [vmem:[%s2824_s1 + $0x238] sm:$0xf0]  ;;  %v1791_v63 = vld [vmem:[%s2824_s1 + $0x1a4] sm:$0xf] }
  0x53   :  { %1067 = vmatpush.bf16.msra.mxu3 %v1330_v15  ;;  %v1849_v15 = vld [vmem:[%s2824_s1 + $0x374] sm:$0xf]  ;;  %v1511_v60 = vld [vmem:[%s2824_s1 + $0x2b8] sm:$0xf0] }
  0x54   :  { %1029 = vmatpush.bf16.msra.mxu0 %v1702_v18  ;;  %v1546_v18 = vor.u32 %v1833_v1, %v1543_v2  ;;  %v1610_v25 = vor.u32 %v1849_v15, %v1607_v16  ;;  %v1375_v1 = vld [vmem:[%s2824_s1 + $0x1a8] sm:$0xf0]  ;;  %v1841_v2 = vld [vmem:[%s2824_s1 + $0x334] sm:$0xf] }
  0x55   :  { %1042 = vmatpush.bf16.msra.mxu1 %v1194_v21  ;;  %v1298_v21 = vor.u32 %v1771_v5, %v1295_v6  ;;  %v1807_v5 = vld [vmem:[%s2824_s1 + $0x224] sm:$0xf]  ;;  %v1439_v6 = vld [vmem:[%s2824_s1 + $0x228] sm:$0xf0]  ;;  %v1789_v15 = vld [vmem:[%s2824_s1 + $0x194] sm:$0xf] }
  0x56   :  { %1055 = vmatpush.bf16.msra.mxu2 %v1258_v24  ;;  %v1410_v24 = vor.u32 %v1799_v9, %v1407_v14  ;;  %v1823_v9 = vld [vmem:[%s2824_s1 + $0x2a4] sm:$0xf]  ;;  %v1442_v16 = vor.u32 %v1807_v5, %v1439_v6  ;;  %v1703_v5 = vld [vmem:[%s2824_s1 + $0x438] sm:$0xf0] }
  0x57   :  { %1068 = vmatpush.bf16.msra.mxu3 %v1322_v27  ;;  %v1474_v27 = vor.u32 %v1815_v19, %v1471_v20  ;;  %v1839_v19 = vld [vmem:[%s2824_s1 + $0x324] sm:$0xf]  ;;  %v1567_v20 = vld [vmem:[%s2824_s1 + $0x328] sm:$0xf0] }
  0x58   :  { %1030 = vmatpush.bf16.msra.mxu0 %v1694_v30  ;;  %v1599_v30 = vld [vmem:[%s2824_s1 + $0x368] sm:$0xf0] }
  0x59   :  { %1043 = vmatpush.bf16.msra.mxu1 %v1186_v33  ;;  %v1463_v33 = vld [vmem:[%s2824_s1 + $0x258] sm:$0xf0]  ;;  %v1602_v37 = vor.u32 %v1847_v29, %v1599_v30  ;;  %v1359_v29 = vld [vmem:[%s2824_s1 + $0x188] sm:$0xf0]  ;;  %v1803_v30 = vld [vmem:[%s2824_s1 + $0x204] sm:$0xf] }
  0x5a   :  { %1056 = vmatpush.bf16.msra.mxu2 %v1250_v36  ;;  %v1402_v36 = vor.u32 %v1797_v26, %v1399_v28  ;;  %v1787_v28 = vld [vmem:[%s2824_s1 + $0x184] sm:$0xf] }
  0x5b   :  { %1069 = vmatpush.bf16.msra.mxu3 %v1314_v41  ;;  %v1466_v41 = vor.u32 %v1813_v32, %v1463_v33  ;;  %v1423_v32 = vld [vmem:[%s2824_s1 + $0x208] sm:$0xf0]  ;;  %v1837_v33 = vld [vmem:[%s2824_s1 + $0x314] sm:$0xf] }
  0x5c   :  { %1031 = vmatpush.bf16.msra.mxu0 %v1686_v46  ;;  %v1811_v46 = vld [vmem:[%s2824_s1 + $0x244] sm:$0xf] }
  0x5d   :  { %1044 = vmatpush.bf16.msra.mxu1 %v1178_v51  ;;  %v1458_v53 = vor.u32 %v1811_v46, %v1455_v47  ;;  %v1426_v46 = vor.u32 %v1803_v30, %v1423_v32 }
  0x5e   :  { %1057 = vmatpush.bf16.msra.mxu2 %v1242_v55  ;;  %v1583_v55 = vld [vmem:[%s2824_s1 + $0x348] sm:$0xf0] }
  0x5f   :  { %1070 = vmatpush.bf16.msra.mxu3 %v1306_v59  ;;  %v1825_v59 = vld [vmem:[%s2824_s1 + $0x2b4] sm:$0xf]  ;;  %v1586_v62 = vor.u32 %v1843_v54, %v1583_v55  ;;  %v1727_v54 = vld [vmem:[%s2824_s1 + $0x468] sm:$0xf0] }
  0x60   :  { %1032 = vmatpush.bf16.msra.mxu0 %v1678_v0  ;;  %v1450_v0 = vor.u32 %v1809_v57, %v1447_v58  ;;  %v1861_v58 = vld [vmem:[%s2824_s1 + $0x3d4] sm:$0xf] }
  0x61   :  { %1045 = vmatpush.bf16.msra.mxu1 %v1170_v3  ;;  %v1575_v3 = vld [vmem:[%s2824_s1 + $0x338] sm:$0xf0] }
  0x62   :  { %1058 = vmatpush.bf16.msra.mxu2 %v1234_v11  ;;  %v1378_v11 = vor.u32 %v1791_v63, %v1375_v1  ;;  %v1578_v14 = vor.u32 %v1841_v2, %v1575_v3  ;;  %v1857_v3 = vld [vmem:[%s2824_s1 + $0x3b4] sm:$0xf] }
  0x63   :  { %1033 = vmatmul.bf16.vlgmr.msra.gmra.mxu0 %v2548_v17  ;;  %1071 = vmatpush.bf16.msra.mxu3 %v1298_v21 }
  0x64   :  { %1077 = vmatpush.bf16.msrb.mxu0 %v1418_v4  ;;  %1046 = vmatmul.bf16.vlgmr.msra.gmra.mxu1 %v2183_v12  ;;  %v1591_v12 = vld [vmem:[%s2824_s1 + $0x358] sm:$0xf0]  ;;  %v1514_v4 = vor.u32 %v1825_v59, %v1511_v60  ;;  %v1877_v60 = vld [vmem:[%s2824_s1 + $0x454] sm:$0xf] }
  0x65   :  { %1090 = vmatpush.bf16.msrb.mxu1 %v1482_v10  ;;  %1059 = vmatmul.bf16.vlgmr.msra.gmra.mxu2 %v2185_v13  ;;  %v1519_v13 = vld [vmem:[%s2824_s1 + $0x2c8] sm:$0xf0]  ;;  %v1594_v51 = vor.u32 %v1845_v43, %v1591_v12  ;;  %v1362_v12 = vor.u32 %v1787_v28, %v1359_v29  ;;  %v1655_v59 = vld [vmem:[%s2824_s1 + $0x3d8] sm:$0xf0] }
  0x66   :  { %1103 = vmatpush.bf16.msrb.mxu2 %v1546_v18  ;;  %1072 = vmatmul.bf16.vlgmr.msra.gmra.mxu3 %v2173_v7  ;;  %v1383_v7 = vld [vmem:[%s2824_s1 + $0x1b8] sm:$0xf0]  ;;  %v1522_v56 = vor.u32 %v1827_v48, %v1519_v13  ;;  %v1503_v10 = vld [vmem:[%s2824_s1 + $0x2a8] sm:$0xf0]  ;;  %v1835_v48 = vld [vmem:[%s2824_s1 + $0x304] sm:$0xf] }
  0x67   :  { %1116 = vmatpush.bf16.msrb.mxu3 %v1610_v25  ;;  %v1386_v61 = vor.u32 %v1793_v52, %v1383_v7  ;;  %v1367_v18 = vld [vmem:[%s2824_s1 + $0x198] sm:$0xf0]  ;;  %v1506_v21 = vor.u32 %v1823_v9, %v1503_v10  ;;  %v1487_v43 = vld [vmem:[%s2824_s1 + $0x288] sm:$0xf0]  ;;  %v1863_v52 = vld [vmem:[%s2824_s1 + $0x3e4] sm:$0xf] }
  0x68   :  { %1078 = vmatpush.bf16.msrb.mxu0 %v1410_v24  ;;  %v1821_v24 = vld [vmem:[%s2824_s1 + $0x294] sm:$0xf]  ;;  %v1495_v25 = vld [vmem:[%s2824_s1 + $0x298] sm:$0xf0]  ;;  %v1370_v26 = vor.u32 %v1789_v15, %v1367_v18  ;;  %v1551_v13 = vld [vmem:[%s2824_s1 + $0x308] sm:$0xf0] }
  0x69   :  { %1091 = vmatpush.bf16.msrb.mxu1 %v1474_v27  ;;  %v1570_v27 = vor.u32 %v1839_v19, %v1567_v20  ;;  %v1498_v35 = vor.u32 %v1821_v24, %v1495_v25  ;;  %v1879_v7 = vld [vmem:[%s2824_s1 + $0x464] sm:$0xf]  ;;  %v1554_v55 = vor.u32 %v1835_v48, %v1551_v13  ;;  %v1695_v15 = vld [vmem:[%s2824_s1 + $0x428] sm:$0xf0]  ;;  %v1853_v19 = vld [vmem:[%s2824_s1 + $0x394] sm:$0xf] }
  0x6a   :  { %1104 = vmatpush.bf16.msrb.mxu2 %v1538_v31  ;;  %v1434_v31 = vor.u32 %v1805_v22, %v1431_v23  ;;  %v1730_v57 = vor.u32 %v1879_v7, %v1727_v54  ;;  %v1855_v10 = vld [vmem:[%s2824_s1 + $0x3a4] sm:$0xf]  ;;  %v1623_v20 = vld [vmem:[%s2824_s1 + $0x398] sm:$0xf0]  ;;  %v1679_v28 = vld [vmem:[%s2824_s1 + $0x408] sm:$0xf0] }
  0x6b   :  { %1117 = vmatpush.bf16.msrb.mxu3 %v1602_v37  ;;  %v1671_v37 = vld [vmem:[%s2824_s1 + $0x3f8] sm:$0xf0]  ;;  %v1626_v23 = vor.u32 %v1853_v19, %v1623_v20  ;;  %v1851_v25 = vld [vmem:[%s2824_s1 + $0x384] sm:$0xf] }
  0x6c   :  { %1079 = vmatpush.bf16.msrb.mxu0 %v1402_v36  ;;  %v1865_v36 = vld [vmem:[%s2824_s1 + $0x3f4] sm:$0xf]  ;;  %v1687_v22 = vld [vmem:[%s2824_s1 + $0x418] sm:$0xf0] }
  0x6d   :  { %1092 = vmatpush.bf16.msrb.mxu1 %v1466_v41  ;;  %v1735_v41 = vld [vmem:[%s2824_s1 + $0x478] sm:$0xf0]  ;;  %v1674_v47 = vor.u32 %v1865_v36, %v1671_v37 }
  0x6e   :  { %1105 = vmatpush.bf16.msrb.mxu2 %v1530_v45  ;;  %v1562_v45 = vor.u32 %v1837_v33, %v1559_v34 }
  0x6f   :  { %1118 = vmatpush.bf16.msrb.mxu3 %v1594_v51  ;;  %v1490_v51 = vor.u32 %v1819_v42, %v1487_v43 }
  0x70   :  { %1080 = vmatpush.bf16.msrb.mxu0 %v1394_v49  ;;  %v1738_v49 = vor.u32 %v1881_v39, %v1735_v41 }
  0x71   :  { %1093 = vmatpush.bf16.msrb.mxu1 %v1458_v53  ;;  %v1663_v53 = vld [vmem:[%s2824_s1 + $0x3e8] sm:$0xf0] }
  0x72   :  { %1106 = vmatpush.bf16.msrb.mxu2 %v1522_v56  ;;  %v1666_v56 = vor.u32 %v1863_v52, %v1663_v53 }
  0x73   :  { %1119 = vmatpush.bf16.msrb.mxu3 %v1586_v62  ;;  %v1658_v62 = vor.u32 %v1861_v58, %v1655_v59 }
  0x74   :  { %1081 = vmatpush.bf16.msrb.mxu0 %v1386_v61  ;;  %v1719_v61 = vld [vmem:[%s2824_s1 + $0x458] sm:$0xf0] }
  0x75   :  { %1094 = vmatpush.bf16.msrb.mxu1 %v1450_v0  ;;  %v1722_v63 = vor.u32 %v1877_v60, %v1719_v61  ;;  %v1647_v0 = vld [vmem:[%s2824_s1 + $0x3c8] sm:$0xf0] }
  0x76   :  { %1107 = vmatpush.bf16.msrb.mxu2 %v1514_v4  ;;  %v1873_v4 = vld [vmem:[%s2824_s1 + $0x434] sm:$0xf] }
  0x77   :  { %1120 = vmatpush.bf16.msrb.mxu3 %v1578_v14  ;;  %v1706_v9 = vor.u32 %v1873_v4, %v1703_v5  ;;  %v1871_v14 = vld [vmem:[%s2824_s1 + $0x424] sm:$0xf] }
  0x78   :  { %1082 = vmatpush.bf16.msrb.mxu0 %v1378_v11  ;;  %v1631_v11 = vld [vmem:[%s2824_s1 + $0x3a8] sm:$0xf0]  ;;  %v1698_v18 = vor.u32 %v1871_v14, %v1695_v15 }
  0x79   :  { %1095 = vmatpush.bf16.msrb.mxu1 %v1442_v16  ;;  %v1634_v16 = vor.u32 %v1855_v10, %v1631_v11 }
  0x7a   :  { %1108 = vmatpush.bf16.msrb.mxu2 %v1506_v21  ;;  %v1869_v21 = vld [vmem:[%s2824_s1 + $0x414] sm:$0xf] }
  0x7b   :  { %1121 = vmatpush.bf16.msrb.mxu3 %v1570_v27  ;;  %v1690_v24 = vor.u32 %v1869_v21, %v1687_v22  ;;  %v1867_v27 = vld [vmem:[%s2824_s1 + $0x404] sm:$0xf] }
  0x7c   :  { %1083 = vmatpush.bf16.msrb.mxu0 %v1370_v26  ;;  %v1615_v26 = vld [vmem:[%s2824_s1 + $0x388] sm:$0xf0]  ;;  %v1682_v30 = vor.u32 %v1867_v27, %v1679_v28 }
  0x7d   :  { %1096 = vmatpush.bf16.msrb.mxu1 %v1434_v31  ;;  %v1618_v29 = vor.u32 %v1851_v25, %v1615_v26  ;;  %v163_v31 = vld [vmem:[%s2826_s2] sm:$0x3] }
  0x7e   :  { %1109 = vmatpush.bf16.msrb.mxu2 %v1498_v35  ;;  %v165_v32 = vperm.slane %v163_v31, 0 }
  0x7f   :  { %1122 = vmatpush.bf16.msrb.mxu3 %v1562_v45 }
  0x80   :  { %1084 = vmatpush.bf16.msrb.mxu0 %v1362_v12 }
  0x81   :  { %1097 = vmatpush.bf16.msrb.mxu1 %v1426_v46 }
  0x82   :  { %1110 = vmatpush.bf16.msrb.mxu2 %v1490_v51 }
  0x83   :  { %1085 = vmatmul.bf16.vlgmr.msrb.gmra.mxu0 %v2175_v8  ;;  %1123 = vmatpush.bf16.msrb.mxu3 %v1554_v55  ;;  %v1859_v8 = vld [vmem:[%s2824_s1 + $0x3c4] sm:$0xf] }
  0x84   :  { %1129 = vmatpush.bf16.msra.mxu0 %v1674_v47  ;;  %1098 = vmatmul.bf16.vlgmr.msrb.gmra.mxu1 %v2353_v38  ;;  %v1875_v38 = vld [vmem:[%s2824_s1 + $0x444] sm:$0xf]  ;;  %v1650_v1 = vor.u32 %v1859_v8, %v1647_v0  ;;  %v166_v8 = vperm.slane %v163_v31, 1 }
  0x85   :  { %1142 = vmatpush.bf16.msra.mxu1 %v1738_v49  ;;  %1111 = vmatmul.bf16.vlgmr.msrb.gmra.mxu2 %v2377_v50  ;;  %v1711_v50 = vld [vmem:[%s2824_s1 + $0x448] sm:$0xf0] }
  0x86   :  { %1124 = vmatmul.bf16.vlgmr.msrb.gmra.mxu3 %v2355_v40  ;;  %v1714_v2 = vor.u32 %v1875_v38, %v1711_v50  ;;  %v1639_v40 = vld [vmem:[%s2824_s1 + $0x3b8] sm:$0xf0] }
  0x87   :  { %v1642_v6 = vor.u32 %v1857_v3, %v1639_v40 }
  0x88   :  { %1130 = vmatpush.bf16.msra.mxu0 %v1666_v56 }
  0x89   :  { %1143 = vmatpush.bf16.msra.mxu1 %v1730_v57 }
  0x8c   :  { %1131 = vmatpush.bf16.msra.mxu0 %v1658_v62 }
  0x8d   :  { %1144 = vmatpush.bf16.msra.mxu1 %v1722_v63 }
  0x90   :  { %1132 = vmatpush.bf16.msra.mxu0 %v1650_v1 }
  0x91   :  { %1145 = vmatpush.bf16.msra.mxu1 %v1714_v2 }
  0x94   :  { %1133 = vmatpush.bf16.msra.mxu0 %v1642_v6 }
  0x95   :  { %1146 = vmatpush.bf16.msra.mxu1 %v1706_v9 }
  0x98   :  { %1134 = vmatpush.bf16.msra.mxu0 %v1634_v16 }
  0x99   :  { %1147 = vmatpush.bf16.msra.mxu1 %v1698_v18 }
  0x9c   :  { %1135 = vmatpush.bf16.msra.mxu0 %v1626_v23 }
  0x9d   :  { %1148 = vmatpush.bf16.msra.mxu1 %v1690_v24 }
  0xa0   :  { %1136 = vmatpush.bf16.msra.mxu0 %v1618_v29  ;;  %v930_v34 = vpop.f32.mrf.mxu0 }
  0xa1   :  { %1149 = vmatpush.bf16.msra.mxu1 %v1682_v30  ;;  %v943_v33 = vpop.f32.mrf.mxu1  ;;  %v931_v35 = vadd.f32 %v930_v34, %v165_v32 }
  0xa3   :  { %1137 = vmatmul.bf16.vlgmr.msra.gmra.mxu0 %v2363_v44  ;;  %v944_v36 = vadd.f32 %v943_v33, %v931_v35 }
  0xa4   :  { %1150 = vmatmul.bf16.vlgmr.msra.gmra.mxu1 %v2548_v17 }
  0xa8   :  { %v956_v39 = vpop.f32.mrf.mxu2  ;;  %v932_v12 = vpop.f32.mrf.mxu0 }
  0xa9   :  { %v969_v37 = vpop.f32.mrf.mxu3  ;;  %v957_v41 = vadd.f32 %v956_v39, %v944_v36  ;;  %v945_v43 = vpop.f32.mrf.mxu1 }
  0xab   :  { %v970_v42 = vadd.f32 %v969_v37, %v957_v41 }
  0xb0   :  { %v958_v46 = vpop.f32.mrf.mxu2 }
  0xb1   :  { %v971_v45 = vpop.f32.mrf.mxu3 }
  0xc0   :  { %v982_v44 = vpop.f32.mrf.mxu0 }
  0xc1   :  { %v983_v47 = vadd.f32 %v982_v44, %v970_v42  ;;  %v995_v17 = vpop.f32.mrf.mxu1 }
  0xc3   :  { %v996_v48 = vadd.f32 %v995_v17, %v983_v47 }
  0xc8   :  { %v1008_v13 = vpop.f32.mrf.mxu2  ;;  %v984_v52 = vpop.f32.mrf.mxu0 }
  0xc9   :  { %v1009_v49 = vadd.f32 %v1008_v13, %v996_v48  ;;  %v1021_v51 = vpop.f32.mrf.mxu3  ;;  %v997_v7 = vpop.f32.mrf.mxu1 }
  0xcb   :  { %v1022_v53 = vadd.f32 %v1021_v51, %v1009_v49 }
  0xd0   :  { %v1010_v54 = vpop.f32.mrf.mxu2 }
  0xd1   :  { %v1023_v55 = vpop.f32.mrf.mxu3 }
  0xe0   :  { %v1034_v56 = vpop.f32.mrf.mxu0 }
  0xe1   :  { %v1047_v57 = vpop.f32.mrf.mxu1  ;;  %v1035_v18 = vadd.f32 %v1034_v56, %v1022_v53 }
  0xe2   :  { %v1048_v50 = vadd.f32 %v1047_v57, %v166_v8 }
  0xe3   :  { %v1155_v22 = vmax.f32 %v1035_v18, 0.0 }
  0xe8   :  { %v1036_v58 = vpop.f32.mrf.mxu0  ;;  %v1060_v59 = vpop.f32.mrf.mxu2 }
  0xe9   :  { %v1049_v60 = vpop.f32.mrf.mxu1  ;;  %v1073_v61 = vpop.f32.mrf.mxu3  ;;  %v1061_v1 = vadd.f32 %v1060_v59, %v1048_v50 }
  0xeb   :  { %v1074_v5 = vadd.f32 %v1073_v61, %v1061_v1 }
  0xf0   :  { %v1062_v62 = vpop.f32.mrf.mxu2 }
  0xf1   :  { %v1075_v63 = vpop.f32.mrf.mxu3 }
 0x100   :  { %v1086_v0 = vpop.f32.mrf.mxu0 }
 0x101   :  { %v1099_v38 = vpop.f32.mrf.mxu1  ;;  %v1087_v6 = vadd.f32 %v1086_v0, %v1074_v5 }
 0x103   :  { %v1100_v11 = vadd.f32 %v1099_v38, %v1087_v6 }
 0x108   :  { %v1112_v2 = vpop.f32.mrf.mxu2  ;;  %v1088_v3 = vpop.f32.mrf.mxu0 }
 0x109   :  { %v1101_v40 = vpop.f32.mrf.mxu1  ;;  %v1125_v4 = vpop.f32.mrf.mxu3  ;;  %v1113_v14 = vadd.f32 %v1112_v2, %v1100_v11 }
 0x10b   :  { %v1126_v15 = vadd.f32 %v1125_v4, %v1113_v14 }
 0x110   :  { %v1114_v9 = vpop.f32.mrf.mxu2 }
 0x111   :  { %v1127_v10 = vpop.f32.mrf.mxu3 }
 0x120   :  { %v1138_v16 = vpop.f32.mrf.mxu0 }
 0x121   :  { %v1139_v19 = vadd.f32 %v1138_v16, %v1126_v15  ;;  %v1151_v20 = vpop.f32.mrf.mxu1 }
 0x123   :  { %v1152_v21 = vadd.f32 %v1151_v20, %v1139_v19 }
 0x125   :  { %v1156_v23 = vmax.f32 %v1152_v21, 0.0 }
 0x127   :  { %v1157_v24 = vpack.c.bf16 %v1156_v23, %v1155_v22 }
 0x128   :  { %v1140_v25 = vpop.f32.mrf.mxu0 }
 0x129   :  { %1158 = vst [vmem:[%s2827_s3] sm:$0xff] %v1157_v24  ;;  %v1153_v26 = vpop.f32.mrf.mxu1 }

// kernel: stegastamp_encoder_forward.21
= control target key start
LH: loop header
LB: loop body
LE: loop exit
PB: predicated region body
PF: predicated region fallthrough
CT: control target
= control target key end

     0   :  { %s1224_s1 = inlined_call_operand.vmem [shape: bf16[1024,128], index: 1, kind: input, shape index: {}]   ;;  %s1225_s2 = inlined_call_operand.vmem [shape: f32[1,128], index: 2, kind: input, shape index: {}]   ;;  %s1226_s0 = inlined_call_operand.vmem [shape: bf16[8,1024], index: 0, kind: input, shape index: {}]   ;;  %s1227_s3 = inlined_call_operand.vmem [shape: bf16[8,128], index: 3, kind: output, shape index: {}]  }
   0x1   :  { %v936_v0 = vld [vmem:[%s1224_s1 + $0x38] sm:$0xff]  ;;  %v935_v4 = vld [vmem:[%s1224_s1 + $0x30] sm:$0xff]  ;;  %v934_v8 = vld [vmem:[%s1224_s1 + $0x28] sm:$0xff] }
   0x2   :  { %v944_v1 = vld [vmem:[%s1224_s1 + $0x78] sm:$0xff]  ;;  %562 = vmatpush.bf16.msra.mxu0 %v936_v0  ;;  %v943_v5 = vld [vmem:[%s1224_s1 + $0x70] sm:$0xff]  ;;  %v942_v9 = vld [vmem:[%s1224_s1 + $0x68] sm:$0xff] }
   0x3   :  { %v952_v2 = vld [vmem:[%s1224_s1 + $0xb8] sm:$0xff]  ;;  %575 = vmatpush.bf16.msra.mxu1 %v944_v1  ;;  %v951_v6 = vld [vmem:[%s1224_s1 + $0xb0] sm:$0xff]  ;;  %v950_v10 = vld [vmem:[%s1224_s1 + $0xa8] sm:$0xff] }
   0x4   :  { %v960_v3 = vld [vmem:[%s1224_s1 + $0xf8] sm:$0xff]  ;;  %588 = vmatpush.bf16.msra.mxu2 %v952_v2  ;;  %v959_v7 = vld [vmem:[%s1224_s1 + $0xf0] sm:$0xff]  ;;  %v958_v11 = vld [vmem:[%s1224_s1 + $0xe8] sm:$0xff] }
   0x5   :  { %601 = vmatpush.bf16.msra.mxu3 %v960_v3  ;;  %v933_v12 = vld [vmem:[%s1224_s1 + $0x20] sm:$0xff]  ;;  %v932_v16 = vld [vmem:[%s1224_s1 + $0x18] sm:$0xff]  ;;  %v931_v20 = vld [vmem:[%s1224_s1 + $0x10] sm:$0xff] }
   0x6   :  { %563 = vmatpush.bf16.msra.mxu0 %v935_v4  ;;  %v941_v13 = vld [vmem:[%s1224_s1 + $0x60] sm:$0xff]  ;;  %v940_v17 = vld [vmem:[%s1224_s1 + $0x58] sm:$0xff]  ;;  %v939_v21 = vld [vmem:[%s1224_s1 + $0x50] sm:$0xff] }
   0x7   :  { %576 = vmatpush.bf16.msra.mxu1 %v943_v5  ;;  %v949_v14 = vld [vmem:[%s1224_s1 + $0xa0] sm:$0xff]  ;;  %v948_v18 = vld [vmem:[%s1224_s1 + $0x98] sm:$0xff]  ;;  %v947_v22 = vld [vmem:[%s1224_s1 + $0x90] sm:$0xff] }
   0x8   :  { %589 = vmatpush.bf16.msra.mxu2 %v951_v6  ;;  %v957_v15 = vld [vmem:[%s1224_s1 + $0xe0] sm:$0xff]  ;;  %v956_v19 = vld [vmem:[%s1224_s1 + $0xd8] sm:$0xff]  ;;  %v955_v23 = vld [vmem:[%s1224_s1 + $0xd0] sm:$0xff] }
   0x9   :  { %602 = vmatpush.bf16.msra.mxu3 %v959_v7  ;;  %v930_v24 = vld [vmem:[%s1224_s1 + $0x8] sm:$0xff]  ;;  %v14_v29 = vld [vmem:[%s1226_s0] sm:$0xff]  ;;  %v968_v38 = vld [vmem:[%s1224_s1 + $0x138] sm:$0xff] }
   0xa   :  { %564 = vmatpush.bf16.msra.mxu0 %v934_v8  ;;  %v938_v25 = vld [vmem:[%s1224_s1 + $0x48] sm:$0xff]  ;;  %v929_v30 = vld [vmem:[%s1224_s1] sm:$0xff]  ;;  %v154_v36 = vunpack.c.l.b16 %v14_v29  ;;  %v155_v37 = vunpack.c.h.b16 %v14_v29  ;;  %v976_v39 = vld [vmem:[%s1224_s1 + $0x178] sm:$0xff] }
   0xb   :  { %577 = vmatpush.bf16.msra.mxu1 %v942_v9  ;;  %v946_v26 = vld [vmem:[%s1224_s1 + $0x88] sm:$0xff]  ;;  %v937_v31 = vld [vmem:[%s1224_s1 + $0x40] sm:$0xff]  ;;  %v984_v40 = vld [vmem:[%s1224_s1 + $0x1b8] sm:$0xff] }
   0xc   :  { %590 = vmatpush.bf16.msra.mxu2 %v950_v10  ;;  %v954_v27 = vld [vmem:[%s1224_s1 + $0xc8] sm:$0xff]  ;;  %v945_v34 = vld [vmem:[%s1224_s1 + $0x80] sm:$0xff]  ;;  %v992_v41 = vld [vmem:[%s1224_s1 + $0x1f8] sm:$0xff]  ;;  %v162_v44 = vpack.c.b16 %v154_v36, %v154_v36  ;;  %v163_v45 = vpack.c.b16 %v155_v37, %v155_v37 }
   0xd   :  { %603 = vmatpush.bf16.msra.mxu3 %v958_v11  ;;  %v15_v28 = vld [vmem:[%s1226_s0 + $0x8] sm:$0xff]  ;;  %v953_v35 = vld [vmem:[%s1224_s1 + $0xc0] sm:$0xff]  ;;  %v967_v46 = vld [vmem:[%s1224_s1 + $0x130] sm:$0xff] }
   0xe   :  { %565 = vmatpush.bf16.msra.mxu0 %v933_v12  ;;  %v156_v32 = vunpack.c.l.b16 %v15_v28  ;;  %v157_v33 = vunpack.c.h.b16 %v15_v28  ;;  %v975_v47 = vld [vmem:[%s1224_s1 + $0x170] sm:$0xff]  ;;  %v966_v50 = vld [vmem:[%s1224_s1 + $0x128] sm:$0xff]  ;;  %v965_v54 = vld [vmem:[%s1224_s1 + $0x120] sm:$0xff] }
   0xf   :  { %578 = vmatpush.bf16.msra.mxu1 %v941_v13  ;;  %v983_v48 = vld [vmem:[%s1224_s1 + $0x1b0] sm:$0xff]  ;;  %v974_v51 = vld [vmem:[%s1224_s1 + $0x168] sm:$0xff]  ;;  %v973_v55 = vld [vmem:[%s1224_s1 + $0x160] sm:$0xff] }
  0x10   :  { %591 = vmatpush.bf16.msra.mxu2 %v949_v14  ;;  %v164_v42 = vpack.c.b16 %v156_v32, %v156_v32  ;;  %v165_v43 = vpack.c.b16 %v157_v33, %v157_v33  ;;  %v991_v49 = vld [vmem:[%s1224_s1 + $0x1f0] sm:$0xff]  ;;  %v982_v52 = vld [vmem:[%s1224_s1 + $0x1a8] sm:$0xff]  ;;  %v981_v56 = vld [vmem:[%s1224_s1 + $0x1a0] sm:$0xff] }
  0x11   :  { %604 = vmatpush.bf16.msra.mxu3 %v957_v15  ;;  %v990_v53 = vld [vmem:[%s1224_s1 + $0x1e8] sm:$0xff]  ;;  %v989_v57 = vld [vmem:[%s1224_s1 + $0x1e0] sm:$0xff]  ;;  %v964_v58 = vld [vmem:[%s1224_s1 + $0x118] sm:$0xff] }
  0x12   :  { %566 = vmatpush.bf16.msra.mxu0 %v932_v16  ;;  %v972_v59 = vld [vmem:[%s1224_s1 + $0x158] sm:$0xff]  ;;  %v963_v62 = vld [vmem:[%s1224_s1 + $0x110] sm:$0xff]  ;;  %v962_v2 = vld [vmem:[%s1224_s1 + $0x108] sm:$0xff] }
  0x13   :  { %579 = vmatpush.bf16.msra.mxu1 %v940_v17  ;;  %v980_v60 = vld [vmem:[%s1224_s1 + $0x198] sm:$0xff]  ;;  %v971_v63 = vld [vmem:[%s1224_s1 + $0x150] sm:$0xff]  ;;  %v970_v3 = vld [vmem:[%s1224_s1 + $0x148] sm:$0xff] }
  0x14   :  { %592 = vmatpush.bf16.msra.mxu2 %v948_v18  ;;  %v988_v61 = vld [vmem:[%s1224_s1 + $0x1d8] sm:$0xff]  ;;  %v979_v0 = vld [vmem:[%s1224_s1 + $0x190] sm:$0xff]  ;;  %v978_v5 = vld [vmem:[%s1224_s1 + $0x188] sm:$0xff] }
  0x15   :  { %605 = vmatpush.bf16.msra.mxu3 %v956_v19  ;;  %v987_v1 = vld [vmem:[%s1224_s1 + $0x1d0] sm:$0xff]  ;;  %v986_v6 = vld [vmem:[%s1224_s1 + $0x1c8] sm:$0xff]  ;;  %v17_v7 = vld [vmem:[%s1226_s0 + $0x18] sm:$0xff] }
  0x16   :  { %567 = vmatpush.bf16.msra.mxu0 %v931_v20  ;;  %v16_v4 = vld [vmem:[%s1226_s0 + $0x10] sm:$0xff]  ;;  %v961_v10 = vld [vmem:[%s1224_s1 + $0x100] sm:$0xff]  ;;  %v160_v12 = vunpack.c.l.b16 %v17_v7  ;;  %v161_v13 = vunpack.c.h.b16 %v17_v7 }
  0x17   :  { %580 = vmatpush.bf16.msra.mxu1 %v939_v21  ;;  %v158_v8 = vunpack.c.l.b16 %v16_v4  ;;  %v159_v9 = vunpack.c.h.b16 %v16_v4  ;;  %v969_v11 = vld [vmem:[%s1224_s1 + $0x140] sm:$0xff] }
  0x18   :  { %593 = vmatpush.bf16.msra.mxu2 %v947_v22  ;;  %v977_v14 = vld [vmem:[%s1224_s1 + $0x180] sm:$0xff]  ;;  %v168_v18 = vpack.c.b16 %v160_v12, %v160_v12  ;;  %v169_v19 = vpack.c.b16 %v161_v13, %v161_v13 }
  0x19   :  { %606 = vmatpush.bf16.msra.mxu3 %v955_v23  ;;  %v985_v15 = vld [vmem:[%s1224_s1 + $0x1c0] sm:$0xff]  ;;  %v166_v16 = vpack.c.b16 %v158_v8, %v158_v8  ;;  %v167_v17 = vpack.c.b16 %v159_v9, %v159_v9 }
  0x1a   :  { %568 = vmatpush.bf16.msra.mxu0 %v930_v24 }
  0x1b   :  { %581 = vmatpush.bf16.msra.mxu1 %v938_v25 }
  0x1c   :  { %594 = vmatpush.bf16.msra.mxu2 %v946_v26  ;;  %v993_v26 = vld [vmem:[%s1225_s2] ss:$0 sm:$0xff] }
  0x1d   :  { %607 = vmatpush.bf16.msra.mxu3 %v954_v27 }
  0x1e   :  { %569 = vmatpush.bf16.msra.mxu0 %v929_v30 }
  0x1f   :  { %582 = vmatpush.bf16.msra.mxu1 %v937_v31 }
  0x20   :  { %595 = vmatpush.bf16.msra.mxu2 %v945_v34 }
  0x21   :  { %608 = vmatpush.bf16.msra.mxu3 %v953_v35  ;;  %570 = vmatmul.bf16.vlgmr.msra.gmra.mxu0 %v162_v44 }
  0x22   :  { %614 = vmatpush.bf16.msrb.mxu0 %v968_v38  ;;  %583 = vmatmul.bf16.vlgmr.msra.gmra.mxu1 %v163_v45 }
  0x23   :  { %627 = vmatpush.bf16.msrb.mxu1 %v976_v39  ;;  %596 = vmatmul.bf16.vlgmr.msra.gmra.mxu2 %v164_v42 }
  0x24   :  { %640 = vmatpush.bf16.msrb.mxu2 %v984_v40  ;;  %609 = vmatmul.bf16.vlgmr.msra.gmra.mxu3 %v165_v43 }
  0x25   :  { %653 = vmatpush.bf16.msrb.mxu3 %v992_v41 }
  0x26   :  { %615 = vmatpush.bf16.msrb.mxu0 %v967_v46 }
  0x27   :  { %628 = vmatpush.bf16.msrb.mxu1 %v975_v47 }
  0x28   :  { %641 = vmatpush.bf16.msrb.mxu2 %v983_v48 }
  0x29   :  { %654 = vmatpush.bf16.msrb.mxu3 %v991_v49 }
  0x2a   :  { %616 = vmatpush.bf16.msrb.mxu0 %v966_v50 }
  0x2b   :  { %629 = vmatpush.bf16.msrb.mxu1 %v974_v51 }
  0x2c   :  { %642 = vmatpush.bf16.msrb.mxu2 %v982_v52 }
  0x2d   :  { %655 = vmatpush.bf16.msrb.mxu3 %v990_v53 }
  0x2e   :  { %617 = vmatpush.bf16.msrb.mxu0 %v965_v54 }
  0x2f   :  { %630 = vmatpush.bf16.msrb.mxu1 %v973_v55 }
  0x30   :  { %643 = vmatpush.bf16.msrb.mxu2 %v981_v56 }
  0x31   :  { %656 = vmatpush.bf16.msrb.mxu3 %v989_v57 }
  0x32   :  { %618 = vmatpush.bf16.msrb.mxu0 %v964_v58 }
  0x33   :  { %631 = vmatpush.bf16.msrb.mxu1 %v972_v59 }
  0x34   :  { %644 = vmatpush.bf16.msrb.mxu2 %v980_v60 }
  0x35   :  { %657 = vmatpush.bf16.msrb.mxu3 %v988_v61 }
  0x36   :  { %619 = vmatpush.bf16.msrb.mxu0 %v963_v62 }
  0x37   :  { %632 = vmatpush.bf16.msrb.mxu1 %v971_v63 }
  0x38   :  { %645 = vmatpush.bf16.msrb.mxu2 %v979_v0 }
  0x39   :  { %658 = vmatpush.bf16.msrb.mxu3 %v987_v1 }
  0x3a   :  { %620 = vmatpush.bf16.msrb.mxu0 %v962_v2 }
  0x3b   :  { %633 = vmatpush.bf16.msrb.mxu1 %v970_v3 }
  0x3c   :  { %646 = vmatpush.bf16.msrb.mxu2 %v978_v5 }
  0x3d   :  { %659 = vmatpush.bf16.msrb.mxu3 %v986_v6 }
  0x3e   :  { %621 = vmatpush.bf16.msrb.mxu0 %v961_v10 }
  0x3f   :  { %634 = vmatpush.bf16.msrb.mxu1 %v969_v11 }
  0x40   :  { %647 = vmatpush.bf16.msrb.mxu2 %v977_v14 }
  0x41   :  { %660 = vmatpush.bf16.msrb.mxu3 %v985_v15  ;;  %622 = vmatmul.bf16.vlgmr.msrb.gmra.mxu0 %v166_v16 }
  0x42   :  { %635 = vmatmul.bf16.vlgmr.msrb.gmra.mxu1 %v167_v17 }
  0x43   :  { %648 = vmatmul.bf16.vlgmr.msrb.gmra.mxu2 %v168_v18 }
  0x44   :  { %661 = vmatmul.bf16.vlgmr.msrb.gmra.mxu3 %v169_v19 }
  0x9e   :  { %v571_v20 = vpop.f32.mrf.mxu0 }
  0x9f   :  { %v584_v21 = vpop.f32.mrf.mxu1  ;;  %v572_v29 = vadd.f32 %v993_v26, %v571_v20 }
  0xa1   :  { %v585_v30 = vadd.f32 %v584_v21, %v572_v29 }
  0xa6   :  { %v597_v22 = vpop.f32.mrf.mxu2  ;;  %v573_v24 = vpop.f32.mrf.mxu0 }
  0xa7   :  { %v610_v23 = vpop.f32.mrf.mxu3  ;;  %v586_v25 = vpop.f32.mrf.mxu1  ;;  %v598_v31 = vadd.f32 %v597_v22, %v585_v30 }
  0xa9   :  { %v611_v32 = vadd.f32 %v610_v23, %v598_v31 }
  0xae   :  { %v599_v27 = vpop.f32.mrf.mxu2 }
  0xaf   :  { %v612_v28 = vpop.f32.mrf.mxu3 }
  0xbe   :  { %v623_v33 = vpop.f32.mrf.mxu0 }
  0xbf   :  { %v636_v34 = vpop.f32.mrf.mxu1  ;;  %v624_v35 = vadd.f32 %v623_v33, %v611_v32 }
  0xc1   :  { %v637_v36 = vadd.f32 %v636_v34, %v624_v35 }
  0xc6   :  { %v649_v37 = vpop.f32.mrf.mxu2  ;;  %v625_v40 = vpop.f32.mrf.mxu0 }
  0xc7   :  { %v662_v38 = vpop.f32.mrf.mxu3  ;;  %v650_v39 = vadd.f32 %v649_v37, %v637_v36  ;;  %v638_v41 = vpop.f32.mrf.mxu1 }
  0xc9   :  { %v663_v42 = vadd.f32 %v662_v38, %v650_v39 }
  0xcb   :  { %v666_v43 = vmax.f32 %v663_v42, 0.0 }
  0xcd   :  { %v667_v44 = vpack.c.bf16 %v666_v43, %v666_v43 }
  0xce   :  { %v651_v45 = vpop.f32.mrf.mxu2 }
  0xcf   :  { %v664_v46 = vpop.f32.mrf.mxu3  ;;  %668 = vst [vmem:[%s1227_s3] sm:$0xf] %v667_v44 }

// kernel: stegastamp_encoder_forward.23
= control target key start
LH: loop header
LB: loop body
LE: loop exit
PB: predicated region body
PF: predicated region fallthrough
CT: control target
= control target key end

     0   :  { %s799_s1 = inlined_call_operand.vmem [shape: bf16[512,128], index: 1, kind: input, shape index: {}]   ;;  %s800_s2 = inlined_call_operand.vmem [shape: f32[1,128], index: 2, kind: input, shape index: {}]   ;;  %s801_s0 = inlined_call_operand.vmem [shape: bf16[32,512], index: 0, kind: input, shape index: {}]   ;;  %s802_s3 = inlined_call_operand.vmem [shape: bf16[32,128], index: 3, kind: output, shape index: {}]  }
   0x1   :  { %v589_v0 = vld [vmem:[%s799_s1 + $0x38] sm:$0xff]  ;;  %v588_v4 = vld [vmem:[%s799_s1 + $0x30] sm:$0xff]  ;;  %v587_v8 = vld [vmem:[%s799_s1 + $0x28] sm:$0xff] }
   0x2   :  { %v597_v1 = vld [vmem:[%s799_s1 + $0x78] sm:$0xff]  ;;  %322 = vmatpush.bf16.msra.mxu0 %v589_v0  ;;  %v596_v5 = vld [vmem:[%s799_s1 + $0x70] sm:$0xff]  ;;  %v595_v9 = vld [vmem:[%s799_s1 + $0x68] sm:$0xff] }
   0x3   :  { %v605_v2 = vld [vmem:[%s799_s1 + $0xb8] sm:$0xff]  ;;  %341 = vmatpush.bf16.msra.mxu1 %v597_v1  ;;  %v604_v6 = vld [vmem:[%s799_s1 + $0xb0] sm:$0xff]  ;;  %v603_v10 = vld [vmem:[%s799_s1 + $0xa8] sm:$0xff] }
   0x4   :  { %v613_v3 = vld [vmem:[%s799_s1 + $0xf8] sm:$0xff]  ;;  %360 = vmatpush.bf16.msra.mxu2 %v605_v2  ;;  %v612_v7 = vld [vmem:[%s799_s1 + $0xf0] sm:$0xff]  ;;  %v611_v11 = vld [vmem:[%s799_s1 + $0xe8] sm:$0xff] }
   0x5   :  { %379 = vmatpush.bf16.msra.mxu3 %v613_v3  ;;  %v586_v12 = vld [vmem:[%s799_s1 + $0x20] sm:$0xff]  ;;  %v585_v16 = vld [vmem:[%s799_s1 + $0x18] sm:$0xff]  ;;  %v584_v20 = vld [vmem:[%s799_s1 + $0x10] sm:$0xff] }
   0x6   :  { %323 = vmatpush.bf16.msra.mxu0 %v588_v4  ;;  %v594_v13 = vld [vmem:[%s799_s1 + $0x60] sm:$0xff]  ;;  %v593_v17 = vld [vmem:[%s799_s1 + $0x58] sm:$0xff]  ;;  %v592_v21 = vld [vmem:[%s799_s1 + $0x50] sm:$0xff] }
   0x7   :  { %342 = vmatpush.bf16.msra.mxu1 %v596_v5  ;;  %v602_v14 = vld [vmem:[%s799_s1 + $0xa0] sm:$0xff]  ;;  %v601_v18 = vld [vmem:[%s799_s1 + $0x98] sm:$0xff]  ;;  %v600_v22 = vld [vmem:[%s799_s1 + $0x90] sm:$0xff] }
   0x8   :  { %361 = vmatpush.bf16.msra.mxu2 %v604_v6  ;;  %v610_v15 = vld [vmem:[%s799_s1 + $0xe0] sm:$0xff]  ;;  %v609_v19 = vld [vmem:[%s799_s1 + $0xd8] sm:$0xff]  ;;  %v608_v23 = vld [vmem:[%s799_s1 + $0xd0] sm:$0xff] }
   0x9   :  { %380 = vmatpush.bf16.msra.mxu3 %v612_v7  ;;  %v583_v24 = vld [vmem:[%s799_s1 + $0x8] sm:$0xff]  ;;  %v582_v28 = vld [vmem:[%s799_s1] sm:$0xff]  ;;  %v576_v33 = vld [vmem:[%s801_s0 + $0xc] sm:$0xf0] }
   0xa   :  { %324 = vmatpush.bf16.msra.mxu0 %v587_v8  ;;  %v591_v25 = vld [vmem:[%s799_s1 + $0x48] sm:$0xff]  ;;  %v590_v29 = vld [vmem:[%s799_s1 + $0x40] sm:$0xff]  ;;  %v418_v35 = vld [vmem:[%s801_s0 + $0x10] sm:$0xf0] }
   0xb   :  { %343 = vmatpush.bf16.msra.mxu1 %v595_v9  ;;  %v599_v26 = vld [vmem:[%s799_s1 + $0x88] sm:$0xff]  ;;  %v598_v30 = vld [vmem:[%s799_s1 + $0x80] sm:$0xff]  ;;  %v577_v37 = vld [vmem:[%s801_s0 + $0x14] sm:$0xf0] }
   0xc   :  { %362 = vmatpush.bf16.msra.mxu2 %v603_v10  ;;  %v607_v27 = vld [vmem:[%s799_s1 + $0xc8] sm:$0xff]  ;;  %v606_v31 = vld [vmem:[%s799_s1 + $0xc0] sm:$0xff]  ;;  %v426_v39 = vld [vmem:[%s801_s0 + $0x18] sm:$0xf0] }
   0xd   :  { %381 = vmatpush.bf16.msra.mxu3 %v611_v11  ;;  %v416_v32 = vld [vmem:[%s801_s0] sm:$0xf]  ;;  %v574_v34 = vld [vmem:[%s801_s0 + $0x4] sm:$0xf]  ;;  %v424_v36 = vld [vmem:[%s801_s0 + $0x8] sm:$0xf] }
   0xe   :  { %325 = vmatpush.bf16.msra.mxu0 %v586_v12  ;;  %v575_v38 = vld [vmem:[%s801_s0 + $0xc] sm:$0xf]  ;;  %v417_v40 = vor.u32 %v576_v33, %v416_v32  ;;  %v421_v41 = vor.u32 %v574_v34, %v418_v35  ;;  %v425_v42 = vor.u32 %v577_v37, %v424_v36  ;;  %v432_v44 = vld [vmem:[%s801_s0 + $0x20] sm:$0xf]  ;;  %v580_v45 = vld [vmem:[%s801_s0 + $0x2c] sm:$0xf0] }
   0xf   :  { %344 = vmatpush.bf16.msra.mxu1 %v594_v13  ;;  %v429_v43 = vor.u32 %v575_v38, %v426_v39  ;;  %v578_v46 = vld [vmem:[%s801_s0 + $0x24] sm:$0xf]  ;;  %v434_v47 = vld [vmem:[%s801_s0 + $0x30] sm:$0xf0]  ;;  %v440_v48 = vld [vmem:[%s801_s0 + $0x28] sm:$0xf]  ;;  %v433_v52 = vor.u32 %v580_v45, %v432_v44 }
  0x10   :  { %363 = vmatpush.bf16.msra.mxu2 %v602_v14  ;;  %v581_v49 = vld [vmem:[%s801_s0 + $0x34] sm:$0xf0]  ;;  %v579_v50 = vld [vmem:[%s801_s0 + $0x2c] sm:$0xf]  ;;  %v442_v51 = vld [vmem:[%s801_s0 + $0x38] sm:$0xf0]  ;;  %v437_v53 = vor.u32 %v578_v46, %v434_v47 }
  0x11   :  { %382 = vmatpush.bf16.msra.mxu3 %v610_v15  ;;  %v441_v54 = vor.u32 %v581_v49, %v440_v48  ;;  %v445_v55 = vor.u32 %v579_v50, %v442_v51  ;;  %v625_v56 = vld [vmem:[%s800_s2] ss:$0 sm:$0xff] }
  0x12   :  { %326 = vmatpush.bf16.msra.mxu0 %v585_v16 }
  0x13   :  { %345 = vmatpush.bf16.msra.mxu1 %v593_v17 }
  0x14   :  { %364 = vmatpush.bf16.msra.mxu2 %v601_v18 }
  0x15   :  { %383 = vmatpush.bf16.msra.mxu3 %v609_v19 }
  0x16   :  { %327 = vmatpush.bf16.msra.mxu0 %v584_v20 }
  0x17   :  { %346 = vmatpush.bf16.msra.mxu1 %v592_v21 }
  0x18   :  { %365 = vmatpush.bf16.msra.mxu2 %v600_v22 }
  0x19   :  { %384 = vmatpush.bf16.msra.mxu3 %v608_v23 }
  0x1a   :  { %328 = vmatpush.bf16.msra.mxu0 %v583_v24 }
  0x1b   :  { %347 = vmatpush.bf16.msra.mxu1 %v591_v25 }
  0x1c   :  { %366 = vmatpush.bf16.msra.mxu2 %v599_v26 }
  0x1d   :  { %385 = vmatpush.bf16.msra.mxu3 %v607_v27 }
  0x1e   :  { %329 = vmatpush.bf16.msra.mxu0 %v582_v28 }
  0x1f   :  { %348 = vmatpush.bf16.msra.mxu1 %v590_v29 }
  0x20   :  { %367 = vmatpush.bf16.msra.mxu2 %v598_v30 }
  0x21   :  { %386 = vmatpush.bf16.msra.mxu3 %v606_v31  ;;  %330 = vmatmul.bf16.vlgmr.msra.gmra.mxu0 %v417_v40 }
  0x22   :  { %349 = vmatmul.bf16.vlgmr.msra.gmra.mxu1 %v421_v41 }
  0x23   :  { %368 = vmatmul.bf16.vlgmr.msra.gmra.mxu2 %v425_v42 }
  0x24   :  { %387 = vmatmul.bf16.vlgmr.msra.gmra.mxu3 %v429_v43 }
  0x31   :  { %335 = vmatmul.bf16.gmra.mxu0 %v433_v52 }
  0x32   :  { %354 = vmatmul.bf16.gmra.mxu1 %v437_v53 }
  0x33   :  { %373 = vmatmul.bf16.gmra.mxu2 %v441_v54 }
  0x34   :  { %392 = vmatmul.bf16.gmra.mxu3 %v445_v55 }
  0x9e   :  { %v331_v57 = vpop.f32.mrf.mxu0 }
  0x9f   :  { %v350_v58 = vpop.f32.mrf.mxu1  ;;  %v332_v59 = vadd.f32 %v625_v56, %v331_v57 }
  0xa1   :  { %v351_v62 = vadd.f32 %v350_v58, %v332_v59 }
  0xa6   :  { %v369_v60 = vpop.f32.mrf.mxu2  ;;  %v333_v63 = vpop.f32.mrf.mxu0 }
  0xa7   :  { %v388_v61 = vpop.f32.mrf.mxu3  ;;  %v352_v0 = vpop.f32.mrf.mxu1  ;;  %v334_v1 = vadd.f32 %v625_v56, %v333_v63  ;;  %v370_v2 = vadd.f32 %v369_v60, %v351_v62 }
  0xa9   :  { %v353_v3 = vadd.f32 %v352_v0, %v334_v1  ;;  %v389_v6 = vadd.f32 %v388_v61, %v370_v2 }
  0xab   :  { %v398_v11 = vmax.f32 %v389_v6, 0.0 }
  0xae   :  { %v371_v4 = vpop.f32.mrf.mxu2  ;;  %v336_v8 = vpop.f32.mrf.mxu0 }
  0xaf   :  { %v390_v5 = vpop.f32.mrf.mxu3  ;;  %v372_v7 = vadd.f32 %v371_v4, %v353_v3  ;;  %v355_v10 = vpop.f32.mrf.mxu1  ;;  %v337_v13 = vadd.f32 %v625_v56, %v336_v8 }
  0xb1   :  { %v391_v9 = vadd.f32 %v390_v5, %v372_v7  ;;  %v356_v17 = vadd.f32 %v355_v10, %v337_v13 }
  0xb3   :  { %v399_v12 = vmax.f32 %v391_v9, 0.0 }
  0xb5   :  { %v617_v14 = vpack.c.bf16 %v399_v12, %v398_v11 }
  0xb6   :  { %v374_v15 = vpop.f32.mrf.mxu2  ;;  %v338_v18 = vpop.f32.mrf.mxu0 }
  0xb7   :  { %v393_v16 = vpop.f32.mrf.mxu3  ;;  %618 = vst [vmem:[%s802_s3] sm:$0xff] %v617_v14   ;;  %v339_v19 = vadd.f32 %v625_v56, %v338_v18  ;;  %v375_v20 = vadd.f32 %v374_v15, %v356_v17  ;;  %v357_v21 = vpop.f32.mrf.mxu1 }
  0xb9   :  { %v358_v22 = vadd.f32 %v357_v21, %v339_v19  ;;  %v394_v24 = vadd.f32 %v393_v16, %v375_v20 }
  0xbb   :  { %v400_v28 = vmax.f32 %v394_v24, 0.0 }
  0xbe   :  { %v376_v23 = vpop.f32.mrf.mxu2 }
  0xbf   :  { %v377_v25 = vadd.f32 %v376_v23, %v358_v22  ;;  %v395_v26 = vpop.f32.mrf.mxu3 }
  0xc1   :  { %v396_v27 = vadd.f32 %v395_v26, %v377_v25 }
  0xc3   :  { %v401_v29 = vmax.f32 %v396_v27, 0.0 }
  0xc5   :  { %v622_v30 = vpack.c.bf16 %v401_v29, %v400_v28 }
  0xc7   :  { %624 = vst [vmem:[%s802_s3 + $0x8] sm:$0xff] %v622_v30  }

// kernel: stegastamp_encoder_forward.22
= control target key start
LH: loop header
LB: loop body
LE: loop exit
PB: predicated region body
PF: predicated region fallthrough
CT: control target
= control target key end

     0   :  { %s2689_s1 = inlined_call_operand.vmem [shape: bf16[2304,128], index: 1, kind: input, shape index: {}]   ;;  %s2690_s0 = inlined_call_operand.vmem [shape: bf16[8,2304], index: 0, kind: input, shape index: {}]   ;;  %s2691_s2 = inlined_call_operand.vmem [shape: f32[1,128], index: 2, kind: input, shape index: {}]   ;;  %s2692_s3 = inlined_call_operand.vmem [shape: bf16[8,128], index: 3, kind: output, shape index: {}]  }
   0x1   :  { %v2066_v0 = vld [vmem:[%s2689_s1 + $0x38] sm:$0xff]  ;;  %v2065_v4 = vld [vmem:[%s2689_s1 + $0x30] sm:$0xff]  ;;  %v2064_v8 = vld [vmem:[%s2689_s1 + $0x28] sm:$0xff] }
   0x2   :  { %v2074_v1 = vld [vmem:[%s2689_s1 + $0x78] sm:$0xff]  ;;  %1242 = vmatpush.bf16.msra.mxu0 %v2066_v0  ;;  %v2073_v5 = vld [vmem:[%s2689_s1 + $0x70] sm:$0xff]  ;;  %v2072_v9 = vld [vmem:[%s2689_s1 + $0x68] sm:$0xff] }
   0x3   :  { %v2082_v2 = vld [vmem:[%s2689_s1 + $0xb8] sm:$0xff]  ;;  %1255 = vmatpush.bf16.msra.mxu1 %v2074_v1  ;;  %v2081_v6 = vld [vmem:[%s2689_s1 + $0xb0] sm:$0xff]  ;;  %v2080_v10 = vld [vmem:[%s2689_s1 + $0xa8] sm:$0xff] }
   0x4   :  { %v2090_v3 = vld [vmem:[%s2689_s1 + $0xf8] sm:$0xff]  ;;  %1268 = vmatpush.bf16.msra.mxu2 %v2082_v2  ;;  %v2089_v7 = vld [vmem:[%s2689_s1 + $0xf0] sm:$0xff]  ;;  %v2088_v11 = vld [vmem:[%s2689_s1 + $0xe8] sm:$0xff] }
   0x5   :  { %1281 = vmatpush.bf16.msra.mxu3 %v2090_v3  ;;  %v2063_v12 = vld [vmem:[%s2689_s1 + $0x20] sm:$0xff]  ;;  %v2062_v16 = vld [vmem:[%s2689_s1 + $0x18] sm:$0xff]  ;;  %v2061_v20 = vld [vmem:[%s2689_s1 + $0x10] sm:$0xff] }
   0x6   :  { %1243 = vmatpush.bf16.msra.mxu0 %v2065_v4  ;;  %v2071_v13 = vld [vmem:[%s2689_s1 + $0x60] sm:$0xff]  ;;  %v2070_v17 = vld [vmem:[%s2689_s1 + $0x58] sm:$0xff]  ;;  %v2069_v21 = vld [vmem:[%s2689_s1 + $0x50] sm:$0xff] }
   0x7   :  { %1256 = vmatpush.bf16.msra.mxu1 %v2073_v5  ;;  %v2079_v14 = vld [vmem:[%s2689_s1 + $0xa0] sm:$0xff]  ;;  %v2078_v18 = vld [vmem:[%s2689_s1 + $0x98] sm:$0xff]  ;;  %v2077_v22 = vld [vmem:[%s2689_s1 + $0x90] sm:$0xff] }
   0x8   :  { %1269 = vmatpush.bf16.msra.mxu2 %v2081_v6  ;;  %v2087_v15 = vld [vmem:[%s2689_s1 + $0xe0] sm:$0xff]  ;;  %v2086_v19 = vld [vmem:[%s2689_s1 + $0xd8] sm:$0xff]  ;;  %v2085_v23 = vld [vmem:[%s2689_s1 + $0xd0] sm:$0xff] }
   0x9   :  { %1282 = vmatpush.bf16.msra.mxu3 %v2089_v7  ;;  %v2060_v24 = vld [vmem:[%s2689_s1 + $0x8] sm:$0xff]  ;;  %v14_v26 = vld [vmem:[%s2690_s0] sm:$0xff]  ;;  %v2098_v35 = vld [vmem:[%s2689_s1 + $0x138] sm:$0xff] }
   0xa   :  { %1244 = vmatpush.bf16.msra.mxu0 %v2064_v8  ;;  %v2068_v25 = vld [vmem:[%s2689_s1 + $0x48] sm:$0xff]  ;;  %v324_v30 = vunpack.c.l.b16 %v14_v26  ;;  %v2059_v31 = vld [vmem:[%s2689_s1] sm:$0xff]  ;;  %v325_v36 = vunpack.c.h.b16 %v14_v26  ;;  %v2106_v37 = vld [vmem:[%s2689_s1 + $0x178] sm:$0xff] }
   0xb   :  { %1257 = vmatpush.bf16.msra.mxu1 %v2072_v9  ;;  %v2076_v27 = vld [vmem:[%s2689_s1 + $0x88] sm:$0xff]  ;;  %v2067_v32 = vld [vmem:[%s2689_s1 + $0x40] sm:$0xff]  ;;  %v2114_v38 = vld [vmem:[%s2689_s1 + $0x1b8] sm:$0xff] }
   0xc   :  { %1270 = vmatpush.bf16.msra.mxu2 %v2080_v10  ;;  %v2084_v28 = vld [vmem:[%s2689_s1 + $0xc8] sm:$0xff]  ;;  %v2075_v34 = vld [vmem:[%s2689_s1 + $0x80] sm:$0xff]  ;;  %v342_v40 = vpack.c.b16 %v324_v30, %v324_v30  ;;  %v2122_v42 = vld [vmem:[%s2689_s1 + $0x1f8] sm:$0xff]  ;;  %v343_v45 = vpack.c.b16 %v325_v36, %v325_v36 }
   0xd   :  { %1283 = vmatpush.bf16.msra.mxu3 %v2088_v11  ;;  %v15_v29 = vld [vmem:[%s2690_s0 + $0x8] sm:$0xff]  ;;  %v2083_v39 = vld [vmem:[%s2689_s1 + $0xc0] sm:$0xff]  ;;  %v2097_v44 = vld [vmem:[%s2689_s1 + $0x130] sm:$0xff] }
   0xe   :  { %1245 = vmatpush.bf16.msra.mxu0 %v2063_v12  ;;  %v326_v33 = vunpack.c.l.b16 %v15_v29  ;;  %v327_v41 = vunpack.c.h.b16 %v15_v29  ;;  %v2105_v46 = vld [vmem:[%s2689_s1 + $0x170] sm:$0xff]  ;;  %v2096_v50 = vld [vmem:[%s2689_s1 + $0x128] sm:$0xff]  ;;  %v2095_v54 = vld [vmem:[%s2689_s1 + $0x120] sm:$0xff] }
   0xf   :  { %1258 = vmatpush.bf16.msra.mxu1 %v2071_v13  ;;  %v2113_v47 = vld [vmem:[%s2689_s1 + $0x1b0] sm:$0xff]  ;;  %v2104_v51 = vld [vmem:[%s2689_s1 + $0x168] sm:$0xff]  ;;  %v2103_v55 = vld [vmem:[%s2689_s1 + $0x160] sm:$0xff] }
  0x10   :  { %1271 = vmatpush.bf16.msra.mxu2 %v2079_v14  ;;  %v344_v43 = vpack.c.b16 %v326_v33, %v326_v33  ;;  %v345_v48 = vpack.c.b16 %v327_v41, %v327_v41  ;;  %v2121_v49 = vld [vmem:[%s2689_s1 + $0x1f0] sm:$0xff]  ;;  %v2112_v52 = vld [vmem:[%s2689_s1 + $0x1a8] sm:$0xff]  ;;  %v2111_v56 = vld [vmem:[%s2689_s1 + $0x1a0] sm:$0xff] }
  0x11   :  { %1284 = vmatpush.bf16.msra.mxu3 %v2087_v15  ;;  %v2120_v53 = vld [vmem:[%s2689_s1 + $0x1e8] sm:$0xff]  ;;  %v2119_v57 = vld [vmem:[%s2689_s1 + $0x1e0] sm:$0xff]  ;;  %v2094_v58 = vld [vmem:[%s2689_s1 + $0x118] sm:$0xff] }
  0x12   :  { %1246 = vmatpush.bf16.msra.mxu0 %v2062_v16  ;;  %v2102_v59 = vld [vmem:[%s2689_s1 + $0x158] sm:$0xff]  ;;  %v2093_v62 = vld [vmem:[%s2689_s1 + $0x110] sm:$0xff]  ;;  %v2092_v2 = vld [vmem:[%s2689_s1 + $0x108] sm:$0xff] }
  0x13   :  { %1259 = vmatpush.bf16.msra.mxu1 %v2070_v17  ;;  %v2110_v60 = vld [vmem:[%s2689_s1 + $0x198] sm:$0xff]  ;;  %v2101_v63 = vld [vmem:[%s2689_s1 + $0x150] sm:$0xff]  ;;  %v2100_v3 = vld [vmem:[%s2689_s1 + $0x148] sm:$0xff] }
  0x14   :  { %1272 = vmatpush.bf16.msra.mxu2 %v2078_v18  ;;  %v2118_v61 = vld [vmem:[%s2689_s1 + $0x1d8] sm:$0xff]  ;;  %v2109_v0 = vld [vmem:[%s2689_s1 + $0x190] sm:$0xff]  ;;  %v2108_v4 = vld [vmem:[%s2689_s1 + $0x188] sm:$0xff] }
  0x15   :  { %1285 = vmatpush.bf16.msra.mxu3 %v2086_v19  ;;  %v2117_v1 = vld [vmem:[%s2689_s1 + $0x1d0] sm:$0xff]  ;;  %v17_v5 = vld [vmem:[%s2690_s0 + $0x18] sm:$0xff]  ;;  %v2116_v7 = vld [vmem:[%s2689_s1 + $0x1c8] sm:$0xff] }
  0x16   :  { %1247 = vmatpush.bf16.msra.mxu0 %v2061_v20  ;;  %v16_v6 = vld [vmem:[%s2690_s0 + $0x10] sm:$0xff]  ;;  %v2091_v8 = vld [vmem:[%s2689_s1 + $0x100] sm:$0xff]  ;;  %v330_v9 = vunpack.c.l.b16 %v17_v5  ;;  %v2130_v14 = vld [vmem:[%s2689_s1 + $0x238] sm:$0xff]  ;;  %v331_v18 = vunpack.c.h.b16 %v17_v5 }
  0x17   :  { %1260 = vmatpush.bf16.msra.mxu1 %v2069_v21  ;;  %v2099_v10 = vld [vmem:[%s2689_s1 + $0x140] sm:$0xff]  ;;  %v328_v12 = vunpack.c.l.b16 %v16_v6  ;;  %v329_v13 = vunpack.c.h.b16 %v16_v6  ;;  %v2138_v15 = vld [vmem:[%s2689_s1 + $0x278] sm:$0xff]  ;;  %v2136_v29 = vld [vmem:[%s2689_s1 + $0x268] sm:$0xff] }
  0x18   :  { %1273 = vmatpush.bf16.msra.mxu2 %v2077_v22  ;;  %v2107_v11 = vld [vmem:[%s2689_s1 + $0x180] sm:$0xff]  ;;  %v2146_v16 = vld [vmem:[%s2689_s1 + $0x2b8] sm:$0xff]  ;;  %v348_v20 = vpack.c.b16 %v330_v9, %v330_v9  ;;  %v349_v26 = vpack.c.b16 %v331_v18, %v331_v18  ;;  %v2144_v30 = vld [vmem:[%s2689_s1 + $0x2a8] sm:$0xff] }
  0x19   :  { %1286 = vmatpush.bf16.msra.mxu3 %v2085_v23  ;;  %v2115_v17 = vld [vmem:[%s2689_s1 + $0x1c0] sm:$0xff]  ;;  %v2154_v19 = vld [vmem:[%s2689_s1 + $0x2f8] sm:$0xff]  ;;  %v346_v21 = vpack.c.b16 %v328_v12, %v328_v12  ;;  %v347_v22 = vpack.c.b16 %v329_v13, %v329_v13  ;;  %v2129_v23 = vld [vmem:[%s2689_s1 + $0x230] sm:$0xff] }
  0x1a   :  { %1248 = vmatpush.bf16.msra.mxu0 %v2060_v24  ;;  %v2137_v24 = vld [vmem:[%s2689_s1 + $0x270] sm:$0xff]  ;;  %v2135_v33 = vld [vmem:[%s2689_s1 + $0x260] sm:$0xff]  ;;  %v2126_v36 = vld [vmem:[%s2689_s1 + $0x218] sm:$0xff] }
  0x1b   :  { %1261 = vmatpush.bf16.msra.mxu1 %v2068_v25  ;;  %v2145_v25 = vld [vmem:[%s2689_s1 + $0x2b0] sm:$0xff]  ;;  %v2160_v6 = vld [vmem:[%s2689_s1 + $0x328] sm:$0xff]  ;;  %v2175_v12 = vld [vmem:[%s2689_s1 + $0x3a0] sm:$0xff] }
  0x1c   :  { %1274 = vmatpush.bf16.msra.mxu2 %v2076_v27  ;;  %v2153_v27 = vld [vmem:[%s2689_s1 + $0x2f0] sm:$0xff]  ;;  %v2184_v9 = vld [vmem:[%s2689_s1 + $0x3e8] sm:$0xff]  ;;  %v2183_v13 = vld [vmem:[%s2689_s1 + $0x3e0] sm:$0xff] }
  0x1d   :  { %1287 = vmatpush.bf16.msra.mxu3 %v2084_v28  ;;  %v2128_v28 = vld [vmem:[%s2689_s1 + $0x228] sm:$0xff]  ;;  %v2133_v41 = vld [vmem:[%s2689_s1 + $0x250] sm:$0xff] }
  0x1e   :  { %1249 = vmatpush.bf16.msra.mxu0 %v2059_v31  ;;  %v2152_v31 = vld [vmem:[%s2689_s1 + $0x2e8] sm:$0xff]  ;;  %v2185_v5 = vld [vmem:[%s2689_s1 + $0x3f0] sm:$0xff] }
  0x1f   :  { %1262 = vmatpush.bf16.msra.mxu1 %v2067_v32  ;;  %v2127_v32 = vld [vmem:[%s2689_s1 + $0x220] sm:$0xff]  ;;  %v2157_v18 = vld [vmem:[%s2689_s1 + $0x310] sm:$0xff] }
  0x20   :  { %1275 = vmatpush.bf16.msra.mxu2 %v2075_v34  ;;  %v2143_v34 = vld [vmem:[%s2689_s1 + $0x2a0] sm:$0xff] }
  0x21   :  { %1288 = vmatpush.bf16.msra.mxu3 %v2083_v39  ;;  %1250 = vmatmul.bf16.vlgmr.msra.gmra.mxu0 %v342_v40  ;;  %v2150_v39 = vld [vmem:[%s2689_s1 + $0x2d8] sm:$0xff]  ;;  %v2125_v40 = vld [vmem:[%s2689_s1 + $0x210] sm:$0xff] }
  0x22   :  { %1294 = vmatpush.bf16.msrb.mxu0 %v2098_v35  ;;  %1263 = vmatmul.bf16.vlgmr.msra.gmra.mxu1 %v343_v45  ;;  %v2151_v35 = vld [vmem:[%s2689_s1 + $0x2e0] sm:$0xff]  ;;  %v2132_v45 = vld [vmem:[%s2689_s1 + $0x248] sm:$0xff] }
  0x23   :  { %1307 = vmatpush.bf16.msrb.mxu1 %v2106_v37  ;;  %1276 = vmatmul.bf16.vlgmr.msra.gmra.mxu2 %v344_v43  ;;  %v2134_v37 = vld [vmem:[%s2689_s1 + $0x258] sm:$0xff]  ;;  %v2149_v43 = vld [vmem:[%s2689_s1 + $0x2d0] sm:$0xff] }
  0x24   :  { %1320 = vmatpush.bf16.msrb.mxu2 %v2114_v38  ;;  %1289 = vmatmul.bf16.vlgmr.msra.gmra.mxu3 %v345_v48  ;;  %v2142_v38 = vld [vmem:[%s2689_s1 + $0x298] sm:$0xff]  ;;  %v19_v48 = vld [vmem:[%s2690_s0 + $0x28] sm:$0xff] }
  0x25   :  { %1333 = vmatpush.bf16.msrb.mxu3 %v2122_v42  ;;  %v2141_v42 = vld [vmem:[%s2689_s1 + $0x290] sm:$0xff] }
  0x26   :  { %1295 = vmatpush.bf16.msrb.mxu0 %v2097_v44  ;;  %v2124_v44 = vld [vmem:[%s2689_s1 + $0x208] sm:$0xff] }
  0x27   :  { %1308 = vmatpush.bf16.msrb.mxu1 %v2105_v46  ;;  %v18_v46 = vld [vmem:[%s2690_s0 + $0x20] sm:$0xff] }
  0x28   :  { %1321 = vmatpush.bf16.msrb.mxu2 %v2113_v47  ;;  %v2140_v47 = vld [vmem:[%s2689_s1 + $0x288] sm:$0xff] }
  0x29   :  { %1334 = vmatpush.bf16.msrb.mxu3 %v2121_v49  ;;  %v2148_v49 = vld [vmem:[%s2689_s1 + $0x2c8] sm:$0xff] }
  0x2a   :  { %1296 = vmatpush.bf16.msrb.mxu0 %v2096_v50  ;;  %v332_v50 = vunpack.c.l.b16 %v18_v46 }
  0x2b   :  { %1309 = vmatpush.bf16.msrb.mxu1 %v2104_v51  ;;  %v2123_v51 = vld [vmem:[%s2689_s1 + $0x200] sm:$0xff] }
  0x2c   :  { %1322 = vmatpush.bf16.msrb.mxu2 %v2112_v52  ;;  %v2131_v52 = vld [vmem:[%s2689_s1 + $0x240] sm:$0xff] }
  0x2d   :  { %1335 = vmatpush.bf16.msrb.mxu3 %v2120_v53  ;;  %v334_v53 = vunpack.c.l.b16 %v19_v48 }
  0x2e   :  { %1297 = vmatpush.bf16.msrb.mxu0 %v2095_v54  ;;  %v2139_v54 = vld [vmem:[%s2689_s1 + $0x280] sm:$0xff] }
  0x2f   :  { %1310 = vmatpush.bf16.msrb.mxu1 %v2103_v55  ;;  %v2162_v55 = vld [vmem:[%s2689_s1 + $0x338] sm:$0xff] }
  0x30   :  { %1323 = vmatpush.bf16.msrb.mxu2 %v2111_v56  ;;  %v333_v56 = vunpack.c.h.b16 %v18_v46  ;;  %v2191_v46 = vld [vmem:[%s2689_s1 + $0x420] sm:$0xff] }
  0x31   :  { %1336 = vmatpush.bf16.msrb.mxu3 %v2119_v57  ;;  %v2170_v57 = vld [vmem:[%s2689_s1 + $0x378] sm:$0xff] }
  0x32   :  { %1298 = vmatpush.bf16.msrb.mxu0 %v2094_v58  ;;  %v2178_v58 = vld [vmem:[%s2689_s1 + $0x3b8] sm:$0xff] }
  0x33   :  { %1311 = vmatpush.bf16.msrb.mxu1 %v2102_v59  ;;  %v335_v59 = vunpack.c.h.b16 %v19_v48  ;;  %v2190_v48 = vld [vmem:[%s2689_s1 + $0x418] sm:$0xff] }
  0x34   :  { %1324 = vmatpush.bf16.msrb.mxu2 %v2110_v60  ;;  %v2147_v60 = vld [vmem:[%s2689_s1 + $0x2c0] sm:$0xff] }
  0x35   :  { %1337 = vmatpush.bf16.msrb.mxu3 %v2118_v61  ;;  %v350_v61 = vpack.c.b16 %v332_v50, %v332_v50  ;;  %v2189_v50 = vld [vmem:[%s2689_s1 + $0x410] sm:$0xff] }
  0x36   :  { %1299 = vmatpush.bf16.msrb.mxu0 %v2093_v62  ;;  %v352_v62 = vpack.c.b16 %v334_v53, %v334_v53  ;;  %v22_v53 = vld [vmem:[%s2690_s0 + $0x40] sm:$0xff] }
  0x37   :  { %1312 = vmatpush.bf16.msrb.mxu1 %v2101_v63  ;;  %v2186_v63 = vld [vmem:[%s2689_s1 + $0x3f8] sm:$0xff] }
  0x38   :  { %1325 = vmatpush.bf16.msrb.mxu2 %v2109_v0  ;;  %v351_v0 = vpack.c.b16 %v333_v56, %v333_v56  ;;  %v2187_v56 = vld [vmem:[%s2689_s1 + $0x400] sm:$0xff] }
  0x39   :  { %1338 = vmatpush.bf16.msrb.mxu3 %v2117_v1  ;;  %v2161_v1 = vld [vmem:[%s2689_s1 + $0x330] sm:$0xff] }
  0x3a   :  { %1300 = vmatpush.bf16.msrb.mxu0 %v2092_v2  ;;  %v353_v2 = vpack.c.b16 %v335_v59, %v335_v59 }
  0x3b   :  { %1313 = vmatpush.bf16.msrb.mxu1 %v2100_v3  ;;  %v2169_v3 = vld [vmem:[%s2689_s1 + $0x370] sm:$0xff] }
  0x3c   :  { %1326 = vmatpush.bf16.msrb.mxu2 %v2108_v4  ;;  %v2177_v4 = vld [vmem:[%s2689_s1 + $0x3b0] sm:$0xff] }
  0x3d   :  { %1339 = vmatpush.bf16.msrb.mxu3 %v2116_v7  ;;  %v2168_v7 = vld [vmem:[%s2689_s1 + $0x368] sm:$0xff] }
  0x3e   :  { %1301 = vmatpush.bf16.msrb.mxu0 %v2091_v8  ;;  %v2176_v8 = vld [vmem:[%s2689_s1 + $0x3a8] sm:$0xff] }
  0x3f   :  { %1314 = vmatpush.bf16.msrb.mxu1 %v2099_v10  ;;  %v2159_v10 = vld [vmem:[%s2689_s1 + $0x320] sm:$0xff] }
  0x40   :  { %1327 = vmatpush.bf16.msrb.mxu2 %v2107_v11  ;;  %v2167_v11 = vld [vmem:[%s2689_s1 + $0x360] sm:$0xff] }
  0x41   :  { %1340 = vmatpush.bf16.msrb.mxu3 %v2115_v17  ;;  %1302 = vmatmul.bf16.vlgmr.msrb.gmra.mxu0 %v346_v21  ;;  %v2182_v17 = vld [vmem:[%s2689_s1 + $0x3d8] sm:$0xff]  ;;  %v2181_v21 = vld [vmem:[%s2689_s1 + $0x3d0] sm:$0xff] }
  0x42   :  { %1346 = vmatpush.bf16.msra.mxu0 %v2130_v14  ;;  %1315 = vmatmul.bf16.vlgmr.msrb.gmra.mxu1 %v347_v22  ;;  %v2158_v14 = vld [vmem:[%s2689_s1 + $0x318] sm:$0xff]  ;;  %v2156_v22 = vld [vmem:[%s2689_s1 + $0x308] sm:$0xff] }
  0x43   :  { %1359 = vmatpush.bf16.msra.mxu1 %v2138_v15  ;;  %1328 = vmatmul.bf16.vlgmr.msrb.gmra.mxu2 %v348_v20  ;;  %v2166_v15 = vld [vmem:[%s2689_s1 + $0x358] sm:$0xff]  ;;  %v2173_v20 = vld [vmem:[%s2689_s1 + $0x390] sm:$0xff] }
  0x44   :  { %1372 = vmatpush.bf16.msra.mxu2 %v2146_v16  ;;  %1341 = vmatmul.bf16.vlgmr.msrb.gmra.mxu3 %v349_v26  ;;  %v2174_v16 = vld [vmem:[%s2689_s1 + $0x398] sm:$0xff] }
  0x45   :  { %1385 = vmatpush.bf16.msra.mxu3 %v2154_v19  ;;  %v2165_v19 = vld [vmem:[%s2689_s1 + $0x350] sm:$0xff]  ;;  %v21_v26 = vld [vmem:[%s2690_s0 + $0x38] sm:$0xff] }
  0x46   :  { %1347 = vmatpush.bf16.msra.mxu0 %v2129_v23  ;;  %v20_v23 = vld [vmem:[%s2690_s0 + $0x30] sm:$0xff] }
  0x47   :  { %1360 = vmatpush.bf16.msra.mxu1 %v2137_v24  ;;  %v2164_v24 = vld [vmem:[%s2689_s1 + $0x348] sm:$0xff] }
  0x48   :  { %1373 = vmatpush.bf16.msra.mxu2 %v2145_v25  ;;  %v2172_v25 = vld [vmem:[%s2689_s1 + $0x388] sm:$0xff] }
  0x49   :  { %1386 = vmatpush.bf16.msra.mxu3 %v2153_v27  ;;  %v2180_v27 = vld [vmem:[%s2689_s1 + $0x3c8] sm:$0xff] }
  0x4a   :  { %1348 = vmatpush.bf16.msra.mxu0 %v2128_v28  ;;  %v336_v28 = vunpack.c.l.b16 %v20_v23 }
  0x4b   :  { %1361 = vmatpush.bf16.msra.mxu1 %v2136_v29  ;;  %v2155_v29 = vld [vmem:[%s2689_s1 + $0x300] sm:$0xff] }
  0x4c   :  { %1374 = vmatpush.bf16.msra.mxu2 %v2144_v30  ;;  %v337_v30 = vunpack.c.h.b16 %v20_v23 }
  0x4d   :  { %1387 = vmatpush.bf16.msra.mxu3 %v2152_v31  ;;  %v2163_v31 = vld [vmem:[%s2689_s1 + $0x340] sm:$0xff] }
  0x4e   :  { %1349 = vmatpush.bf16.msra.mxu0 %v2127_v32  ;;  %v2194_v32 = vld [vmem:[%s2689_s1 + $0x438] sm:$0xff] }
  0x4f   :  { %1362 = vmatpush.bf16.msra.mxu1 %v2135_v33  ;;  %v338_v33 = vunpack.c.l.b16 %v21_v26 }
  0x50   :  { %1375 = vmatpush.bf16.msra.mxu2 %v2143_v34  ;;  %v2171_v34 = vld [vmem:[%s2689_s1 + $0x380] sm:$0xff] }
  0x51   :  { %1388 = vmatpush.bf16.msra.mxu3 %v2151_v35  ;;  %v2202_v35 = vld [vmem:[%s2689_s1 + $0x478] sm:$0xff] }
  0x52   :  { %1350 = vmatpush.bf16.msra.mxu0 %v2126_v36  ;;  %v339_v36 = vunpack.c.h.b16 %v21_v26 }
  0x53   :  { %1363 = vmatpush.bf16.msra.mxu1 %v2134_v37  ;;  %v2179_v37 = vld [vmem:[%s2689_s1 + $0x3c0] sm:$0xff] }
  0x54   :  { %1376 = vmatpush.bf16.msra.mxu2 %v2142_v38  ;;  %v354_v38 = vpack.c.b16 %v336_v28, %v336_v28 }
  0x55   :  { %1389 = vmatpush.bf16.msra.mxu3 %v2150_v39  ;;  %v355_v39 = vpack.c.b16 %v337_v30, %v337_v30 }
  0x56   :  { %1351 = vmatpush.bf16.msra.mxu0 %v2125_v40  ;;  %v356_v40 = vpack.c.b16 %v338_v33, %v338_v33 }
  0x57   :  { %1364 = vmatpush.bf16.msra.mxu1 %v2133_v41  ;;  %v2193_v41 = vld [vmem:[%s2689_s1 + $0x430] sm:$0xff] }
  0x58   :  { %1377 = vmatpush.bf16.msra.mxu2 %v2141_v42  ;;  %v357_v42 = vpack.c.b16 %v339_v36, %v339_v36 }
  0x59   :  { %1390 = vmatpush.bf16.msra.mxu3 %v2149_v43  ;;  %v2201_v43 = vld [vmem:[%s2689_s1 + $0x470] sm:$0xff] }
  0x5a   :  { %1352 = vmatpush.bf16.msra.mxu0 %v2124_v44  ;;  %v2192_v44 = vld [vmem:[%s2689_s1 + $0x428] sm:$0xff] }
  0x5b   :  { %1365 = vmatpush.bf16.msra.mxu1 %v2132_v45  ;;  %v2200_v45 = vld [vmem:[%s2689_s1 + $0x468] sm:$0xff] }
  0x5c   :  { %1378 = vmatpush.bf16.msra.mxu2 %v2140_v47  ;;  %v2199_v47 = vld [vmem:[%s2689_s1 + $0x460] sm:$0xff] }
  0x5d   :  { %1391 = vmatpush.bf16.msra.mxu3 %v2148_v49  ;;  %v2198_v49 = vld [vmem:[%s2689_s1 + $0x458] sm:$0xff] }
  0x5e   :  { %1353 = vmatpush.bf16.msra.mxu0 %v2123_v51  ;;  %v2197_v51 = vld [vmem:[%s2689_s1 + $0x450] sm:$0xff] }
  0x5f   :  { %1366 = vmatpush.bf16.msra.mxu1 %v2131_v52  ;;  %v2188_v52 = vld [vmem:[%s2689_s1 + $0x408] sm:$0xff] }
  0x60   :  { %1379 = vmatpush.bf16.msra.mxu2 %v2139_v54  ;;  %v2196_v54 = vld [vmem:[%s2689_s1 + $0x448] sm:$0xff] }
  0x61   :  { %1392 = vmatpush.bf16.msra.mxu3 %v2147_v60  ;;  %1354 = vmatmul.bf16.vlgmr.msra.gmra.mxu0 %v350_v61  ;;  %v2203_v61 = vld [vmem:[%s2691_s2] ss:$0 sm:$0xff] }
  0x62   :  { %1398 = vmatpush.bf16.msrb.mxu0 %v2162_v55  ;;  %1367 = vmatmul.bf16.vlgmr.msra.gmra.mxu1 %v351_v0  ;;  %v340_v55 = vunpack.c.l.b16 %v22_v53 }
  0x63   :  { %1411 = vmatpush.bf16.msrb.mxu1 %v2170_v57  ;;  %1380 = vmatmul.bf16.vlgmr.msra.gmra.mxu2 %v352_v62  ;;  %v341_v57 = vunpack.c.h.b16 %v22_v53 }
  0x64   :  { %1424 = vmatpush.bf16.msrb.mxu2 %v2178_v58  ;;  %1393 = vmatmul.bf16.vlgmr.msra.gmra.mxu3 %v353_v2  ;;  %v2195_v58 = vld [vmem:[%s2689_s1 + $0x440] sm:$0xff]  ;;  %v358_v59 = vpack.c.b16 %v340_v55, %v340_v55 }
  0x65   :  { %1437 = vmatpush.bf16.msrb.mxu3 %v2186_v63  ;;  %v359_v60 = vpack.c.b16 %v341_v57, %v341_v57 }
  0x66   :  { %1399 = vmatpush.bf16.msrb.mxu0 %v2161_v1 }
  0x67   :  { %1412 = vmatpush.bf16.msrb.mxu1 %v2169_v3 }
  0x68   :  { %1425 = vmatpush.bf16.msrb.mxu2 %v2177_v4 }
  0x69   :  { %1438 = vmatpush.bf16.msrb.mxu3 %v2185_v5 }
  0x6a   :  { %1400 = vmatpush.bf16.msrb.mxu0 %v2160_v6 }
  0x6b   :  { %1413 = vmatpush.bf16.msrb.mxu1 %v2168_v7 }
  0x6c   :  { %1426 = vmatpush.bf16.msrb.mxu2 %v2176_v8 }
  0x6d   :  { %1439 = vmatpush.bf16.msrb.mxu3 %v2184_v9 }
  0x6e   :  { %1401 = vmatpush.bf16.msrb.mxu0 %v2159_v10 }
  0x6f   :  { %1414 = vmatpush.bf16.msrb.mxu1 %v2167_v11 }
  0x70   :  { %1427 = vmatpush.bf16.msrb.mxu2 %v2175_v12 }
  0x71   :  { %1440 = vmatpush.bf16.msrb.mxu3 %v2183_v13 }
  0x72   :  { %1402 = vmatpush.bf16.msrb.mxu0 %v2158_v14 }
  0x73   :  { %1415 = vmatpush.bf16.msrb.mxu1 %v2166_v15 }
  0x74   :  { %1428 = vmatpush.bf16.msrb.mxu2 %v2174_v16 }
  0x75   :  { %1441 = vmatpush.bf16.msrb.mxu3 %v2182_v17 }
  0x76   :  { %1403 = vmatpush.bf16.msrb.mxu0 %v2157_v18 }
  0x77   :  { %1416 = vmatpush.bf16.msrb.mxu1 %v2165_v19 }
  0x78   :  { %1429 = vmatpush.bf16.msrb.mxu2 %v2173_v20 }
  0x79   :  { %1442 = vmatpush.bf16.msrb.mxu3 %v2181_v21 }
  0x7a   :  { %1404 = vmatpush.bf16.msrb.mxu0 %v2156_v22 }
  0x7b   :  { %1417 = vmatpush.bf16.msrb.mxu1 %v2164_v24 }
  0x7c   :  { %1430 = vmatpush.bf16.msrb.mxu2 %v2172_v25 }
  0x7d   :  { %1443 = vmatpush.bf16.msrb.mxu3 %v2180_v27 }
  0x7e   :  { %1405 = vmatpush.bf16.msrb.mxu0 %v2155_v29 }
  0x7f   :  { %1418 = vmatpush.bf16.msrb.mxu1 %v2163_v31 }
  0x80   :  { %1431 = vmatpush.bf16.msrb.mxu2 %v2171_v34 }
  0x81   :  { %1444 = vmatpush.bf16.msrb.mxu3 %v2179_v37  ;;  %1406 = vmatmul.bf16.vlgmr.msrb.gmra.mxu0 %v354_v38 }
  0x82   :  { %1450 = vmatpush.bf16.msra.mxu0 %v2194_v32  ;;  %1419 = vmatmul.bf16.vlgmr.msrb.gmra.mxu1 %v355_v39 }
  0x83   :  { %1463 = vmatpush.bf16.msra.mxu1 %v2202_v35  ;;  %1432 = vmatmul.bf16.vlgmr.msrb.gmra.mxu2 %v356_v40 }
  0x84   :  { %1445 = vmatmul.bf16.vlgmr.msrb.gmra.mxu3 %v357_v42 }
  0x86   :  { %1451 = vmatpush.bf16.msra.mxu0 %v2193_v41 }
  0x87   :  { %1464 = vmatpush.bf16.msra.mxu1 %v2201_v43 }
  0x8a   :  { %1452 = vmatpush.bf16.msra.mxu0 %v2192_v44 }
  0x8b   :  { %1465 = vmatpush.bf16.msra.mxu1 %v2200_v45 }
  0x8e   :  { %1453 = vmatpush.bf16.msra.mxu0 %v2191_v46 }
  0x8f   :  { %1466 = vmatpush.bf16.msra.mxu1 %v2199_v47 }
  0x92   :  { %1454 = vmatpush.bf16.msra.mxu0 %v2190_v48 }
  0x93   :  { %1467 = vmatpush.bf16.msra.mxu1 %v2198_v49 }
  0x96   :  { %1455 = vmatpush.bf16.msra.mxu0 %v2189_v50 }
  0x97   :  { %1468 = vmatpush.bf16.msra.mxu1 %v2197_v51 }
  0x9a   :  { %1456 = vmatpush.bf16.msra.mxu0 %v2188_v52 }
  0x9b   :  { %1469 = vmatpush.bf16.msra.mxu1 %v2196_v54 }
  0x9e   :  { %1457 = vmatpush.bf16.msra.mxu0 %v2187_v56  ;;  %v1251_v62 = vpop.f32.mrf.mxu0 }
  0x9f   :  { %1470 = vmatpush.bf16.msra.mxu1 %v2195_v58  ;;  %v1252_v63 = vadd.f32 %v2203_v61, %v1251_v62  ;;  %v1264_v0 = vpop.f32.mrf.mxu1 }
  0xa1   :  { %1458 = vmatmul.bf16.vlgmr.msra.gmra.mxu0 %v358_v59  ;;  %v1265_v1 = vadd.f32 %v1264_v0, %v1252_v63 }
  0xa2   :  { %1471 = vmatmul.bf16.vlgmr.msra.gmra.mxu1 %v359_v60 }
  0xa6   :  { %v1277_v2 = vpop.f32.mrf.mxu2  ;;  %v1253_v4 = vpop.f32.mrf.mxu0 }
  0xa7   :  { %v1278_v3 = vadd.f32 %v1277_v2, %v1265_v1  ;;  %v1290_v5 = vpop.f32.mrf.mxu3  ;;  %v1266_v6 = vpop.f32.mrf.mxu1 }
  0xa9   :  { %v1291_v7 = vadd.f32 %v1290_v5, %v1278_v3 }
  0xae   :  { %v1279_v8 = vpop.f32.mrf.mxu2 }
  0xaf   :  { %v1292_v9 = vpop.f32.mrf.mxu3 }
  0xbe   :  { %v1303_v10 = vpop.f32.mrf.mxu0 }
  0xbf   :  { %v1316_v11 = vpop.f32.mrf.mxu1  ;;  %v1304_v26 = vadd.f32 %v1303_v10, %v1291_v7 }
  0xc1   :  { %v1317_v27 = vadd.f32 %v1316_v11, %v1304_v26 }
  0xc6   :  { %v1329_v12 = vpop.f32.mrf.mxu2  ;;  %v1305_v14 = vpop.f32.mrf.mxu0 }
  0xc7   :  { %v1342_v13 = vpop.f32.mrf.mxu3  ;;  %v1318_v15 = vpop.f32.mrf.mxu1  ;;  %v1330_v28 = vadd.f32 %v1329_v12, %v1317_v27 }
  0xc9   :  { %v1343_v31 = vadd.f32 %v1342_v13, %v1330_v28 }
  0xce   :  { %v1331_v16 = vpop.f32.mrf.mxu2 }
  0xcf   :  { %v1344_v17 = vpop.f32.mrf.mxu3 }
  0xde   :  { %v1355_v18 = vpop.f32.mrf.mxu0 }
  0xdf   :  { %v1368_v19 = vpop.f32.mrf.mxu1  ;;  %v1356_v32 = vadd.f32 %v1355_v18, %v1343_v31 }
  0xe1   :  { %v1369_v37 = vadd.f32 %v1368_v19, %v1356_v32 }
  0xe6   :  { %v1381_v20 = vpop.f32.mrf.mxu2  ;;  %v1357_v21 = vpop.f32.mrf.mxu0 }
  0xe7   :  { %v1394_v22 = vpop.f32.mrf.mxu3  ;;  %v1370_v23 = vpop.f32.mrf.mxu1  ;;  %v1382_v38 = vadd.f32 %v1381_v20, %v1369_v37 }
  0xe9   :  { %v1395_v39 = vadd.f32 %v1394_v22, %v1382_v38 }
  0xee   :  { %v1383_v24 = vpop.f32.mrf.mxu2 }
  0xef   :  { %v1396_v25 = vpop.f32.mrf.mxu3 }
  0xfe   :  { %v1407_v29 = vpop.f32.mrf.mxu0 }
  0xff   :  { %v1420_v30 = vpop.f32.mrf.mxu1  ;;  %v1408_v42 = vadd.f32 %v1407_v29, %v1395_v39 }
 0x101   :  { %v1421_v43 = vadd.f32 %v1420_v30, %v1408_v42 }
 0x106   :  { %v1433_v33 = vpop.f32.mrf.mxu2  ;;  %v1409_v34 = vpop.f32.mrf.mxu0 }
 0x107   :  { %v1446_v35 = vpop.f32.mrf.mxu3  ;;  %v1422_v36 = vpop.f32.mrf.mxu1  ;;  %v1434_v44 = vadd.f32 %v1433_v33, %v1421_v43 }
 0x109   :  { %v1447_v45 = vadd.f32 %v1446_v35, %v1434_v44 }
 0x10e   :  { %v1435_v40 = vpop.f32.mrf.mxu2 }
 0x10f   :  { %v1448_v41 = vpop.f32.mrf.mxu3 }
 0x11e   :  { %v1459_v46 = vpop.f32.mrf.mxu0 }
 0x11f   :  { %v1460_v47 = vadd.f32 %v1459_v46, %v1447_v45  ;;  %v1472_v48 = vpop.f32.mrf.mxu1 }
 0x121   :  { %v1473_v49 = vadd.f32 %v1472_v48, %v1460_v47 }
 0x123   :  { %v1476_v50 = vmax.f32 %v1473_v49, 0.0 }
 0x125   :  { %v1477_v51 = vpack.c.bf16 %v1476_v50, %v1476_v50 }
 0x126   :  { %v1461_v52 = vpop.f32.mrf.mxu0 }
 0x127   :  { %1478 = vst [vmem:[%s2692_s3] sm:$0xf] %v1477_v51  ;;  %v1474_v53 = vpop.f32.mrf.mxu1 }

// kernel: stegastamp_encoder_forward.24
= control target key start
LH: loop header
LB: loop body
LE: loop exit
PB: predicated region body
PF: predicated region fallthrough
CT: control target
= control target key end

     0   :  { %s1716_s1 = inlined_call_operand.vmem [shape: bf16[1152,128], index: 1, kind: input, shape index: {}]   ;;  %s1717_s0 = inlined_call_operand.vmem [shape: bf16[32,1152], index: 0, kind: input, shape index: {}]   ;;  %s1718_s2 = inlined_call_operand.vmem [shape: f32[1,128], index: 2, kind: input, shape index: {}]   ;;  %s1719_s3 = inlined_call_operand.vmem [shape: bf16[32,128], index: 3, kind: output, shape index: {}]  }
   0x1   :  { %v1278_v0 = vld [vmem:[%s1716_s1 + $0x38] sm:$0xff]  ;;  %v1277_v4 = vld [vmem:[%s1716_s1 + $0x30] sm:$0xff]  ;;  %v1276_v8 = vld [vmem:[%s1716_s1 + $0x28] sm:$0xff] }
   0x2   :  { %v1286_v1 = vld [vmem:[%s1716_s1 + $0x78] sm:$0xff]  ;;  %706 = vmatpush.bf16.msra.mxu0 %v1278_v0  ;;  %v1285_v5 = vld [vmem:[%s1716_s1 + $0x70] sm:$0xff]  ;;  %v1284_v9 = vld [vmem:[%s1716_s1 + $0x68] sm:$0xff] }
   0x3   :  { %v1294_v2 = vld [vmem:[%s1716_s1 + $0xb8] sm:$0xff]  ;;  %725 = vmatpush.bf16.msra.mxu1 %v1286_v1  ;;  %v1293_v6 = vld [vmem:[%s1716_s1 + $0xb0] sm:$0xff]  ;;  %v1292_v10 = vld [vmem:[%s1716_s1 + $0xa8] sm:$0xff] }
   0x4   :  { %v1302_v3 = vld [vmem:[%s1716_s1 + $0xf8] sm:$0xff]  ;;  %744 = vmatpush.bf16.msra.mxu2 %v1294_v2  ;;  %v1301_v7 = vld [vmem:[%s1716_s1 + $0xf0] sm:$0xff]  ;;  %v1300_v11 = vld [vmem:[%s1716_s1 + $0xe8] sm:$0xff] }
   0x5   :  { %763 = vmatpush.bf16.msra.mxu3 %v1302_v3  ;;  %v1275_v12 = vld [vmem:[%s1716_s1 + $0x20] sm:$0xff]  ;;  %v1274_v16 = vld [vmem:[%s1716_s1 + $0x18] sm:$0xff]  ;;  %v1273_v20 = vld [vmem:[%s1716_s1 + $0x10] sm:$0xff] }
   0x6   :  { %707 = vmatpush.bf16.msra.mxu0 %v1277_v4  ;;  %v1283_v13 = vld [vmem:[%s1716_s1 + $0x60] sm:$0xff]  ;;  %v1282_v17 = vld [vmem:[%s1716_s1 + $0x58] sm:$0xff]  ;;  %v1281_v21 = vld [vmem:[%s1716_s1 + $0x50] sm:$0xff] }
   0x7   :  { %726 = vmatpush.bf16.msra.mxu1 %v1285_v5  ;;  %v1291_v14 = vld [vmem:[%s1716_s1 + $0xa0] sm:$0xff]  ;;  %v1290_v18 = vld [vmem:[%s1716_s1 + $0x98] sm:$0xff]  ;;  %v1289_v22 = vld [vmem:[%s1716_s1 + $0x90] sm:$0xff] }
   0x8   :  { %745 = vmatpush.bf16.msra.mxu2 %v1293_v6  ;;  %v1299_v15 = vld [vmem:[%s1716_s1 + $0xe0] sm:$0xff]  ;;  %v1298_v19 = vld [vmem:[%s1716_s1 + $0xd8] sm:$0xff]  ;;  %v1297_v23 = vld [vmem:[%s1716_s1 + $0xd0] sm:$0xff] }
   0x9   :  { %764 = vmatpush.bf16.msra.mxu3 %v1301_v7  ;;  %v1272_v24 = vld [vmem:[%s1716_s1 + $0x8] sm:$0xff]  ;;  %v1271_v28 = vld [vmem:[%s1716_s1] sm:$0xff]  ;;  %v905_v39 = vld [vmem:[%s1717_s0 + $0x2c] sm:$0xf0] }
   0xa   :  { %708 = vmatpush.bf16.msra.mxu0 %v1276_v8  ;;  %v1280_v25 = vld [vmem:[%s1716_s1 + $0x48] sm:$0xff]  ;;  %v1279_v29 = vld [vmem:[%s1716_s1 + $0x40] sm:$0xff]  ;;  %v1310_v40 = vld [vmem:[%s1716_s1 + $0x138] sm:$0xff] }
   0xb   :  { %727 = vmatpush.bf16.msra.mxu1 %v1284_v9  ;;  %v1288_v26 = vld [vmem:[%s1716_s1 + $0x88] sm:$0xff]  ;;  %v1287_v30 = vld [vmem:[%s1716_s1 + $0x80] sm:$0xff]  ;;  %v1318_v41 = vld [vmem:[%s1716_s1 + $0x178] sm:$0xff] }
   0xc   :  { %746 = vmatpush.bf16.msra.mxu2 %v1292_v10  ;;  %v1296_v27 = vld [vmem:[%s1716_s1 + $0xc8] sm:$0xff]  ;;  %v1295_v31 = vld [vmem:[%s1716_s1 + $0xc0] sm:$0xff]  ;;  %v1326_v46 = vld [vmem:[%s1716_s1 + $0x1b8] sm:$0xff] }
   0xd   :  { %765 = vmatpush.bf16.msra.mxu3 %v1300_v11  ;;  %v895_v32 = vld [vmem:[%s1717_s0] sm:$0xf]  ;;  %v1257_v33 = vld [vmem:[%s1717_s0 + $0x20] sm:$0xf0]  ;;  %v897_v35 = vld [vmem:[%s1717_s0 + $0x24] sm:$0xf0] }
   0xe   :  { %709 = vmatpush.bf16.msra.mxu0 %v1275_v12  ;;  %v1253_v34 = vld [vmem:[%s1717_s0 + $0x4] sm:$0xf]  ;;  %v903_v36 = vld [vmem:[%s1717_s0 + $0x8] sm:$0xf]  ;;  %v1258_v37 = vld [vmem:[%s1717_s0 + $0x28] sm:$0xf0]  ;;  %v896_v42 = vor.u32 %v1257_v33, %v895_v32 }
   0xf   :  { %728 = vmatpush.bf16.msra.mxu1 %v1283_v13  ;;  %v1254_v38 = vld [vmem:[%s1717_s0 + $0xc] sm:$0xf]  ;;  %v900_v43 = vor.u32 %v1253_v34, %v897_v35  ;;  %v904_v44 = vor.u32 %v1258_v37, %v903_v36  ;;  %v1334_v47 = vld [vmem:[%s1716_s1 + $0x1f8] sm:$0xff]  ;;  %v1309_v48 = vld [vmem:[%s1716_s1 + $0x130] sm:$0xff] }
  0x10   :  { %747 = vmatpush.bf16.msra.mxu2 %v1291_v14  ;;  %v908_v45 = vor.u32 %v1254_v38, %v905_v39  ;;  %v1317_v49 = vld [vmem:[%s1716_s1 + $0x170] sm:$0xff]  ;;  %v1308_v52 = vld [vmem:[%s1716_s1 + $0x128] sm:$0xff]  ;;  %v1307_v56 = vld [vmem:[%s1716_s1 + $0x120] sm:$0xff] }
  0x11   :  { %766 = vmatpush.bf16.msra.mxu3 %v1299_v15  ;;  %v1325_v50 = vld [vmem:[%s1716_s1 + $0x1b0] sm:$0xff]  ;;  %v1316_v53 = vld [vmem:[%s1716_s1 + $0x168] sm:$0xff]  ;;  %v1315_v57 = vld [vmem:[%s1716_s1 + $0x160] sm:$0xff] }
  0x12   :  { %710 = vmatpush.bf16.msra.mxu0 %v1274_v16  ;;  %v1333_v51 = vld [vmem:[%s1716_s1 + $0x1f0] sm:$0xff]  ;;  %v1324_v54 = vld [vmem:[%s1716_s1 + $0x1a8] sm:$0xff]  ;;  %v1323_v58 = vld [vmem:[%s1716_s1 + $0x1a0] sm:$0xff] }
  0x13   :  { %729 = vmatpush.bf16.msra.mxu1 %v1282_v17  ;;  %v1332_v55 = vld [vmem:[%s1716_s1 + $0x1e8] sm:$0xff]  ;;  %v1331_v59 = vld [vmem:[%s1716_s1 + $0x1e0] sm:$0xff]  ;;  %v933_v63 = vld [vmem:[%s1717_s0 + $0x6c] sm:$0xf0] }
  0x14   :  { %748 = vmatpush.bf16.msra.mxu2 %v1290_v18  ;;  %v931_v60 = vld [vmem:[%s1717_s0 + $0x48] sm:$0xf]  ;;  %v1266_v61 = vld [vmem:[%s1717_s0 + $0x68] sm:$0xf0]  ;;  %v939_v0 = vld [vmem:[%s1717_s0 + $0x50] sm:$0xf] }
  0x15   :  { %767 = vmatpush.bf16.msra.mxu3 %v1298_v19  ;;  %v1262_v62 = vld [vmem:[%s1717_s0 + $0x4c] sm:$0xf]  ;;  %v1267_v1 = vld [vmem:[%s1717_s0 + $0x70] sm:$0xf0]  ;;  %v941_v3 = vld [vmem:[%s1717_s0 + $0x74] sm:$0xf0]  ;;  %v932_v6 = vor.u32 %v1266_v61, %v931_v60 }
  0x16   :  { %711 = vmatpush.bf16.msra.mxu0 %v1273_v20  ;;  %v1263_v2 = vld [vmem:[%s1717_s0 + $0x54] sm:$0xf]  ;;  %v1306_v4 = vld [vmem:[%s1716_s1 + $0x118] sm:$0xff]  ;;  %v936_v7 = vor.u32 %v1262_v62, %v933_v63  ;;  %v940_v8 = vor.u32 %v1267_v1, %v939_v0  ;;  %v1304_v16 = vld [vmem:[%s1716_s1 + $0x108] sm:$0xff] }
  0x17   :  { %730 = vmatpush.bf16.msra.mxu1 %v1281_v21  ;;  %v1314_v5 = vld [vmem:[%s1716_s1 + $0x158] sm:$0xff]  ;;  %v944_v9 = vor.u32 %v1263_v2, %v941_v3  ;;  %v1305_v12 = vld [vmem:[%s1716_s1 + $0x110] sm:$0xff]  ;;  %v1312_v17 = vld [vmem:[%s1716_s1 + $0x148] sm:$0xff] }
  0x18   :  { %749 = vmatpush.bf16.msra.mxu2 %v1289_v22  ;;  %v1322_v10 = vld [vmem:[%s1716_s1 + $0x198] sm:$0xff]  ;;  %v1313_v13 = vld [vmem:[%s1716_s1 + $0x150] sm:$0xff]  ;;  %v1320_v18 = vld [vmem:[%s1716_s1 + $0x188] sm:$0xff] }
  0x19   :  { %768 = vmatpush.bf16.msra.mxu3 %v1297_v23  ;;  %v1330_v11 = vld [vmem:[%s1716_s1 + $0x1d8] sm:$0xff]  ;;  %v1321_v14 = vld [vmem:[%s1716_s1 + $0x190] sm:$0xff]  ;;  %v1328_v19 = vld [vmem:[%s1716_s1 + $0x1c8] sm:$0xff] }
  0x1a   :  { %712 = vmatpush.bf16.msra.mxu0 %v1272_v24  ;;  %v1329_v15 = vld [vmem:[%s1716_s1 + $0x1d0] sm:$0xff]  ;;  %v1303_v20 = vld [vmem:[%s1716_s1 + $0x100] sm:$0xff]  ;;  %v1340_v38 = vld [vmem:[%s1716_s1 + $0x228] sm:$0xff] }
  0x1b   :  { %731 = vmatpush.bf16.msra.mxu1 %v1280_v25  ;;  %v1311_v21 = vld [vmem:[%s1716_s1 + $0x140] sm:$0xff]  ;;  %v911_v24 = vld [vmem:[%s1717_s0 + $0x10] sm:$0xf]  ;;  %v1259_v25 = vld [vmem:[%s1717_s0 + $0x30] sm:$0xf0] }
  0x1c   :  { %750 = vmatpush.bf16.msra.mxu2 %v1288_v26  ;;  %v1319_v22 = vld [vmem:[%s1716_s1 + $0x180] sm:$0xff]  ;;  %v1342_v26 = vld [vmem:[%s1716_s1 + $0x238] sm:$0xff]  ;;  %v912_v33 = vor.u32 %v1259_v25, %v911_v24  ;;  %v1341_v37 = vld [vmem:[%s1716_s1 + $0x230] sm:$0xff] }
  0x1d   :  { %769 = vmatpush.bf16.msra.mxu3 %v1296_v27  ;;  %v1327_v23 = vld [vmem:[%s1716_s1 + $0x1c0] sm:$0xff]  ;;  %v1255_v27 = vld [vmem:[%s1717_s0 + $0x14] sm:$0xf] }
  0x1e   :  { %713 = vmatpush.bf16.msra.mxu0 %v1271_v28  ;;  %v913_v28 = vld [vmem:[%s1717_s0 + $0x34] sm:$0xf0]  ;;  %v921_v32 = vld [vmem:[%s1717_s0 + $0x3c] sm:$0xf0] }
  0x1f   :  { %732 = vmatpush.bf16.msra.mxu1 %v1279_v29  ;;  %v919_v29 = vld [vmem:[%s1717_s0 + $0x18] sm:$0xf]  ;;  %v916_v34 = vor.u32 %v1255_v27, %v913_v28  ;;  %v1339_v39 = vld [vmem:[%s1716_s1 + $0x220] sm:$0xff] }
  0x20   :  { %751 = vmatpush.bf16.msra.mxu2 %v1287_v30  ;;  %v1260_v30 = vld [vmem:[%s1717_s0 + $0x38] sm:$0xf0] }
  0x21   :  { %770 = vmatpush.bf16.msra.mxu3 %v1295_v31  ;;  %714 = vmatmul.bf16.vlgmr.msra.gmra.mxu0 %v896_v42  ;;  %v1256_v31 = vld [vmem:[%s1717_s0 + $0x1c] sm:$0xf]  ;;  %v920_v35 = vor.u32 %v1260_v30, %v919_v29 }
  0x22   :  { %782 = vmatpush.bf16.msrb.mxu0 %v1310_v40  ;;  %733 = vmatmul.bf16.vlgmr.msra.gmra.mxu1 %v900_v43  ;;  %v924_v36 = vor.u32 %v1256_v31, %v921_v32  ;;  %v947_v40 = vld [vmem:[%s1717_s0 + $0x58] sm:$0xf]  ;;  %v1264_v42 = vld [vmem:[%s1717_s0 + $0x5c] sm:$0xf]  ;;  %v949_v43 = vld [vmem:[%s1717_s0 + $0x7c] sm:$0xf0] }
  0x23   :  { %801 = vmatpush.bf16.msrb.mxu1 %v1318_v41  ;;  %752 = vmatmul.bf16.vlgmr.msra.gmra.mxu2 %v904_v44  ;;  %v1268_v41 = vld [vmem:[%s1717_s0 + $0x78] sm:$0xf0]  ;;  %v955_v44 = vld [vmem:[%s1717_s0 + $0x60] sm:$0xf] }
  0x24   :  { %771 = vmatmul.bf16.vlgmr.msra.gmra.mxu3 %v908_v45  ;;  %820 = vmatpush.bf16.msrb.mxu2 %v1326_v46  ;;  %v1269_v45 = vld [vmem:[%s1717_s0 + $0x80] sm:$0xf0] }
  0x25   :  { %839 = vmatpush.bf16.msrb.mxu3 %v1334_v47  ;;  %v1265_v46 = vld [vmem:[%s1717_s0 + $0x64] sm:$0xf]  ;;  %v957_v47 = vld [vmem:[%s1717_s0 + $0x84] sm:$0xf0] }
  0x26   :  { %783 = vmatpush.bf16.msrb.mxu0 %v1309_v48  ;;  %v1338_v48 = vld [vmem:[%s1716_s1 + $0x218] sm:$0xff] }
  0x27   :  { %802 = vmatpush.bf16.msrb.mxu1 %v1317_v49  ;;  %v948_v49 = vor.u32 %v1268_v41, %v947_v40 }
  0x28   :  { %821 = vmatpush.bf16.msrb.mxu2 %v1325_v50  ;;  %v952_v50 = vor.u32 %v1264_v42, %v949_v43 }
  0x29   :  { %840 = vmatpush.bf16.msrb.mxu3 %v1333_v51  ;;  %v956_v51 = vor.u32 %v1269_v45, %v955_v44 }
  0x2a   :  { %784 = vmatpush.bf16.msrb.mxu0 %v1308_v52  ;;  %v960_v52 = vor.u32 %v1265_v46, %v957_v47 }
  0x2b   :  { %803 = vmatpush.bf16.msrb.mxu1 %v1316_v53  ;;  %v1337_v53 = vld [vmem:[%s1716_s1 + $0x210] sm:$0xff] }
  0x2c   :  { %822 = vmatpush.bf16.msrb.mxu2 %v1324_v54  ;;  %v1336_v54 = vld [vmem:[%s1716_s1 + $0x208] sm:$0xff] }
  0x2d   :  { %841 = vmatpush.bf16.msrb.mxu3 %v1332_v55  ;;  %v1335_v55 = vld [vmem:[%s1716_s1 + $0x200] sm:$0xff] }
  0x2e   :  { %785 = vmatpush.bf16.msrb.mxu0 %v1307_v56  ;;  %v927_v56 = vld [vmem:[%s1717_s0 + $0x20] sm:$0xf] }
  0x2f   :  { %804 = vmatpush.bf16.msrb.mxu1 %v1315_v57  ;;  %v1261_v57 = vld [vmem:[%s1717_s0 + $0x40] sm:$0xf0] }
  0x30   :  { %823 = vmatpush.bf16.msrb.mxu2 %v1323_v58  ;;  %v963_v58 = vld [vmem:[%s1717_s0 + $0x68] sm:$0xf]  ;;  %v928_v60 = vor.u32 %v1261_v57, %v927_v56 }
  0x31   :  { %842 = vmatpush.bf16.msrb.mxu3 %v1331_v59  ;;  %719 = vmatmul.bf16.gmra.mxu0 %v932_v6  ;;  %v1270_v59 = vld [vmem:[%s1717_s0 + $0x88] sm:$0xf0] }
  0x32   :  { %786 = vmatpush.bf16.msrb.mxu0 %v1306_v4  ;;  %738 = vmatmul.bf16.gmra.mxu1 %v936_v7  ;;  %v964_v61 = vor.u32 %v1270_v59, %v963_v58 }
  0x33   :  { %805 = vmatpush.bf16.msrb.mxu1 %v1314_v5  ;;  %757 = vmatmul.bf16.gmra.mxu2 %v940_v8 }
  0x34   :  { %776 = vmatmul.bf16.gmra.mxu3 %v944_v9  ;;  %824 = vmatpush.bf16.msrb.mxu2 %v1322_v10 }
  0x35   :  { %843 = vmatpush.bf16.msrb.mxu3 %v1330_v11 }
  0x36   :  { %787 = vmatpush.bf16.msrb.mxu0 %v1305_v12 }
  0x37   :  { %806 = vmatpush.bf16.msrb.mxu1 %v1313_v13 }
  0x38   :  { %825 = vmatpush.bf16.msrb.mxu2 %v1321_v14 }
  0x39   :  { %844 = vmatpush.bf16.msrb.mxu3 %v1329_v15 }
  0x3a   :  { %788 = vmatpush.bf16.msrb.mxu0 %v1304_v16 }
  0x3b   :  { %807 = vmatpush.bf16.msrb.mxu1 %v1312_v17 }
  0x3c   :  { %826 = vmatpush.bf16.msrb.mxu2 %v1320_v18 }
  0x3d   :  { %845 = vmatpush.bf16.msrb.mxu3 %v1328_v19 }
  0x3e   :  { %789 = vmatpush.bf16.msrb.mxu0 %v1303_v20  ;;  %v1362_v20 = vld [vmem:[%s1718_s2] ss:$0 sm:$0xff] }
  0x3f   :  { %808 = vmatpush.bf16.msrb.mxu1 %v1311_v21 }
  0x40   :  { %827 = vmatpush.bf16.msrb.mxu2 %v1319_v22 }
  0x41   :  { %846 = vmatpush.bf16.msrb.mxu3 %v1327_v23  ;;  %790 = vmatmul.bf16.vlgmr.msrb.gmra.mxu0 %v912_v33 }
  0x42   :  { %858 = vmatpush.bf16.msra.mxu0 %v1342_v26  ;;  %809 = vmatmul.bf16.vlgmr.msrb.gmra.mxu1 %v916_v34 }
  0x43   :  { %1354 = vmatpush.bf16.msra.mxu1 %v1342_v26  ;;  %828 = vmatmul.bf16.vlgmr.msrb.gmra.mxu2 %v920_v35 }
  0x44   :  { %847 = vmatmul.bf16.vlgmr.msrb.gmra.mxu3 %v924_v36 }
  0x46   :  { %859 = vmatpush.bf16.msra.mxu0 %v1341_v37 }
  0x47   :  { %1355 = vmatpush.bf16.msra.mxu1 %v1341_v37 }
  0x4a   :  { %860 = vmatpush.bf16.msra.mxu0 %v1340_v38 }
  0x4b   :  { %1356 = vmatpush.bf16.msra.mxu1 %v1340_v38 }
  0x4e   :  { %861 = vmatpush.bf16.msra.mxu0 %v1339_v39 }
  0x4f   :  { %1357 = vmatpush.bf16.msra.mxu1 %v1339_v39 }
  0x51   :  { %795 = vmatmul.bf16.gmra.mxu0 %v948_v49 }
  0x52   :  { %862 = vmatpush.bf16.msra.mxu0 %v1338_v48  ;;  %814 = vmatmul.bf16.gmra.mxu1 %v952_v50 }
  0x53   :  { %1358 = vmatpush.bf16.msra.mxu1 %v1338_v48  ;;  %833 = vmatmul.bf16.gmra.mxu2 %v956_v51 }
  0x54   :  { %852 = vmatmul.bf16.gmra.mxu3 %v960_v52 }
  0x56   :  { %863 = vmatpush.bf16.msra.mxu0 %v1337_v53 }
  0x57   :  { %1359 = vmatpush.bf16.msra.mxu1 %v1337_v53 }
  0x5a   :  { %864 = vmatpush.bf16.msra.mxu0 %v1336_v54 }
  0x5b   :  { %1360 = vmatpush.bf16.msra.mxu1 %v1336_v54 }
  0x5e   :  { %865 = vmatpush.bf16.msra.mxu0 %v1335_v55 }
  0x5f   :  { %1361 = vmatpush.bf16.msra.mxu1 %v1335_v55 }
  0x61   :  { %866 = vmatmul.bf16.vlgmr.msra.gmra.mxu0 %v928_v60 }
  0x62   :  { %871 = vmatmul.bf16.vlgmr.msra.gmra.mxu1 %v964_v61 }
  0x9e   :  { %v715_v62 = vpop.f32.mrf.mxu0 }
  0x9f   :  { %v734_v63 = vpop.f32.mrf.mxu1  ;;  %v716_v21 = vadd.f32 %v1362_v20, %v715_v62 }
  0xa1   :  { %v735_v29 = vadd.f32 %v734_v63, %v716_v21 }
  0xa6   :  { %v753_v0 = vpop.f32.mrf.mxu2  ;;  %v717_v2 = vpop.f32.mrf.mxu0 }
  0xa7   :  { %v772_v1 = vpop.f32.mrf.mxu3  ;;  %v736_v3 = vpop.f32.mrf.mxu1  ;;  %v718_v26 = vadd.f32 %v1362_v20, %v717_v2  ;;  %v754_v31 = vadd.f32 %v753_v0, %v735_v29 }
  0xa9   :  { %v737_v32 = vadd.f32 %v736_v3, %v718_v26  ;;  %v773_v40 = vadd.f32 %v772_v1, %v754_v31 }
  0xae   :  { %v755_v4 = vpop.f32.mrf.mxu2  ;;  %v720_v6 = vpop.f32.mrf.mxu0 }
  0xaf   :  { %v774_v5 = vpop.f32.mrf.mxu3  ;;  %v739_v7 = vpop.f32.mrf.mxu1  ;;  %v721_v22 = vadd.f32 %v1362_v20, %v720_v6  ;;  %v756_v35 = vadd.f32 %v755_v4, %v737_v32 }
  0xb1   :  { %v740_v30 = vadd.f32 %v739_v7, %v721_v22  ;;  %v775_v42 = vadd.f32 %v774_v5, %v756_v35 }
  0xb6   :  { %v758_v8 = vpop.f32.mrf.mxu2  ;;  %v722_v10 = vpop.f32.mrf.mxu0 }
  0xb7   :  { %v777_v9 = vpop.f32.mrf.mxu3  ;;  %v741_v11 = vpop.f32.mrf.mxu1  ;;  %v723_v27 = vadd.f32 %v1362_v20, %v722_v10  ;;  %v759_v33 = vadd.f32 %v758_v8, %v740_v30 }
  0xb9   :  { %v742_v34 = vadd.f32 %v741_v11, %v723_v27  ;;  %v778_v41 = vadd.f32 %v777_v9, %v759_v33 }
  0xbe   :  { %v760_v12 = vpop.f32.mrf.mxu2  ;;  %v791_v14 = vpop.f32.mrf.mxu0 }
  0xbf   :  { %v779_v13 = vpop.f32.mrf.mxu3  ;;  %v810_v15 = vpop.f32.mrf.mxu1  ;;  %v761_v36 = vadd.f32 %v760_v12, %v742_v34  ;;  %v792_v44 = vadd.f32 %v791_v14, %v773_v40 }
  0xc1   :  { %v780_v43 = vadd.f32 %v779_v13, %v761_v36  ;;  %v811_v49 = vadd.f32 %v810_v15, %v792_v44 }
  0xc6   :  { %v829_v16 = vpop.f32.mrf.mxu2  ;;  %v793_v18 = vpop.f32.mrf.mxu0 }
  0xc7   :  { %v848_v17 = vpop.f32.mrf.mxu3  ;;  %v812_v19 = vpop.f32.mrf.mxu1  ;;  %v794_v47 = vadd.f32 %v793_v18, %v775_v42  ;;  %v830_v54 = vadd.f32 %v829_v16, %v811_v49 }
  0xc9   :  { %v813_v55 = vadd.f32 %v812_v19, %v794_v47  ;;  %v849_v60 = vadd.f32 %v848_v17, %v830_v54 }
  0xce   :  { %v831_v23 = vpop.f32.mrf.mxu2  ;;  %v796_v24 = vpop.f32.mrf.mxu0 }
  0xcf   :  { %v815_v25 = vpop.f32.mrf.mxu1  ;;  %v850_v28 = vpop.f32.mrf.mxu3  ;;  %v797_v45 = vadd.f32 %v796_v24, %v778_v41  ;;  %v832_v58 = vadd.f32 %v831_v23, %v813_v55 }
  0xd1   :  { %v816_v50 = vadd.f32 %v815_v25, %v797_v45  ;;  %v851_v63 = vadd.f32 %v850_v28, %v832_v58 }
  0xd6   :  { %v834_v37 = vpop.f32.mrf.mxu2  ;;  %v798_v38 = vpop.f32.mrf.mxu0 }
  0xd7   :  { %v817_v39 = vpop.f32.mrf.mxu1  ;;  %v853_v46 = vpop.f32.mrf.mxu3  ;;  %v799_v48 = vadd.f32 %v798_v38, %v780_v43  ;;  %v835_v56 = vadd.f32 %v834_v37, %v816_v50 }
  0xd9   :  { %v818_v57 = vadd.f32 %v817_v39, %v799_v48  ;;  %v854_v61 = vadd.f32 %v853_v46, %v835_v56 }
  0xde   :  { %v836_v51 = vpop.f32.mrf.mxu2  ;;  %v867_v52 = vpop.f32.mrf.mxu0 }
  0xdf   :  { %v872_v53 = vpop.f32.mrf.mxu1  ;;  %v837_v59 = vadd.f32 %v836_v51, %v818_v57  ;;  %v855_v62 = vpop.f32.mrf.mxu3  ;;  %v868_v1 = vadd.f32 %v867_v52, %v849_v60 }
  0xe0   :  { %v873_v2 = vadd.f32 %v872_v53, %v854_v61 }
  0xe1   :  { %v856_v0 = vadd.f32 %v855_v62, %v837_v59  ;;  %v877_v7 = vmax.f32 %v868_v1, 0.0 }
  0xe2   :  { %v879_v8 = vmax.f32 %v873_v2, 0.0 }
  0xe6   :  { %v869_v3 = vpop.f32.mrf.mxu0 }
  0xe7   :  { %v874_v4 = vpop.f32.mrf.mxu1  ;;  %v870_v5 = vadd.f32 %v869_v3, %v851_v63 }
  0xe8   :  { %v875_v6 = vadd.f32 %v874_v4, %v856_v0 }
  0xe9   :  { %v878_v9 = vmax.f32 %v870_v5, 0.0 }
  0xea   :  { %v880_v10 = vmax.f32 %v875_v6, 0.0 }
  0xeb   :  { %v1346_v11 = vpack.c.bf16 %v878_v9, %v877_v7 }
  0xec   :  { %v1351_v12 = vpack.c.bf16 %v880_v10, %v879_v8 }
  0xed   :  { %1347 = vst [vmem:[%s1719_s3] sm:$0xff] %v1346_v11  }
  0xee   :  { %1353 = vst [vmem:[%s1719_s3 + $0x8] sm:$0xff] %v1351_v12  }

// kernel: stegastamp_encoder_forward.25
= control target key start
LH: loop header
LB: loop body
LE: loop exit
PB: predicated region body
PF: predicated region fallthrough
CT: control target
= control target key end

     0   :  { %s825_s1 = inlined_call_operand.vmem [shape: bf16[256,128], index: 1, kind: input, shape index: {}]   ;;  %s826_s2 = inlined_call_operand.vmem [shape: f32[1,128], index: 2, kind: input, shape index: {}]   ;;  %s827_s0 = inlined_call_operand.vmem [shape: bf16[128,256], index: 0, kind: input, shape index: {}]   ;;  %s828_s3 = inlined_call_operand.vmem [shape: bf16[128,128], index: 3, kind: output, shape index: {}]  }
   0x1   :  { %v543_v0 = vld [vmem:[%s825_s1 + $0x38] sm:$0xff]  ;;  %v542_v2 = vld [vmem:[%s825_s1 + $0x30] sm:$0xff]  ;;  %v541_v4 = vld [vmem:[%s825_s1 + $0x28] sm:$0xff] }
   0x2   :  { %v551_v1 = vld [vmem:[%s825_s1 + $0x78] sm:$0xff]  ;;  %242 = vmatpush.bf16.msra.mxu0 %v543_v0  ;;  %599 = vmatpush.bf16.msra.mxu2 %v543_v0  ;;  %v550_v3 = vld [vmem:[%s825_s1 + $0x70] sm:$0xff]  ;;  %v549_v5 = vld [vmem:[%s825_s1 + $0x68] sm:$0xff] }
   0x3   :  { %291 = vmatpush.bf16.msra.mxu1 %v551_v1  ;;  %607 = vmatpush.bf16.msra.mxu3 %v551_v1  ;;  %v540_v6 = vld [vmem:[%s825_s1 + $0x20] sm:$0xff]  ;;  %v539_v8 = vld [vmem:[%s825_s1 + $0x18] sm:$0xff]  ;;  %v538_v10 = vld [vmem:[%s825_s1 + $0x10] sm:$0xff] }
   0x4   :  { %v548_v7 = vld [vmem:[%s825_s1 + $0x60] sm:$0xff]  ;;  %v547_v9 = vld [vmem:[%s825_s1 + $0x58] sm:$0xff]  ;;  %v546_v11 = vld [vmem:[%s825_s1 + $0x50] sm:$0xff] }
   0x5   :  { %v537_v12 = vld [vmem:[%s825_s1 + $0x8] sm:$0xff]  ;;  %v536_v14 = vld [vmem:[%s825_s1] sm:$0xff]  ;;  %v402_v28 = vld [vmem:[%s827_s0 + $0x10] sm:$0xf] }
   0x6   :  { %243 = vmatpush.bf16.msra.mxu0 %v542_v2  ;;  %600 = vmatpush.bf16.msra.mxu2 %v542_v2  ;;  %v545_v13 = vld [vmem:[%s825_s1 + $0x48] sm:$0xff]  ;;  %v544_v15 = vld [vmem:[%s825_s1 + $0x40] sm:$0xff]  ;;  %v523_v29 = vld [vmem:[%s827_s0 + $0x14] sm:$0xf0] }
   0x7   :  { %292 = vmatpush.bf16.msra.mxu1 %v550_v3  ;;  %608 = vmatpush.bf16.msra.mxu3 %v550_v3  ;;  %v394_v16 = vld [vmem:[%s827_s0] sm:$0xf]  ;;  %v521_v17 = vld [vmem:[%s827_s0 + $0x4] sm:$0xf0]  ;;  %v520_v20 = vld [vmem:[%s827_s0 + $0x4] sm:$0xf]  ;;  %v403_v36 = vor.u32 %v523_v29, %v402_v28 }
   0x8   :  { %v426_v18 = vld [vmem:[%s827_s0 + $0x40] sm:$0xf]  ;;  %v529_v19 = vld [vmem:[%s827_s0 + $0x44] sm:$0xf0]  ;;  %v396_v21 = vld [vmem:[%s827_s0 + $0x8] sm:$0xf0]  ;;  %v395_v24 = vor.u32 %v521_v17, %v394_v16 }
   0x9   :  { %v528_v22 = vld [vmem:[%s827_s0 + $0x44] sm:$0xf]  ;;  %v428_v23 = vld [vmem:[%s827_s0 + $0x48] sm:$0xf0]  ;;  %v427_v25 = vor.u32 %v529_v19, %v426_v18  ;;  %v399_v26 = vor.u32 %v520_v20, %v396_v21  ;;  %v434_v30 = vld [vmem:[%s827_s0 + $0x50] sm:$0xf] }
   0xa   :  { %244 = vmatpush.bf16.msra.mxu0 %v541_v4  ;;  %601 = vmatpush.bf16.msra.mxu2 %v541_v4  ;;  %v431_v27 = vor.u32 %v528_v22, %v428_v23  ;;  %v531_v31 = vld [vmem:[%s827_s0 + $0x54] sm:$0xf0]  ;;  %v522_v32 = vld [vmem:[%s827_s0 + $0x14] sm:$0xf]  ;;  %v404_v33 = vld [vmem:[%s827_s0 + $0x18] sm:$0xf0] }
   0xb   :  { %293 = vmatpush.bf16.msra.mxu1 %v549_v5  ;;  %609 = vmatpush.bf16.msra.mxu3 %v549_v5  ;;  %v530_v34 = vld [vmem:[%s827_s0 + $0x54] sm:$0xf]  ;;  %v436_v35 = vld [vmem:[%s827_s0 + $0x58] sm:$0xf0]  ;;  %v435_v37 = vor.u32 %v531_v31, %v434_v30  ;;  %v407_v38 = vor.u32 %v522_v32, %v404_v33  ;;  %v410_v40 = vld [vmem:[%s827_s0 + $0x20] sm:$0xf] }
   0xc   :  { %v439_v39 = vor.u32 %v530_v34, %v436_v35  ;;  %v525_v41 = vld [vmem:[%s827_s0 + $0x24] sm:$0xf0]  ;;  %v442_v42 = vld [vmem:[%s827_s0 + $0x60] sm:$0xf]  ;;  %v524_v44 = vld [vmem:[%s827_s0 + $0x24] sm:$0xf] }
   0xd   :  { %v533_v43 = vld [vmem:[%s827_s0 + $0x64] sm:$0xf0]  ;;  %v412_v45 = vld [vmem:[%s827_s0 + $0x28] sm:$0xf0]  ;;  %v532_v46 = vld [vmem:[%s827_s0 + $0x64] sm:$0xf]  ;;  %v411_v48 = vor.u32 %v525_v41, %v410_v40 }
   0xe   :  { %245 = vmatpush.bf16.msra.mxu0 %v540_v6  ;;  %602 = vmatpush.bf16.msra.mxu2 %v540_v6  ;;  %v444_v47 = vld [vmem:[%s827_s0 + $0x68] sm:$0xf0]  ;;  %v443_v49 = vor.u32 %v533_v43, %v442_v42  ;;  %v415_v50 = vor.u32 %v524_v44, %v412_v45  ;;  %v418_v52 = vld [vmem:[%s827_s0 + $0x30] sm:$0xf]  ;;  %v527_v53 = vld [vmem:[%s827_s0 + $0x34] sm:$0xf0] }
   0xf   :  { %294 = vmatpush.bf16.msra.mxu1 %v548_v7  ;;  %610 = vmatpush.bf16.msra.mxu3 %v548_v7  ;;  %v447_v51 = vor.u32 %v532_v46, %v444_v47  ;;  %v450_v54 = vld [vmem:[%s827_s0 + $0x70] sm:$0xf]  ;;  %v535_v55 = vld [vmem:[%s827_s0 + $0x74] sm:$0xf0]  ;;  %v526_v56 = vld [vmem:[%s827_s0 + $0x34] sm:$0xf]  ;;  %v419_v60 = vor.u32 %v527_v53, %v418_v52 }
  0x10   :  { %v420_v57 = vld [vmem:[%s827_s0 + $0x38] sm:$0xf0]  ;;  %v534_v58 = vld [vmem:[%s827_s0 + $0x74] sm:$0xf]  ;;  %v451_v61 = vor.u32 %v535_v55, %v450_v54  ;;  %v783_v1 = vld [vmem:[%s826_s2] ss:$0 sm:$0xff] }
  0x11   :  { %v452_v59 = vld [vmem:[%s827_s0 + $0x78] sm:$0xf0]  ;;  %v423_v62 = vor.u32 %v526_v56, %v420_v57 }
  0x12   :  { %246 = vmatpush.bf16.msra.mxu0 %v539_v8  ;;  %603 = vmatpush.bf16.msra.mxu2 %v539_v8  ;;  %v455_v63 = vor.u32 %v534_v58, %v452_v59 }
  0x13   :  { %295 = vmatpush.bf16.msra.mxu1 %v547_v9  ;;  %611 = vmatpush.bf16.msra.mxu3 %v547_v9 }
  0x16   :  { %247 = vmatpush.bf16.msra.mxu0 %v538_v10  ;;  %604 = vmatpush.bf16.msra.mxu2 %v538_v10 }
  0x17   :  { %296 = vmatpush.bf16.msra.mxu1 %v546_v11  ;;  %612 = vmatpush.bf16.msra.mxu3 %v546_v11 }
  0x1a   :  { %248 = vmatpush.bf16.msra.mxu0 %v537_v12  ;;  %605 = vmatpush.bf16.msra.mxu2 %v537_v12 }
  0x1b   :  { %297 = vmatpush.bf16.msra.mxu1 %v545_v13  ;;  %613 = vmatpush.bf16.msra.mxu3 %v545_v13 }
  0x1e   :  { %249 = vmatpush.bf16.msra.mxu0 %v536_v14  ;;  %606 = vmatpush.bf16.msra.mxu2 %v536_v14 }
  0x1f   :  { %298 = vmatpush.bf16.msra.mxu1 %v544_v15  ;;  %614 = vmatpush.bf16.msra.mxu3 %v544_v15 }
  0x21   :  { %250 = vmatmul.bf16.vlgmr.msra.gmra.mxu0 %v395_v24  ;;  %270 = vmatmul.bf16.vlgmr.msra.gmra.mxu2 %v427_v25 }
  0x22   :  { %299 = vmatmul.bf16.vlgmr.msra.gmra.mxu1 %v399_v26  ;;  %319 = vmatmul.bf16.vlgmr.msra.gmra.mxu3 %v431_v27 }
  0x31   :  { %255 = vmatmul.bf16.gmra.mxu0 %v403_v36  ;;  %275 = vmatmul.bf16.gmra.mxu2 %v435_v37 }
  0x32   :  { %304 = vmatmul.bf16.gmra.mxu1 %v407_v38  ;;  %324 = vmatmul.bf16.gmra.mxu3 %v439_v39 }
  0x41   :  { %260 = vmatmul.bf16.gmra.mxu0 %v411_v48  ;;  %280 = vmatmul.bf16.gmra.mxu2 %v443_v49 }
  0x42   :  { %309 = vmatmul.bf16.gmra.mxu1 %v415_v50  ;;  %329 = vmatmul.bf16.gmra.mxu3 %v447_v51 }
  0x51   :  { %265 = vmatmul.bf16.gmra.mxu0 %v419_v60  ;;  %285 = vmatmul.bf16.gmra.mxu2 %v451_v61 }
  0x52   :  { %314 = vmatmul.bf16.gmra.mxu1 %v423_v62  ;;  %334 = vmatmul.bf16.gmra.mxu3 %v455_v63 }
  0x9e   :  { %v251_v0 = vpop.f32.mrf.mxu0 }
  0x9f   :  { %v300_v2 = vpop.f32.mrf.mxu1  ;;  %v252_v3 = vadd.f32 %v783_v1, %v251_v0 }
  0xa1   :  { %v301_v7 = vadd.f32 %v300_v2, %v252_v3 }
  0xa3   :  { %v340_v12 = vmax.f32 %v301_v7, 0.0 }
  0xa4   :  { %v271_v4 = vpop.f32.mrf.mxu2 }
  0xa5   :  { %v320_v5 = vpop.f32.mrf.mxu3  ;;  %v272_v10 = vadd.f32 %v783_v1, %v271_v4 }
  0xa6   :  { %v253_v6 = vpop.f32.mrf.mxu0 }
  0xa7   :  { %v254_v8 = vadd.f32 %v783_v1, %v253_v6  ;;  %v302_v9 = vpop.f32.mrf.mxu1  ;;  %v321_v15 = vadd.f32 %v320_v5, %v272_v10 }
  0xa9   :  { %v303_v11 = vadd.f32 %v302_v9, %v254_v8  ;;  %v348_v22 = vmax.f32 %v321_v15, 0.0 }
  0xab   :  { %v341_v13 = vmax.f32 %v303_v11, 0.0 }
  0xac   :  { %v273_v14 = vpop.f32.mrf.mxu2 }
  0xad   :  { %v555_v16 = vpack.c.bf16 %v341_v13, %v340_v12  ;;  %v274_v17 = vadd.f32 %v783_v1, %v273_v14  ;;  %v322_v18 = vpop.f32.mrf.mxu3 }
  0xae   :  { %v256_v19 = vpop.f32.mrf.mxu0 }
  0xaf   :  { %556 = vst [vmem:[%s828_s3] sm:$0xff] %v555_v16   ;;  %v323_v20 = vadd.f32 %v322_v18, %v274_v17  ;;  %v305_v21 = vpop.f32.mrf.mxu1  ;;  %v257_v25 = vadd.f32 %v783_v1, %v256_v19 }
  0xb1   :  { %v349_v23 = vmax.f32 %v323_v20, 0.0  ;;  %v306_v29 = vadd.f32 %v305_v21, %v257_v25 }
  0xb3   :  { %v575_v24 = vpack.c.bf16 %v349_v23, %v348_v22  ;;  %v342_v34 = vmax.f32 %v306_v29, 0.0 }
  0xb4   :  { %v276_v26 = vpop.f32.mrf.mxu2 }
  0xb5   :  { %595 = vst [vmem:[%s828_s3 + $0x20] sm:$0xff] %v575_v24   ;;  %v325_v27 = vpop.f32.mrf.mxu3  ;;  %v277_v32 = vadd.f32 %v783_v1, %v276_v26 }
  0xb6   :  { %v258_v28 = vpop.f32.mrf.mxu0 }
  0xb7   :  { %v259_v30 = vadd.f32 %v783_v1, %v258_v28  ;;  %v307_v31 = vpop.f32.mrf.mxu1  ;;  %v326_v37 = vadd.f32 %v325_v27, %v277_v32 }
  0xb9   :  { %v308_v33 = vadd.f32 %v307_v31, %v259_v30  ;;  %v350_v44 = vmax.f32 %v326_v37, 0.0 }
  0xbb   :  { %v343_v35 = vmax.f32 %v308_v33, 0.0 }
  0xbc   :  { %v278_v36 = vpop.f32.mrf.mxu2 }
  0xbd   :  { %v560_v38 = vpack.c.bf16 %v343_v35, %v342_v34  ;;  %v279_v39 = vadd.f32 %v783_v1, %v278_v36  ;;  %v327_v40 = vpop.f32.mrf.mxu3 }
  0xbe   :  { %v261_v41 = vpop.f32.mrf.mxu0 }
  0xbf   :  { %592 = vst [vmem:[%s828_s3 + $0x8] sm:$0xff] %v560_v38   ;;  %v328_v42 = vadd.f32 %v327_v40, %v279_v39  ;;  %v310_v43 = vpop.f32.mrf.mxu1  ;;  %v262_v47 = vadd.f32 %v783_v1, %v261_v41 }
  0xc1   :  { %v351_v45 = vmax.f32 %v328_v42, 0.0  ;;  %v311_v51 = vadd.f32 %v310_v43, %v262_v47 }
  0xc3   :  { %v580_v46 = vpack.c.bf16 %v351_v45, %v350_v44  ;;  %v344_v56 = vmax.f32 %v311_v51, 0.0 }
  0xc4   :  { %v281_v48 = vpop.f32.mrf.mxu2 }
  0xc5   :  { %596 = vst [vmem:[%s828_s3 + $0x28] sm:$0xff] %v580_v46   ;;  %v330_v49 = vpop.f32.mrf.mxu3  ;;  %v282_v54 = vadd.f32 %v783_v1, %v281_v48 }
  0xc6   :  { %v263_v50 = vpop.f32.mrf.mxu0 }
  0xc7   :  { %v264_v52 = vadd.f32 %v783_v1, %v263_v50  ;;  %v312_v53 = vpop.f32.mrf.mxu1  ;;  %v331_v59 = vadd.f32 %v330_v49, %v282_v54 }
  0xc9   :  { %v313_v55 = vadd.f32 %v312_v53, %v264_v52  ;;  %v352_v3 = vmax.f32 %v331_v59, 0.0 }
  0xcb   :  { %v345_v57 = vmax.f32 %v313_v55, 0.0 }
  0xcc   :  { %v283_v58 = vpop.f32.mrf.mxu2 }
  0xcd   :  { %v565_v60 = vpack.c.bf16 %v345_v57, %v344_v56  ;;  %v284_v61 = vadd.f32 %v783_v1, %v283_v58  ;;  %v332_v62 = vpop.f32.mrf.mxu3 }
  0xce   :  { %v266_v63 = vpop.f32.mrf.mxu0 }
  0xcf   :  { %593 = vst [vmem:[%s828_s3 + $0x10] sm:$0xff] %v565_v60   ;;  %v333_v0 = vadd.f32 %v332_v62, %v284_v61  ;;  %v315_v2 = vpop.f32.mrf.mxu1  ;;  %v267_v6 = vadd.f32 %v783_v1, %v266_v63 }
  0xd1   :  { %v353_v4 = vmax.f32 %v333_v0, 0.0  ;;  %v316_v10 = vadd.f32 %v315_v2, %v267_v6 }
  0xd3   :  { %v585_v5 = vpack.c.bf16 %v353_v4, %v352_v3  ;;  %v346_v15 = vmax.f32 %v316_v10, 0.0 }
  0xd4   :  { %v286_v7 = vpop.f32.mrf.mxu2 }
  0xd5   :  { %597 = vst [vmem:[%s828_s3 + $0x30] sm:$0xff] %v585_v5   ;;  %v335_v8 = vpop.f32.mrf.mxu3  ;;  %v287_v13 = vadd.f32 %v783_v1, %v286_v7 }
  0xd6   :  { %v268_v9 = vpop.f32.mrf.mxu0 }
  0xd7   :  { %v269_v11 = vadd.f32 %v783_v1, %v268_v9  ;;  %v317_v12 = vpop.f32.mrf.mxu1  ;;  %v336_v18 = vadd.f32 %v335_v8, %v287_v13 }
  0xd9   :  { %v318_v14 = vadd.f32 %v317_v12, %v269_v11  ;;  %v354_v23 = vmax.f32 %v336_v18, 0.0 }
  0xdb   :  { %v347_v16 = vmax.f32 %v318_v14, 0.0 }
  0xdc   :  { %v288_v17 = vpop.f32.mrf.mxu2 }
  0xdd   :  { %v570_v19 = vpack.c.bf16 %v347_v16, %v346_v15  ;;  %v289_v20 = vadd.f32 %v783_v1, %v288_v17  ;;  %v337_v21 = vpop.f32.mrf.mxu3 }
  0xdf   :  { %594 = vst [vmem:[%s828_s3 + $0x18] sm:$0xff] %v570_v19   ;;  %v338_v22 = vadd.f32 %v337_v21, %v289_v20 }
  0xe1   :  { %v355_v24 = vmax.f32 %v338_v22, 0.0 }
  0xe3   :  { %v590_v25 = vpack.c.bf16 %v355_v24, %v354_v23 }
  0xe5   :  { %598 = vst [vmem:[%s828_s3 + $0x38] sm:$0xff] %v590_v25  }

// kernel: stegastamp_encoder_forward.26
= control target key start
LH: loop header
LB: loop body
LE: loop exit
PB: predicated region body
PF: predicated region fallthrough
CT: control target
= control target key end

     0   :  { %vm555_vm0 = vcmask 523264   ;;  %s1794_s1 = inlined_call_operand.vmem [shape: bf16[576,128], index: 1, kind: input, shape index: {}]   ;;  %s1795_s2 = inlined_call_operand.vmem [shape: f32[1,128], index: 2, kind: input, shape index: {}]   ;;  %s1796_s0 = inlined_call_operand.vmem [shape: bf16[128,576], index: 0, kind: input, shape index: {}]   ;;  %s1797_s3 = inlined_call_operand.vmem [shape: bf16[128,128], index: 3, kind: output, shape index: {}]  }
   0x1   :  { %v1236_v0 = vld [vmem:[%s1794_s1 + $0x38] sm:$0xff]  ;;  %v1235_v1 = vld [vmem:[%s1794_s1 + $0x30] sm:$0xff]  ;;  %v1234_v2 = vld [vmem:[%s1794_s1 + $0x28] sm:$0xff] }
   0x2   :  { %1312 = vmatpush.bf16.msra.mxu1 %v1236_v0  ;;  %1313 = vmatpush.bf16.msra.mxu2 %v1236_v0  ;;  %v1233_v3 = vld [vmem:[%s1794_s1 + $0x20] sm:$0xff]  ;;  %v1232_v4 = vld [vmem:[%s1794_s1 + $0x18] sm:$0xff]  ;;  %v1231_v5 = vld [vmem:[%s1794_s1 + $0x10] sm:$0xff] }
   0x3   :  { %1314 = vmatpush.bf16.msra.mxu3 %v1236_v0  ;;  %580 = vmatpush.bf16.msra.mxu0 %v1236_v0  ;;  %v1230_v6 = vld [vmem:[%s1794_s1 + $0x8] sm:$0xff]  ;;  %v1229_v7 = vld [vmem:[%s1794_s1] sm:$0xff]  ;;  %v919_v8 = vld [vmem:[%s1796_s0 + $0x50] sm:$0xf] }
   0x4   :  { %v1201_v9 = vld [vmem:[%s1796_s0 + $0x60] sm:$0xf0]  ;;  %v959_v10 = vld [vmem:[%s1796_s0 + $0xa0] sm:$0xf]  ;;  %v1211_v11 = vld [vmem:[%s1796_s0 + $0xb0] sm:$0xf0] }
   0x5   :  { %v999_v12 = vld [vmem:[%s1796_s0 + $0xf0] sm:$0xf]  ;;  %v1221_v13 = vld [vmem:[%s1796_s0 + $0x100] sm:$0xf0]  ;;  %v879_v14 = vld [vmem:[%s1796_s0] sm:$0xf]  ;;  %v920_v18 = vor.u32 %v1201_v9, %v919_v8  ;;  %v960_v19 = vor.u32 %v1211_v11, %v959_v10 }
   0x6   :  { %1315 = vmatpush.bf16.msra.mxu1 %v1235_v1  ;;  %1316 = vmatpush.bf16.msra.mxu2 %v1235_v1  ;;  %v1191_v15 = vld [vmem:[%s1796_s0 + $0x10] sm:$0xf0]  ;;  %v1252_v16 = vld [vmem:[%s1794_s1 + $0xb8] sm:$0xff]  ;;  %v1000_v20 = vor.u32 %v1221_v13, %v999_v12  ;;  %v1250_v28 = vld [vmem:[%s1794_s1 + $0xa8] sm:$0xff] }
   0x7   :  { %1317 = vmatpush.bf16.msra.mxu3 %v1235_v1  ;;  %581 = vmatpush.bf16.msra.mxu0 %v1235_v1  ;;  %v1244_v17 = vld [vmem:[%s1794_s1 + $0x78] sm:$0xff]  ;;  %v880_v21 = vor.u32 %v1191_v15, %v879_v14  ;;  %v1251_v24 = vld [vmem:[%s1794_s1 + $0xb0] sm:$0xff]  ;;  %v1242_v29 = vld [vmem:[%s1794_s1 + $0x68] sm:$0xff] }
   0x8   :  { %v1260_v22 = vld [vmem:[%s1794_s1 + $0xf8] sm:$0xff]  ;;  %v1243_v25 = vld [vmem:[%s1794_s1 + $0x70] sm:$0xff]  ;;  %v1258_v30 = vld [vmem:[%s1794_s1 + $0xe8] sm:$0xff] }
   0x9   :  { %v1264_v23 = vld [vmem:[%s1794_s1 + $0x118] sm:$0xff]  ;;  %v1259_v26 = vld [vmem:[%s1794_s1 + $0xf0] sm:$0xff]  ;;  %v1262_v31 = vld [vmem:[%s1794_s1 + $0x108] sm:$0xff] }
   0xa   :  { %1318 = vmatpush.bf16.msra.mxu1 %v1234_v2  ;;  %1319 = vmatpush.bf16.msra.mxu2 %v1234_v2  ;;  %v1263_v27 = vld [vmem:[%s1794_s1 + $0x110] sm:$0xff]  ;;  %v1249_v32 = vld [vmem:[%s1794_s1 + $0xa0] sm:$0xff]  ;;  %v939_v35 = vld [vmem:[%s1796_s0 + $0x78] sm:$0xf] }
   0xb   :  { %1320 = vmatpush.bf16.msra.mxu3 %v1234_v2  ;;  %582 = vmatpush.bf16.msra.mxu0 %v1234_v2  ;;  %v1241_v33 = vld [vmem:[%s1794_s1 + $0x60] sm:$0xff]  ;;  %v1206_v36 = vld [vmem:[%s1796_s0 + $0x88] sm:$0xf0]  ;;  %v979_v37 = vld [vmem:[%s1796_s0 + $0xc8] sm:$0xf] }
   0xc   :  { %v1257_v34 = vld [vmem:[%s1794_s1 + $0xe0] sm:$0xff]  ;;  %v1216_v38 = vld [vmem:[%s1796_s0 + $0xd8] sm:$0xf0]  ;;  %v1019_v39 = vld [vmem:[%s1796_s0 + $0x118] sm:$0xf]  ;;  %v940_v46 = vor.u32 %v1206_v36, %v939_v35 }
   0xd   :  { %v1226_v40 = vld [vmem:[%s1796_s0 + $0x128] sm:$0xf0]  ;;  %v899_v41 = vld [vmem:[%s1796_s0 + $0x28] sm:$0xf]  ;;  %v1196_v42 = vld [vmem:[%s1796_s0 + $0x38] sm:$0xf0]  ;;  %v980_v47 = vor.u32 %v1216_v38, %v979_v37 }
   0xe   :  { %1321 = vmatpush.bf16.msra.mxu1 %v1233_v3  ;;  %1322 = vmatpush.bf16.msra.mxu2 %v1233_v3  ;;  %v1261_v43 = vld [vmem:[%s1794_s1 + $0x100] sm:$0xff]  ;;  %v1248_v44 = vld [vmem:[%s1794_s1 + $0x98] sm:$0xff]  ;;  %v1020_v48 = vor.u32 %v1226_v40, %v1019_v39  ;;  %v900_v49 = vor.u32 %v1196_v42, %v899_v41  ;;  %v1247_v51 = vld [vmem:[%s1794_s1 + $0x90] sm:$0xff] }
   0xf   :  { %1323 = vmatpush.bf16.msra.mxu3 %v1233_v3  ;;  %583 = vmatpush.bf16.msra.mxu0 %v1233_v3  ;;  %v1240_v45 = vld [vmem:[%s1794_s1 + $0x58] sm:$0xff]  ;;  %v1239_v52 = vld [vmem:[%s1794_s1 + $0x50] sm:$0xff]  ;;  %v1246_v54 = vld [vmem:[%s1794_s1 + $0x88] sm:$0xff] }
  0x10   :  { %v1256_v50 = vld [vmem:[%s1794_s1 + $0xd8] sm:$0xff]  ;;  %v1255_v53 = vld [vmem:[%s1794_s1 + $0xd0] sm:$0xff]  ;;  %v1238_v55 = vld [vmem:[%s1794_s1 + $0x48] sm:$0xff] }
  0x11   :  { %v1254_v56 = vld [vmem:[%s1794_s1 + $0xc8] sm:$0xff]  ;;  %v1245_v57 = vld [vmem:[%s1794_s1 + $0x80] sm:$0xff]  ;;  %v881_v61 = vld [vmem:[%s1796_s0 + $0x14] sm:$0xf0] }
  0x12   :  { %1324 = vmatpush.bf16.msra.mxu1 %v1232_v4  ;;  %1325 = vmatpush.bf16.msra.mxu2 %v1232_v4  ;;  %v1237_v58 = vld [vmem:[%s1794_s1 + $0x40] sm:$0xff]  ;;  %v887_v62 = vld [vmem:[%s1796_s0 + $0x8] sm:$0xf]  ;;  %v1192_v63 = vld [vmem:[%s1796_s0 + $0x18] sm:$0xf0] }
  0x13   :  { %1326 = vmatpush.bf16.msra.mxu3 %v1232_v4  ;;  %584 = vmatpush.bf16.msra.mxu0 %v1232_v4  ;;  %v1253_v59 = vld [vmem:[%s1794_s1 + $0xc0] sm:$0xff]  ;;  %v1190_v0 = vld [vmem:[%s1796_s0 + $0xc] sm:$0xf]  ;;  %v895_v2 = vld [vmem:[%s1796_s0 + $0x10] sm:$0xf] }
  0x14   :  { %v1189_v60 = vld [vmem:[%s1796_s0 + $0x4] sm:$0xf]  ;;  %v889_v1 = vld [vmem:[%s1796_s0 + $0x1c] sm:$0xf0]  ;;  %v1194_v8 = vld [vmem:[%s1796_s0 + $0x2c] sm:$0xf] }
  0x15   :  { %v1193_v3 = vld [vmem:[%s1796_s0 + $0x20] sm:$0xf0]  ;;  %v884_v4 = vor.u32 %v1189_v60, %v881_v61  ;;  %v901_v9 = vld [vmem:[%s1796_s0 + $0x3c] sm:$0xf0]  ;;  %v907_v10 = vld [vmem:[%s1796_s0 + $0x30] sm:$0xf] }
  0x16   :  { %1327 = vmatpush.bf16.msra.mxu1 %v1231_v5  ;;  %1328 = vmatpush.bf16.msra.mxu2 %v1231_v5  ;;  %v1197_v11 = vld [vmem:[%s1796_s0 + $0x40] sm:$0xf0]  ;;  %v1195_v12 = vld [vmem:[%s1796_s0 + $0x34] sm:$0xf]  ;;  %v909_v13 = vld [vmem:[%s1796_s0 + $0x44] sm:$0xf0] }
  0x17   :  { %1329 = vmatpush.bf16.msra.mxu3 %v1231_v5  ;;  %585 = vmatpush.bf16.msra.mxu0 %v1231_v5  ;;  %v888_v5 = vor.u32 %v1192_v63, %v887_v62  ;;  %v915_v14 = vld [vmem:[%s1796_s0 + $0x38] sm:$0xf]  ;;  %v1198_v15 = vld [vmem:[%s1796_s0 + $0x48] sm:$0xf0]  ;;  %v1207_v35 = vld [vmem:[%s1796_s0 + $0x90] sm:$0xf0] }
  0x18   :  { %v1205_v36 = vld [vmem:[%s1796_s0 + $0x84] sm:$0xf]  ;;  %v949_v37 = vld [vmem:[%s1796_s0 + $0x94] sm:$0xf0]  ;;  %v955_v38 = vld [vmem:[%s1796_s0 + $0x88] sm:$0xf] }
  0x19   :  { %v1208_v39 = vld [vmem:[%s1796_s0 + $0x98] sm:$0xf0]  ;;  %v952_v42 = vor.u32 %v1205_v36, %v949_v37  ;;  %v1215_v60 = vld [vmem:[%s1796_s0 + $0xd4] sm:$0xf]  ;;  %v989_v61 = vld [vmem:[%s1796_s0 + $0xe4] sm:$0xf0] }
  0x1a   :  { %1330 = vmatpush.bf16.msra.mxu1 %v1230_v6  ;;  %1331 = vmatpush.bf16.msra.mxu2 %v1230_v6  ;;  %v995_v62 = vld [vmem:[%s1796_s0 + $0xd8] sm:$0xf]  ;;  %v1218_v63 = vld [vmem:[%s1796_s0 + $0xe8] sm:$0xf0] }
  0x1b   :  { %1332 = vmatpush.bf16.msra.mxu3 %v1230_v6  ;;  %586 = vmatpush.bf16.msra.mxu0 %v1230_v6  ;;  %v892_v6 = vor.u32 %v1190_v0, %v889_v1 }
  0x1e   :  { %1333 = vmatpush.bf16.msra.mxu1 %v1229_v7  ;;  %1334 = vmatpush.bf16.msra.mxu2 %v1229_v7 }
  0x1f   :  { %1335 = vmatpush.bf16.msra.mxu3 %v1229_v7  ;;  %587 = vmatpush.bf16.msra.mxu0 %v1229_v7  ;;  %v896_v7 = vor.u32 %v1193_v3, %v895_v2  ;;  %v992_v2 = vor.u32 %v1215_v60, %v989_v61  ;;  %v996_v3 = vor.u32 %v1218_v63, %v995_v62 }
  0x21   :  { %598 = vmatmul.bf16.vlgmr.msra.gmra.mxu1 %v920_v18  ;;  %608 = vmatmul.bf16.vlgmr.msra.gmra.mxu2 %v960_v19  ;;  %v912_v18 = vor.u32 %v1195_v12, %v909_v13  ;;  %v916_v19 = vor.u32 %v1198_v15, %v915_v14 }
  0x22   :  { %678 = vmatpush.bf16.msrb.mxu2 %v1252_v16  ;;  %629 = vmatpush.bf16.msrb.mxu1 %v1244_v17  ;;  %v904_v16 = vor.u32 %v1194_v8, %v901_v9  ;;  %v908_v17 = vor.u32 %v1197_v11, %v907_v10  ;;  %v1220_v8 = vld [vmem:[%s1796_s0 + $0xfc] sm:$0xf]  ;;  %v1009_v9 = vld [vmem:[%s1796_s0 + $0x10c] sm:$0xf0]  ;;  %v1015_v10 = vld [vmem:[%s1796_s0 + $0x100] sm:$0xf] }
  0x23   :  { %618 = vmatmul.bf16.vlgmr.msra.gmra.mxu3 %v1000_v20  ;;  %588 = vmatmul.bf16.vlgmr.msra.gmra.mxu0 %v880_v21  ;;  %v1199_v20 = vld [vmem:[%s1796_s0 + $0x54] sm:$0xf]  ;;  %v921_v21 = vld [vmem:[%s1796_s0 + $0x64] sm:$0xf0]  ;;  %v1012_v15 = vor.u32 %v1220_v8, %v1009_v9 }
  0x24   :  { %727 = vmatpush.bf16.msrb.mxu3 %v1260_v22  ;;  %780 = vmatpush.bf16.msrb.mxu0 %v1264_v23  ;;  %v927_v22 = vld [vmem:[%s1796_s0 + $0x58] sm:$0xf]  ;;  %v1202_v23 = vld [vmem:[%s1796_s0 + $0x68] sm:$0xf0]  ;;  %v1223_v11 = vld [vmem:[%s1796_s0 + $0x110] sm:$0xf0] }
  0x26   :  { %679 = vmatpush.bf16.msrb.mxu2 %v1251_v24  ;;  %630 = vmatpush.bf16.msrb.mxu1 %v1243_v25  ;;  %v1200_v24 = vld [vmem:[%s1796_s0 + $0x5c] sm:$0xf]  ;;  %v929_v25 = vld [vmem:[%s1796_s0 + $0x6c] sm:$0xf0] }
  0x28   :  { %728 = vmatpush.bf16.msrb.mxu3 %v1259_v26  ;;  %781 = vmatpush.bf16.msrb.mxu0 %v1263_v27  ;;  %v935_v26 = vld [vmem:[%s1796_s0 + $0x60] sm:$0xf]  ;;  %v1203_v27 = vld [vmem:[%s1796_s0 + $0x70] sm:$0xf0] }
  0x2a   :  { %680 = vmatpush.bf16.msrb.mxu2 %v1250_v28  ;;  %631 = vmatpush.bf16.msrb.mxu1 %v1242_v29  ;;  %v924_v28 = vor.u32 %v1199_v20, %v921_v21  ;;  %v928_v29 = vor.u32 %v1202_v23, %v927_v22 }
  0x2c   :  { %729 = vmatpush.bf16.msrb.mxu3 %v1258_v30  ;;  %782 = vmatpush.bf16.msrb.mxu0 %v1262_v31  ;;  %v932_v30 = vor.u32 %v1200_v24, %v929_v25  ;;  %v936_v31 = vor.u32 %v1203_v27, %v935_v26  ;;  %v1224_v25 = vld [vmem:[%s1796_s0 + $0x11c] sm:$0xf]  ;;  %v1021_v26 = vld [vmem:[%s1796_s0 + $0x12c] sm:$0xf0]  ;;  %v1027_v27 = vld [vmem:[%s1796_s0 + $0x120] sm:$0xf] }
  0x2d   :  { %v1024_v36 = vor.u32 %v1224_v25, %v1021_v26 }
  0x2e   :  { %681 = vmatpush.bf16.msrb.mxu2 %v1249_v32  ;;  %632 = vmatpush.bf16.msrb.mxu1 %v1241_v33  ;;  %v1204_v32 = vld [vmem:[%s1796_s0 + $0x7c] sm:$0xf]  ;;  %v941_v33 = vld [vmem:[%s1796_s0 + $0x8c] sm:$0xf0] }
  0x2f   :  { %v944_v40 = vor.u32 %v1204_v32, %v941_v33  ;;  %v1228_v32 = vld [vmem:[%s1796_s0 + $0x138] sm:$0xf0] }
  0x30   :  { %730 = vmatpush.bf16.msrb.mxu3 %v1257_v34  ;;  %783 = vmatpush.bf16.msrb.mxu0 %v1261_v43  ;;  %v947_v34 = vld [vmem:[%s1796_s0 + $0x80] sm:$0xf]  ;;  %v956_v43 = vor.u32 %v1208_v39, %v955_v38 }
  0x31   :  { %603 = vmatmul.bf16.gmra.mxu1 %v940_v46  ;;  %613 = vmatmul.bf16.gmra.mxu2 %v980_v47  ;;  %v948_v41 = vor.u32 %v1207_v35, %v947_v34  ;;  %v967_v46 = vld [vmem:[%s1796_s0 + $0xa8] sm:$0xf]  ;;  %v1212_v47 = vld [vmem:[%s1796_s0 + $0xb8] sm:$0xf0] }
  0x32   :  { %682 = vmatpush.bf16.msrb.mxu2 %v1248_v44  ;;  %633 = vmatpush.bf16.msrb.mxu1 %v1240_v45  ;;  %v1209_v44 = vld [vmem:[%s1796_s0 + $0xa4] sm:$0xf]  ;;  %v961_v45 = vld [vmem:[%s1796_s0 + $0xb4] sm:$0xf0] }
  0x33   :  { %623 = vmatmul.bf16.gmra.mxu3 %v1020_v48  ;;  %593 = vmatmul.bf16.gmra.mxu0 %v900_v49  ;;  %v1210_v48 = vld [vmem:[%s1796_s0 + $0xac] sm:$0xf]  ;;  %v969_v49 = vld [vmem:[%s1796_s0 + $0xbc] sm:$0xf0] }
  0x34   :  { %731 = vmatpush.bf16.msrb.mxu3 %v1256_v50  ;;  %v975_v50 = vld [vmem:[%s1796_s0 + $0xb0] sm:$0xf] }
  0x36   :  { %683 = vmatpush.bf16.msrb.mxu2 %v1247_v51  ;;  %634 = vmatpush.bf16.msrb.mxu1 %v1239_v52  ;;  %v1213_v51 = vld [vmem:[%s1796_s0 + $0xc0] sm:$0xf0]  ;;  %v964_v52 = vor.u32 %v1209_v44, %v961_v45 }
  0x38   :  { %732 = vmatpush.bf16.msrb.mxu3 %v1255_v53  ;;  %v968_v53 = vor.u32 %v1212_v47, %v967_v46 }
  0x3a   :  { %684 = vmatpush.bf16.msrb.mxu2 %v1246_v54  ;;  %635 = vmatpush.bf16.msrb.mxu1 %v1238_v55  ;;  %v972_v54 = vor.u32 %v1210_v48, %v969_v49  ;;  %v976_v55 = vor.u32 %v1213_v51, %v975_v50 }
  0x3c   :  { %733 = vmatpush.bf16.msrb.mxu3 %v1254_v56  ;;  %v1214_v56 = vld [vmem:[%s1796_s0 + $0xcc] sm:$0xf] }
  0x3e   :  { %685 = vmatpush.bf16.msrb.mxu2 %v1245_v57  ;;  %636 = vmatpush.bf16.msrb.mxu1 %v1237_v58  ;;  %v981_v57 = vld [vmem:[%s1796_s0 + $0xdc] sm:$0xf0]  ;;  %v987_v58 = vld [vmem:[%s1796_s0 + $0xd0] sm:$0xf] }
  0x3f   :  { %v984_v0 = vor.u32 %v1214_v56, %v981_v57 }
  0x40   :  { %734 = vmatpush.bf16.msrb.mxu3 %v1253_v59  ;;  %v1217_v59 = vld [vmem:[%s1796_s0 + $0xe0] sm:$0xf0] }
  0x41   :  { %637 = vmatmul.bf16.vlgmr.msrb.gmra.mxu1 %v884_v4  ;;  %686 = vmatmul.bf16.vlgmr.msrb.gmra.mxu2 %v888_v5  ;;  %v988_v1 = vor.u32 %v1217_v59, %v987_v58  ;;  %v1219_v4 = vld [vmem:[%s1796_s0 + $0xf4] sm:$0xf]  ;;  %v1001_v5 = vld [vmem:[%s1796_s0 + $0x104] sm:$0xf0] }
  0x42   :  { %v1004_v12 = vor.u32 %v1219_v4, %v1001_v5 }
  0x43   :  { %735 = vmatmul.bf16.vlgmr.msrb.gmra.mxu3 %v892_v6  ;;  %1181 = vmatmul.msk.bf16.vlgmr.msrb.gmra.mxu0 %vm555_vm0, %v896_v7  ;;  %v1007_v6 = vld [vmem:[%s1796_s0 + $0xf8] sm:$0xf]  ;;  %v1222_v7 = vld [vmem:[%s1796_s0 + $0x108] sm:$0xf0] }
  0x44   :  { %v1008_v13 = vor.u32 %v1222_v7, %v1007_v6 }
  0x51   :  { %642 = vmatmul.bf16.gmra.mxu1 %v904_v16  ;;  %691 = vmatmul.bf16.gmra.mxu2 %v908_v17  ;;  %v1016_v16 = vor.u32 %v1223_v11, %v1015_v10 }
  0x53   :  { %740 = vmatmul.bf16.gmra.mxu3 %v912_v18  ;;  %1182 = vmatmul.msk.bf16.gmra.mxu0 %vm555_vm0, %v916_v19  ;;  %v1693_v18 = vld [vmem:[%s1795_s2] ss:$0 sm:$0xff] }
  0x61   :  { %647 = vmatmul.bf16.gmra.mxu1 %v924_v28  ;;  %696 = vmatmul.bf16.gmra.mxu2 %v928_v29  ;;  %v1227_v28 = vld [vmem:[%s1796_s0 + $0x130] sm:$0xf0]  ;;  %v1225_v29 = vld [vmem:[%s1796_s0 + $0x124] sm:$0xf] }
  0x62   :  { %v1028_v37 = vor.u32 %v1227_v28, %v1027_v27 }
  0x63   :  { %745 = vmatmul.bf16.gmra.mxu3 %v932_v30  ;;  %1183 = vmatmul.msk.bf16.gmra.mxu0 %vm555_vm0, %v936_v31  ;;  %v1029_v30 = vld [vmem:[%s1796_s0 + $0x134] sm:$0xf0]  ;;  %v1035_v31 = vld [vmem:[%s1796_s0 + $0x128] sm:$0xf] }
  0x71   :  { %652 = vmatmul.bf16.gmra.mxu1 %v944_v40  ;;  %701 = vmatmul.bf16.gmra.mxu2 %v948_v41  ;;  %v1032_v40 = vor.u32 %v1225_v29, %v1029_v30  ;;  %v1036_v41 = vor.u32 %v1228_v32, %v1035_v31 }
  0x73   :  { %750 = vmatmul.bf16.gmra.mxu3 %v952_v42  ;;  %1184 = vmatmul.msk.bf16.gmra.mxu0 %vm555_vm0, %v956_v43 }
  0x81   :  { %657 = vmatmul.bf16.gmra.mxu1 %v964_v52  ;;  %706 = vmatmul.bf16.gmra.mxu2 %v968_v53 }
  0x83   :  { %755 = vmatmul.bf16.gmra.mxu3 %v972_v54  ;;  %1185 = vmatmul.msk.bf16.gmra.mxu0 %vm555_vm0, %v976_v55 }
  0x91   :  { %662 = vmatmul.bf16.gmra.mxu1 %v984_v0  ;;  %711 = vmatmul.bf16.gmra.mxu2 %v988_v1 }
  0x93   :  { %760 = vmatmul.bf16.gmra.mxu3 %v992_v2  ;;  %1186 = vmatmul.msk.bf16.gmra.mxu0 %vm555_vm0, %v996_v3 }
  0x9e   :  { %v1687_v14 = vpop.f32.mrf.mxu1 }
  0xa0   :  { %v589_v17 = vpop.f32.mrf.mxu0 }
  0xa1   :  { %667 = vmatmul.bf16.gmra.mxu1 %v1004_v12  ;;  %716 = vmatmul.bf16.gmra.mxu2 %v1008_v13  ;;  %v590_v55 = vadd.f32 %v1693_v18, %v589_v17 }
  0xa3   :  { %765 = vmatmul.bf16.gmra.mxu3 %v1012_v15  ;;  %1187 = vmatmul.msk.bf16.gmra.mxu0 %vm555_vm0, %v1016_v16 }
  0xa4   :  { %v609_v19 = vpop.f32.mrf.mxu2 }
  0xa5   :  { %v1696_v20 = vadd.f32 %v1693_v18, %v609_v19 }
  0xa6   :  { %v619_v21 = vpop.f32.mrf.mxu3  ;;  %v1701_v23 = vpop.f32.mrf.mxu1 }
  0xa7   :  { %v1699_v22 = vadd.f32 %v1693_v18, %v619_v21 }
  0xa8   :  { %v591_v24 = vpop.f32.mrf.mxu0 }
  0xa9   :  { %v592_v62 = vadd.f32 %v1693_v18, %v591_v24 }
  0xac   :  { %v611_v33 = vpop.f32.mrf.mxu2 }
  0xad   :  { %v1728_v34 = vadd.f32 %v1693_v18, %v611_v33 }
  0xae   :  { %v621_v35 = vpop.f32.mrf.mxu3  ;;  %v1733_v39 = vpop.f32.mrf.mxu1 }
  0xaf   :  { %v1731_v38 = vadd.f32 %v1693_v18, %v621_v35 }
  0xb0   :  { %v594_v42 = vpop.f32.mrf.mxu0 }
  0xb1   :  { %672 = vmatmul.bf16.gmra.mxu1 %v1024_v36  ;;  %721 = vmatmul.bf16.gmra.mxu2 %v1028_v37  ;;  %v595_v9 = vadd.f32 %v1693_v18, %v594_v42  ;;  %v600_v36 = vadd.f32 %v1693_v18, %v1687_v14 }
  0xb3   :  { %770 = vmatmul.bf16.gmra.mxu3 %v1032_v40  ;;  %1188 = vmatmul.msk.bf16.gmra.mxu0 %vm555_vm0, %v1036_v41 }
  0xb4   :  { %v614_v43 = vpop.f32.mrf.mxu2 }
  0xb5   :  { %v1737_v44 = vadd.f32 %v1693_v18, %v614_v43 }
  0xb6   :  { %v624_v45 = vpop.f32.mrf.mxu3  ;;  %v1742_v47 = vpop.f32.mrf.mxu1 }
  0xb7   :  { %v1740_v46 = vadd.f32 %v1693_v18, %v624_v45 }
  0xb8   :  { %v596_v48 = vpop.f32.mrf.mxu0 }
  0xb9   :  { %v597_v24 = vadd.f32 %v1693_v18, %v596_v48 }
  0xbc   :  { %v616_v49 = vpop.f32.mrf.mxu2 }
  0xbd   :  { %v1745_v50 = vadd.f32 %v1693_v18, %v616_v49 }
  0xbe   :  { %v626_v51 = vpop.f32.mrf.mxu3  ;;  %v638_v53 = vpop.f32.mrf.mxu1 }
  0xbf   :  { %v1748_v52 = vadd.f32 %v1693_v18, %v626_v51  ;;  %v639_v57 = vadd.f32 %v638_v53, %v590_v55  ;;  %v602_v53 = vadd.f32 %v1693_v18, %v1701_v23 }
  0xc0   :  { %v785_v54 = vpop.f32.mrf.mxu0 }
  0xc4   :  { %v687_v56 = vpop.f32.mrf.mxu2 }
  0xc5   :  { %v688_v60 = vadd.f32 %v687_v56, %v639_v57 }
  0xc6   :  { %v736_v58 = vpop.f32.mrf.mxu3  ;;  %v640_v59 = vpop.f32.mrf.mxu1 }
  0xc7   :  { %v737_v63 = vadd.f32 %v736_v58, %v688_v60  ;;  %v641_v0 = vadd.f32 %v640_v59, %v592_v62 }
  0xc8   :  { %v787_v61 = vpop.f32.mrf.mxu0 }
  0xc9   :  { %v786_v5 = vadd.f32 %v785_v54, %v737_v63  ;;  %v605_v63 = vadd.f32 %v1693_v18, %v1733_v39 }
  0xcb   :  { %v825_v10 = vmax.f32 %v786_v5, 0.0 }
  0xcc   :  { %v689_v1 = vpop.f32.mrf.mxu2 }
  0xcd   :  { %v690_v2 = vadd.f32 %v689_v1, %v641_v0 }
  0xce   :  { %v738_v3 = vpop.f32.mrf.mxu3  ;;  %v643_v4 = vpop.f32.mrf.mxu1 }
  0xcf   :  { %v739_v6 = vadd.f32 %v738_v3, %v690_v2  ;;  %v644_v15 = vadd.f32 %v643_v4, %v595_v9 }
  0xd0   :  { %v790_v7 = vpop.f32.mrf.mxu0 }
  0xd1   :  { %v788_v8 = vadd.f32 %v787_v61, %v739_v6 }
  0xd3   :  { %v826_v11 = vmax.f32 %v788_v8, 0.0  ;;  %v607_v8 = vadd.f32 %v1693_v18, %v1742_v47 }
  0xd4   :  { %v692_v12 = vpop.f32.mrf.mxu2 }
  0xd5   :  { %v1268_v13 = vpack.c.bf16 %v826_v11, %v825_v10  ;;  %v693_v19 = vadd.f32 %v692_v12, %v644_v15 }
  0xd6   :  { %v741_v16 = vpop.f32.mrf.mxu3  ;;  %v645_v17 = vpop.f32.mrf.mxu1 }
  0xd7   :  { %1269 = vst [vmem:[%s1797_s3] sm:$0xff] %v1268_v13   ;;  %v742_v25 = vadd.f32 %v741_v16, %v693_v19  ;;  %v646_v26 = vadd.f32 %v645_v17, %v597_v24 }
  0xd8   :  { %v792_v21 = vpop.f32.mrf.mxu0 }
  0xd9   :  { %v791_v31 = vadd.f32 %v790_v7, %v742_v25 }
  0xdb   :  { %v827_v37 = vmax.f32 %v791_v31, 0.0 }
  0xdc   :  { %v694_v27 = vpop.f32.mrf.mxu2 }
  0xdd   :  { %v695_v28 = vadd.f32 %v694_v27, %v646_v26 }
  0xde   :  { %v743_v29 = vpop.f32.mrf.mxu3  ;;  %v648_v30 = vpop.f32.mrf.mxu1 }
  0xdf   :  { %v744_v32 = vadd.f32 %v743_v29, %v695_v28  ;;  %v649_v43 = vadd.f32 %v648_v30, %v600_v36 }
  0xe0   :  { %v795_v33 = vpop.f32.mrf.mxu0 }
  0xe1   :  { %v793_v35 = vadd.f32 %v792_v21, %v744_v32 }
  0xe3   :  { %v828_v40 = vmax.f32 %v793_v35, 0.0 }
  0xe4   :  { %v697_v41 = vpop.f32.mrf.mxu2 }
  0xe5   :  { %v1273_v42 = vpack.c.bf16 %v828_v40, %v827_v37  ;;  %v698_v49 = vadd.f32 %v697_v41, %v649_v43 }
  0xe6   :  { %v746_v45 = vpop.f32.mrf.mxu3  ;;  %v650_v48 = vpop.f32.mrf.mxu1 }
  0xe7   :  { %1305 = vst [vmem:[%s1797_s3 + $0x8] sm:$0xff] %v1273_v42   ;;  %v747_v54 = vadd.f32 %v746_v45, %v698_v49  ;;  %v651_v55 = vadd.f32 %v650_v48, %v602_v53 }
  0xe8   :  { %v797_v51 = vpop.f32.mrf.mxu0 }
  0xe9   :  { %v796_v59 = vadd.f32 %v795_v33, %v747_v54 }
  0xeb   :  { %v829_v0 = vmax.f32 %v796_v59, 0.0 }
  0xec   :  { %v699_v56 = vpop.f32.mrf.mxu2 }
  0xed   :  { %v700_v14 = vadd.f32 %v699_v56, %v651_v55 }
  0xee   :  { %v748_v57 = vpop.f32.mrf.mxu3  ;;  %v653_v58 = vpop.f32.mrf.mxu1 }
  0xef   :  { %v749_v60 = vadd.f32 %v748_v57, %v700_v14  ;;  %v654_v4 = vadd.f32 %v653_v58, %v605_v63 }
  0xf0   :  { %v800_v61 = vpop.f32.mrf.mxu0 }
  0xf1   :  { %v798_v62 = vadd.f32 %v797_v51, %v749_v60 }
  0xf3   :  { %v830_v1 = vmax.f32 %v798_v62, 0.0 }
  0xf4   :  { %v702_v2 = vpop.f32.mrf.mxu2 }
  0xf5   :  { %v1278_v3 = vpack.c.bf16 %v830_v1, %v829_v0  ;;  %v703_v6 = vadd.f32 %v702_v2, %v654_v4 }
  0xf6   :  { %v751_v5 = vpop.f32.mrf.mxu3  ;;  %v655_v23 = vpop.f32.mrf.mxu1 }
  0xf7   :  { %1306 = vst [vmem:[%s1797_s3 + $0x10] sm:$0xff] %v1278_v3   ;;  %v752_v9 = vadd.f32 %v751_v5, %v703_v6  ;;  %v656_v10 = vadd.f32 %v655_v23, %v607_v8 }
  0xf8   :  { %v802_v7 = vpop.f32.mrf.mxu0 }
  0xf9   :  { %v801_v15 = vadd.f32 %v800_v61, %v752_v9 }
  0xfb   :  { %v831_v21 = vmax.f32 %v801_v15, 0.0 }
  0xfc   :  { %v704_v11 = vpop.f32.mrf.mxu2 }
  0xfd   :  { %v705_v39 = vadd.f32 %v704_v11, %v656_v10 }
  0xfe   :  { %v753_v12 = vpop.f32.mrf.mxu3  ;;  %v658_v13 = vpop.f32.mrf.mxu1 }
  0xff   :  { %v754_v16 = vadd.f32 %v753_v12, %v705_v39  ;;  %v659_v27 = vadd.f32 %v658_v13, %v1696_v20 }
 0x100   :  { %v805_v17 = vpop.f32.mrf.mxu0 }
 0x101   :  { %v803_v19 = vadd.f32 %v802_v7, %v754_v16 }
 0x103   :  { %v832_v24 = vmax.f32 %v803_v19, 0.0 }
 0x104   :  { %v707_v25 = vpop.f32.mrf.mxu2 }
 0x105   :  { %v1283_v26 = vpack.c.bf16 %v832_v24, %v831_v21  ;;  %v708_v18 = vadd.f32 %v707_v25, %v659_v27 }
 0x106   :  { %v756_v28 = vpop.f32.mrf.mxu3  ;;  %v660_v29 = vpop.f32.mrf.mxu1 }
 0x107   :  { %1307 = vst [vmem:[%s1797_s3 + $0x18] sm:$0xff] %v1283_v26   ;;  %v757_v30 = vadd.f32 %v756_v28, %v708_v18  ;;  %v661_v31 = vadd.f32 %v660_v29, %v1728_v34 }
 0x108   :  { %v807_v47 = vpop.f32.mrf.mxu0 }
 0x109   :  { %v806_v37 = vadd.f32 %v805_v17, %v757_v30 }
 0x10b   :  { %v833_v20 = vmax.f32 %v806_v37, 0.0 }
 0x10c   :  { %v709_v32 = vpop.f32.mrf.mxu2 }
 0x10d   :  { %v710_v33 = vadd.f32 %v709_v32, %v661_v31 }
 0x10e   :  { %v758_v35 = vpop.f32.mrf.mxu3  ;;  %v663_v36 = vpop.f32.mrf.mxu1 }
 0x10f   :  { %v759_v40 = vadd.f32 %v758_v35, %v710_v33  ;;  %v664_v49 = vadd.f32 %v663_v36, %v1737_v44 }
 0x110   :  { %v810_v41 = vpop.f32.mrf.mxu0 }
 0x111   :  { %v808_v42 = vadd.f32 %v807_v47, %v759_v40 }
 0x113   :  { %v834_v43 = vmax.f32 %v808_v42, 0.0 }
 0x114   :  { %v712_v45 = vpop.f32.mrf.mxu2 }
 0x115   :  { %v1288_v48 = vpack.c.bf16 %v834_v43, %v833_v20  ;;  %v713_v34 = vadd.f32 %v712_v45, %v664_v49 }
 0x116   :  { %v761_v51 = vpop.f32.mrf.mxu3  ;;  %v665_v53 = vpop.f32.mrf.mxu1 }
 0x117   :  { %1308 = vst [vmem:[%s1797_s3 + $0x20] sm:$0xff] %v1288_v48   ;;  %v762_v55 = vadd.f32 %v761_v51, %v713_v34  ;;  %v666_v56 = vadd.f32 %v665_v53, %v1745_v50 }
 0x118   :  { %v812_v54 = vpop.f32.mrf.mxu0 }
 0x119   :  { %v811_v60 = vadd.f32 %v810_v41, %v762_v55 }
 0x11b   :  { %v835_v44 = vmax.f32 %v811_v60, 0.0 }
 0x11c   :  { %v714_v14 = vpop.f32.mrf.mxu2 }
 0x11d   :  { %v715_v57 = vadd.f32 %v714_v14, %v666_v56 }
 0x11e   :  { %v763_v58 = vpop.f32.mrf.mxu3  ;;  %v668_v59 = vpop.f32.mrf.mxu1 }
 0x11f   :  { %v764_v61 = vadd.f32 %v763_v58, %v715_v57  ;;  %v669_v3 = vadd.f32 %v668_v59, %v1699_v22 }
 0x120   :  { %v815_v63 = vpop.f32.mrf.mxu0 }
 0x121   :  { %v813_v62 = vadd.f32 %v812_v54, %v764_v61 }
 0x123   :  { %v836_v0 = vmax.f32 %v813_v62, 0.0 }
 0x124   :  { %v717_v1 = vpop.f32.mrf.mxu2 }
 0x125   :  { %v1293_v2 = vpack.c.bf16 %v836_v0, %v835_v44  ;;  %v718_v50 = vadd.f32 %v717_v1, %v669_v3 }
 0x126   :  { %v766_v4 = vpop.f32.mrf.mxu3  ;;  %v670_v5 = vpop.f32.mrf.mxu1 }
 0x127   :  { %1309 = vst [vmem:[%s1797_s3 + $0x28] sm:$0xff] %v1293_v2   ;;  %v767_v23 = vadd.f32 %v766_v4, %v718_v50  ;;  %v671_v6 = vadd.f32 %v670_v5, %v1731_v38 }
 0x128   :  { %v817_v7 = vpop.f32.mrf.mxu0 }
 0x129   :  { %v816_v39 = vadd.f32 %v815_v63, %v767_v23 }
 0x12b   :  { %v837_v15 = vmax.f32 %v816_v39, 0.0 }
 0x12c   :  { %v719_v8 = vpop.f32.mrf.mxu2 }
 0x12d   :  { %v720_v9 = vadd.f32 %v719_v8, %v671_v6 }
 0x12e   :  { %v768_v10 = vpop.f32.mrf.mxu3  ;;  %v673_v11 = vpop.f32.mrf.mxu1 }
 0x12f   :  { %v769_v12 = vadd.f32 %v768_v10, %v720_v9  ;;  %v674_v19 = vadd.f32 %v673_v11, %v1740_v46 }
 0x130   :  { %v820_v24 = vpop.f32.mrf.mxu0 }
 0x131   :  { %v818_v13 = vadd.f32 %v817_v7, %v769_v12 }
 0x133   :  { %v838_v22 = vmax.f32 %v818_v13, 0.0 }
 0x134   :  { %v722_v16 = vpop.f32.mrf.mxu2 }
 0x135   :  { %v1298_v17 = vpack.c.bf16 %v838_v22, %v837_v15  ;;  %v723_v38 = vadd.f32 %v722_v16, %v674_v19 }
 0x136   :  { %v771_v21 = vpop.f32.mrf.mxu3  ;;  %v675_v25 = vpop.f32.mrf.mxu1 }
 0x137   :  { %1310 = vst [vmem:[%s1797_s3 + $0x30] sm:$0xff] %v1298_v17   ;;  %v772_v26 = vadd.f32 %v771_v21, %v723_v38  ;;  %v676_v27 = vadd.f32 %v675_v25, %v1748_v52 }
 0x138   :  { %v822_v31 = vpop.f32.mrf.mxu0 }
 0x139   :  { %v821_v47 = vadd.f32 %v820_v24, %v772_v26 }
 0x13b   :  { %v839_v33 = vmax.f32 %v821_v47, 0.0 }
 0x13c   :  { %v724_v28 = vpop.f32.mrf.mxu2 }
 0x13d   :  { %v725_v29 = vadd.f32 %v724_v28, %v676_v27 }
 0x13e   :  { %v773_v18 = vpop.f32.mrf.mxu3 }
 0x13f   :  { %v774_v30 = vadd.f32 %v773_v18, %v725_v29 }
 0x141   :  { %v823_v32 = vadd.f32 %v822_v31, %v774_v30 }
 0x143   :  { %v840_v46 = vmax.f32 %v823_v32, 0.0 }
 0x145   :  { %v1303_v35 = vpack.c.bf16 %v840_v46, %v839_v33 }
 0x147   :  { %1311 = vst [vmem:[%s1797_s3 + $0x38] sm:$0xff] %v1303_v35  }

// kernel: stegastamp_encoder_forward.27
= control target key start
LH: loop header
LB: loop body
LE: loop exit
PB: predicated region body
PF: predicated region fallthrough
CT: control target
= control target key end

     0   :  { %s1424_s1 = inlined_call_operand.vmem [shape: bf16[128,128], index: 1, kind: input, shape index: {}]   ;;  %s1425_s2 = inlined_call_operand.vmem [shape: f32[1,128], index: 2, kind: input, shape index: {}]   ;;  %s1426_s0 = inlined_call_operand.vmem [shape: bf16[512,128], index: 0, kind: input, shape index: {}]   ;;  %s1427_s3 = inlined_call_operand.vmem [shape: bf16[512,128], index: 3, kind: output, shape index: {}]  }
   0x1   :  { %v902_v0 = vld [vmem:[%s1424_s1 + $0x38] sm:$0xff]  ;;  %v901_v1 = vld [vmem:[%s1424_s1 + $0x30] sm:$0xff]  ;;  %v900_v2 = vld [vmem:[%s1424_s1 + $0x28] sm:$0xff] }
   0x2   :  { %338 = vmatpush.bf16.msra.mxu0 %v902_v0  ;;  %1094 = vmatpush.bf16.msra.mxu1 %v902_v0  ;;  %v899_v3 = vld [vmem:[%s1424_s1 + $0x20] sm:$0xff]  ;;  %v898_v4 = vld [vmem:[%s1424_s1 + $0x18] sm:$0xff]  ;;  %v897_v5 = vld [vmem:[%s1424_s1 + $0x10] sm:$0xff] }
   0x3   :  { %1095 = vmatpush.bf16.msra.mxu2 %v902_v0  ;;  %1096 = vmatpush.bf16.msra.mxu3 %v902_v0  ;;  %v896_v6 = vld [vmem:[%s1424_s1 + $0x8] sm:$0xff]  ;;  %v895_v7 = vld [vmem:[%s1424_s1] sm:$0xff]  ;;  %v865_v16 = vld [vmem:[%s1426_s0 + $0x10] sm:$0xff] }
   0x4   :  { %v863_v8 = vld [vmem:[%s1426_s0] sm:$0xff]  ;;  %v864_v12 = vld [vmem:[%s1426_s0 + $0x8] sm:$0xff]  ;;  %v873_v17 = vld [vmem:[%s1426_s0 + $0x50] sm:$0xff] }
   0x5   :  { %v871_v9 = vld [vmem:[%s1426_s0 + $0x40] sm:$0xff]  ;;  %v872_v13 = vld [vmem:[%s1426_s0 + $0x48] sm:$0xff]  ;;  %v881_v18 = vld [vmem:[%s1426_s0 + $0x90] sm:$0xff] }
   0x6   :  { %339 = vmatpush.bf16.msra.mxu0 %v901_v1  ;;  %1097 = vmatpush.bf16.msra.mxu1 %v901_v1  ;;  %v879_v10 = vld [vmem:[%s1426_s0 + $0x80] sm:$0xff]  ;;  %v880_v14 = vld [vmem:[%s1426_s0 + $0x88] sm:$0xff]  ;;  %v889_v19 = vld [vmem:[%s1426_s0 + $0xd0] sm:$0xff] }
   0x7   :  { %1098 = vmatpush.bf16.msra.mxu2 %v901_v1  ;;  %1099 = vmatpush.bf16.msra.mxu3 %v901_v1  ;;  %v887_v11 = vld [vmem:[%s1426_s0 + $0xc0] sm:$0xff]  ;;  %v888_v15 = vld [vmem:[%s1426_s0 + $0xc8] sm:$0xff]  ;;  %v866_v20 = vld [vmem:[%s1426_s0 + $0x18] sm:$0xff] }
   0x8   :  { %v874_v21 = vld [vmem:[%s1426_s0 + $0x58] sm:$0xff]  ;;  %v867_v24 = vld [vmem:[%s1426_s0 + $0x20] sm:$0xff]  ;;  %v868_v28 = vld [vmem:[%s1426_s0 + $0x28] sm:$0xff] }
   0x9   :  { %v882_v22 = vld [vmem:[%s1426_s0 + $0x98] sm:$0xff]  ;;  %v875_v25 = vld [vmem:[%s1426_s0 + $0x60] sm:$0xff]  ;;  %v876_v29 = vld [vmem:[%s1426_s0 + $0x68] sm:$0xff] }
   0xa   :  { %340 = vmatpush.bf16.msra.mxu0 %v900_v2  ;;  %1100 = vmatpush.bf16.msra.mxu1 %v900_v2  ;;  %v890_v23 = vld [vmem:[%s1426_s0 + $0xd8] sm:$0xff]  ;;  %v883_v26 = vld [vmem:[%s1426_s0 + $0xa0] sm:$0xff]  ;;  %v884_v30 = vld [vmem:[%s1426_s0 + $0xa8] sm:$0xff] }
   0xb   :  { %1101 = vmatpush.bf16.msra.mxu2 %v900_v2  ;;  %1102 = vmatpush.bf16.msra.mxu3 %v900_v2  ;;  %v891_v27 = vld [vmem:[%s1426_s0 + $0xe0] sm:$0xff]  ;;  %v892_v31 = vld [vmem:[%s1426_s0 + $0xe8] sm:$0xff]  ;;  %v869_v32 = vld [vmem:[%s1426_s0 + $0x30] sm:$0xff] }
   0xc   :  { %v877_v33 = vld [vmem:[%s1426_s0 + $0x70] sm:$0xff]  ;;  %v870_v36 = vld [vmem:[%s1426_s0 + $0x38] sm:$0xff]  ;;  %v1262_v42 = vld [vmem:[%s1425_s2] ss:$0 sm:$0xff] }
   0xd   :  { %v885_v34 = vld [vmem:[%s1426_s0 + $0xb0] sm:$0xff]  ;;  %v878_v37 = vld [vmem:[%s1426_s0 + $0x78] sm:$0xff] }
   0xe   :  { %341 = vmatpush.bf16.msra.mxu0 %v899_v3  ;;  %1103 = vmatpush.bf16.msra.mxu1 %v899_v3  ;;  %v893_v35 = vld [vmem:[%s1426_s0 + $0xf0] sm:$0xff]  ;;  %v886_v38 = vld [vmem:[%s1426_s0 + $0xb8] sm:$0xff] }
   0xf   :  { %1104 = vmatpush.bf16.msra.mxu2 %v899_v3  ;;  %1105 = vmatpush.bf16.msra.mxu3 %v899_v3  ;;  %v894_v39 = vld [vmem:[%s1426_s0 + $0xf8] sm:$0xff] }
  0x12   :  { %342 = vmatpush.bf16.msra.mxu0 %v898_v4  ;;  %1106 = vmatpush.bf16.msra.mxu1 %v898_v4 }
  0x13   :  { %1107 = vmatpush.bf16.msra.mxu2 %v898_v4  ;;  %1108 = vmatpush.bf16.msra.mxu3 %v898_v4 }
  0x16   :  { %343 = vmatpush.bf16.msra.mxu0 %v897_v5  ;;  %1109 = vmatpush.bf16.msra.mxu1 %v897_v5 }
  0x17   :  { %1110 = vmatpush.bf16.msra.mxu2 %v897_v5  ;;  %1111 = vmatpush.bf16.msra.mxu3 %v897_v5 }
  0x1a   :  { %344 = vmatpush.bf16.msra.mxu0 %v896_v6  ;;  %1112 = vmatpush.bf16.msra.mxu1 %v896_v6 }
  0x1b   :  { %1113 = vmatpush.bf16.msra.mxu2 %v896_v6  ;;  %1114 = vmatpush.bf16.msra.mxu3 %v896_v6 }
  0x1e   :  { %345 = vmatpush.bf16.msra.mxu0 %v895_v7  ;;  %1115 = vmatpush.bf16.msra.mxu1 %v895_v7 }
  0x1f   :  { %1116 = vmatpush.bf16.msra.mxu2 %v895_v7  ;;  %1117 = vmatpush.bf16.msra.mxu3 %v895_v7 }
  0x21   :  { %346 = vmatmul.bf16.vlgmr.msra.gmra.mxu0 %v863_v8  ;;  %386 = vmatmul.bf16.vlgmr.msra.gmra.mxu1 %v871_v9 }
  0x22   :  { %426 = vmatmul.bf16.vlgmr.msra.gmra.mxu2 %v879_v10  ;;  %466 = vmatmul.bf16.vlgmr.msra.gmra.mxu3 %v887_v11 }
  0x31   :  { %351 = vmatmul.bf16.gmra.mxu0 %v864_v12  ;;  %391 = vmatmul.bf16.gmra.mxu1 %v872_v13 }
  0x32   :  { %431 = vmatmul.bf16.gmra.mxu2 %v880_v14  ;;  %471 = vmatmul.bf16.gmra.mxu3 %v888_v15 }
  0x41   :  { %356 = vmatmul.bf16.gmra.mxu0 %v865_v16  ;;  %396 = vmatmul.bf16.gmra.mxu1 %v873_v17 }
  0x42   :  { %436 = vmatmul.bf16.gmra.mxu2 %v881_v18  ;;  %476 = vmatmul.bf16.gmra.mxu3 %v889_v19 }
  0x51   :  { %361 = vmatmul.bf16.gmra.mxu0 %v866_v20  ;;  %401 = vmatmul.bf16.gmra.mxu1 %v874_v21 }
  0x52   :  { %441 = vmatmul.bf16.gmra.mxu2 %v882_v22  ;;  %481 = vmatmul.bf16.gmra.mxu3 %v890_v23 }
  0x61   :  { %366 = vmatmul.bf16.gmra.mxu0 %v867_v24  ;;  %406 = vmatmul.bf16.gmra.mxu1 %v875_v25 }
  0x62   :  { %446 = vmatmul.bf16.gmra.mxu2 %v883_v26  ;;  %486 = vmatmul.bf16.gmra.mxu3 %v891_v27 }
  0x71   :  { %371 = vmatmul.bf16.gmra.mxu0 %v868_v28  ;;  %411 = vmatmul.bf16.gmra.mxu1 %v876_v29 }
  0x72   :  { %451 = vmatmul.bf16.gmra.mxu2 %v884_v30  ;;  %491 = vmatmul.bf16.gmra.mxu3 %v892_v31 }
  0x81   :  { %376 = vmatmul.bf16.gmra.mxu0 %v869_v32  ;;  %416 = vmatmul.bf16.gmra.mxu1 %v877_v33 }
  0x82   :  { %456 = vmatmul.bf16.gmra.mxu2 %v885_v34  ;;  %496 = vmatmul.bf16.gmra.mxu3 %v893_v35 }
  0x91   :  { %381 = vmatmul.bf16.gmra.mxu0 %v870_v36  ;;  %421 = vmatmul.bf16.gmra.mxu1 %v878_v37 }
  0x92   :  { %461 = vmatmul.bf16.gmra.mxu2 %v886_v38  ;;  %501 = vmatmul.bf16.gmra.mxu3 %v894_v39 }
  0x9e   :  { %v347_v40 = vpop.f32.mrf.mxu0  ;;  %v387_v41 = vpop.f32.mrf.mxu1 }
  0x9f   :  { %v348_v43 = vadd.f32 %v1262_v42, %v347_v40  ;;  %v388_v44 = vadd.f32 %v1262_v42, %v387_v41 }
  0xa1   :  { %v507_v51 = vmax.f32 %v348_v43, 0.0  ;;  %v523_v52 = vmax.f32 %v388_v44, 0.0 }
  0xa5   :  { %v427_v45 = vpop.f32.mrf.mxu2  ;;  %v467_v46 = vpop.f32.mrf.mxu3 }
  0xa6   :  { %v349_v47 = vpop.f32.mrf.mxu0  ;;  %v389_v48 = vpop.f32.mrf.mxu1  ;;  %v428_v57 = vadd.f32 %v1262_v42, %v427_v45  ;;  %v468_v58 = vadd.f32 %v1262_v42, %v467_v46 }
  0xa7   :  { %v350_v49 = vadd.f32 %v1262_v42, %v349_v47  ;;  %v390_v50 = vadd.f32 %v1262_v42, %v389_v48 }
  0xa8   :  { %v539_v1 = vmax.f32 %v428_v57, 0.0  ;;  %v555_v2 = vmax.f32 %v468_v58, 0.0 }
  0xa9   :  { %v508_v53 = vmax.f32 %v350_v49, 0.0  ;;  %v524_v54 = vmax.f32 %v390_v50, 0.0 }
  0xab   :  { %v906_v55 = vpack.c.bf16 %v508_v53, %v507_v51  ;;  %v946_v56 = vpack.c.bf16 %v524_v54, %v523_v52 }
  0xad   :  { %907 = vst [vmem:[%s1427_s3] sm:$0xff] %v906_v55   ;;  %v429_v59 = vpop.f32.mrf.mxu2  ;;  %v469_v60 = vpop.f32.mrf.mxu3 }
  0xae   :  { %1070 = vst [vmem:[%s1427_s3 + $0x40] sm:$0xff] %v946_v56   ;;  %v430_v61 = vadd.f32 %v1262_v42, %v429_v59  ;;  %v470_v62 = vadd.f32 %v1262_v42, %v469_v60  ;;  %v352_v63 = vpop.f32.mrf.mxu0  ;;  %v392_v0 = vpop.f32.mrf.mxu1 }
  0xaf   :  { %v353_v7 = vadd.f32 %v1262_v42, %v352_v63  ;;  %v393_v8 = vadd.f32 %v1262_v42, %v392_v0 }
  0xb0   :  { %v540_v3 = vmax.f32 %v430_v61, 0.0  ;;  %v556_v4 = vmax.f32 %v470_v62, 0.0 }
  0xb1   :  { %v509_v15 = vmax.f32 %v353_v7, 0.0  ;;  %v525_v16 = vmax.f32 %v393_v8, 0.0 }
  0xb2   :  { %v986_v5 = vpack.c.bf16 %v540_v3, %v539_v1  ;;  %v1026_v6 = vpack.c.bf16 %v556_v4, %v555_v2 }
  0xb4   :  { %1078 = vst [vmem:[%s1427_s3 + $0x80] sm:$0xff] %v986_v5  }
  0xb5   :  { %1086 = vst [vmem:[%s1427_s3 + $0xc0] sm:$0xff] %v1026_v6   ;;  %v432_v9 = vpop.f32.mrf.mxu2  ;;  %v472_v10 = vpop.f32.mrf.mxu3 }
  0xb6   :  { %v354_v11 = vpop.f32.mrf.mxu0  ;;  %v394_v12 = vpop.f32.mrf.mxu1  ;;  %v433_v21 = vadd.f32 %v1262_v42, %v432_v9  ;;  %v473_v22 = vadd.f32 %v1262_v42, %v472_v10 }
  0xb7   :  { %v355_v13 = vadd.f32 %v1262_v42, %v354_v11  ;;  %v395_v14 = vadd.f32 %v1262_v42, %v394_v12 }
  0xb8   :  { %v541_v29 = vmax.f32 %v433_v21, 0.0  ;;  %v557_v30 = vmax.f32 %v473_v22, 0.0 }
  0xb9   :  { %v510_v17 = vmax.f32 %v355_v13, 0.0  ;;  %v526_v18 = vmax.f32 %v395_v14, 0.0 }
  0xbb   :  { %v911_v19 = vpack.c.bf16 %v510_v17, %v509_v15  ;;  %v951_v20 = vpack.c.bf16 %v526_v18, %v525_v16 }
  0xbd   :  { %1063 = vst [vmem:[%s1427_s3 + $0x8] sm:$0xff] %v911_v19   ;;  %v434_v23 = vpop.f32.mrf.mxu2  ;;  %v474_v24 = vpop.f32.mrf.mxu3 }
  0xbe   :  { %1071 = vst [vmem:[%s1427_s3 + $0x48] sm:$0xff] %v951_v20   ;;  %v435_v25 = vadd.f32 %v1262_v42, %v434_v23  ;;  %v475_v26 = vadd.f32 %v1262_v42, %v474_v24  ;;  %v357_v27 = vpop.f32.mrf.mxu0  ;;  %v397_v28 = vpop.f32.mrf.mxu1 }
  0xbf   :  { %v358_v35 = vadd.f32 %v1262_v42, %v357_v27  ;;  %v398_v36 = vadd.f32 %v1262_v42, %v397_v28 }
  0xc0   :  { %v542_v31 = vmax.f32 %v435_v25, 0.0  ;;  %v558_v32 = vmax.f32 %v475_v26, 0.0 }
  0xc1   :  { %v511_v44 = vmax.f32 %v358_v35, 0.0  ;;  %v527_v45 = vmax.f32 %v398_v36, 0.0 }
  0xc2   :  { %v991_v33 = vpack.c.bf16 %v542_v31, %v541_v29  ;;  %v1031_v34 = vpack.c.bf16 %v558_v32, %v557_v30 }
  0xc4   :  { %1079 = vst [vmem:[%s1427_s3 + $0x88] sm:$0xff] %v991_v33  }
  0xc5   :  { %1087 = vst [vmem:[%s1427_s3 + $0xc8] sm:$0xff] %v1031_v34   ;;  %v437_v37 = vpop.f32.mrf.mxu2  ;;  %v477_v38 = vpop.f32.mrf.mxu3 }
  0xc6   :  { %v359_v39 = vpop.f32.mrf.mxu0  ;;  %v399_v40 = vpop.f32.mrf.mxu1  ;;  %v438_v50 = vadd.f32 %v1262_v42, %v437_v37  ;;  %v478_v51 = vadd.f32 %v1262_v42, %v477_v38 }
  0xc7   :  { %v360_v41 = vadd.f32 %v1262_v42, %v359_v39  ;;  %v400_v43 = vadd.f32 %v1262_v42, %v399_v40 }
  0xc8   :  { %v543_v58 = vmax.f32 %v438_v50, 0.0  ;;  %v559_v59 = vmax.f32 %v478_v51, 0.0 }
  0xc9   :  { %v512_v46 = vmax.f32 %v360_v41, 0.0  ;;  %v528_v47 = vmax.f32 %v400_v43, 0.0 }
  0xcb   :  { %v916_v48 = vpack.c.bf16 %v512_v46, %v511_v44  ;;  %v956_v49 = vpack.c.bf16 %v528_v47, %v527_v45 }
  0xcd   :  { %1064 = vst [vmem:[%s1427_s3 + $0x10] sm:$0xff] %v916_v48   ;;  %v439_v52 = vpop.f32.mrf.mxu2  ;;  %v479_v53 = vpop.f32.mrf.mxu3 }
  0xce   :  { %1072 = vst [vmem:[%s1427_s3 + $0x50] sm:$0xff] %v956_v49   ;;  %v440_v54 = vadd.f32 %v1262_v42, %v439_v52  ;;  %v480_v55 = vadd.f32 %v1262_v42, %v479_v53  ;;  %v362_v56 = vpop.f32.mrf.mxu0  ;;  %v402_v57 = vpop.f32.mrf.mxu1 }
  0xcf   :  { %v363_v0 = vadd.f32 %v1262_v42, %v362_v56  ;;  %v403_v1 = vadd.f32 %v1262_v42, %v402_v57 }
  0xd0   :  { %v544_v60 = vmax.f32 %v440_v54, 0.0  ;;  %v560_v61 = vmax.f32 %v480_v55, 0.0 }
  0xd1   :  { %v513_v8 = vmax.f32 %v363_v0, 0.0  ;;  %v529_v9 = vmax.f32 %v403_v1, 0.0 }
  0xd2   :  { %v996_v62 = vpack.c.bf16 %v544_v60, %v543_v58  ;;  %v1036_v63 = vpack.c.bf16 %v560_v61, %v559_v59 }
  0xd4   :  { %1080 = vst [vmem:[%s1427_s3 + $0x90] sm:$0xff] %v996_v62  }
  0xd5   :  { %1088 = vst [vmem:[%s1427_s3 + $0xd0] sm:$0xff] %v1036_v63   ;;  %v442_v2 = vpop.f32.mrf.mxu2  ;;  %v482_v3 = vpop.f32.mrf.mxu3 }
  0xd6   :  { %v364_v4 = vpop.f32.mrf.mxu0  ;;  %v404_v5 = vpop.f32.mrf.mxu1  ;;  %v443_v14 = vadd.f32 %v1262_v42, %v442_v2  ;;  %v483_v15 = vadd.f32 %v1262_v42, %v482_v3 }
  0xd7   :  { %v365_v6 = vadd.f32 %v1262_v42, %v364_v4  ;;  %v405_v7 = vadd.f32 %v1262_v42, %v404_v5 }
  0xd8   :  { %v545_v22 = vmax.f32 %v443_v14, 0.0  ;;  %v561_v23 = vmax.f32 %v483_v15, 0.0 }
  0xd9   :  { %v514_v10 = vmax.f32 %v365_v6, 0.0  ;;  %v530_v11 = vmax.f32 %v405_v7, 0.0 }
  0xdb   :  { %v921_v12 = vpack.c.bf16 %v514_v10, %v513_v8  ;;  %v961_v13 = vpack.c.bf16 %v530_v11, %v529_v9 }
  0xdd   :  { %1065 = vst [vmem:[%s1427_s3 + $0x18] sm:$0xff] %v921_v12   ;;  %v444_v16 = vpop.f32.mrf.mxu2  ;;  %v484_v17 = vpop.f32.mrf.mxu3 }
  0xde   :  { %1073 = vst [vmem:[%s1427_s3 + $0x58] sm:$0xff] %v961_v13   ;;  %v445_v18 = vadd.f32 %v1262_v42, %v444_v16  ;;  %v485_v19 = vadd.f32 %v1262_v42, %v484_v17  ;;  %v367_v20 = vpop.f32.mrf.mxu0  ;;  %v407_v21 = vpop.f32.mrf.mxu1 }
  0xdf   :  { %v368_v28 = vadd.f32 %v1262_v42, %v367_v20  ;;  %v408_v29 = vadd.f32 %v1262_v42, %v407_v21 }
  0xe0   :  { %v546_v24 = vmax.f32 %v445_v18, 0.0  ;;  %v562_v25 = vmax.f32 %v485_v19, 0.0 }
  0xe1   :  { %v515_v36 = vmax.f32 %v368_v28, 0.0  ;;  %v531_v37 = vmax.f32 %v408_v29, 0.0 }
  0xe2   :  { %v1001_v26 = vpack.c.bf16 %v546_v24, %v545_v22  ;;  %v1041_v27 = vpack.c.bf16 %v562_v25, %v561_v23 }
  0xe4   :  { %1081 = vst [vmem:[%s1427_s3 + $0x98] sm:$0xff] %v1001_v26  }
  0xe5   :  { %1089 = vst [vmem:[%s1427_s3 + $0xd8] sm:$0xff] %v1041_v27   ;;  %v447_v30 = vpop.f32.mrf.mxu2  ;;  %v487_v31 = vpop.f32.mrf.mxu3 }
  0xe6   :  { %v369_v32 = vpop.f32.mrf.mxu0  ;;  %v409_v33 = vpop.f32.mrf.mxu1  ;;  %v448_v43 = vadd.f32 %v1262_v42, %v447_v30  ;;  %v488_v44 = vadd.f32 %v1262_v42, %v487_v31 }
  0xe7   :  { %v370_v34 = vadd.f32 %v1262_v42, %v369_v32  ;;  %v410_v35 = vadd.f32 %v1262_v42, %v409_v33 }
  0xe8   :  { %v547_v51 = vmax.f32 %v448_v43, 0.0  ;;  %v563_v52 = vmax.f32 %v488_v44, 0.0 }
  0xe9   :  { %v516_v38 = vmax.f32 %v370_v34, 0.0  ;;  %v532_v39 = vmax.f32 %v410_v35, 0.0 }
  0xeb   :  { %v926_v40 = vpack.c.bf16 %v516_v38, %v515_v36  ;;  %v966_v41 = vpack.c.bf16 %v532_v39, %v531_v37 }
  0xed   :  { %1066 = vst [vmem:[%s1427_s3 + $0x20] sm:$0xff] %v926_v40   ;;  %v449_v45 = vpop.f32.mrf.mxu2  ;;  %v489_v46 = vpop.f32.mrf.mxu3 }
  0xee   :  { %1074 = vst [vmem:[%s1427_s3 + $0x60] sm:$0xff] %v966_v41   ;;  %v450_v47 = vadd.f32 %v1262_v42, %v449_v45  ;;  %v490_v48 = vadd.f32 %v1262_v42, %v489_v46  ;;  %v372_v49 = vpop.f32.mrf.mxu0  ;;  %v412_v50 = vpop.f32.mrf.mxu1 }
  0xef   :  { %v373_v57 = vadd.f32 %v1262_v42, %v372_v49  ;;  %v413_v58 = vadd.f32 %v1262_v42, %v412_v50 }
  0xf0   :  { %v548_v53 = vmax.f32 %v450_v47, 0.0  ;;  %v564_v54 = vmax.f32 %v490_v48, 0.0 }
  0xf1   :  { %v517_v1 = vmax.f32 %v373_v57, 0.0  ;;  %v533_v2 = vmax.f32 %v413_v58, 0.0 }
  0xf2   :  { %v1006_v55 = vpack.c.bf16 %v548_v53, %v547_v51  ;;  %v1046_v56 = vpack.c.bf16 %v564_v54, %v563_v52 }
  0xf4   :  { %1082 = vst [vmem:[%s1427_s3 + $0xa0] sm:$0xff] %v1006_v55  }
  0xf5   :  { %1090 = vst [vmem:[%s1427_s3 + $0xe0] sm:$0xff] %v1046_v56   ;;  %v452_v59 = vpop.f32.mrf.mxu2  ;;  %v492_v60 = vpop.f32.mrf.mxu3 }
  0xf6   :  { %v374_v61 = vpop.f32.mrf.mxu0  ;;  %v414_v62 = vpop.f32.mrf.mxu1  ;;  %v453_v7 = vadd.f32 %v1262_v42, %v452_v59  ;;  %v493_v8 = vadd.f32 %v1262_v42, %v492_v60 }
  0xf7   :  { %v375_v63 = vadd.f32 %v1262_v42, %v374_v61  ;;  %v415_v0 = vadd.f32 %v1262_v42, %v414_v62 }
  0xf8   :  { %v549_v15 = vmax.f32 %v453_v7, 0.0  ;;  %v565_v16 = vmax.f32 %v493_v8, 0.0 }
  0xf9   :  { %v518_v3 = vmax.f32 %v375_v63, 0.0  ;;  %v534_v4 = vmax.f32 %v415_v0, 0.0 }
  0xfb   :  { %v931_v5 = vpack.c.bf16 %v518_v3, %v517_v1  ;;  %v971_v6 = vpack.c.bf16 %v534_v4, %v533_v2 }
  0xfd   :  { %1067 = vst [vmem:[%s1427_s3 + $0x28] sm:$0xff] %v931_v5   ;;  %v454_v9 = vpop.f32.mrf.mxu2  ;;  %v494_v10 = vpop.f32.mrf.mxu3 }
  0xfe   :  { %1075 = vst [vmem:[%s1427_s3 + $0x68] sm:$0xff] %v971_v6   ;;  %v455_v11 = vadd.f32 %v1262_v42, %v454_v9  ;;  %v495_v12 = vadd.f32 %v1262_v42, %v494_v10  ;;  %v377_v13 = vpop.f32.mrf.mxu0  ;;  %v417_v14 = vpop.f32.mrf.mxu1 }
  0xff   :  { %v378_v21 = vadd.f32 %v1262_v42, %v377_v13  ;;  %v418_v22 = vadd.f32 %v1262_v42, %v417_v14 }
 0x100   :  { %v550_v17 = vmax.f32 %v455_v11, 0.0  ;;  %v566_v18 = vmax.f32 %v495_v12, 0.0 }
 0x101   :  { %v519_v29 = vmax.f32 %v378_v21, 0.0  ;;  %v535_v30 = vmax.f32 %v418_v22, 0.0 }
 0x102   :  { %v1011_v19 = vpack.c.bf16 %v550_v17, %v549_v15  ;;  %v1051_v20 = vpack.c.bf16 %v566_v18, %v565_v16 }
 0x104   :  { %1083 = vst [vmem:[%s1427_s3 + $0xa8] sm:$0xff] %v1011_v19  }
 0x105   :  { %1091 = vst [vmem:[%s1427_s3 + $0xe8] sm:$0xff] %v1051_v20   ;;  %v457_v23 = vpop.f32.mrf.mxu2  ;;  %v497_v24 = vpop.f32.mrf.mxu3 }
 0x106   :  { %v379_v25 = vpop.f32.mrf.mxu0  ;;  %v419_v26 = vpop.f32.mrf.mxu1  ;;  %v458_v35 = vadd.f32 %v1262_v42, %v457_v23  ;;  %v498_v36 = vadd.f32 %v1262_v42, %v497_v24 }
 0x107   :  { %v380_v27 = vadd.f32 %v1262_v42, %v379_v25  ;;  %v420_v28 = vadd.f32 %v1262_v42, %v419_v26 }
 0x108   :  { %v551_v44 = vmax.f32 %v458_v35, 0.0  ;;  %v567_v45 = vmax.f32 %v498_v36, 0.0 }
 0x109   :  { %v520_v31 = vmax.f32 %v380_v27, 0.0  ;;  %v536_v32 = vmax.f32 %v420_v28, 0.0 }
 0x10b   :  { %v936_v33 = vpack.c.bf16 %v520_v31, %v519_v29  ;;  %v976_v34 = vpack.c.bf16 %v536_v32, %v535_v30 }
 0x10d   :  { %1068 = vst [vmem:[%s1427_s3 + $0x30] sm:$0xff] %v936_v33   ;;  %v459_v37 = vpop.f32.mrf.mxu2  ;;  %v499_v38 = vpop.f32.mrf.mxu3 }
 0x10e   :  { %1076 = vst [vmem:[%s1427_s3 + $0x70] sm:$0xff] %v976_v34   ;;  %v460_v39 = vadd.f32 %v1262_v42, %v459_v37  ;;  %v500_v40 = vadd.f32 %v1262_v42, %v499_v38  ;;  %v382_v41 = vpop.f32.mrf.mxu0  ;;  %v422_v43 = vpop.f32.mrf.mxu1 }
 0x10f   :  { %v383_v50 = vadd.f32 %v1262_v42, %v382_v41  ;;  %v423_v51 = vadd.f32 %v1262_v42, %v422_v43 }
 0x110   :  { %v552_v46 = vmax.f32 %v460_v39, 0.0  ;;  %v568_v47 = vmax.f32 %v500_v40, 0.0 }
 0x111   :  { %v521_v58 = vmax.f32 %v383_v50, 0.0  ;;  %v537_v59 = vmax.f32 %v423_v51, 0.0 }
 0x112   :  { %v1016_v48 = vpack.c.bf16 %v552_v46, %v551_v44  ;;  %v1056_v49 = vpack.c.bf16 %v568_v47, %v567_v45 }
 0x114   :  { %1084 = vst [vmem:[%s1427_s3 + $0xb0] sm:$0xff] %v1016_v48  }
 0x115   :  { %1092 = vst [vmem:[%s1427_s3 + $0xf0] sm:$0xff] %v1056_v49   ;;  %v462_v52 = vpop.f32.mrf.mxu2  ;;  %v502_v53 = vpop.f32.mrf.mxu3 }
 0x116   :  { %v384_v54 = vpop.f32.mrf.mxu0  ;;  %v424_v55 = vpop.f32.mrf.mxu1  ;;  %v463_v0 = vadd.f32 %v1262_v42, %v462_v52  ;;  %v503_v1 = vadd.f32 %v1262_v42, %v502_v53 }
 0x117   :  { %v385_v56 = vadd.f32 %v1262_v42, %v384_v54  ;;  %v425_v57 = vadd.f32 %v1262_v42, %v424_v55 }
 0x118   :  { %v553_v6 = vmax.f32 %v463_v0, 0.0  ;;  %v569_v7 = vmax.f32 %v503_v1, 0.0 }
 0x119   :  { %v522_v60 = vmax.f32 %v385_v56, 0.0  ;;  %v538_v61 = vmax.f32 %v425_v57, 0.0 }
 0x11b   :  { %v941_v62 = vpack.c.bf16 %v522_v60, %v521_v58  ;;  %v981_v63 = vpack.c.bf16 %v538_v61, %v537_v59 }
 0x11d   :  { %1069 = vst [vmem:[%s1427_s3 + $0x38] sm:$0xff] %v941_v62   ;;  %v464_v2 = vpop.f32.mrf.mxu2  ;;  %v504_v3 = vpop.f32.mrf.mxu3 }
 0x11e   :  { %1077 = vst [vmem:[%s1427_s3 + $0x78] sm:$0xff] %v981_v63   ;;  %v465_v4 = vadd.f32 %v1262_v42, %v464_v2  ;;  %v505_v5 = vadd.f32 %v1262_v42, %v504_v3 }
 0x120   :  { %v554_v8 = vmax.f32 %v465_v4, 0.0  ;;  %v570_v9 = vmax.f32 %v505_v5, 0.0 }
 0x122   :  { %v1021_v10 = vpack.c.bf16 %v554_v8, %v553_v6  ;;  %v1061_v11 = vpack.c.bf16 %v570_v9, %v569_v7 }
 0x124   :  { %1085 = vst [vmem:[%s1427_s3 + $0xb8] sm:$0xff] %v1021_v10  }
 0x125   :  { %1093 = vst [vmem:[%s1427_s3 + $0xf8] sm:$0xff] %v1061_v11  }

// kernel: stegastamp_encoder_forward.29
= control target key start
LH: loop header
LB: loop body
LE: loop exit
PB: predicated region body
PF: predicated region fallthrough
CT: control target
= control target key end

     0   :  { %vm259_vm0 = vcmask 261120   ;;  %s1217_s1 = inlined_call_operand.vmem [shape: bf16[32,128], index: 1, kind: input, shape index: {}]   ;;  %s1218_s0 = inlined_call_operand.vmem [shape: bf16[512,32], index: 0, kind: input, shape index: {}]   ;;  %s1219_s2 = inlined_call_operand.vmem [shape: f32[1,128], index: 2, kind: input, shape index: {}]   ;;  %s1220_s3 = inlined_call_operand.vmem [shape: f32[512,128], index: 3, kind: output, shape index: {}]  }
   0x1   :  { %v794_v0 = vld [vmem:[%s1217_s1 + $0x8] sm:$0xff]  ;;  %v793_v1 = vld [vmem:[%s1217_s1] sm:$0xff]  ;;  %v763_v10 = vld [vmem:[%s1218_s0 + $0x10] sm:$0xff] }
   0x2   :  { %362 = vmatpush.bf16.msra.mxu0 %v794_v0  ;;  %795 = vmatpush.bf16.msra.mxu1 %v794_v0  ;;  %v761_v2 = vld [vmem:[%s1218_s0] sm:$0xff]  ;;  %v762_v6 = vld [vmem:[%s1218_s0 + $0x8] sm:$0xff]  ;;  %v771_v11 = vld [vmem:[%s1218_s0 + $0x50] sm:$0xff] }
   0x3   :  { %796 = vmatpush.bf16.msra.mxu2 %v794_v0  ;;  %797 = vmatpush.bf16.msra.mxu3 %v794_v0  ;;  %v769_v3 = vld [vmem:[%s1218_s0 + $0x40] sm:$0xff]  ;;  %v770_v7 = vld [vmem:[%s1218_s0 + $0x48] sm:$0xff]  ;;  %v779_v12 = vld [vmem:[%s1218_s0 + $0x90] sm:$0xff] }
   0x4   :  { %v777_v4 = vld [vmem:[%s1218_s0 + $0x80] sm:$0xff]  ;;  %v778_v8 = vld [vmem:[%s1218_s0 + $0x88] sm:$0xff]  ;;  %v787_v13 = vld [vmem:[%s1218_s0 + $0xd0] sm:$0xff] }
   0x5   :  { %v785_v5 = vld [vmem:[%s1218_s0 + $0xc0] sm:$0xff]  ;;  %v786_v9 = vld [vmem:[%s1218_s0 + $0xc8] sm:$0xff]  ;;  %v764_v14 = vld [vmem:[%s1218_s0 + $0x18] sm:$0xff] }
   0x6   :  { %363 = vmatpush.bf16.msra.mxu0 %v793_v1  ;;  %798 = vmatpush.bf16.msra.mxu1 %v793_v1  ;;  %v772_v15 = vld [vmem:[%s1218_s0 + $0x58] sm:$0xff]  ;;  %v765_v18 = vld [vmem:[%s1218_s0 + $0x20] sm:$0xff]  ;;  %v766_v22 = vld [vmem:[%s1218_s0 + $0x28] sm:$0xff] }
   0x7   :  { %799 = vmatpush.bf16.msra.mxu2 %v793_v1  ;;  %800 = vmatpush.bf16.msra.mxu3 %v793_v1  ;;  %v780_v16 = vld [vmem:[%s1218_s0 + $0x98] sm:$0xff]  ;;  %v773_v19 = vld [vmem:[%s1218_s0 + $0x60] sm:$0xff]  ;;  %v774_v23 = vld [vmem:[%s1218_s0 + $0x68] sm:$0xff] }
   0x8   :  { %v788_v17 = vld [vmem:[%s1218_s0 + $0xd8] sm:$0xff]  ;;  %v781_v20 = vld [vmem:[%s1218_s0 + $0xa0] sm:$0xff]  ;;  %v782_v24 = vld [vmem:[%s1218_s0 + $0xa8] sm:$0xff] }
   0x9   :  { %729 = vmatmul.msk.bf16.vlgmr.msra.gmra.mxu0 %vm259_vm0, %v761_v2  ;;  %737 = vmatmul.msk.bf16.vlgmr.msra.gmra.mxu1 %vm259_vm0, %v769_v3  ;;  %v789_v21 = vld [vmem:[%s1218_s0 + $0xe0] sm:$0xff]  ;;  %v790_v25 = vld [vmem:[%s1218_s0 + $0xe8] sm:$0xff]  ;;  %v767_v26 = vld [vmem:[%s1218_s0 + $0x30] sm:$0xff] }
   0xa   :  { %745 = vmatmul.msk.bf16.vlgmr.msra.gmra.mxu2 %vm259_vm0, %v777_v4  ;;  %753 = vmatmul.msk.bf16.vlgmr.msra.gmra.mxu3 %vm259_vm0, %v785_v5  ;;  %v775_v27 = vld [vmem:[%s1218_s0 + $0x70] sm:$0xff]  ;;  %v768_v30 = vld [vmem:[%s1218_s0 + $0x38] sm:$0xff]  ;;  %v959_v34 = vld [vmem:[%s1219_s2] ss:$0 sm:$0xff] }
   0xb   :  { %v783_v28 = vld [vmem:[%s1218_s0 + $0xb0] sm:$0xff]  ;;  %v776_v31 = vld [vmem:[%s1218_s0 + $0x78] sm:$0xff] }
   0xc   :  { %v791_v29 = vld [vmem:[%s1218_s0 + $0xf0] sm:$0xff]  ;;  %v784_v32 = vld [vmem:[%s1218_s0 + $0xb8] sm:$0xff] }
   0xd   :  { %v792_v33 = vld [vmem:[%s1218_s0 + $0xf8] sm:$0xff] }
  0x19   :  { %730 = vmatmul.msk.bf16.gmra.mxu0 %vm259_vm0, %v762_v6  ;;  %738 = vmatmul.msk.bf16.gmra.mxu1 %vm259_vm0, %v770_v7 }
  0x1a   :  { %746 = vmatmul.msk.bf16.gmra.mxu2 %vm259_vm0, %v778_v8  ;;  %754 = vmatmul.msk.bf16.gmra.mxu3 %vm259_vm0, %v786_v9 }
  0x29   :  { %731 = vmatmul.msk.bf16.gmra.mxu0 %vm259_vm0, %v763_v10  ;;  %739 = vmatmul.msk.bf16.gmra.mxu1 %vm259_vm0, %v771_v11 }
  0x2a   :  { %747 = vmatmul.msk.bf16.gmra.mxu2 %vm259_vm0, %v779_v12  ;;  %755 = vmatmul.msk.bf16.gmra.mxu3 %vm259_vm0, %v787_v13 }
  0x39   :  { %732 = vmatmul.msk.bf16.gmra.mxu0 %vm259_vm0, %v764_v14  ;;  %740 = vmatmul.msk.bf16.gmra.mxu1 %vm259_vm0, %v772_v15 }
  0x3a   :  { %748 = vmatmul.msk.bf16.gmra.mxu2 %vm259_vm0, %v780_v16  ;;  %756 = vmatmul.msk.bf16.gmra.mxu3 %vm259_vm0, %v788_v17 }
  0x49   :  { %733 = vmatmul.msk.bf16.gmra.mxu0 %vm259_vm0, %v765_v18  ;;  %741 = vmatmul.msk.bf16.gmra.mxu1 %vm259_vm0, %v773_v19 }
  0x4a   :  { %749 = vmatmul.msk.bf16.gmra.mxu2 %vm259_vm0, %v781_v20  ;;  %757 = vmatmul.msk.bf16.gmra.mxu3 %vm259_vm0, %v789_v21 }
  0x59   :  { %734 = vmatmul.msk.bf16.gmra.mxu0 %vm259_vm0, %v766_v22  ;;  %742 = vmatmul.msk.bf16.gmra.mxu1 %vm259_vm0, %v774_v23 }
  0x5a   :  { %750 = vmatmul.msk.bf16.gmra.mxu2 %vm259_vm0, %v782_v24  ;;  %758 = vmatmul.msk.bf16.gmra.mxu3 %vm259_vm0, %v790_v25 }
  0x69   :  { %735 = vmatmul.msk.bf16.gmra.mxu0 %vm259_vm0, %v767_v26  ;;  %743 = vmatmul.msk.bf16.gmra.mxu1 %vm259_vm0, %v775_v27 }
  0x6a   :  { %751 = vmatmul.msk.bf16.gmra.mxu2 %vm259_vm0, %v783_v28  ;;  %759 = vmatmul.msk.bf16.gmra.mxu3 %vm259_vm0, %v791_v29 }
  0x79   :  { %736 = vmatmul.msk.bf16.gmra.mxu0 %vm259_vm0, %v768_v30  ;;  %744 = vmatmul.msk.bf16.gmra.mxu1 %vm259_vm0, %v776_v31 }
  0x7a   :  { %752 = vmatmul.msk.bf16.gmra.mxu2 %vm259_vm0, %v784_v32  ;;  %760 = vmatmul.msk.bf16.gmra.mxu3 %vm259_vm0, %v792_v33 }
  0x86   :  { %v365_v35 = vpop.f32.mrf.mxu0  ;;  %v405_v36 = vpop.f32.mrf.mxu1 }
  0x87   :  { %v366_v37 = vadd.f32 %v959_v34, %v365_v35  ;;  %v406_v38 = vadd.f32 %v959_v34, %v405_v36 }
  0x89   :  { %525 = vst [vmem:[%s1220_s3] sm:$0xff] %v366_v37 }
  0x8a   :  { %541 = vst [vmem:[%s1220_s3 + $0x80] sm:$0xff] %v406_v38 }
  0x8d   :  { %v445_v39 = vpop.f32.mrf.mxu2  ;;  %v485_v40 = vpop.f32.mrf.mxu3 }
  0x8e   :  { %v446_v41 = vadd.f32 %v959_v34, %v445_v39  ;;  %v486_v42 = vadd.f32 %v959_v34, %v485_v40  ;;  %v367_v43 = vpop.f32.mrf.mxu0  ;;  %v407_v44 = vpop.f32.mrf.mxu1 }
  0x8f   :  { %v368_v45 = vadd.f32 %v959_v34, %v367_v43  ;;  %v408_v46 = vadd.f32 %v959_v34, %v407_v44 }
  0x90   :  { %557 = vst [vmem:[%s1220_s3 + $0x100] sm:$0xff] %v446_v41 }
  0x91   :  { %573 = vst [vmem:[%s1220_s3 + $0x180] sm:$0xff] %v486_v42 }
  0x92   :  { %526 = vst [vmem:[%s1220_s3 + $0x8] sm:$0xff] %v368_v45 }
  0x93   :  { %542 = vst [vmem:[%s1220_s3 + $0x88] sm:$0xff] %v408_v46 }
  0x95   :  { %v447_v47 = vpop.f32.mrf.mxu2  ;;  %v487_v48 = vpop.f32.mrf.mxu3 }
  0x96   :  { %v448_v49 = vadd.f32 %v959_v34, %v447_v47  ;;  %v488_v50 = vadd.f32 %v959_v34, %v487_v48  ;;  %v370_v51 = vpop.f32.mrf.mxu0  ;;  %v410_v52 = vpop.f32.mrf.mxu1 }
  0x97   :  { %v371_v53 = vadd.f32 %v959_v34, %v370_v51  ;;  %v411_v54 = vadd.f32 %v959_v34, %v410_v52 }
  0x98   :  { %558 = vst [vmem:[%s1220_s3 + $0x108] sm:$0xff] %v448_v49 }
  0x99   :  { %574 = vst [vmem:[%s1220_s3 + $0x188] sm:$0xff] %v488_v50 }
  0x9a   :  { %527 = vst [vmem:[%s1220_s3 + $0x10] sm:$0xff] %v371_v53 }
  0x9b   :  { %543 = vst [vmem:[%s1220_s3 + $0x90] sm:$0xff] %v411_v54 }
  0x9d   :  { %v450_v55 = vpop.f32.mrf.mxu2  ;;  %v490_v56 = vpop.f32.mrf.mxu3 }
  0x9e   :  { %v451_v57 = vadd.f32 %v959_v34, %v450_v55  ;;  %v491_v58 = vadd.f32 %v959_v34, %v490_v56  ;;  %v372_v59 = vpop.f32.mrf.mxu0  ;;  %v412_v60 = vpop.f32.mrf.mxu1 }
  0x9f   :  { %v373_v61 = vadd.f32 %v959_v34, %v372_v59  ;;  %v413_v62 = vadd.f32 %v959_v34, %v412_v60 }
  0xa0   :  { %559 = vst [vmem:[%s1220_s3 + $0x110] sm:$0xff] %v451_v57 }
  0xa1   :  { %575 = vst [vmem:[%s1220_s3 + $0x190] sm:$0xff] %v491_v58 }
  0xa2   :  { %528 = vst [vmem:[%s1220_s3 + $0x18] sm:$0xff] %v373_v61 }
  0xa3   :  { %544 = vst [vmem:[%s1220_s3 + $0x98] sm:$0xff] %v413_v62 }
  0xa5   :  { %v452_v63 = vpop.f32.mrf.mxu2  ;;  %v492_v0 = vpop.f32.mrf.mxu3 }
  0xa6   :  { %v453_v1 = vadd.f32 %v959_v34, %v452_v63  ;;  %v493_v2 = vadd.f32 %v959_v34, %v492_v0  ;;  %v375_v3 = vpop.f32.mrf.mxu0  ;;  %v415_v4 = vpop.f32.mrf.mxu1 }
  0xa7   :  { %v376_v5 = vadd.f32 %v959_v34, %v375_v3  ;;  %v416_v6 = vadd.f32 %v959_v34, %v415_v4 }
  0xa8   :  { %560 = vst [vmem:[%s1220_s3 + $0x118] sm:$0xff] %v453_v1 }
  0xa9   :  { %576 = vst [vmem:[%s1220_s3 + $0x198] sm:$0xff] %v493_v2 }
  0xaa   :  { %529 = vst [vmem:[%s1220_s3 + $0x20] sm:$0xff] %v376_v5 }
  0xab   :  { %545 = vst [vmem:[%s1220_s3 + $0xa0] sm:$0xff] %v416_v6 }
  0xad   :  { %v455_v7 = vpop.f32.mrf.mxu2  ;;  %v495_v8 = vpop.f32.mrf.mxu3 }
  0xae   :  { %v456_v9 = vadd.f32 %v959_v34, %v455_v7  ;;  %v496_v10 = vadd.f32 %v959_v34, %v495_v8  ;;  %v377_v11 = vpop.f32.mrf.mxu0  ;;  %v417_v12 = vpop.f32.mrf.mxu1 }
  0xaf   :  { %v378_v13 = vadd.f32 %v959_v34, %v377_v11  ;;  %v418_v14 = vadd.f32 %v959_v34, %v417_v12 }
  0xb0   :  { %561 = vst [vmem:[%s1220_s3 + $0x120] sm:$0xff] %v456_v9 }
  0xb1   :  { %577 = vst [vmem:[%s1220_s3 + $0x1a0] sm:$0xff] %v496_v10 }
  0xb2   :  { %530 = vst [vmem:[%s1220_s3 + $0x28] sm:$0xff] %v378_v13 }
  0xb3   :  { %546 = vst [vmem:[%s1220_s3 + $0xa8] sm:$0xff] %v418_v14 }
  0xb5   :  { %v457_v15 = vpop.f32.mrf.mxu2  ;;  %v497_v16 = vpop.f32.mrf.mxu3 }
  0xb6   :  { %v458_v17 = vadd.f32 %v959_v34, %v457_v15  ;;  %v498_v18 = vadd.f32 %v959_v34, %v497_v16  ;;  %v380_v19 = vpop.f32.mrf.mxu0  ;;  %v420_v20 = vpop.f32.mrf.mxu1 }
  0xb7   :  { %v381_v21 = vadd.f32 %v959_v34, %v380_v19  ;;  %v421_v22 = vadd.f32 %v959_v34, %v420_v20 }
  0xb8   :  { %562 = vst [vmem:[%s1220_s3 + $0x128] sm:$0xff] %v458_v17 }
  0xb9   :  { %578 = vst [vmem:[%s1220_s3 + $0x1a8] sm:$0xff] %v498_v18 }
  0xba   :  { %531 = vst [vmem:[%s1220_s3 + $0x30] sm:$0xff] %v381_v21 }
  0xbb   :  { %547 = vst [vmem:[%s1220_s3 + $0xb0] sm:$0xff] %v421_v22 }
  0xbd   :  { %v460_v23 = vpop.f32.mrf.mxu2  ;;  %v500_v24 = vpop.f32.mrf.mxu3 }
  0xbe   :  { %v461_v25 = vadd.f32 %v959_v34, %v460_v23  ;;  %v501_v26 = vadd.f32 %v959_v34, %v500_v24  ;;  %v382_v27 = vpop.f32.mrf.mxu0  ;;  %v422_v28 = vpop.f32.mrf.mxu1 }
  0xbf   :  { %v383_v29 = vadd.f32 %v959_v34, %v382_v27  ;;  %v423_v30 = vadd.f32 %v959_v34, %v422_v28 }
  0xc0   :  { %563 = vst [vmem:[%s1220_s3 + $0x130] sm:$0xff] %v461_v25 }
  0xc1   :  { %579 = vst [vmem:[%s1220_s3 + $0x1b0] sm:$0xff] %v501_v26 }
  0xc2   :  { %532 = vst [vmem:[%s1220_s3 + $0x38] sm:$0xff] %v383_v29 }
  0xc3   :  { %548 = vst [vmem:[%s1220_s3 + $0xb8] sm:$0xff] %v423_v30 }
  0xc5   :  { %v462_v31 = vpop.f32.mrf.mxu2  ;;  %v502_v32 = vpop.f32.mrf.mxu3 }
  0xc6   :  { %v463_v33 = vadd.f32 %v959_v34, %v462_v31  ;;  %v503_v35 = vadd.f32 %v959_v34, %v502_v32  ;;  %v385_v36 = vpop.f32.mrf.mxu0  ;;  %v425_v37 = vpop.f32.mrf.mxu1 }
  0xc7   :  { %v386_v38 = vadd.f32 %v959_v34, %v385_v36  ;;  %v426_v39 = vadd.f32 %v959_v34, %v425_v37 }
  0xc8   :  { %564 = vst [vmem:[%s1220_s3 + $0x138] sm:$0xff] %v463_v33 }
  0xc9   :  { %580 = vst [vmem:[%s1220_s3 + $0x1b8] sm:$0xff] %v503_v35 }
  0xca   :  { %533 = vst [vmem:[%s1220_s3 + $0x40] sm:$0xff] %v386_v38 }
  0xcb   :  { %549 = vst [vmem:[%s1220_s3 + $0xc0] sm:$0xff] %v426_v39 }
  0xcd   :  { %v465_v40 = vpop.f32.mrf.mxu2  ;;  %v505_v41 = vpop.f32.mrf.mxu3 }
  0xce   :  { %v466_v42 = vadd.f32 %v959_v34, %v465_v40  ;;  %v506_v43 = vadd.f32 %v959_v34, %v505_v41  ;;  %v387_v44 = vpop.f32.mrf.mxu0  ;;  %v427_v45 = vpop.f32.mrf.mxu1 }
  0xcf   :  { %v388_v46 = vadd.f32 %v959_v34, %v387_v44  ;;  %v428_v47 = vadd.f32 %v959_v34, %v427_v45 }
  0xd0   :  { %565 = vst [vmem:[%s1220_s3 + $0x140] sm:$0xff] %v466_v42 }
  0xd1   :  { %581 = vst [vmem:[%s1220_s3 + $0x1c0] sm:$0xff] %v506_v43 }
  0xd2   :  { %534 = vst [vmem:[%s1220_s3 + $0x48] sm:$0xff] %v388_v46 }
  0xd3   :  { %550 = vst [vmem:[%s1220_s3 + $0xc8] sm:$0xff] %v428_v47 }
  0xd5   :  { %v467_v48 = vpop.f32.mrf.mxu2  ;;  %v507_v49 = vpop.f32.mrf.mxu3 }
  0xd6   :  { %v468_v50 = vadd.f32 %v959_v34, %v467_v48  ;;  %v508_v51 = vadd.f32 %v959_v34, %v507_v49  ;;  %v390_v52 = vpop.f32.mrf.mxu0  ;;  %v430_v53 = vpop.f32.mrf.mxu1 }
  0xd7   :  { %v391_v54 = vadd.f32 %v959_v34, %v390_v52  ;;  %v431_v55 = vadd.f32 %v959_v34, %v430_v53 }
  0xd8   :  { %566 = vst [vmem:[%s1220_s3 + $0x148] sm:$0xff] %v468_v50 }
  0xd9   :  { %582 = vst [vmem:[%s1220_s3 + $0x1c8] sm:$0xff] %v508_v51 }
  0xda   :  { %535 = vst [vmem:[%s1220_s3 + $0x50] sm:$0xff] %v391_v54 }
  0xdb   :  { %551 = vst [vmem:[%s1220_s3 + $0xd0] sm:$0xff] %v431_v55 }
  0xdd   :  { %v470_v56 = vpop.f32.mrf.mxu2  ;;  %v510_v57 = vpop.f32.mrf.mxu3 }
  0xde   :  { %v471_v58 = vadd.f32 %v959_v34, %v470_v56  ;;  %v511_v59 = vadd.f32 %v959_v34, %v510_v57  ;;  %v392_v60 = vpop.f32.mrf.mxu0  ;;  %v432_v61 = vpop.f32.mrf.mxu1 }
  0xdf   :  { %v393_v62 = vadd.f32 %v959_v34, %v392_v60  ;;  %v433_v63 = vadd.f32 %v959_v34, %v432_v61 }
  0xe0   :  { %567 = vst [vmem:[%s1220_s3 + $0x150] sm:$0xff] %v471_v58 }
  0xe1   :  { %583 = vst [vmem:[%s1220_s3 + $0x1d0] sm:$0xff] %v511_v59 }
  0xe2   :  { %536 = vst [vmem:[%s1220_s3 + $0x58] sm:$0xff] %v393_v62 }
  0xe3   :  { %552 = vst [vmem:[%s1220_s3 + $0xd8] sm:$0xff] %v433_v63 }
  0xe5   :  { %v472_v0 = vpop.f32.mrf.mxu2  ;;  %v512_v1 = vpop.f32.mrf.mxu3 }
  0xe6   :  { %v473_v2 = vadd.f32 %v959_v34, %v472_v0  ;;  %v513_v3 = vadd.f32 %v959_v34, %v512_v1  ;;  %v395_v4 = vpop.f32.mrf.mxu0  ;;  %v435_v5 = vpop.f32.mrf.mxu1 }
  0xe7   :  { %v396_v6 = vadd.f32 %v959_v34, %v395_v4  ;;  %v436_v7 = vadd.f32 %v959_v34, %v435_v5 }
  0xe8   :  { %568 = vst [vmem:[%s1220_s3 + $0x158] sm:$0xff] %v473_v2 }
  0xe9   :  { %584 = vst [vmem:[%s1220_s3 + $0x1d8] sm:$0xff] %v513_v3 }
  0xea   :  { %537 = vst [vmem:[%s1220_s3 + $0x60] sm:$0xff] %v396_v6 }
  0xeb   :  { %553 = vst [vmem:[%s1220_s3 + $0xe0] sm:$0xff] %v436_v7 }
  0xed   :  { %v475_v8 = vpop.f32.mrf.mxu2  ;;  %v515_v9 = vpop.f32.mrf.mxu3 }
  0xee   :  { %v476_v10 = vadd.f32 %v959_v34, %v475_v8  ;;  %v516_v11 = vadd.f32 %v959_v34, %v515_v9  ;;  %v397_v12 = vpop.f32.mrf.mxu0  ;;  %v437_v13 = vpop.f32.mrf.mxu1 }
  0xef   :  { %v398_v14 = vadd.f32 %v959_v34, %v397_v12  ;;  %v438_v15 = vadd.f32 %v959_v34, %v437_v13 }
  0xf0   :  { %569 = vst [vmem:[%s1220_s3 + $0x160] sm:$0xff] %v476_v10 }
  0xf1   :  { %585 = vst [vmem:[%s1220_s3 + $0x1e0] sm:$0xff] %v516_v11 }
  0xf2   :  { %538 = vst [vmem:[%s1220_s3 + $0x68] sm:$0xff] %v398_v14 }
  0xf3   :  { %554 = vst [vmem:[%s1220_s3 + $0xe8] sm:$0xff] %v438_v15 }
  0xf5   :  { %v477_v16 = vpop.f32.mrf.mxu2  ;;  %v517_v17 = vpop.f32.mrf.mxu3 }
  0xf6   :  { %v478_v18 = vadd.f32 %v959_v34, %v477_v16  ;;  %v518_v19 = vadd.f32 %v959_v34, %v517_v17  ;;  %v400_v20 = vpop.f32.mrf.mxu0  ;;  %v440_v21 = vpop.f32.mrf.mxu1 }
  0xf7   :  { %v401_v22 = vadd.f32 %v959_v34, %v400_v20  ;;  %v441_v23 = vadd.f32 %v959_v34, %v440_v21 }
  0xf8   :  { %570 = vst [vmem:[%s1220_s3 + $0x168] sm:$0xff] %v478_v18 }
  0xf9   :  { %586 = vst [vmem:[%s1220_s3 + $0x1e8] sm:$0xff] %v518_v19 }
  0xfa   :  { %539 = vst [vmem:[%s1220_s3 + $0x70] sm:$0xff] %v401_v22 }
  0xfb   :  { %555 = vst [vmem:[%s1220_s3 + $0xf0] sm:$0xff] %v441_v23 }
  0xfd   :  { %v480_v24 = vpop.f32.mrf.mxu2  ;;  %v520_v25 = vpop.f32.mrf.mxu3 }
  0xfe   :  { %v481_v26 = vadd.f32 %v959_v34, %v480_v24  ;;  %v521_v27 = vadd.f32 %v959_v34, %v520_v25  ;;  %v402_v28 = vpop.f32.mrf.mxu0  ;;  %v442_v29 = vpop.f32.mrf.mxu1 }
  0xff   :  { %v403_v30 = vadd.f32 %v959_v34, %v402_v28  ;;  %v443_v31 = vadd.f32 %v959_v34, %v442_v29 }
 0x100   :  { %571 = vst [vmem:[%s1220_s3 + $0x170] sm:$0xff] %v481_v26 }
 0x101   :  { %587 = vst [vmem:[%s1220_s3 + $0x1f0] sm:$0xff] %v521_v27 }
 0x102   :  { %540 = vst [vmem:[%s1220_s3 + $0x78] sm:$0xff] %v403_v30 }
 0x103   :  { %556 = vst [vmem:[%s1220_s3 + $0xf8] sm:$0xff] %v443_v31 }
 0x105   :  { %v482_v32 = vpop.f32.mrf.mxu2  ;;  %v522_v33 = vpop.f32.mrf.mxu3 }
 0x106   :  { %v483_v35 = vadd.f32 %v959_v34, %v482_v32  ;;  %v523_v36 = vadd.f32 %v959_v34, %v522_v33 }
 0x108   :  { %572 = vst [vmem:[%s1220_s3 + $0x178] sm:$0xff] %v483_v35 }
 0x109   :  { %588 = vst [vmem:[%s1220_s3 + $0x1f8] sm:$0xff] %v523_v36 }

// kernel: stegastamp_encoder_forward.28
= control target key start
LH: loop header
LB: loop body
LE: loop exit
PB: predicated region body
PF: predicated region fallthrough
CT: control target
= control target key end

     0   :  { %vm1423_vm0 = vcmask 1042432   ;;  %vm1326_vm1 = vcmask 965632   ;;  %s5208_s1 = inlined_call_operand.vmem [shape: bf16[630,128], index: 1, kind: input, shape index: {}]   ;;  %s5209_s2 = inlined_call_operand.vmem [shape: f32[1,128], index: 2, kind: input, shape index: {}]   ;;  %s5210_s0 = inlined_call_operand.vmem [shape: bf16[512,630], index: 0, kind: input, shape index: {}]   ;;  %s5211_s3 = inlined_call_operand.vmem [shape: bf16[512,128], index: 3, kind: output, shape index: {}]  }
   0x1   :  { %v3463_v0 = vld [vmem:[%s5208_s1 + $0x38] sm:$0xff]  ;;  %v3462_v1 = vld [vmem:[%s5208_s1 + $0x30] sm:$0xff]  ;;  %v3461_v2 = vld [vmem:[%s5208_s1 + $0x28] sm:$0xff] }
   0x2   :  { %3686 = vmatpush.bf16.msra.mxu1 %v3463_v0  ;;  %3687 = vmatpush.bf16.msra.mxu2 %v3463_v0  ;;  %v3460_v3 = vld [vmem:[%s5208_s1 + $0x20] sm:$0xff]  ;;  %v3459_v4 = vld [vmem:[%s5208_s1 + $0x18] sm:$0xff]  ;;  %v3458_v5 = vld [vmem:[%s5208_s1 + $0x10] sm:$0xff] }
   0x3   :  { %3688 = vmatpush.bf16.msra.mxu3 %v3463_v0  ;;  %1427 = vmatpush.bf16.msra.mxu0 %v3463_v0  ;;  %v284_v6 = vld [vmem:[%s5208_s1 + $0x138] sm:$0x7]  ;;  %v3457_v7 = vld [vmem:[%s5208_s1 + $0x8] sm:$0xff]  ;;  %v3456_v9 = vld [vmem:[%s5208_s1] sm:$0xff] }
   0x4   :  { %v1246_v8 = vunpack.c.l.b16 %v284_v6  ;;  %v2630_v10 = vld [vmem:[%s5210_s0 + $0x140] sm:$0xf]  ;;  %v3338_v11 = vld [vmem:[%s5210_s0 + $0x150] sm:$0xf0]  ;;  %v3479_v18 = vld [vmem:[%s5208_s1 + $0xb8] sm:$0xff] }
   0x5   :  { %v2790_v12 = vld [vmem:[%s5210_s0 + $0x280] sm:$0xf]  ;;  %v3378_v13 = vld [vmem:[%s5210_s0 + $0x290] sm:$0xf0]  ;;  %v3487_v19 = vld [vmem:[%s5208_s1 + $0xf8] sm:$0xff]  ;;  %v2631_v21 = vor.u32 %v3338_v11, %v2630_v10 }
   0x6   :  { %3689 = vmatpush.bf16.msra.mxu1 %v3462_v1  ;;  %3690 = vmatpush.bf16.msra.mxu2 %v3462_v1  ;;  %v2950_v14 = vld [vmem:[%s5210_s0 + $0x3c0] sm:$0xf]  ;;  %v3418_v15 = vld [vmem:[%s5210_s0 + $0x3d0] sm:$0xf0]  ;;  %v1286_v20 = vpack.c.b16 %v1246_v8, %v1246_v8  ;;  %v2791_v22 = vor.u32 %v3378_v13, %v2790_v12  ;;  %v3471_v25 = vld [vmem:[%s5208_s1 + $0x78] sm:$0xff] }
   0x7   :  { %3691 = vmatpush.bf16.msra.mxu3 %v3462_v1  ;;  %1428 = vmatpush.bf16.msra.mxu0 %v3462_v1  ;;  %v2470_v16 = vld [vmem:[%s5210_s0] sm:$0xf]  ;;  %v3298_v17 = vld [vmem:[%s5210_s0 + $0x10] sm:$0xf0]  ;;  %v2951_v23 = vor.u32 %v3418_v15, %v2950_v14  ;;  %v3477_v31 = vld [vmem:[%s5208_s1 + $0xa8] sm:$0xff] }
   0x8   :  { %v2471_v24 = vor.u32 %v3298_v17, %v2470_v16  ;;  %v1425_v26 = vsel %vm1423_vm0, %v1286_v20, 0  ;;  %v3478_v27 = vld [vmem:[%s5208_s1 + $0xb0] sm:$0xff]  ;;  %v3485_v32 = vld [vmem:[%s5208_s1 + $0xe8] sm:$0xff]  ;;  %v3343_v36 = vld [vmem:[%s5210_s0 + $0x178] sm:$0xf0] }
   0x9   :  { %v3486_v28 = vld [vmem:[%s5208_s1 + $0xf0] sm:$0xff]  ;;  %v3469_v33 = vld [vmem:[%s5208_s1 + $0x68] sm:$0xff]  ;;  %v3383_v38 = vld [vmem:[%s5210_s0 + $0x2b8] sm:$0xf0] }
   0xa   :  { %3692 = vmatpush.bf16.msra.mxu1 %v3461_v2  ;;  %3693 = vmatpush.bf16.msra.mxu2 %v3461_v2  ;;  %v3470_v29 = vld [vmem:[%s5208_s1 + $0x70] sm:$0xff]  ;;  %v3493_v34 = vld [vmem:[%s5208_s1 + $0x128] sm:$0xff]  ;;  %v3423_v40 = vld [vmem:[%s5210_s0 + $0x3f8] sm:$0xf0] }
   0xb   :  { %3694 = vmatpush.bf16.msra.mxu3 %v3461_v2  ;;  %1429 = vmatpush.bf16.msra.mxu0 %v3461_v2  ;;  %v3494_v30 = vld [vmem:[%s5208_s1 + $0x130] sm:$0xff]  ;;  %v2650_v35 = vld [vmem:[%s5210_s0 + $0x168] sm:$0xf]  ;;  %v3303_v42 = vld [vmem:[%s5210_s0 + $0x38] sm:$0xf0] }
   0xc   :  { %v2810_v37 = vld [vmem:[%s5210_s0 + $0x2a8] sm:$0xf]  ;;  %v2651_v43 = vor.u32 %v3343_v36, %v2650_v35  ;;  %v3476_v47 = vld [vmem:[%s5208_s1 + $0xa0] sm:$0xff]  ;;  %v2670_v51 = vld [vmem:[%s5210_s0 + $0x190] sm:$0xf] }
   0xd   :  { %v2970_v39 = vld [vmem:[%s5210_s0 + $0x3e8] sm:$0xf]  ;;  %v2811_v44 = vor.u32 %v3383_v38, %v2810_v37  ;;  %v3484_v48 = vld [vmem:[%s5208_s1 + $0xe0] sm:$0xff]  ;;  %v2830_v53 = vld [vmem:[%s5210_s0 + $0x2d0] sm:$0xf] }
   0xe   :  { %3695 = vmatpush.bf16.msra.mxu1 %v3460_v3  ;;  %3696 = vmatpush.bf16.msra.mxu2 %v3460_v3  ;;  %v2490_v41 = vld [vmem:[%s5210_s0 + $0x28] sm:$0xf]  ;;  %v2971_v45 = vor.u32 %v3423_v40, %v2970_v39  ;;  %v3468_v49 = vld [vmem:[%s5208_s1 + $0x60] sm:$0xff]  ;;  %v2990_v55 = vld [vmem:[%s5210_s0 + $0x410] sm:$0xf] }
   0xf   :  { %3697 = vmatpush.bf16.msra.mxu3 %v3460_v3  ;;  %1430 = vmatpush.bf16.msra.mxu0 %v3460_v3  ;;  %v2491_v46 = vor.u32 %v3303_v42, %v2490_v41  ;;  %v3492_v50 = vld [vmem:[%s5208_s1 + $0x120] sm:$0xff]  ;;  %v2510_v57 = vld [vmem:[%s5210_s0 + $0x50] sm:$0xf]  ;;  %v3475_v63 = vld [vmem:[%s5208_s1 + $0x98] sm:$0xff] }
  0x10   :  { %v3348_v52 = vld [vmem:[%s5210_s0 + $0x1a0] sm:$0xf0]  ;;  %v3483_v0 = vld [vmem:[%s5208_s1 + $0xd8] sm:$0xff]  ;;  %v3393_v6 = vld [vmem:[%s5210_s0 + $0x308] sm:$0xf0] }
  0x11   :  { %v3388_v54 = vld [vmem:[%s5210_s0 + $0x2e0] sm:$0xf0]  ;;  %v2671_v59 = vor.u32 %v3348_v52, %v2670_v51  ;;  %v3467_v1 = vld [vmem:[%s5208_s1 + $0x58] sm:$0xff]  ;;  %v3433_v8 = vld [vmem:[%s5210_s0 + $0x448] sm:$0xf0] }
  0x12   :  { %3698 = vmatpush.bf16.msra.mxu1 %v3459_v4  ;;  %3699 = vmatpush.bf16.msra.mxu2 %v3459_v4  ;;  %v3428_v56 = vld [vmem:[%s5210_s0 + $0x420] sm:$0xf0]  ;;  %v2831_v60 = vor.u32 %v3388_v54, %v2830_v53  ;;  %v3491_v2 = vld [vmem:[%s5208_s1 + $0x118] sm:$0xff]  ;;  %v3313_v10 = vld [vmem:[%s5210_s0 + $0x88] sm:$0xf0] }
  0x13   :  { %3700 = vmatpush.bf16.msra.mxu3 %v3459_v4  ;;  %1431 = vmatpush.bf16.msra.mxu0 %v3459_v4  ;;  %v3308_v58 = vld [vmem:[%s5210_s0 + $0x60] sm:$0xf0]  ;;  %v2991_v61 = vor.u32 %v3428_v56, %v2990_v55  ;;  %v2690_v3 = vld [vmem:[%s5210_s0 + $0x1b8] sm:$0xf]  ;;  %v3353_v4 = vld [vmem:[%s5210_s0 + $0x1c8] sm:$0xf0] }
  0x14   :  { %v2511_v62 = vor.u32 %v3308_v58, %v2510_v57  ;;  %v2691_v11 = vor.u32 %v3353_v4, %v2690_v3  ;;  %v3474_v15 = vld [vmem:[%s5208_s1 + $0x90] sm:$0xff]  ;;  %v2730_v35 = vld [vmem:[%s5210_s0 + $0x208] sm:$0xf]  ;;  %v3363_v36 = vld [vmem:[%s5210_s0 + $0x218] sm:$0xf0] }
  0x15   :  { %v3482_v16 = vld [vmem:[%s5208_s1 + $0xd0] sm:$0xff]  ;;  %v2890_v37 = vld [vmem:[%s5210_s0 + $0x348] sm:$0xf]  ;;  %v3403_v38 = vld [vmem:[%s5210_s0 + $0x358] sm:$0xf0] }
  0x16   :  { %3701 = vmatpush.bf16.msra.mxu1 %v3458_v5  ;;  %3702 = vmatpush.bf16.msra.mxu2 %v3458_v5  ;;  %v3466_v17 = vld [vmem:[%s5208_s1 + $0x50] sm:$0xff]  ;;  %v3050_v39 = vld [vmem:[%s5210_s0 + $0x488] sm:$0xf]  ;;  %v3443_v40 = vld [vmem:[%s5210_s0 + $0x498] sm:$0xf0] }
  0x17   :  { %3703 = vmatpush.bf16.msra.mxu3 %v3458_v5  ;;  %1432 = vmatpush.bf16.msra.mxu0 %v3458_v5  ;;  %v2850_v5 = vld [vmem:[%s5210_s0 + $0x2f8] sm:$0xf]  ;;  %v3358_v20 = vld [vmem:[%s5210_s0 + $0x1f0] sm:$0xf0]  ;;  %v2570_v41 = vld [vmem:[%s5210_s0 + $0xc8] sm:$0xf] }
  0x18   :  { %v2851_v12 = vor.u32 %v3393_v6, %v2850_v5  ;;  %v3323_v42 = vld [vmem:[%s5210_s0 + $0xd8] sm:$0xf0]  ;;  %v2750_v51 = vld [vmem:[%s5210_s0 + $0x230] sm:$0xf]  ;;  %v3368_v52 = vld [vmem:[%s5210_s0 + $0x240] sm:$0xf0] }
  0x19   :  { %v2910_v53 = vld [vmem:[%s5210_s0 + $0x370] sm:$0xf]  ;;  %v3408_v54 = vld [vmem:[%s5210_s0 + $0x380] sm:$0xf0]  ;;  %v3090_v3 = vld [vmem:[%s5210_s0 + $0x4d8] sm:$0xf] }
  0x1a   :  { %3704 = vmatpush.bf16.msra.mxu1 %v3457_v7  ;;  %3705 = vmatpush.bf16.msra.mxu2 %v3457_v7  ;;  %v3070_v55 = vld [vmem:[%s5210_s0 + $0x4b0] sm:$0xf]  ;;  %v3448_v56 = vld [vmem:[%s5210_s0 + $0x4c0] sm:$0xf0]  ;;  %v3453_v4 = vld [vmem:[%s5210_s0 + $0x4e8] sm:$0xf0] }
  0x1b   :  { %3706 = vmatpush.bf16.msra.mxu3 %v3457_v7  ;;  %1433 = vmatpush.bf16.msra.mxu0 %v3457_v7  ;;  %v3010_v7 = vld [vmem:[%s5210_s0 + $0x438] sm:$0xf]  ;;  %v2590_v57 = vld [vmem:[%s5210_s0 + $0xf0] sm:$0xf]  ;;  %v3328_v58 = vld [vmem:[%s5210_s0 + $0x100] sm:$0xf0] }
  0x1c   :  { %v3011_v13 = vor.u32 %v3433_v8, %v3010_v7  ;;  %v2610_v5 = vld [vmem:[%s5210_s0 + $0x118] sm:$0xf]  ;;  %v3333_v6 = vld [vmem:[%s5210_s0 + $0x128] sm:$0xf0] }
  0x1e   :  { %3707 = vmatpush.bf16.msra.mxu1 %v3456_v9  ;;  %3708 = vmatpush.bf16.msra.mxu2 %v3456_v9 }
  0x1f   :  { %3709 = vmatpush.bf16.msra.mxu3 %v3456_v9  ;;  %1434 = vmatpush.bf16.msra.mxu0 %v3456_v9  ;;  %v2530_v9 = vld [vmem:[%s5210_s0 + $0x78] sm:$0xf] }
  0x20   :  { %v2531_v14 = vor.u32 %v3313_v10, %v2530_v9  ;;  %v3091_v9 = vor.u32 %v3453_v4, %v3090_v3  ;;  %v2611_v10 = vor.u32 %v3333_v6, %v2610_v5  ;;  %v3311_v5 = vld [vmem:[%s5210_s0 + $0x7c] sm:$0xf]  ;;  %v2532_v6 = vld [vmem:[%s5210_s0 + $0x8c] sm:$0xf0] }
  0x21   :  { %1475 = vmatmul.bf16.vlgmr.msra.gmra.mxu1 %v2631_v21  ;;  %1515 = vmatmul.bf16.vlgmr.msra.gmra.mxu2 %v2791_v22  ;;  %v2870_v21 = vld [vmem:[%s5210_s0 + $0x320] sm:$0xf]  ;;  %v3398_v22 = vld [vmem:[%s5210_s0 + $0x330] sm:$0xf0] }
  0x22   :  { %1765 = vmatpush.bf16.msrb.mxu2 %v3479_v18  ;;  %1555 = vmatmul.bf16.vlgmr.msra.gmra.mxu3 %v2951_v23  ;;  %v3490_v18 = vld [vmem:[%s5208_s1 + $0x110] sm:$0xff]  ;;  %v3030_v23 = vld [vmem:[%s5210_s0 + $0x460] sm:$0xf] }
  0x23   :  { %1934 = vmatpush.bf16.msrb.mxu3 %v3487_v19  ;;  %1435 = vmatmul.bf16.vlgmr.msra.gmra.mxu0 %v2471_v24  ;;  %v2710_v19 = vld [vmem:[%s5210_s0 + $0x1e0] sm:$0xf]  ;;  %v3438_v24 = vld [vmem:[%s5210_s0 + $0x470] sm:$0xf0] }
  0x24   :  { %1596 = vmatpush.bf16.msrb.mxu1 %v3471_v25  ;;  %2103 = vmatpush.bf16.msrb.mxu0 %v1425_v26  ;;  %v2550_v25 = vld [vmem:[%s5210_s0 + $0xa0] sm:$0xf]  ;;  %v3318_v26 = vld [vmem:[%s5210_s0 + $0xb0] sm:$0xf0] }
  0x26   :  { %1766 = vmatpush.bf16.msrb.mxu2 %v3478_v27  ;;  %v2711_v27 = vor.u32 %v3358_v20, %v2710_v19 }
  0x27   :  { %1935 = vmatpush.bf16.msrb.mxu3 %v3486_v28  ;;  %v2871_v28 = vor.u32 %v3398_v22, %v2870_v21 }
  0x28   :  { %1597 = vmatpush.bf16.msrb.mxu1 %v3470_v29  ;;  %2104 = vmatpush.bf16.msrb.mxu0 %v3494_v30  ;;  %v3031_v29 = vor.u32 %v3438_v24, %v3030_v23  ;;  %v2551_v30 = vor.u32 %v3318_v26, %v2550_v25 }
  0x2a   :  { %1767 = vmatpush.bf16.msrb.mxu2 %v3477_v31  ;;  %v3473_v31 = vld [vmem:[%s5208_s1 + $0x88] sm:$0xff] }
  0x2b   :  { %1936 = vmatpush.bf16.msrb.mxu3 %v3485_v32  ;;  %v3481_v32 = vld [vmem:[%s5208_s1 + $0xc8] sm:$0xff] }
  0x2c   :  { %1598 = vmatpush.bf16.msrb.mxu1 %v3469_v33  ;;  %2105 = vmatpush.bf16.msrb.mxu0 %v3493_v34  ;;  %v3465_v33 = vld [vmem:[%s5208_s1 + $0x48] sm:$0xff] }
  0x2d   :  { %v3489_v34 = vld [vmem:[%s5208_s1 + $0x108] sm:$0xff] }
  0x2e   :  { %1768 = vmatpush.bf16.msrb.mxu2 %v3476_v47  ;;  %v3472_v47 = vld [vmem:[%s5208_s1 + $0x80] sm:$0xff] }
  0x2f   :  { %1937 = vmatpush.bf16.msrb.mxu3 %v3484_v48  ;;  %v3480_v48 = vld [vmem:[%s5208_s1 + $0xc0] sm:$0xff] }
  0x30   :  { %1599 = vmatpush.bf16.msrb.mxu1 %v3468_v49  ;;  %2106 = vmatpush.bf16.msrb.mxu0 %v3492_v50  ;;  %v3464_v49 = vld [vmem:[%s5208_s1 + $0x40] sm:$0xff] }
  0x31   :  { %1480 = vmatmul.bf16.gmra.mxu1 %v2651_v43  ;;  %1520 = vmatmul.bf16.gmra.mxu2 %v2811_v44  ;;  %v2731_v43 = vor.u32 %v3363_v36, %v2730_v35  ;;  %v2891_v44 = vor.u32 %v3403_v38, %v2890_v37  ;;  %v3488_v50 = vld [vmem:[%s5208_s1 + $0x100] sm:$0xff]  ;;  %v2506_v35 = vld [vmem:[%s5210_s0 + $0x38] sm:$0xf]  ;;  %v3305_v36 = vld [vmem:[%s5210_s0 + $0x48] sm:$0xf0] }
  0x32   :  { %1560 = vmatmul.bf16.gmra.mxu3 %v2971_v45  ;;  %1769 = vmatpush.bf16.msrb.mxu2 %v3475_v63  ;;  %v3051_v45 = vor.u32 %v3443_v40, %v3050_v39  ;;  %v2770_v63 = vld [vmem:[%s5210_s0 + $0x258] sm:$0xf] }
  0x33   :  { %1440 = vmatmul.bf16.gmra.mxu0 %v2491_v46  ;;  %1938 = vmatpush.bf16.msrb.mxu3 %v3483_v0  ;;  %v2571_v46 = vor.u32 %v3323_v42, %v2570_v41  ;;  %v3373_v0 = vld [vmem:[%s5210_s0 + $0x268] sm:$0xf0] }
  0x34   :  { %1600 = vmatpush.bf16.msrb.mxu1 %v3467_v1  ;;  %2107 = vmatpush.bf16.msrb.mxu0 %v3491_v2  ;;  %v2930_v1 = vld [vmem:[%s5210_s0 + $0x398] sm:$0xf]  ;;  %v3413_v2 = vld [vmem:[%s5210_s0 + $0x3a8] sm:$0xf0]  ;;  %v2771_v7 = vor.u32 %v3373_v0, %v2770_v63 }
  0x35   :  { %v2931_v8 = vor.u32 %v3413_v2, %v2930_v1 }
  0x36   :  { %1770 = vmatpush.bf16.msrb.mxu2 %v3474_v15  ;;  %v3297_v15 = vld [vmem:[%s5210_s0 + $0xc] sm:$0xf] }
  0x37   :  { %1939 = vmatpush.bf16.msrb.mxu3 %v3482_v16  ;;  %v2480_v16 = vld [vmem:[%s5210_s0 + $0x1c] sm:$0xf0] }
  0x38   :  { %1601 = vmatpush.bf16.msrb.mxu1 %v3466_v17  ;;  %2108 = vmatpush.bf16.msrb.mxu0 %v3490_v18  ;;  %v2486_v17 = vld [vmem:[%s5210_s0 + $0x10] sm:$0xf]  ;;  %v3300_v18 = vld [vmem:[%s5210_s0 + $0x20] sm:$0xf0]  ;;  %v2483_v22 = vor.u32 %v3297_v15, %v2480_v16  ;;  %v2535_v15 = vor.u32 %v3311_v5, %v2532_v6 }
  0x39   :  { %v2487_v23 = vor.u32 %v3300_v18, %v2486_v17  ;;  %v2578_v5 = vld [vmem:[%s5210_s0 + $0xd0] sm:$0xf]  ;;  %v3324_v6 = vld [vmem:[%s5210_s0 + $0xe0] sm:$0xf0] }
  0x3a   :  { %1771 = vmatpush.bf16.msrb.mxu2 %v3473_v31  ;;  %v2498_v31 = vld [vmem:[%s5210_s0 + $0x30] sm:$0xf] }
  0x3b   :  { %1940 = vmatpush.bf16.msrb.mxu3 %v3481_v32  ;;  %v3304_v32 = vld [vmem:[%s5210_s0 + $0x40] sm:$0xf0] }
  0x3c   :  { %1602 = vmatpush.bf16.msrb.mxu1 %v3465_v33  ;;  %2109 = vmatpush.bf16.msrb.mxu0 %v3489_v34  ;;  %v3302_v33 = vld [vmem:[%s5210_s0 + $0x34] sm:$0xf]  ;;  %v2500_v34 = vld [vmem:[%s5210_s0 + $0x44] sm:$0xf0]  ;;  %v2499_v40 = vor.u32 %v3304_v32, %v2498_v31  ;;  %v3316_v31 = vld [vmem:[%s5210_s0 + $0xa4] sm:$0xf] }
  0x3d   :  { %v2503_v42 = vor.u32 %v3302_v33, %v2500_v34  ;;  %v2552_v32 = vld [vmem:[%s5210_s0 + $0xb4] sm:$0xf0]  ;;  %v2558_v33 = vld [vmem:[%s5210_s0 + $0xa8] sm:$0xf]  ;;  %v3319_v34 = vld [vmem:[%s5210_s0 + $0xb8] sm:$0xf0] }
  0x3e   :  { %1772 = vmatpush.bf16.msrb.mxu2 %v3472_v47 }
  0x3f   :  { %1941 = vmatpush.bf16.msrb.mxu3 %v3480_v48 }
  0x40   :  { %1603 = vmatpush.bf16.msrb.mxu1 %v3464_v49  ;;  %2110 = vmatpush.bf16.msrb.mxu0 %v3488_v50  ;;  %v3306_v49 = vld [vmem:[%s5210_s0 + $0x54] sm:$0xf]  ;;  %v2512_v50 = vld [vmem:[%s5210_s0 + $0x64] sm:$0xf0] }
  0x41   :  { %1485 = vmatmul.bf16.gmra.mxu1 %v2671_v59  ;;  %1525 = vmatmul.bf16.gmra.mxu2 %v2831_v60  ;;  %v2751_v59 = vor.u32 %v3368_v52, %v2750_v51  ;;  %v2911_v60 = vor.u32 %v3408_v54, %v2910_v53  ;;  %v2518_v51 = vld [vmem:[%s5210_s0 + $0x58] sm:$0xf]  ;;  %v3309_v52 = vld [vmem:[%s5210_s0 + $0x68] sm:$0xf0]  ;;  %v3307_v53 = vld [vmem:[%s5210_s0 + $0x5c] sm:$0xf] }
  0x42   :  { %1565 = vmatmul.bf16.gmra.mxu3 %v2991_v61  ;;  %v3071_v61 = vor.u32 %v3448_v56, %v3070_v55  ;;  %v2520_v54 = vld [vmem:[%s5210_s0 + $0x6c] sm:$0xf0]  ;;  %v2526_v55 = vld [vmem:[%s5210_s0 + $0x60] sm:$0xf]  ;;  %v3310_v56 = vld [vmem:[%s5210_s0 + $0x70] sm:$0xf0] }
  0x43   :  { %1445 = vmatmul.bf16.gmra.mxu0 %v2511_v62  ;;  %v2591_v62 = vor.u32 %v3328_v58, %v2590_v57  ;;  %v2527_v63 = vor.u32 %v3310_v56, %v2526_v55 }
  0x51   :  { %1490 = vmatmul.bf16.gmra.mxu1 %v2691_v11  ;;  %1530 = vmatmul.bf16.gmra.mxu2 %v2851_v12  ;;  %v3296_v11 = vld [vmem:[%s5210_s0 + $0x4] sm:$0xf]  ;;  %v2472_v12 = vld [vmem:[%s5210_s0 + $0x14] sm:$0xf0] }
  0x52   :  { %1570 = vmatmul.bf16.gmra.mxu3 %v3011_v13  ;;  %v2478_v13 = vld [vmem:[%s5210_s0 + $0x8] sm:$0xf]  ;;  %v2475_v19 = vor.u32 %v3296_v11, %v2472_v12  ;;  %v3315_v12 = vld [vmem:[%s5210_s0 + $0x98] sm:$0xf0] }
  0x53   :  { %1450 = vmatmul.bf16.gmra.mxu0 %v2531_v14  ;;  %v3299_v14 = vld [vmem:[%s5210_s0 + $0x18] sm:$0xf0]  ;;  %v2546_v11 = vld [vmem:[%s5210_s0 + $0x88] sm:$0xf] }
  0x54   :  { %v2479_v20 = vor.u32 %v3299_v14, %v2478_v13 }
  0x61   :  { %1495 = vmatmul.bf16.gmra.mxu1 %v2711_v27  ;;  %1535 = vmatmul.bf16.gmra.mxu2 %v2871_v28 }
  0x62   :  { %1575 = vmatmul.bf16.gmra.mxu3 %v3031_v29  ;;  %v3301_v29 = vld [vmem:[%s5210_s0 + $0x2c] sm:$0xf] }
  0x63   :  { %1455 = vmatmul.bf16.gmra.mxu0 %v2551_v30  ;;  %v2492_v30 = vld [vmem:[%s5210_s0 + $0x3c] sm:$0xf0] }
  0x64   :  { %v2495_v39 = vor.u32 %v3301_v29, %v2492_v30 }
  0x71   :  { %1500 = vmatmul.bf16.gmra.mxu1 %v2731_v43  ;;  %1540 = vmatmul.bf16.gmra.mxu2 %v2891_v44  ;;  %v2507_v43 = vor.u32 %v3305_v36, %v2506_v35  ;;  %v3317_v35 = vld [vmem:[%s5210_s0 + $0xac] sm:$0xf]  ;;  %v2560_v36 = vld [vmem:[%s5210_s0 + $0xbc] sm:$0xf0] }
  0x72   :  { %1580 = vmatmul.bf16.gmra.mxu3 %v3051_v45 }
  0x73   :  { %1460 = vmatmul.bf16.gmra.mxu0 %v2571_v46 }
  0x81   :  { %1505 = vmatmul.bf16.gmra.mxu1 %v2751_v59  ;;  %1545 = vmatmul.bf16.gmra.mxu2 %v2911_v60  ;;  %v2515_v59 = vor.u32 %v3306_v49, %v2512_v50  ;;  %v2519_v60 = vor.u32 %v3309_v52, %v2518_v51  ;;  %v2555_v49 = vor.u32 %v3316_v31, %v2552_v32 }
  0x82   :  { %1585 = vmatmul.bf16.gmra.mxu3 %v3071_v61  ;;  %v2559_v50 = vor.u32 %v3319_v34, %v2558_v33  ;;  %v2563_v52 = vor.u32 %v3317_v35, %v2560_v36 }
  0x83   :  { %1465 = vmatmul.bf16.gmra.mxu0 %v2591_v62  ;;  %v2523_v62 = vor.u32 %v3307_v53, %v2520_v54 }
  0x91   :  { %1510 = vmatmul.bf16.gmra.mxu1 %v2771_v7  ;;  %1550 = vmatmul.bf16.gmra.mxu2 %v2931_v8  ;;  %v2538_v7 = vld [vmem:[%s5210_s0 + $0x80] sm:$0xf]  ;;  %v3314_v8 = vld [vmem:[%s5210_s0 + $0x90] sm:$0xf0] }
  0x92   :  { %1590 = vmatmul.bf16.gmra.mxu3 %v3091_v9  ;;  %v3312_v9 = vld [vmem:[%s5210_s0 + $0x84] sm:$0xf]  ;;  %v2539_v16 = vor.u32 %v3314_v8, %v2538_v7  ;;  %v3322_v7 = vld [vmem:[%s5210_s0 + $0xd4] sm:$0xf]  ;;  %v2580_v8 = vld [vmem:[%s5210_s0 + $0xe4] sm:$0xf0] }
  0x93   :  { %1470 = vmatmul.bf16.gmra.mxu0 %v2611_v10  ;;  %v2540_v10 = vld [vmem:[%s5210_s0 + $0x94] sm:$0xf0] }
  0x94   :  { %v2543_v18 = vor.u32 %v3312_v9, %v2540_v10  ;;  %v2586_v9 = vld [vmem:[%s5210_s0 + $0xd8] sm:$0xf]  ;;  %v3325_v10 = vld [vmem:[%s5210_s0 + $0xe8] sm:$0xf0] }
  0x95   :  { %v2587_v31 = vor.u32 %v3325_v10, %v2586_v9 }
  0x9e   :  { %v4069_v21 = vpop.f32.mrf.mxu1 }
  0xa0   :  { %v4071_v24 = vpop.f32.mrf.mxu0 }
  0xa1   :  { %1604 = vmatmul.bf16.vlgmr.msrb.gmra.mxu1 %v2475_v19  ;;  %1773 = vmatmul.bf16.vlgmr.msrb.gmra.mxu2 %v2479_v20  ;;  %v2547_v19 = vor.u32 %v3315_v12, %v2546_v11 }
  0xa2   :  { %1942 = vmatmul.bf16.vlgmr.msrb.gmra.mxu3 %v2483_v22 }
  0xa3   :  { %3264 = vmatmul.msk.bf16.vlgmr.msrb.gmra.mxu0 %vm1326_vm1, %v2487_v23 }
  0xa4   :  { %v4074_v25 = vpop.f32.mrf.mxu2 }
  0xa5   :  { %v4076_v26 = vpop.f32.mrf.mxu3 }
  0xa6   :  { %5212 = vst [vmem:[#allocation2_spill] sm:$0xff] %v4076_v26  ;;  %v4078_v27 = vpop.f32.mrf.mxu1  ;;  %v4400_v26 = vld [vmem:[%s5209_s2] ss:$0 sm:$0xff] }
  0xa8   :  { %v4080_v28 = vpop.f32.mrf.mxu0 }
  0xac   :  { %v4106_v37 = vpop.f32.mrf.mxu2 }
  0xad   :  { %v4108_v38 = vpop.f32.mrf.mxu3 }
  0xae   :  { %5213 = vst [vmem:[#allocation3_spill] sm:$0xff] %v4108_v38  ;;  %v4110_v41 = vpop.f32.mrf.mxu1 }
  0xb0   :  { %v4112_v44 = vpop.f32.mrf.mxu0 }
  0xb1   :  { %1609 = vmatmul.bf16.gmra.mxu1 %v2495_v39  ;;  %1778 = vmatmul.bf16.gmra.mxu2 %v2499_v40  ;;  %v2566_v39 = vld [vmem:[%s5210_s0 + $0xb0] sm:$0xf]  ;;  %v3320_v40 = vld [vmem:[%s5210_s0 + $0xc0] sm:$0xf0] }
  0xb2   :  { %1947 = vmatmul.bf16.gmra.mxu3 %v2503_v42  ;;  %v2567_v53 = vor.u32 %v3320_v40, %v2566_v39  ;;  %v3326_v39 = vld [vmem:[%s5210_s0 + $0xf4] sm:$0xf]  ;;  %v2592_v40 = vld [vmem:[%s5210_s0 + $0x104] sm:$0xf0] }
  0xb3   :  { %3265 = vmatmul.msk.bf16.gmra.mxu0 %vm1326_vm1, %v2507_v43 }
  0xb4   :  { %v4115_v45 = vpop.f32.mrf.mxu2 }
  0xb5   :  { %v4117_v46 = vpop.f32.mrf.mxu3 }
  0xb6   :  { %5214 = vst [vmem:[#allocation4_spill] sm:$0xff] %v4117_v46  ;;  %v4119_v47 = vpop.f32.mrf.mxu1 }
  0xb8   :  { %v4121_v48 = vpop.f32.mrf.mxu0 }
  0xbc   :  { %v4147_v57 = vpop.f32.mrf.mxu2 }
  0xbd   :  { %v4149_v58 = vpop.f32.mrf.mxu3 }
  0xbe   :  { %5215 = vst [vmem:[#allocation5_spill] sm:$0xff] %v4149_v58  ;;  %v4151_v61 = vpop.f32.mrf.mxu1 }
  0xc0   :  { %v4153_v0 = vpop.f32.mrf.mxu0 }
  0xc1   :  { %1614 = vmatmul.bf16.gmra.mxu1 %v2515_v59  ;;  %1783 = vmatmul.bf16.gmra.mxu2 %v2519_v60 }
  0xc2   :  { %1952 = vmatmul.bf16.gmra.mxu3 %v2523_v62  ;;  %v3321_v62 = vld [vmem:[%s5210_s0 + $0xcc] sm:$0xf] }
  0xc3   :  { %3266 = vmatmul.msk.bf16.gmra.mxu0 %vm1326_vm1, %v2527_v63  ;;  %v2572_v63 = vld [vmem:[%s5210_s0 + $0xdc] sm:$0xf0] }
  0xc4   :  { %v4156_v1 = vpop.f32.mrf.mxu2 }
  0xc5   :  { %v4158_v2 = vpop.f32.mrf.mxu3 }
  0xc6   :  { %5216 = vst [vmem:[#allocation6_spill] sm:$0xff] %v4158_v2  ;;  %v4160_v3 = vpop.f32.mrf.mxu1 }
  0xc8   :  { %v4162_v4 = vpop.f32.mrf.mxu0 }
  0xcc   :  { %v4188_v13 = vpop.f32.mrf.mxu2 }
  0xcd   :  { %v4190_v14 = vpop.f32.mrf.mxu3 }
  0xce   :  { %5217 = vst [vmem:[#allocation7_spill] sm:$0xff] %v4190_v14  ;;  %v4192_v17 = vpop.f32.mrf.mxu1 }
  0xd0   :  { %v4194_v20 = vpop.f32.mrf.mxu0 }
  0xd1   :  { %1619 = vmatmul.bf16.gmra.mxu1 %v2535_v15  ;;  %1788 = vmatmul.bf16.gmra.mxu2 %v2539_v16  ;;  %v2575_v15 = vor.u32 %v3321_v62, %v2572_v63  ;;  %v2579_v16 = vor.u32 %v3324_v6, %v2578_v5  ;;  %v2606_v62 = vld [vmem:[%s5210_s0 + $0x100] sm:$0xf]  ;;  %v3330_v63 = vld [vmem:[%s5210_s0 + $0x110] sm:$0xf0] }
  0xd2   :  { %1957 = vmatmul.bf16.gmra.mxu3 %v2543_v18 }
  0xd3   :  { %3267 = vmatmul.msk.bf16.gmra.mxu0 %vm1326_vm1, %v2547_v19  ;;  %v2583_v19 = vor.u32 %v3322_v7, %v2580_v8  ;;  %v2595_v7 = vor.u32 %v3326_v39, %v2592_v40  ;;  %v3331_v39 = vld [vmem:[%s5210_s0 + $0x11c] sm:$0xf]  ;;  %v2612_v40 = vld [vmem:[%s5210_s0 + $0x12c] sm:$0xf0] }
  0xd4   :  { %v4197_v22 = vpop.f32.mrf.mxu2 }
  0xd5   :  { %v4199_v23 = vpop.f32.mrf.mxu3 }
  0xd6   :  { %5218 = vst [vmem:[#allocation8_spill] sm:$0xff] %v4199_v23  ;;  %v4201_v29 = vpop.f32.mrf.mxu1 }
  0xd8   :  { %v4203_v30 = vpop.f32.mrf.mxu0 }
  0xdc   :  { %v4229_v42 = vpop.f32.mrf.mxu2 }
  0xdd   :  { %5219 = vst [vmem:[#allocation9_spill] sm:$0xff] %v4229_v42  ;;  %v4231_v43 = vpop.f32.mrf.mxu3 }
  0xde   :  { %5220 = vst [vmem:[#allocation10_spill] sm:$0xff] %v4231_v43  ;;  %v4233_v51 = vpop.f32.mrf.mxu1 }
  0xe0   :  { %v4235_v54 = vpop.f32.mrf.mxu0 }
  0xe1   :  { %1624 = vmatmul.bf16.gmra.mxu1 %v2555_v49  ;;  %1793 = vmatmul.bf16.gmra.mxu2 %v2559_v50  ;;  %v2598_v49 = vld [vmem:[%s5210_s0 + $0xf8] sm:$0xf]  ;;  %v3329_v50 = vld [vmem:[%s5210_s0 + $0x108] sm:$0xf0] }
  0xe2   :  { %1962 = vmatmul.bf16.gmra.mxu3 %v2563_v52  ;;  %v3327_v52 = vld [vmem:[%s5210_s0 + $0xfc] sm:$0xf]  ;;  %v2599_v8 = vor.u32 %v3329_v50, %v2598_v49  ;;  %v2618_v49 = vld [vmem:[%s5210_s0 + $0x120] sm:$0xf]  ;;  %v3334_v50 = vld [vmem:[%s5210_s0 + $0x130] sm:$0xf0] }
  0xe3   :  { %3268 = vmatmul.msk.bf16.gmra.mxu0 %vm1326_vm1, %v2567_v53  ;;  %v2600_v53 = vld [vmem:[%s5210_s0 + $0x10c] sm:$0xf0] }
  0xe4   :  { %v4238_v55 = vpop.f32.mrf.mxu2  ;;  %v2603_v10 = vor.u32 %v3327_v52, %v2600_v53  ;;  %v3332_v52 = vld [vmem:[%s5210_s0 + $0x124] sm:$0xf]  ;;  %v2620_v53 = vld [vmem:[%s5210_s0 + $0x134] sm:$0xf0] }
  0xe5   :  { %5221 = vst [vmem:[#allocation11_spill] sm:$0xff] %v4238_v55  ;;  %v4240_v56 = vpop.f32.mrf.mxu3  ;;  %v1442_v55 = vadd.f32 %v4400_v26, %v4112_v44  ;;  %v3346_v44 = vld [vmem:[%s5210_s0 + $0x194] sm:$0xf] }
  0xe6   :  { %5222 = vst [vmem:[#allocation12_spill] sm:$0xff] %v4240_v56  ;;  %v4242_v59 = vpop.f32.mrf.mxu1 }
  0xe8   :  { %v4244_v60 = vpop.f32.mrf.mxu0 }
  0xec   :  { %v4270_v11 = vpop.f32.mrf.mxu2 }
  0xed   :  { %5223 = vst [vmem:[#allocation13_spill] sm:$0xff] %v4270_v11  ;;  %v4272_v12 = vpop.f32.mrf.mxu3 }
  0xee   :  { %5224 = vst [vmem:[#allocation14_spill] sm:$0xff] %v4272_v12  ;;  %v4274_v18 = vpop.f32.mrf.mxu1  ;;  %v2623_v12 = vor.u32 %v3332_v52, %v2620_v53  ;;  %v2646_v52 = vld [vmem:[%s5210_s0 + $0x150] sm:$0xf]  ;;  %v3340_v53 = vld [vmem:[%s5210_s0 + $0x160] sm:$0xf0] }
  0xef   :  { %v2647_v46 = vor.u32 %v3340_v53, %v2646_v52  ;;  %v3341_v52 = vld [vmem:[%s5210_s0 + $0x16c] sm:$0xf] }
  0xf0   :  { %v4276_v32 = vpop.f32.mrf.mxu0 }
  0xf1   :  { %1629 = vmatmul.bf16.gmra.mxu1 %v2575_v15  ;;  %1798 = vmatmul.bf16.gmra.mxu2 %v2579_v16  ;;  %v2607_v15 = vor.u32 %v3330_v63, %v2606_v62  ;;  %v2626_v62 = vld [vmem:[%s5210_s0 + $0x128] sm:$0xf]  ;;  %v3335_v63 = vld [vmem:[%s5210_s0 + $0x138] sm:$0xf0] }
  0xf2   :  { %1967 = vmatmul.bf16.gmra.mxu3 %v2583_v19  ;;  %v2627_v56 = vor.u32 %v3335_v63, %v2626_v62 }
  0xf3   :  { %3269 = vmatmul.msk.bf16.gmra.mxu0 %vm1326_vm1, %v2587_v31 }
  0xf4   :  { %v4279_v33 = vpop.f32.mrf.mxu2 }
  0xf5   :  { %5225 = vst [vmem:[#allocation15_spill] sm:$0xff] %v4279_v33  ;;  %v4281_v34 = vpop.f32.mrf.mxu3 }
  0xf6   :  { %5226 = vst [vmem:[#allocation16_spill] sm:$0xff] %v4281_v34  ;;  %v4283_v35 = vpop.f32.mrf.mxu1 }
  0xf8   :  { %v4285_v36 = vpop.f32.mrf.mxu0 }
  0xfc   :  { %v4311_v5 = vpop.f32.mrf.mxu2 }
  0xfd   :  { %5227 = vst [vmem:[#allocation17_spill] sm:$0xff] %v4311_v5  ;;  %v4313_v6 = vpop.f32.mrf.mxu3 }
  0xfe   :  { %5228 = vst [vmem:[#allocation18_spill] sm:$0xff] %v4313_v6  ;;  %v4315_v9 = vpop.f32.mrf.mxu1 }
 0x100   :  { %v4317_v16 = vpop.f32.mrf.mxu0 }
 0x101   :  { %1634 = vmatmul.bf16.gmra.mxu1 %v2595_v7  ;;  %1803 = vmatmul.bf16.gmra.mxu2 %v2599_v8 }
 0x102   :  { %1972 = vmatmul.bf16.gmra.mxu3 %v2603_v10  ;;  %v2615_v10 = vor.u32 %v3331_v39, %v2612_v40  ;;  %v3336_v39 = vld [vmem:[%s5210_s0 + $0x144] sm:$0xf]  ;;  %v2632_v40 = vld [vmem:[%s5210_s0 + $0x154] sm:$0xf0] }
 0x103   :  { %3270 = vmatmul.msk.bf16.gmra.mxu0 %vm1326_vm1, %v2607_v15  ;;  %v2619_v15 = vor.u32 %v3334_v50, %v2618_v49  ;;  %v3337_v49 = vld [vmem:[%s5210_s0 + $0x14c] sm:$0xf]  ;;  %v2640_v50 = vld [vmem:[%s5210_s0 + $0x15c] sm:$0xf0] }
 0x104   :  { %v4320_v19 = vpop.f32.mrf.mxu2  ;;  %v2643_v58 = vor.u32 %v3337_v49, %v2640_v50  ;;  %v1439_v50 = vadd.f32 %v4400_v26, %v4080_v28  ;;  %v3342_v28 = vld [vmem:[%s5210_s0 + $0x174] sm:$0xf] }
 0x105   :  { %5229 = vst [vmem:[#allocation19_spill] sm:$0xff] %v4320_v19  ;;  %v4322_v31 = vpop.f32.mrf.mxu3 }
 0x106   :  { %5230 = vst [vmem:[#allocation20_spill] sm:$0xff] %v4322_v31  ;;  %v4324_v34 = vpop.f32.mrf.mxu1 }
 0x108   :  { %v4326_v6 = vpop.f32.mrf.mxu0 }
 0x10c   :  { %v4352_v7 = vpop.f32.mrf.mxu2 }
 0x10d   :  { %5231 = vst [vmem:[#allocation21_spill] sm:$0xff] %v4352_v7  ;;  %v4354_v8 = vpop.f32.mrf.mxu3 }
 0x10e   :  { %5232 = vst [vmem:[#allocation22_spill] sm:$0xff] %v4354_v8  ;;  %v4356_v31 = vpop.f32.mrf.mxu1 }
 0x110   :  { %v4358_v43 = vpop.f32.mrf.mxu0 }
 0x111   :  { %1639 = vmatmul.bf16.gmra.mxu1 %v2615_v10  ;;  %1808 = vmatmul.bf16.gmra.mxu2 %v2619_v15  ;;  %v2635_v10 = vor.u32 %v3336_v39, %v2632_v40 }
 0x112   :  { %1977 = vmatmul.bf16.gmra.mxu3 %v2623_v12  ;;  %v3339_v12 = vld [vmem:[%s5210_s0 + $0x158] sm:$0xf0] }
 0x113   :  { %3271 = vmatmul.msk.bf16.gmra.mxu0 %vm1326_vm1, %v2627_v56  ;;  %v2638_v56 = vld [vmem:[%s5210_s0 + $0x148] sm:$0xf] }
 0x114   :  { %v4361_v23 = vpop.f32.mrf.mxu2  ;;  %v2639_v15 = vor.u32 %v3339_v12, %v2638_v56 }
 0x115   :  { %5233 = vst [vmem:[#allocation23_spill] sm:$0xff] %v4361_v23  ;;  %v4363_v14 = vpop.f32.mrf.mxu3 }
 0x116   :  { %5234 = vst [vmem:[#allocation24_spill] sm:$0xff] %v4363_v14  ;;  %v4365_v2 = vpop.f32.mrf.mxu1 }
 0x118   :  { %v4367_v8 = vpop.f32.mrf.mxu0 }
 0x11c   :  { %v4393_v62 = vpop.f32.mrf.mxu2 }
 0x11d   :  { %5235 = vst [vmem:[#allocation25_spill] sm:$0xff] %v4393_v62  ;;  %v4395_v63 = vpop.f32.mrf.mxu3  ;;  %v1437_v62 = vadd.f32 %v4400_v26, %v4071_v24  ;;  %v2658_v24 = vld [vmem:[%s5210_s0 + $0x170] sm:$0xf] }
 0x11e   :  { %5236 = vst [vmem:[#allocation26_spill] sm:$0xff] %v4395_v63  ;;  %v1605_v14 = vpop.f32.mrf.mxu1 }
 0x11f   :  { %v1606_v39 = vadd.f32 %v1605_v14, %v1437_v62  ;;  %v2660_v62 = vld [vmem:[%s5210_s0 + $0x184] sm:$0xf0] }
 0x120   :  { %v2112_v38 = vpop.f32.mrf.mxu0 }
 0x121   :  { %1644 = vmatmul.bf16.gmra.mxu1 %v2635_v10  ;;  %1813 = vmatmul.bf16.gmra.mxu2 %v2639_v15  ;;  %v3345_v10 = vld [vmem:[%s5210_s0 + $0x188] sm:$0xf0] }
 0x122   :  { %1982 = vmatmul.bf16.gmra.mxu3 %v2643_v58  ;;  %v3344_v58 = vld [vmem:[%s5210_s0 + $0x180] sm:$0xf0] }
 0x123   :  { %3272 = vmatmul.msk.bf16.gmra.mxu0 %vm1326_vm1, %v2647_v46  ;;  %v2652_v46 = vld [vmem:[%s5210_s0 + $0x17c] sm:$0xf0]  ;;  %v2659_v19 = vor.u32 %v3344_v58, %v2658_v24 }
 0x124   :  { %v1774_v63 = vpop.f32.mrf.mxu2  ;;  %v2655_v7 = vor.u32 %v3341_v52, %v2652_v46 }
 0x125   :  { %v1943_v40 = vpop.f32.mrf.mxu3  ;;  %v1775_v12 = vadd.f32 %v1774_v63, %v1606_v39  ;;  %v2666_v63 = vld [vmem:[%s5210_s0 + $0x178] sm:$0xf] }
 0x126   :  { %v1607_v56 = vpop.f32.mrf.mxu1 }
 0x127   :  { %v1944_v14 = vadd.f32 %v1943_v40, %v1775_v12  ;;  %v1608_v53 = vadd.f32 %v1607_v56, %v1439_v50  ;;  %v2663_v40 = vor.u32 %v3342_v28, %v2660_v62  ;;  %v2667_v56 = vor.u32 %v3345_v10, %v2666_v63  ;;  %v2686_v28 = vld [vmem:[%s5210_s0 + $0x1a0] sm:$0xf] }
 0x128   :  { %v2114_v49 = vpop.f32.mrf.mxu0 }
 0x129   :  { %v2113_v12 = vadd.f32 %v2112_v38, %v1944_v14  ;;  %v3350_v14 = vld [vmem:[%s5210_s0 + $0x1b0] sm:$0xf0] }
 0x12b   :  { %v2272_v42 = vmax.f32 %v2113_v12, 0.0 }
 0x12c   :  { %v1776_v15 = vpop.f32.mrf.mxu2 }
 0x12d   :  { %v1777_v39 = vadd.f32 %v1776_v15, %v1608_v53  ;;  %v1945_v23 = vpop.f32.mrf.mxu3 }
 0x12e   :  { %v1610_v5 = vpop.f32.mrf.mxu1 }
 0x12f   :  { %v1946_v50 = vadd.f32 %v1945_v23, %v1777_v39  ;;  %v1611_v46 = vadd.f32 %v1610_v5, %v1442_v55  ;;  %v2678_v55 = vld [vmem:[%s5210_s0 + $0x198] sm:$0xf] }
 0x130   :  { %v2117_v33 = vpop.f32.mrf.mxu0 }
 0x131   :  { %v2115_v11 = vadd.f32 %v2114_v49, %v1946_v50  ;;  %1649 = vmatmul.bf16.gmra.mxu1 %v2655_v7  ;;  %1818 = vmatmul.bf16.gmra.mxu2 %v2659_v19  ;;  %v1444_v19 = vadd.f32 %v4400_v26, %v4121_v48  ;;  %v3347_v48 = vld [vmem:[%s5210_s0 + $0x19c] sm:$0xf]  ;;  %v2680_v49 = vld [vmem:[%s5210_s0 + $0x1ac] sm:$0xf0]  ;;  %v2687_v50 = vor.u32 %v3350_v14, %v2686_v28 }
 0x132   :  { %1987 = vmatmul.bf16.gmra.mxu3 %v2663_v40  ;;  %v2683_v12 = vor.u32 %v3347_v48, %v2680_v49  ;;  %v1449_v48 = vadd.f32 %v4400_v26, %v4162_v4  ;;  %v3354_v49 = vld [vmem:[%s5210_s0 + $0x1d0] sm:$0xf0]  ;;  %v3352_v4 = vld [vmem:[%s5210_s0 + $0x1c4] sm:$0xf] }
 0x133   :  { %3273 = vmatmul.msk.bf16.gmra.mxu0 %vm1326_vm1, %v2667_v56  ;;  %v2273_v53 = vmax.f32 %v2115_v11, 0.0  ;;  %v3349_v11 = vld [vmem:[%s5210_s0 + $0x1a8] sm:$0xf0] }
 0x134   :  { %v1779_v15 = vpop.f32.mrf.mxu2  ;;  %v2679_v40 = vor.u32 %v3349_v11, %v2678_v55 }
 0x135   :  { %v3498_v52 = vpack.c.bf16 %v2273_v53, %v2272_v42  ;;  %v1948_v24 = vpop.f32.mrf.mxu3  ;;  %v1780_v38 = vadd.f32 %v1779_v15, %v1611_v46  ;;  %v2672_v42 = vld [vmem:[%s5210_s0 + $0x1a4] sm:$0xf0] }
 0x136   :  { %v1612_v58 = vpop.f32.mrf.mxu1  ;;  %v2675_v39 = vor.u32 %v3346_v44, %v2672_v42 }
 0x137   :  { %3499 = vst [vmem:[%s5211_s3] sm:$0xff] %v3498_v52   ;;  %v1949_v5 = vadd.f32 %v1948_v24, %v1780_v38  ;;  %v1613_v7 = vadd.f32 %v1612_v58, %v1444_v19  ;;  %v1447_v24 = vadd.f32 %v4400_v26, %v4153_v0  ;;  %v3351_v0 = vld [vmem:[%s5210_s0 + $0x1bc] sm:$0xf] }
 0x138   :  { %v2119_v23 = vpop.f32.mrf.mxu0 }
 0x139   :  { %v2118_v53 = vadd.f32 %v2117_v33, %v1949_v5  ;;  %v2692_v5 = vld [vmem:[%s5210_s0 + $0x1cc] sm:$0xf0] }
 0x13b   :  { %v2274_v58 = vmax.f32 %v2118_v53, 0.0 }
 0x13c   :  { %v1781_v62 = vpop.f32.mrf.mxu2 }
 0x13d   :  { %v1782_v63 = vadd.f32 %v1781_v62, %v1613_v7  ;;  %v1950_v10 = vpop.f32.mrf.mxu3  ;;  %v2698_v7 = vld [vmem:[%s5210_s0 + $0x1c0] sm:$0xf]  ;;  %v2700_v62 = vld [vmem:[%s5210_s0 + $0x1d4] sm:$0xf0] }
 0x13e   :  { %v1615_v56 = vpop.f32.mrf.mxu1 }
 0x13f   :  { %v1951_v15 = vadd.f32 %v1950_v10, %v1782_v63  ;;  %v1616_v42 = vadd.f32 %v1615_v56, %v1447_v24  ;;  %v2706_v63 = vld [vmem:[%s5210_s0 + $0x1c8] sm:$0xf]  ;;  %v3355_v10 = vld [vmem:[%s5210_s0 + $0x1d8] sm:$0xf0] }
 0x140   :  { %v2122_v52 = vpop.f32.mrf.mxu0 }
 0x141   :  { %v2120_v46 = vadd.f32 %v2119_v23, %v1951_v15  ;;  %1654 = vmatmul.bf16.gmra.mxu1 %v2675_v39  ;;  %1823 = vmatmul.bf16.gmra.mxu2 %v2679_v40  ;;  %v2703_v15 = vor.u32 %v3352_v4, %v2700_v62  ;;  %v2718_v4 = vld [vmem:[%s5210_s0 + $0x1e8] sm:$0xf] }
 0x142   :  { %1992 = vmatmul.bf16.gmra.mxu3 %v2683_v12  ;;  %v2695_v12 = vor.u32 %v3351_v0, %v2692_v5 }
 0x143   :  { %3274 = vmatmul.msk.bf16.gmra.mxu0 %vm1326_vm1, %v2687_v50  ;;  %v2275_v38 = vmax.f32 %v2120_v46, 0.0  ;;  %v2699_v50 = vor.u32 %v3354_v49, %v2698_v7  ;;  %v2707_v46 = vor.u32 %v3355_v10, %v2706_v63  ;;  %v1454_v7 = vadd.f32 %v4400_v26, %v4203_v30  ;;  %v2712_v49 = vld [vmem:[%s5210_s0 + $0x1f4] sm:$0xf0]  ;;  %v3357_v30 = vld [vmem:[%s5210_s0 + $0x1ec] sm:$0xf] }
 0x144   :  { %v1784_v19 = vpop.f32.mrf.mxu2  ;;  %v2720_v63 = vld [vmem:[%s5210_s0 + $0x1fc] sm:$0xf0]  ;;  %v2726_v10 = vld [vmem:[%s5210_s0 + $0x1f0] sm:$0xf] }
 0x145   :  { %v3503_v44 = vpack.c.bf16 %v2275_v38, %v2274_v58  ;;  %v1953_v55 = vpop.f32.mrf.mxu3  ;;  %v1785_v33 = vadd.f32 %v1784_v19, %v1616_v42 }
 0x146   :  { %v1617_v11 = vpop.f32.mrf.mxu1 }
 0x147   :  { %3655 = vst [vmem:[%s5211_s3 + $0x8] sm:$0xff] %v3503_v44   ;;  %v1954_v28 = vadd.f32 %v1953_v55, %v1785_v33  ;;  %v1618_v14 = vadd.f32 %v1617_v11, %v1449_v48  ;;  %v1452_v44 = vadd.f32 %v4400_v26, %v4194_v20  ;;  %v3356_v20 = vld [vmem:[%s5210_s0 + $0x1e4] sm:$0xf] }
 0x148   :  { %v2124_v23 = vpop.f32.mrf.mxu0 }
 0x149   :  { %v2123_v24 = vadd.f32 %v2122_v52, %v1954_v28  ;;  %v3359_v28 = vld [vmem:[%s5210_s0 + $0x1f8] sm:$0xf0] }
 0x14b   :  { %v2276_v42 = vmax.f32 %v2123_v24, 0.0 }
 0x14c   :  { %v1786_v39 = vpop.f32.mrf.mxu2 }
 0x14d   :  { %v1787_v40 = vadd.f32 %v1786_v39, %v1618_v14  ;;  %v1955_v56 = vpop.f32.mrf.mxu3  ;;  %v3360_v39 = vld [vmem:[%s5210_s0 + $0x200] sm:$0xf0] }
 0x14e   :  { %v1620_v53 = vpop.f32.mrf.mxu1  ;;  %v2727_v24 = vor.u32 %v3360_v39, %v2726_v10  ;;  %v3365_v10 = vld [vmem:[%s5210_s0 + $0x228] sm:$0xf0] }
 0x14f   :  { %v1956_v58 = vadd.f32 %v1955_v56, %v1787_v40  ;;  %v1621_v48 = vadd.f32 %v1620_v53, %v1452_v44  ;;  %v2719_v53 = vor.u32 %v3359_v28, %v2718_v4  ;;  %v2738_v4 = vld [vmem:[%s5210_s0 + $0x210] sm:$0xf]  ;;  %v3364_v28 = vld [vmem:[%s5210_s0 + $0x220] sm:$0xf0] }
 0x150   :  { %v2127_v38 = vpop.f32.mrf.mxu0 }
 0x151   :  { %v2125_v19 = vadd.f32 %v2124_v23, %v1956_v58  ;;  %1659 = vmatmul.bf16.gmra.mxu1 %v2695_v12  ;;  %1828 = vmatmul.bf16.gmra.mxu2 %v2699_v50  ;;  %v2715_v50 = vor.u32 %v3356_v20, %v2712_v49  ;;  %v1459_v20 = vadd.f32 %v4400_v26, %v4244_v60  ;;  %v2732_v49 = vld [vmem:[%s5210_s0 + $0x21c] sm:$0xf0]  ;;  %v3362_v60 = vld [vmem:[%s5210_s0 + $0x214] sm:$0xf] }
 0x152   :  { %1997 = vmatmul.bf16.gmra.mxu3 %v2703_v15 }
 0x153   :  { %3275 = vmatmul.msk.bf16.gmra.mxu0 %vm1326_vm1, %v2707_v46  ;;  %v2277_v55 = vmax.f32 %v2125_v19, 0.0  ;;  %v2723_v46 = vor.u32 %v3357_v30, %v2720_v63  ;;  %v2746_v63 = vld [vmem:[%s5210_s0 + $0x218] sm:$0xf] }
 0x154   :  { %v1789_v11 = vpop.f32.mrf.mxu2 }
 0x155   :  { %v3508_v33 = vpack.c.bf16 %v2277_v55, %v2276_v42  ;;  %v1958_v0 = vpop.f32.mrf.mxu3  ;;  %v1790_v52 = vadd.f32 %v1789_v11, %v1621_v48  ;;  %v1457_v55 = vadd.f32 %v4400_v26, %v4235_v54  ;;  %v3361_v54 = vld [vmem:[%s5210_s0 + $0x20c] sm:$0xf] }
 0x156   :  { %v1622_v5 = vpop.f32.mrf.mxu1 }
 0x157   :  { %3656 = vst [vmem:[%s5211_s3 + $0x10] sm:$0xff] %v3508_v33   ;;  %v1959_v14 = vadd.f32 %v1958_v0, %v1790_v52  ;;  %v1623_v62 = vadd.f32 %v1622_v5, %v1454_v7 }
 0x158   :  { %v2129_v23 = vpop.f32.mrf.mxu0 }
 0x159   :  { %v2128_v58 = vadd.f32 %v2127_v38, %v1959_v14 }
 0x15b   :  { %v2278_v11 = vmax.f32 %v2128_v58, 0.0 }
 0x15c   :  { %v1791_v40 = vpop.f32.mrf.mxu2 }
 0x15d   :  { %v1792_v56 = vadd.f32 %v1791_v40, %v1623_v62  ;;  %v1960_v12 = vpop.f32.mrf.mxu3  ;;  %v2740_v62 = vld [vmem:[%s5210_s0 + $0x224] sm:$0xf0] }
 0x15e   :  { %v1625_v15 = vpop.f32.mrf.mxu1 }
 0x15f   :  { %v1961_v19 = vadd.f32 %v1960_v12, %v1792_v56  ;;  %v1626_v5 = vadd.f32 %v1625_v15, %v1457_v55  ;;  %v2735_v12 = vor.u32 %v3361_v54, %v2732_v49  ;;  %v2743_v15 = vor.u32 %v3362_v60, %v2740_v62  ;;  %v2758_v54 = vld [vmem:[%s5210_s0 + $0x238] sm:$0xf]  ;;  %v3369_v49 = vld [vmem:[%s5210_s0 + $0x248] sm:$0xf0]  ;;  %v2760_v60 = vld [vmem:[%s5210_s0 + $0x24c] sm:$0xf0] }
 0x160   :  { %v2132_v44 = vpop.f32.mrf.mxu0  ;;  %v1462_v55 = vadd.f32 %v4400_v26, %v4276_v32  ;;  %v3366_v32 = vld [vmem:[%s5210_s0 + $0x234] sm:$0xf] }
 0x161   :  { %v2130_v42 = vadd.f32 %v2129_v23, %v1961_v19  ;;  %1664 = vmatmul.bf16.gmra.mxu1 %v2715_v50  ;;  %1833 = vmatmul.bf16.gmra.mxu2 %v2719_v53  ;;  %v2739_v50 = vor.u32 %v3364_v28, %v2738_v4 }
 0x162   :  { %2002 = vmatmul.bf16.gmra.mxu3 %v2723_v46  ;;  %v2747_v46 = vor.u32 %v3365_v10, %v2746_v63 }
 0x163   :  { %3276 = vmatmul.msk.bf16.gmra.mxu0 %vm1326_vm1, %v2727_v24  ;;  %v2279_v33 = vmax.f32 %v2130_v42, 0.0 }
 0x164   :  { %v1794_v48 = vpop.f32.mrf.mxu2 }
 0x165   :  { %v3513_v0 = vpack.c.bf16 %v2279_v33, %v2278_v11  ;;  %v1963_v52 = vpop.f32.mrf.mxu3  ;;  %v1795_v38 = vadd.f32 %v1794_v48, %v1626_v5 }
 0x166   :  { %v1627_v7 = vpop.f32.mrf.mxu1 }
 0x167   :  { %3657 = vst [vmem:[%s5211_s3 + $0x18] sm:$0xff] %v3513_v0   ;;  %v1964_v30 = vadd.f32 %v1963_v52, %v1795_v38  ;;  %v1628_v14 = vadd.f32 %v1627_v7, %v1459_v20  ;;  %v2752_v20 = vld [vmem:[%s5210_s0 + $0x244] sm:$0xf0] }
 0x168   :  { %v2134_v23 = vpop.f32.mrf.mxu0 }
 0x169   :  { %v2133_v24 = vadd.f32 %v2132_v44, %v1964_v30  ;;  %v2766_v30 = vld [vmem:[%s5210_s0 + $0x240] sm:$0xf] }
 0x16b   :  { %v2280_v11 = vmax.f32 %v2133_v24, 0.0 }
 0x16c   :  { %v1796_v39 = vpop.f32.mrf.mxu2 }
 0x16d   :  { %v1797_v40 = vadd.f32 %v1796_v39, %v1628_v14  ;;  %v1965_v56 = vpop.f32.mrf.mxu3  ;;  %v3370_v14 = vld [vmem:[%s5210_s0 + $0x250] sm:$0xf0]  ;;  %v2755_v39 = vor.u32 %v3366_v32, %v2752_v20 }
 0x16e   :  { %v1630_v53 = vpop.f32.mrf.mxu1 }
 0x16f   :  { %v1966_v58 = vadd.f32 %v1965_v56, %v1797_v40  ;;  %v1631_v5 = vadd.f32 %v1630_v53, %v1462_v55  ;;  %v2759_v40 = vor.u32 %v3369_v49, %v2758_v54  ;;  %v2780_v54 = vld [vmem:[%s5210_s0 + $0x274] sm:$0xf0]  ;;  %v2786_v49 = vld [vmem:[%s5210_s0 + $0x268] sm:$0xf] }
 0x170   :  { %v2137_v19 = vpop.f32.mrf.mxu0 }
 0x171   :  { %v2135_v42 = vadd.f32 %v2134_v23, %v1966_v58  ;;  %1669 = vmatmul.bf16.gmra.mxu1 %v2735_v12  ;;  %1838 = vmatmul.bf16.gmra.mxu2 %v2739_v50  ;;  %v1464_v23 = vadd.f32 %v4400_v26, %v4285_v36  ;;  %v3367_v36 = vld [vmem:[%s5210_s0 + $0x23c] sm:$0xf]  ;;  %v2767_v50 = vor.u32 %v3370_v14, %v2766_v30 }
 0x172   :  { %2007 = vmatmul.bf16.gmra.mxu3 %v2743_v15  ;;  %v2763_v12 = vor.u32 %v3367_v36, %v2760_v60  ;;  %v1467_v58 = vadd.f32 %v4400_v26, %v4317_v16  ;;  %v3371_v16 = vld [vmem:[%s5210_s0 + $0x25c] sm:$0xf] }
 0x173   :  { %3277 = vmatmul.msk.bf16.gmra.mxu0 %vm1326_vm1, %v2747_v46  ;;  %v2281_v33 = vmax.f32 %v2135_v42, 0.0  ;;  %v3375_v36 = vld [vmem:[%s5210_s0 + $0x278] sm:$0xf0] }
 0x174   :  { %v1799_v48 = vpop.f32.mrf.mxu2 }
 0x175   :  { %v3518_v0 = vpack.c.bf16 %v2281_v33, %v2280_v11  ;;  %v1968_v52 = vpop.f32.mrf.mxu3  ;;  %v1800_v44 = vadd.f32 %v1799_v48, %v1631_v5 }
 0x176   :  { %v1632_v7 = vpop.f32.mrf.mxu1 }
 0x177   :  { %3658 = vst [vmem:[%s5211_s3 + $0x20] sm:$0xff] %v3518_v0   ;;  %v1969_v4 = vadd.f32 %v1968_v52, %v1800_v44  ;;  %v1633_v28 = vadd.f32 %v1632_v7, %v1464_v23  ;;  %v1469_v7 = vadd.f32 %v4400_v26, %v4326_v6  ;;  %v2772_v44 = vld [vmem:[%s5210_s0 + $0x26c] sm:$0xf0]  ;;  %v3374_v23 = vld [vmem:[%s5210_s0 + $0x270] sm:$0xf0] }
 0x178   :  { %v2139_v38 = vpop.f32.mrf.mxu0  ;;  %v3372_v6 = vld [vmem:[%s5210_s0 + $0x264] sm:$0xf]  ;;  %v2775_v30 = vor.u32 %v3371_v16, %v2772_v44  ;;  %v2800_v16 = vld [vmem:[%s5210_s0 + $0x29c] sm:$0xf0]  ;;  %v2806_v44 = vld [vmem:[%s5210_s0 + $0x290] sm:$0xf] }
 0x179   :  { %v2138_v53 = vadd.f32 %v2137_v19, %v1969_v4 }
 0x17b   :  { %v2282_v42 = vmax.f32 %v2138_v53, 0.0 }
 0x17c   :  { %v1801_v62 = vpop.f32.mrf.mxu2 }
 0x17d   :  { %v1802_v63 = vadd.f32 %v1801_v62, %v1633_v28  ;;  %v1970_v10 = vpop.f32.mrf.mxu3 }
 0x17e   :  { %v1635_v56 = vpop.f32.mrf.mxu1 }
 0x17f   :  { %v1971_v15 = vadd.f32 %v1970_v10, %v1802_v63  ;;  %v1636_v48 = vadd.f32 %v1635_v56, %v1467_v58  ;;  %v2783_v63 = vor.u32 %v3372_v6, %v2780_v54  ;;  %v2787_v10 = vor.u32 %v3375_v36, %v2786_v49 }
 0x180   :  { %v2142_v46 = vpop.f32.mrf.mxu0 }
 0x181   :  { %v2140_v24 = vadd.f32 %v2139_v38, %v1971_v15  ;;  %1674 = vmatmul.bf16.gmra.mxu1 %v2755_v39  ;;  %1843 = vmatmul.bf16.gmra.mxu2 %v2759_v40  ;;  %v2778_v38 = vld [vmem:[%s5210_s0 + $0x260] sm:$0xf] }
 0x182   :  { %2012 = vmatmul.bf16.gmra.mxu3 %v2763_v12  ;;  %v2779_v14 = vor.u32 %v3374_v23, %v2778_v38  ;;  %v3380_v38 = vld [vmem:[%s5210_s0 + $0x2a0] sm:$0xf0] }
 0x183   :  { %3278 = vmatmul.msk.bf16.gmra.mxu0 %vm1326_vm1, %v2767_v50  ;;  %v2283_v55 = vmax.f32 %v2140_v24, 0.0  ;;  %v1472_v50 = vadd.f32 %v4400_v26, %v4358_v43  ;;  %v3376_v43 = vld [vmem:[%s5210_s0 + $0x284] sm:$0xf] }
 0x184   :  { %v1804_v11 = vpop.f32.mrf.mxu2 }
 0x185   :  { %v3523_v33 = vpack.c.bf16 %v2283_v55, %v2282_v42  ;;  %v1973_v0 = vpop.f32.mrf.mxu3  ;;  %v1805_v19 = vadd.f32 %v1804_v11, %v1636_v48  ;;  %v1474_v48 = vadd.f32 %v4400_v26, %v4367_v8  ;;  %v3377_v8 = vld [vmem:[%s5210_s0 + $0x28c] sm:$0xf] }
 0x186   :  { %v1637_v5 = vpop.f32.mrf.mxu1  ;;  %v2803_v36 = vor.u32 %v3377_v8, %v2800_v16 }
 0x187   :  { %3659 = vst [vmem:[%s5211_s3 + $0x28] sm:$0xff] %v3523_v33   ;;  %v1974_v32 = vadd.f32 %v1973_v0, %v1805_v19  ;;  %v1638_v20 = vadd.f32 %v1637_v5, %v1469_v7  ;;  %v2792_v0 = vld [vmem:[%s5210_s0 + $0x294] sm:$0xf0]  ;;  %v2798_v5 = vld [vmem:[%s5210_s0 + $0x288] sm:$0xf] }
 0x188   :  { %v2144_v52 = vpop.f32.mrf.mxu0  ;;  %v3379_v19 = vld [vmem:[%s5210_s0 + $0x298] sm:$0xf0] }
 0x189   :  { %v2143_v39 = vadd.f32 %v2142_v46, %v1974_v32  ;;  %v2799_v54 = vor.u32 %v3379_v19, %v2798_v5 }
 0x18b   :  { %v2284_v53 = vmax.f32 %v2143_v39, 0.0 }
 0x18c   :  { %v1806_v4 = vpop.f32.mrf.mxu2 }
 0x18d   :  { %v1807_v28 = vadd.f32 %v1806_v4, %v1638_v20  ;;  %v1975_v60 = vpop.f32.mrf.mxu3  ;;  %v2795_v20 = vor.u32 %v3376_v43, %v2792_v0  ;;  %v2807_v4 = vor.u32 %v3380_v38, %v2806_v44  ;;  %v3385_v43 = vld [vmem:[%s5210_s0 + $0x2c8] sm:$0xf0] }
 0x18e   :  { %v1640_v62 = vpop.f32.mrf.mxu1 }
 0x18f   :  { %v1976_v40 = vadd.f32 %v1975_v60, %v1807_v28  ;;  %v1641_v42 = vadd.f32 %v1640_v62, %v1472_v50  ;;  %v1477_v62 = vadd.f32 %v4400_v26, %v4069_v21  ;;  %v3381_v21 = vld [vmem:[%s5210_s0 + $0x2ac] sm:$0xf] }
 0x190   :  { %v2147_v56 = vpop.f32.mrf.mxu0 }
 0x191   :  { %v2145_v12 = vadd.f32 %v2144_v52, %v1976_v40  ;;  %1679 = vmatmul.bf16.gmra.mxu1 %v2775_v30  ;;  %1848 = vmatmul.bf16.gmra.mxu2 %v2779_v14 }
 0x192   :  { %2017 = vmatmul.bf16.gmra.mxu3 %v2783_v63 }
 0x193   :  { %3279 = vmatmul.msk.bf16.gmra.mxu0 %vm1326_vm1, %v2787_v10  ;;  %v2285_v15 = vmax.f32 %v2145_v12, 0.0 }
 0x194   :  { %v1809_v24 = vpop.f32.mrf.mxu2 }
 0x195   :  { %v3528_v58 = vpack.c.bf16 %v2285_v15, %v2284_v53  ;;  %v1978_v55 = vpop.f32.mrf.mxu3  ;;  %v1810_v46 = vadd.f32 %v1809_v24, %v1641_v42  ;;  %v1479_v24 = vadd.f32 %v4400_v26, %v4078_v27  ;;  %v2818_v42 = vld [vmem:[%s5210_s0 + $0x2b0] sm:$0xf]  ;;  %v3382_v27 = vld [vmem:[%s5210_s0 + $0x2b4] sm:$0xf] }
 0x196   :  { %v1642_v11 = vpop.f32.mrf.mxu1 }
 0x197   :  { %3660 = vst [vmem:[%s5211_s3 + $0x30] sm:$0xff] %v3528_v58   ;;  %v1979_v52 = vadd.f32 %v1978_v55, %v1810_v46  ;;  %v1643_v7 = vadd.f32 %v1642_v11, %v1474_v48  ;;  %v2812_v58 = vld [vmem:[%s5210_s0 + $0x2bc] sm:$0xf0]  ;;  %v3384_v55 = vld [vmem:[%s5210_s0 + $0x2c0] sm:$0xf0] }
 0x198   :  { %v2149_v33 = vpop.f32.mrf.mxu0  ;;  %v2826_v48 = vld [vmem:[%s5210_s0 + $0x2b8] sm:$0xf]  ;;  %v2815_v8 = vor.u32 %v3381_v21, %v2812_v58 }
 0x199   :  { %v2148_v28 = vadd.f32 %v2147_v56, %v1979_v52  ;;  %v2819_v52 = vor.u32 %v3384_v55, %v2818_v42  ;;  %v2827_v44 = vor.u32 %v3385_v43, %v2826_v48 }
 0x19b   :  { %v2286_v63 = vmax.f32 %v2148_v28, 0.0 }
 0x19c   :  { %v1811_v23 = vpop.f32.mrf.mxu2 }
 0x19d   :  { %v1812_v6 = vadd.f32 %v1811_v23, %v1643_v7  ;;  %v1980_v32 = vpop.f32.mrf.mxu3 }
 0x19e   :  { %v1645_v49 = vpop.f32.mrf.mxu1 }
 0x19f   :  { %v1981_v60 = vadd.f32 %v1980_v32, %v1812_v6  ;;  %v1646_v12 = vadd.f32 %v1645_v49, %v1477_v62 }
 0x1a0   :  { %v2152_v30 = vpop.f32.mrf.mxu0 }
 0x1a1   :  { %v2150_v14 = vadd.f32 %v2149_v33, %v1981_v60  ;;  %1684 = vmatmul.bf16.gmra.mxu1 %v2795_v20  ;;  %1853 = vmatmul.bf16.gmra.mxu2 %v2799_v54  ;;  %v2820_v33 = vld [vmem:[%s5210_s0 + $0x2c4] sm:$0xf0]  ;;  %v1482_v20 = vadd.f32 %v4400_v26, %v4110_v41  ;;  %v3386_v41 = vld [vmem:[%s5210_s0 + $0x2d4] sm:$0xf] }
 0x1a2   :  { %2022 = vmatmul.bf16.gmra.mxu3 %v2803_v36  ;;  %v2823_v16 = vor.u32 %v3382_v27, %v2820_v33 }
 0x1a3   :  { %3280 = vmatmul.msk.bf16.gmra.mxu0 %vm1326_vm1, %v2807_v4  ;;  %v2287_v10 = vmax.f32 %v2150_v14, 0.0 }
 0x1a4   :  { %v1814_v39 = vpop.f32.mrf.mxu2 }
 0x1a5   :  { %v3533_v40 = vpack.c.bf16 %v2287_v10, %v2286_v63  ;;  %v1983_v50 = vpop.f32.mrf.mxu3  ;;  %v1815_v56 = vadd.f32 %v1814_v39, %v1646_v12  ;;  %v1484_v63 = vadd.f32 %v4400_v26, %v4119_v47  ;;  %v2832_v10 = vld [vmem:[%s5210_s0 + $0x2e4] sm:$0xf0]  ;;  %v2838_v39 = vld [vmem:[%s5210_s0 + $0x2d8] sm:$0xf]  ;;  %v3387_v47 = vld [vmem:[%s5210_s0 + $0x2dc] sm:$0xf] }
 0x1a6   :  { %v1647_v53 = vpop.f32.mrf.mxu1  ;;  %v2835_v42 = vor.u32 %v3386_v41, %v2832_v10 }
 0x1a7   :  { %3661 = vst [vmem:[%s5211_s3 + $0x38] sm:$0xff] %v3533_v40   ;;  %v1984_v11 = vadd.f32 %v1983_v50, %v1815_v56  ;;  %v1648_v46 = vadd.f32 %v1647_v53, %v1479_v24  ;;  %v3389_v40 = vld [vmem:[%s5210_s0 + $0x2e8] sm:$0xf0]  ;;  %v2840_v53 = vld [vmem:[%s5210_s0 + $0x2ec] sm:$0xf0] }
 0x1a8   :  { %v2154_v15 = vpop.f32.mrf.mxu0  ;;  %v2846_v56 = vld [vmem:[%s5210_s0 + $0x2e0] sm:$0xf]  ;;  %v2839_v55 = vor.u32 %v3389_v40, %v2838_v39 }
 0x1a9   :  { %v2153_v38 = vadd.f32 %v2152_v30, %v1984_v11  ;;  %v2843_v11 = vor.u32 %v3387_v47, %v2840_v53 }
 0x1ab   :  { %v2288_v54 = vmax.f32 %v2153_v38, 0.0 }
 0x1ac   :  { %v1816_v0 = vpop.f32.mrf.mxu2 }
 0x1ad   :  { %v1817_v5 = vadd.f32 %v1816_v0, %v1648_v46  ;;  %v1985_v19 = vpop.f32.mrf.mxu3 }
 0x1ae   :  { %v1650_v7 = vpop.f32.mrf.mxu1 }
 0x1af   :  { %v1986_v23 = vadd.f32 %v1985_v19, %v1817_v5  ;;  %v1651_v28 = vadd.f32 %v1650_v7, %v1482_v20  ;;  %v1487_v5 = vadd.f32 %v4400_v26, %v4151_v61  ;;  %v3391_v61 = vld [vmem:[%s5210_s0 + $0x2fc] sm:$0xf]  ;;  %v2852_v20 = vld [vmem:[%s5210_s0 + $0x30c] sm:$0xf0] }
 0x1b0   :  { %v2157_v6 = vpop.f32.mrf.mxu0  ;;  %v2855_v41 = vor.u32 %v3391_v61, %v2852_v20 }
 0x1b1   :  { %v2155_v32 = vadd.f32 %v2154_v15, %v1986_v23  ;;  %1689 = vmatmul.bf16.gmra.mxu1 %v2815_v8  ;;  %1858 = vmatmul.bf16.gmra.mxu2 %v2819_v52  ;;  %v3390_v15 = vld [vmem:[%s5210_s0 + $0x2f0] sm:$0xf0] }
 0x1b2   :  { %2027 = vmatmul.bf16.gmra.mxu3 %v2823_v16  ;;  %v2847_v46 = vor.u32 %v3390_v15, %v2846_v56  ;;  %v1492_v15 = vadd.f32 %v4400_v26, %v4192_v17  ;;  %v3396_v17 = vld [vmem:[%s5210_s0 + $0x324] sm:$0xf] }
 0x1b3   :  { %3281 = vmatmul.msk.bf16.gmra.mxu0 %vm1326_vm1, %v2827_v44  ;;  %v2289_v49 = vmax.f32 %v2155_v32, 0.0  ;;  %v1489_v32 = vadd.f32 %v4400_v26, %v4160_v3  ;;  %v3392_v3 = vld [vmem:[%s5210_s0 + $0x304] sm:$0xf] }
 0x1b4   :  { %v1819_v36 = vpop.f32.mrf.mxu2 }
 0x1b5   :  { %v3538_v4 = vpack.c.bf16 %v2289_v49, %v2288_v54  ;;  %v1988_v60 = vpop.f32.mrf.mxu3  ;;  %v1820_v30 = vadd.f32 %v1819_v36, %v1651_v28  ;;  %v2858_v54 = vld [vmem:[%s5210_s0 + $0x300] sm:$0xf]  ;;  %v3394_v49 = vld [vmem:[%s5210_s0 + $0x310] sm:$0xf0]  ;;  %v2860_v28 = vld [vmem:[%s5210_s0 + $0x314] sm:$0xf0] }
 0x1b6   :  { %v1652_v14 = vpop.f32.mrf.mxu1  ;;  %v2859_v10 = vor.u32 %v3394_v49, %v2858_v54  ;;  %v2863_v40 = vor.u32 %v3392_v3, %v2860_v28  ;;  %v1497_v28 = vadd.f32 %v4400_v26, %v4233_v51  ;;  %v3401_v51 = vld [vmem:[%s5210_s0 + $0x34c] sm:$0xf] }
 0x1b7   :  { %3662 = vst [vmem:[%s5211_s3 + $0x40] sm:$0xff] %v3538_v4   ;;  %v1989_v12 = vadd.f32 %v1988_v60, %v1820_v30  ;;  %v1653_v50 = vadd.f32 %v1652_v14, %v1484_v63  ;;  %v2866_v60 = vld [vmem:[%s5210_s0 + $0x308] sm:$0xf]  ;;  %v3395_v14 = vld [vmem:[%s5210_s0 + $0x318] sm:$0xf0] }
 0x1b8   :  { %v2159_v62 = vpop.f32.mrf.mxu0  ;;  %v2867_v47 = vor.u32 %v3395_v14, %v2866_v60 }
 0x1b9   :  { %v2158_v33 = vadd.f32 %v2157_v6, %v1989_v12 }
 0x1bb   :  { %v2290_v19 = vmax.f32 %v2158_v33, 0.0 }
 0x1bc   :  { %v1821_v24 = vpop.f32.mrf.mxu2 }
 0x1bd   :  { %v1822_v21 = vadd.f32 %v1821_v24, %v1653_v50  ;;  %v1990_v58 = vpop.f32.mrf.mxu3 }
 0x1be   :  { %v1655_v27 = vpop.f32.mrf.mxu1 }
 0x1bf   :  { %v1991_v48 = vadd.f32 %v1990_v58, %v1822_v21  ;;  %v1656_v16 = vadd.f32 %v1655_v27, %v1487_v5  ;;  %v3399_v5 = vld [vmem:[%s5210_s0 + $0x338] sm:$0xf0] }
 0x1c0   :  { %v2162_v43 = vpop.f32.mrf.mxu0 }
 0x1c1   :  { %v2160_v0 = vadd.f32 %v2159_v62, %v1991_v48  ;;  %1694 = vmatmul.bf16.gmra.mxu1 %v2835_v42  ;;  %1863 = vmatmul.bf16.gmra.mxu2 %v2839_v55  ;;  %v1494_v48 = vadd.f32 %v4400_v26, %v4201_v29  ;;  %v3397_v29 = vld [vmem:[%s5210_s0 + $0x32c] sm:$0xf] }
 0x1c2   :  { %2032 = vmatmul.bf16.gmra.mxu3 %v2843_v11 }
 0x1c3   :  { %3282 = vmatmul.msk.bf16.gmra.mxu0 %vm1326_vm1, %v2847_v46  ;;  %v2291_v8 = vmax.f32 %v2160_v0, 0.0  ;;  %v2878_v0 = vld [vmem:[%s5210_s0 + $0x328] sm:$0xf] }
 0x1c4   :  { %v1824_v52 = vpop.f32.mrf.mxu2 }
 0x1c5   :  { %v3543_v7 = vpack.c.bf16 %v2291_v8, %v2290_v19  ;;  %v1993_v44 = vpop.f32.mrf.mxu3  ;;  %v1825_v23 = vadd.f32 %v1824_v52, %v1656_v16  ;;  %v2880_v52 = vld [vmem:[%s5210_s0 + $0x33c] sm:$0xf0]  ;;  %v3400_v16 = vld [vmem:[%s5210_s0 + $0x340] sm:$0xf0] }
 0x1c6   :  { %v1657_v38 = vpop.f32.mrf.mxu1  ;;  %v2883_v20 = vor.u32 %v3397_v29, %v2880_v52 }
 0x1c7   :  { %3663 = vst [vmem:[%s5211_s3 + $0x48] sm:$0xff] %v3543_v7   ;;  %v1994_v36 = vadd.f32 %v1993_v44, %v1825_v23  ;;  %v1658_v4 = vadd.f32 %v1657_v38, %v1489_v32  ;;  %v2886_v7 = vld [vmem:[%s5210_s0 + $0x330] sm:$0xf]  ;;  %v2879_v32 = vor.u32 %v3399_v5, %v2878_v0 }
 0x1c8   :  { %v2164_v6 = vpop.f32.mrf.mxu0  ;;  %v2887_v54 = vor.u32 %v3400_v16, %v2886_v7 }
 0x1c9   :  { %v2163_v12 = vadd.f32 %v2162_v43, %v1994_v36  ;;  %v2872_v43 = vld [vmem:[%s5210_s0 + $0x334] sm:$0xf0] }
 0x1cb   :  { %v2292_v24 = vmax.f32 %v2163_v12, 0.0  ;;  %v2892_v12 = vld [vmem:[%s5210_s0 + $0x35c] sm:$0xf0] }
 0x1cc   :  { %v1826_v30 = vpop.f32.mrf.mxu2 }
 0x1cd   :  { %v1827_v62 = vadd.f32 %v1826_v30, %v1658_v4  ;;  %v1995_v63 = vpop.f32.mrf.mxu3 }
 0x1ce   :  { %v1660_v39 = vpop.f32.mrf.mxu1 }
 0x1cf   :  { %v1996_v50 = vadd.f32 %v1995_v63, %v1827_v62  ;;  %v1661_v55 = vadd.f32 %v1660_v39, %v1492_v15 }
 0x1d0   :  { %v2167_v53 = vpop.f32.mrf.mxu0 }
 0x1d1   :  { %v2165_v56 = vadd.f32 %v2164_v6, %v1996_v50  ;;  %1699 = vmatmul.bf16.gmra.mxu1 %v2855_v41  ;;  %1868 = vmatmul.bf16.gmra.mxu2 %v2859_v10  ;;  %v2875_v6 = vor.u32 %v3396_v17, %v2872_v43  ;;  %v2898_v50 = vld [vmem:[%s5210_s0 + $0x350] sm:$0xf] }
 0x1d2   :  { %2037 = vmatmul.bf16.gmra.mxu3 %v2863_v40 }
 0x1d3   :  { %3283 = vmatmul.msk.bf16.gmra.mxu0 %vm1326_vm1, %v2867_v47  ;;  %v2293_v21 = vmax.f32 %v2165_v56, 0.0  ;;  %v1499_v47 = vadd.f32 %v4400_v26, %v4242_v59  ;;  %v3402_v59 = vld [vmem:[%s5210_s0 + $0x354] sm:$0xf] }
 0x1d4   :  { %v1829_v58 = vpop.f32.mrf.mxu2 }
 0x1d5   :  { %v3548_v42 = vpack.c.bf16 %v2293_v21, %v2292_v24  ;;  %v1998_v27 = vpop.f32.mrf.mxu3  ;;  %v1830_v46 = vadd.f32 %v1829_v58, %v1661_v55  ;;  %v2900_v24 = vld [vmem:[%s5210_s0 + $0x364] sm:$0xf0]  ;;  %v2906_v21 = vld [vmem:[%s5210_s0 + $0x358] sm:$0xf]  ;;  %v3405_v58 = vld [vmem:[%s5210_s0 + $0x368] sm:$0xf0] }
 0x1d6   :  { %v1662_v11 = vpop.f32.mrf.mxu1  ;;  %v2907_v17 = vor.u32 %v3405_v58, %v2906_v21 }
 0x1d7   :  { %3664 = vst [vmem:[%s5211_s3 + $0x50] sm:$0xff] %v3548_v42   ;;  %v1999_v19 = vadd.f32 %v1998_v27, %v1830_v46  ;;  %v1663_v8 = vadd.f32 %v1662_v11, %v1494_v48  ;;  %v2895_v11 = vor.u32 %v3401_v51, %v2892_v12  ;;  %v2903_v48 = vor.u32 %v3402_v59, %v2900_v24 }
 0x1d8   :  { %v2169_v33 = vpop.f32.mrf.mxu0 }
 0x1d9   :  { %v2168_v49 = vadd.f32 %v2167_v53, %v1999_v19  ;;  %v3404_v53 = vld [vmem:[%s5210_s0 + $0x360] sm:$0xf0]  ;;  %v1502_v19 = vadd.f32 %v4400_v26, %v4274_v18  ;;  %v3406_v18 = vld [vmem:[%s5210_s0 + $0x374] sm:$0xf] }
 0x1da   :  { %v2899_v46 = vor.u32 %v3404_v53, %v2898_v50  ;;  %v4851_v50 = vld [vmem:[%s5209_s2] ss:$0 sm:$0xff] }
 0x1db   :  { %v2294_v60 = vmax.f32 %v2168_v49, 0.0  ;;  %v3409_v49 = vld [vmem:[%s5210_s0 + $0x388] sm:$0xf0]  ;;  %v1507_v53 = vadd.f32 %v4851_v50, %v4315_v9  ;;  %v3411_v9 = vld [vmem:[%s5210_s0 + $0x39c] sm:$0xf] }
 0x1dc   :  { %v1831_v44 = vpop.f32.mrf.mxu2 }
 0x1dd   :  { %v1832_v38 = vadd.f32 %v1831_v44, %v1663_v8  ;;  %v2000_v23 = vpop.f32.mrf.mxu3 }
 0x1de   :  { %v1665_v61 = vpop.f32.mrf.mxu1 }
 0x1df   :  { %v2001_v3 = vadd.f32 %v2000_v23, %v1832_v38  ;;  %v1666_v63 = vadd.f32 %v1665_v61, %v1497_v28  ;;  %v1504_v61 = vadd.f32 %v4400_v26, %v4283_v35  ;;  %v3407_v26 = vld [vmem:[%s5210_s0 + $0x37c] sm:$0xf]  ;;  %v3410_v28 = vld [vmem:[%s5210_s0 + $0x390] sm:$0xf0] }
 0x1e0   :  { %v2172_v36 = vpop.f32.mrf.mxu0 }
 0x1e1   :  { %v2170_v4 = vadd.f32 %v2169_v33, %v2001_v3  ;;  %1704 = vmatmul.bf16.gmra.mxu1 %v2875_v6  ;;  %1873 = vmatmul.bf16.gmra.mxu2 %v2879_v32 }
 0x1e2   :  { %2042 = vmatmul.bf16.gmra.mxu3 %v2883_v20  ;;  %v2912_v20 = vld [vmem:[%s5210_s0 + $0x384] sm:$0xf0] }
 0x1e3   :  { %3284 = vmatmul.msk.bf16.gmra.mxu0 %vm1326_vm1, %v2887_v54  ;;  %v2295_v14 = vmax.f32 %v2170_v4, 0.0  ;;  %v2918_v54 = vld [vmem:[%s5210_s0 + $0x378] sm:$0xf]  ;;  %v2926_v4 = vld [vmem:[%s5210_s0 + $0x380] sm:$0xf] }
 0x1e4   :  { %v1834_v30 = vpop.f32.mrf.mxu2 }
 0x1e5   :  { %v3553_v62 = vpack.c.bf16 %v2295_v14, %v2294_v60  ;;  %v2003_v41 = vpop.f32.mrf.mxu3  ;;  %v1835_v39 = vadd.f32 %v1834_v30, %v1666_v63  ;;  %v2919_v63 = vor.u32 %v3409_v49, %v2918_v54 }
 0x1e6   :  { %v1667_v10 = vpop.f32.mrf.mxu1 }
 0x1e7   :  { %3665 = vst [vmem:[%s5211_s3 + $0x58] sm:$0xff] %v3553_v62   ;;  %v2004_v56 = vadd.f32 %v2003_v41, %v1835_v39  ;;  %v1668_v15 = vadd.f32 %v1667_v10, %v1499_v47  ;;  %v2915_v62 = vor.u32 %v3406_v18, %v2912_v20  ;;  %v2927_v39 = vor.u32 %v3410_v28, %v2926_v4 }
 0x1e8   :  { %v2174_v40 = vpop.f32.mrf.mxu0  ;;  %v1512_v20 = vadd.f32 %v4851_v50, %v4356_v31  ;;  %v3416_v31 = vld [vmem:[%s5210_s0 + $0x3c4] sm:$0xf] }
 0x1e9   :  { %v2173_v43 = vadd.f32 %v2172_v36, %v2004_v56  ;;  %v2920_v36 = vld [vmem:[%s5210_s0 + $0x38c] sm:$0xf0] }
 0x1ea   :  { %v2923_v10 = vor.u32 %v3407_v26, %v2920_v36 }
 0x1eb   :  { %v2296_v8 = vmax.f32 %v2173_v43, 0.0 }
 0x1ec   :  { %v1836_v42 = vpop.f32.mrf.mxu2 }
 0x1ed   :  { %v1837_v55 = vadd.f32 %v1836_v42, %v1668_v15  ;;  %v2005_v27 = vpop.f32.mrf.mxu3 }
 0x1ee   :  { %v1670_v33 = vpop.f32.mrf.mxu1 }
 0x1ef   :  { %v2006_v0 = vadd.f32 %v2005_v27, %v1837_v55  ;;  %v1671_v44 = vadd.f32 %v1670_v33, %v1502_v19  ;;  %v2938_v33 = vld [vmem:[%s5210_s0 + $0x3a0] sm:$0xf] }
 0x1f0   :  { %v2177_v5 = vpop.f32.mrf.mxu0 }
 0x1f1   :  { %v2175_v29 = vadd.f32 %v2174_v40, %v2006_v0  ;;  %1709 = vmatmul.bf16.gmra.mxu1 %v2895_v11  ;;  %1878 = vmatmul.bf16.gmra.mxu2 %v2899_v46  ;;  %v1509_v11 = vadd.f32 %v4851_v50, %v4324_v34  ;;  %v2932_v46 = vld [vmem:[%s5210_s0 + $0x3ac] sm:$0xf0]  ;;  %v3412_v34 = vld [vmem:[%s5210_s0 + $0x3a4] sm:$0xf]  ;;  %v2940_v0 = vld [vmem:[%s5210_s0 + $0x3b4] sm:$0xf0] }
 0x1f2   :  { %2047 = vmatmul.bf16.gmra.mxu3 %v2903_v48  ;;  %v3414_v48 = vld [vmem:[%s5210_s0 + $0x3b0] sm:$0xf0] }
 0x1f3   :  { %3285 = vmatmul.msk.bf16.gmra.mxu0 %vm1326_vm1, %v2907_v17  ;;  %v2297_v52 = vmax.f32 %v2175_v29, 0.0  ;;  %v3415_v29 = vld [vmem:[%s5210_s0 + $0x3b8] sm:$0xf0] }
 0x1f4   :  { %v1839_v7 = vpop.f32.mrf.mxu2 }
 0x1f5   :  { %v3558_v16 = vpack.c.bf16 %v2297_v52, %v2296_v8  ;;  %v2008_v38 = vpop.f32.mrf.mxu3  ;;  %v1840_v6 = vadd.f32 %v1839_v7, %v1671_v44  ;;  %v2935_v7 = vor.u32 %v3411_v9, %v2932_v46 }
 0x1f6   :  { %v1672_v23 = vpop.f32.mrf.mxu1 }
 0x1f7   :  { %3666 = vst [vmem:[%s5211_s3 + $0x60] sm:$0xff] %v3558_v16   ;;  %v2009_v35 = vadd.f32 %v2008_v38, %v1840_v6  ;;  %v1673_v3 = vadd.f32 %v1672_v23, %v1504_v61  ;;  %v2939_v16 = vor.u32 %v3414_v48, %v2938_v33  ;;  %v2943_v38 = vor.u32 %v3412_v34, %v2940_v0 }
 0x1f8   :  { %v2179_v32 = vpop.f32.mrf.mxu0 }
 0x1f9   :  { %v2178_v40 = vadd.f32 %v2177_v5, %v2009_v35  ;;  %v2946_v5 = vld [vmem:[%s5210_s0 + $0x3a8] sm:$0xf] }
 0x1fa   :  { %v2947_v23 = vor.u32 %v3415_v29, %v2946_v5  ;;  %v1519_v29 = vadd.f32 %v4851_v50, %v4106_v37  ;;  %v3422_v37 = vld [vmem:[%s5210_s0 + $0x3f4] sm:$0xf] }
 0x1fb   :  { %v2298_v59 = vmax.f32 %v2178_v40, 0.0  ;;  %v2966_v40 = vld [vmem:[%s5210_s0 + $0x3d0] sm:$0xf] }
 0x1fc   :  { %v1841_v60 = vpop.f32.mrf.mxu2 }
 0x1fd   :  { %v1842_v14 = vadd.f32 %v1841_v60, %v1673_v3  ;;  %v2010_v30 = vpop.f32.mrf.mxu3 }
 0x1fe   :  { %v1675_v41 = vpop.f32.mrf.mxu1 }
 0x1ff   :  { %v2011_v47 = vadd.f32 %v2010_v30, %v1842_v14  ;;  %v1676_v21 = vadd.f32 %v1675_v41, %v1507_v53  ;;  %v1514_v14 = vadd.f32 %v4851_v50, %v4365_v2  ;;  %v2952_v30 = vld [vmem:[%s5210_s0 + $0x3d4] sm:$0xf0]  ;;  %v3417_v2 = vld [vmem:[%s5210_s0 + $0x3cc] sm:$0xf] }
 0x200   :  { %v2182_v51 = vpop.f32.mrf.mxu0 }
 0x201   :  { %v2180_v12 = vadd.f32 %v2179_v32, %v2011_v47  ;;  %1714 = vmatmul.bf16.gmra.mxu1 %v2915_v62  ;;  %1883 = vmatmul.bf16.gmra.mxu2 %v2919_v63  ;;  %v2958_v62 = vld [vmem:[%s5210_s0 + $0x3c8] sm:$0xf]  ;;  %v3419_v63 = vld [vmem:[%s5210_s0 + $0x3d8] sm:$0xf0]  ;;  %v3420_v47 = vld [vmem:[%s5210_s0 + $0x3e0] sm:$0xf0] }
 0x202   :  { %2052 = vmatmul.bf16.gmra.mxu3 %v2923_v10 }
 0x203   :  { %3286 = vmatmul.msk.bf16.gmra.mxu0 %vm1326_vm1, %v2927_v39  ;;  %v2299_v56 = vmax.f32 %v2180_v12, 0.0  ;;  %v2960_v39 = vld [vmem:[%s5210_s0 + $0x3dc] sm:$0xf0] }
 0x204   :  { %v1844_v15 = vpop.f32.mrf.mxu2 }
 0x205   :  { %v3563_v24 = vpack.c.bf16 %v2299_v56, %v2298_v59  ;;  %v2013_v58 = vpop.f32.mrf.mxu3  ;;  %v1845_v55 = vadd.f32 %v1844_v15, %v1676_v21  ;;  %v2955_v59 = vor.u32 %v3416_v31, %v2952_v30  ;;  %v2959_v56 = vor.u32 %v3419_v63, %v2958_v62 }
 0x206   :  { %v1677_v42 = vpop.f32.mrf.mxu1  ;;  %v2967_v21 = vor.u32 %v3420_v47, %v2966_v40  ;;  %v2992_v40 = vld [vmem:[%s5210_s0 + $0x424] sm:$0xf0]  ;;  %v2998_v47 = vld [vmem:[%s5210_s0 + $0x418] sm:$0xf] }
 0x207   :  { %3667 = vst [vmem:[%s5211_s3 + $0x68] sm:$0xff] %v3563_v24   ;;  %v2014_v17 = vadd.f32 %v2013_v58, %v1845_v55  ;;  %v1678_v43 = vadd.f32 %v1677_v42, %v1509_v11  ;;  %v2963_v24 = vor.u32 %v3417_v2, %v2960_v39  ;;  %v1517_v11 = vadd.f32 %v4851_v50, %v4074_v25  ;;  %v3421_v25 = vld [vmem:[%s5210_s0 + $0x3ec] sm:$0xf] }
 0x208   :  { %v2184_v27 = vpop.f32.mrf.mxu0  ;;  %v1524_v39 = vadd.f32 %v4851_v50, %v4147_v57  ;;  %v3427_v57 = vld [vmem:[%s5210_s0 + $0x41c] sm:$0xf] }
 0x209   :  { %v2183_v6 = vadd.f32 %v2182_v51, %v2014_v17 }
 0x20b   :  { %v2300_v54 = vmax.f32 %v2183_v6, 0.0 }
 0x20c   :  { %v1846_v19 = vpop.f32.mrf.mxu2 }
 0x20d   :  { %v1847_v8 = vadd.f32 %v1846_v19, %v1678_v43  ;;  %v2015_v52 = vpop.f32.mrf.mxu3  ;;  %v2972_v19 = vld [vmem:[%s5210_s0 + $0x3fc] sm:$0xf0] }
 0x20e   :  { %v1680_v44 = vpop.f32.mrf.mxu1 }
 0x20f   :  { %v2016_v32 = vadd.f32 %v2015_v52, %v1847_v8  ;;  %v1681_v3 = vadd.f32 %v1680_v44, %v1512_v20  ;;  %v2978_v8 = vld [vmem:[%s5210_s0 + $0x3f0] sm:$0xf]  ;;  %v3424_v52 = vld [vmem:[%s5210_s0 + $0x400] sm:$0xf0]  ;;  %v2980_v44 = vld [vmem:[%s5210_s0 + $0x404] sm:$0xf0] }
 0x210   :  { %v2187_v61 = vpop.f32.mrf.mxu0  ;;  %v2979_v20 = vor.u32 %v3424_v52, %v2978_v8 }
 0x211   :  { %v2185_v18 = vadd.f32 %v2184_v27, %v2016_v32  ;;  %1719 = vmatmul.bf16.gmra.mxu1 %v2935_v7  ;;  %1888 = vmatmul.bf16.gmra.mxu2 %v2939_v16 }
 0x212   :  { %2057 = vmatmul.bf16.gmra.mxu3 %v2943_v38  ;;  %v2986_v38 = vld [vmem:[%s5210_s0 + $0x3f8] sm:$0xf] }
 0x213   :  { %3287 = vmatmul.msk.bf16.gmra.mxu0 %vm1326_vm1, %v2947_v23  ;;  %v2301_v49 = vmax.f32 %v2185_v18, 0.0  ;;  %v3425_v23 = vld [vmem:[%s5210_s0 + $0x408] sm:$0xf0]  ;;  %v2975_v18 = vor.u32 %v3421_v25, %v2972_v19 }
 0x214   :  { %v1849_v26 = vpop.f32.mrf.mxu2 }
 0x215   :  { %v3568_v35 = vpack.c.bf16 %v2301_v49, %v2300_v54  ;;  %v2018_v36 = vpop.f32.mrf.mxu3  ;;  %v1850_v28 = vadd.f32 %v1849_v26, %v1681_v3  ;;  %v2983_v49 = vor.u32 %v3422_v37, %v2980_v44  ;;  %v2987_v26 = vor.u32 %v3425_v23, %v2986_v38  ;;  %v3018_v44 = vld [vmem:[%s5210_s0 + $0x440] sm:$0xf]  ;;  %v3434_v38 = vld [vmem:[%s5210_s0 + $0x450] sm:$0xf0] }
 0x216   :  { %v1682_v4 = vpop.f32.mrf.mxu1 }
 0x217   :  { %3668 = vst [vmem:[%s5211_s3 + $0x70] sm:$0xff] %v3568_v35   ;;  %v2019_v41 = vadd.f32 %v2018_v36, %v1850_v28  ;;  %v1683_v10 = vadd.f32 %v1682_v4, %v1514_v14  ;;  %v1522_v28 = vadd.f32 %v4851_v50, %v4115_v45  ;;  %v3426_v45 = vld [vmem:[%s5210_s0 + $0x414] sm:$0xf] }
 0x218   :  { %v2189_v60 = vpop.f32.mrf.mxu0 }
 0x219   :  { %v2188_v58 = vadd.f32 %v2187_v61, %v2019_v41 }
 0x21b   :  { %v2302_v9 = vmax.f32 %v2188_v58, 0.0 }
 0x21c   :  { %v1851_v51 = vpop.f32.mrf.mxu2 }
 0x21d   :  { %v1852_v12 = vadd.f32 %v1851_v51, %v1683_v10  ;;  %v2020_v53 = vpop.f32.mrf.mxu3  ;;  %v3429_v51 = vld [vmem:[%s5210_s0 + $0x428] sm:$0xf0] }
 0x21e   :  { %v1685_v15 = vpop.f32.mrf.mxu1 }
 0x21f   :  { %v2021_v42 = vadd.f32 %v2020_v53, %v1852_v12  ;;  %v1686_v34 = vadd.f32 %v1685_v15, %v1517_v11  ;;  %v3430_v15 = vld [vmem:[%s5210_s0 + $0x430] sm:$0xf0] }
 0x220   :  { %v2192_v55 = vpop.f32.mrf.mxu0 }
 0x221   :  { %v2190_v27 = vadd.f32 %v2189_v60, %v2021_v42  ;;  %1724 = vmatmul.bf16.gmra.mxu1 %v2955_v59  ;;  %1893 = vmatmul.bf16.gmra.mxu2 %v2959_v56  ;;  %v3000_v59 = vld [vmem:[%s5210_s0 + $0x42c] sm:$0xf0]  ;;  %v3006_v56 = vld [vmem:[%s5210_s0 + $0x420] sm:$0xf]  ;;  %v2995_v42 = vor.u32 %v3426_v45, %v2992_v40 }
 0x222   :  { %2062 = vmatmul.bf16.gmra.mxu3 %v2963_v24  ;;  %v3003_v11 = vor.u32 %v3427_v57, %v3000_v59  ;;  %v3439_v59 = vld [vmem:[%s5210_s0 + $0x478] sm:$0xf0] }
 0x223   :  { %3288 = vmatmul.msk.bf16.gmra.mxu0 %vm1326_vm1, %v2967_v21  ;;  %v2303_v46 = vmax.f32 %v2190_v27, 0.0 }
 0x224   :  { %v1854_v33 = vpop.f32.mrf.mxu2 }
 0x225   :  { %v3573_v48 = vpack.c.bf16 %v2303_v46, %v2302_v9  ;;  %v2023_v17 = vpop.f32.mrf.mxu3  ;;  %v1855_v0 = vadd.f32 %v1854_v33, %v1686_v34  ;;  %v3007_v9 = vor.u32 %v3430_v15, %v3006_v56  ;;  %v3437_v56 = vld [vmem:[%s5210_s0 + $0x46c] sm:$0xf] }
 0x226   :  { %v1687_v43 = vpop.f32.mrf.mxu1 }
 0x227   :  { %3669 = vst [vmem:[%s5211_s3 + $0x78] sm:$0xff] %v3573_v48   ;;  %v2024_v7 = vadd.f32 %v2023_v17, %v1855_v0  ;;  %v1688_v16 = vadd.f32 %v1687_v43, %v1519_v29  ;;  %v1527_v17 = vadd.f32 %v4851_v50, %v4156_v1  ;;  %v3431_v1 = vld [vmem:[%s5210_s0 + $0x43c] sm:$0xf] }
 0x228   :  { %v2194_v5 = vpop.f32.mrf.mxu0 }
 0x229   :  { %v2193_v35 = vadd.f32 %v2192_v55, %v2024_v7  ;;  %v2999_v55 = vor.u32 %v3429_v51, %v2998_v47  ;;  %v1529_v7 = vadd.f32 %v4851_v50, %v4188_v13  ;;  %v3432_v13 = vld [vmem:[%s5210_s0 + $0x444] sm:$0xf]  ;;  %v5237_v51 = vld [vmem:[#allocation9_spill] sm:$0xff] }
 0x22a   :  { %v1534_v57 = vadd.f32 %v4851_v50, %v5237_v51 }
 0x22b   :  { %v2304_v60 = vmax.f32 %v2193_v35, 0.0  ;;  %v3019_v35 = vor.u32 %v3434_v38, %v3018_v44 }
 0x22c   :  { %v1856_v6 = vpop.f32.mrf.mxu2 }
 0x22d   :  { %v1857_v32 = vadd.f32 %v1856_v6, %v1688_v16  ;;  %v2025_v61 = vpop.f32.mrf.mxu3  ;;  %v3012_v16 = vld [vmem:[%s5210_s0 + $0x44c] sm:$0xf0] }
 0x22e   :  { %v1690_v54 = vpop.f32.mrf.mxu1 }
 0x22f   :  { %v2026_v3 = vadd.f32 %v2025_v61, %v1857_v32  ;;  %v1691_v62 = vadd.f32 %v1690_v54, %v1522_v28  ;;  %v3020_v32 = vld [vmem:[%s5210_s0 + $0x454] sm:$0xf0]  ;;  %v3026_v61 = vld [vmem:[%s5210_s0 + $0x448] sm:$0xf] }
 0x230   :  { %v2197_v36 = vpop.f32.mrf.mxu0 }
 0x231   :  { %v2195_v4 = vadd.f32 %v2194_v5, %v2026_v3  ;;  %1729 = vmatmul.bf16.gmra.mxu1 %v2975_v18  ;;  %1898 = vmatmul.bf16.gmra.mxu2 %v2979_v20  ;;  %v3435_v18 = vld [vmem:[%s5210_s0 + $0x458] sm:$0xf0] }
 0x232   :  { %2067 = vmatmul.bf16.gmra.mxu3 %v2983_v49 }
 0x233   :  { %3289 = vmatmul.msk.bf16.gmra.mxu0 %vm1326_vm1, %v2987_v26  ;;  %v2305_v14 = vmax.f32 %v2195_v4, 0.0  ;;  %v3015_v26 = vor.u32 %v3431_v1, %v3012_v16  ;;  %v3027_v4 = vor.u32 %v3435_v18, %v3026_v61  ;;  %v3058_v61 = vld [vmem:[%s5210_s0 + $0x490] sm:$0xf]  ;;  %v3444_v18 = vld [vmem:[%s5210_s0 + $0x4a0] sm:$0xf0] }
 0x234   :  { %v1859_v31 = vpop.f32.mrf.mxu2 }
 0x235   :  { %v3578_v30 = vpack.c.bf16 %v2305_v14, %v2304_v60  ;;  %v2028_v63 = vpop.f32.mrf.mxu3  ;;  %v1860_v41 = vadd.f32 %v1859_v31, %v1691_v62 }
 0x236   :  { %v1692_v2 = vpop.f32.mrf.mxu1 }
 0x237   :  { %3670 = vst [vmem:[%s5211_s3 + $0x80] sm:$0xff] %v3578_v30   ;;  %v2029_v12 = vadd.f32 %v2028_v63, %v1860_v41  ;;  %v1693_v53 = vadd.f32 %v1692_v2, %v1524_v39  ;;  %v1532_v30 = vadd.f32 %v4851_v50, %v4197_v22  ;;  %v3436_v22 = vld [vmem:[%s5210_s0 + $0x464] sm:$0xf] }
 0x238   :  { %v2199_v10 = vpop.f32.mrf.mxu0 }
 0x239   :  { %v2198_v46 = vadd.f32 %v2197_v36, %v2029_v12  ;;  %v3023_v36 = vor.u32 %v3432_v13, %v3020_v32  ;;  %v3032_v12 = vld [vmem:[%s5210_s0 + $0x474] sm:$0xf0]  ;;  %v3052_v32 = vld [vmem:[%s5210_s0 + $0x49c] sm:$0xf0] }
 0x23a   :  { %v5239_v13 = vld [vmem:[#allocation13_spill] sm:$0xff] }
 0x23b   :  { %v2306_v43 = vmax.f32 %v2198_v46, 0.0 }
 0x23c   :  { %v1861_v24 = vpop.f32.mrf.mxu2 }
 0x23d   :  { %v1862_v21 = vadd.f32 %v1861_v24, %v1693_v53  ;;  %v2030_v58 = vpop.f32.mrf.mxu3  ;;  %v3038_v53 = vld [vmem:[%s5210_s0 + $0x468] sm:$0xf] }
 0x23e   :  { %v1695_v27 = vpop.f32.mrf.mxu1  ;;  %v3039_v46 = vor.u32 %v3439_v59, %v3038_v53 }
 0x23f   :  { %v2031_v33 = vadd.f32 %v2030_v58, %v1862_v21  ;;  %v1696_v25 = vadd.f32 %v1695_v27, %v1527_v17  ;;  %v3040_v21 = vld [vmem:[%s5210_s0 + $0x47c] sm:$0xf0]  ;;  %v3046_v58 = vld [vmem:[%s5210_s0 + $0x470] sm:$0xf] }
 0x240   :  { %v2202_v48 = vpop.f32.mrf.mxu0 }
 0x241   :  { %v2200_v34 = vadd.f32 %v2199_v10, %v2031_v33  ;;  %1734 = vmatmul.bf16.gmra.mxu1 %v2995_v42  ;;  %1903 = vmatmul.bf16.gmra.mxu2 %v2999_v55  ;;  %v3440_v42 = vld [vmem:[%s5210_s0 + $0x480] sm:$0xf0] }
 0x242   :  { %2072 = vmatmul.bf16.gmra.mxu3 %v3003_v11 }
 0x243   :  { %3290 = vmatmul.msk.bf16.gmra.mxu0 %vm1326_vm1, %v3007_v9  ;;  %v2307_v0 = vmax.f32 %v2200_v34, 0.0  ;;  %v3035_v9 = vor.u32 %v3436_v22, %v3032_v12  ;;  %v3047_v34 = vor.u32 %v3440_v42, %v3046_v58  ;;  %v3072_v58 = vld [vmem:[%s5210_s0 + $0x4c4] sm:$0xf0]  ;;  %v3078_v42 = vld [vmem:[%s5210_s0 + $0x4b8] sm:$0xf] }
 0x244   :  { %v1864_v5 = vpop.f32.mrf.mxu2 }
 0x245   :  { %v3583_v29 = vpack.c.bf16 %v2307_v0, %v2306_v43  ;;  %v2033_v19 = vpop.f32.mrf.mxu3  ;;  %v1865_v52 = vadd.f32 %v1864_v5, %v1696_v25 }
 0x246   :  { %v1697_v8 = vpop.f32.mrf.mxu1 }
 0x247   :  { %3671 = vst [vmem:[%s5211_s3 + $0x88] sm:$0xff] %v3583_v29   ;;  %v2034_v23 = vadd.f32 %v2033_v19, %v1865_v52  ;;  %v1698_v6 = vadd.f32 %v1697_v8, %v1529_v7  ;;  %v5238_v29 = vld [vmem:[#allocation11_spill] sm:$0xff] }
 0x248   :  { %v2204_v37 = vpop.f32.mrf.mxu0  ;;  %v1537_v25 = vadd.f32 %v4851_v50, %v5238_v29 }
 0x249   :  { %v2203_v28 = vadd.f32 %v2202_v48, %v2034_v23  ;;  %v3043_v48 = vor.u32 %v3437_v56, %v3040_v21  ;;  %v1539_v23 = vadd.f32 %v4851_v50, %v5239_v13  ;;  %v3446_v21 = vld [vmem:[%s5210_s0 + $0x4b4] sm:$0xf] }
 0x24b   :  { %v2308_v62 = vmax.f32 %v2203_v28, 0.0 }
 0x24c   :  { %v1866_v20 = vpop.f32.mrf.mxu2 }
 0x24d   :  { %v1867_v54 = vadd.f32 %v1866_v20, %v1698_v6  ;;  %v2035_v49 = vpop.f32.mrf.mxu3  ;;  %v3441_v6 = vld [vmem:[%s5210_s0 + $0x48c] sm:$0xf]  ;;  %v3442_v20 = vld [vmem:[%s5210_s0 + $0x494] sm:$0xf] }
 0x24e   :  { %v1700_v3 = vpop.f32.mrf.mxu1 }
 0x24f   :  { %v2036_v60 = vadd.f32 %v2035_v49, %v1867_v54  ;;  %v1701_v10 = vadd.f32 %v1700_v3, %v1532_v30  ;;  %v3445_v3 = vld [vmem:[%s5210_s0 + $0x4a8] sm:$0xf0] }
 0x250   :  { %v2207_v14 = vpop.f32.mrf.mxu0 }
 0x251   :  { %v2205_v31 = vadd.f32 %v2204_v37, %v2036_v60  ;;  %1739 = vmatmul.bf16.gmra.mxu1 %v3015_v26  ;;  %1908 = vmatmul.bf16.gmra.mxu2 %v3019_v35  ;;  %v3060_v26 = vld [vmem:[%s5210_s0 + $0x4a4] sm:$0xf0]  ;;  %v3066_v35 = vld [vmem:[%s5210_s0 + $0x498] sm:$0xf]  ;;  %v3055_v60 = vor.u32 %v3441_v6, %v3052_v32 }
 0x252   :  { %2077 = vmatmul.bf16.gmra.mxu3 %v3023_v36  ;;  %v3063_v30 = vor.u32 %v3442_v20, %v3060_v26  ;;  %v3451_v26 = vld [vmem:[%s5210_s0 + $0x4dc] sm:$0xf] }
 0x253   :  { %3291 = vmatmul.msk.bf16.gmra.mxu0 %vm1326_vm1, %v3027_v4  ;;  %v2309_v63 = vmax.f32 %v2205_v31, 0.0 }
 0x254   :  { %v1869_v2 = vpop.f32.mrf.mxu2 }
 0x255   :  { %v3588_v41 = vpack.c.bf16 %v2309_v63, %v2308_v62  ;;  %v2038_v39 = vpop.f32.mrf.mxu3  ;;  %v1870_v40 = vadd.f32 %v1869_v2, %v1701_v10  ;;  %v3067_v62 = vor.u32 %v3445_v3, %v3066_v35  ;;  %v3092_v35 = vld [vmem:[%s5210_s0 + $0x4ec] sm:$0xf0]  ;;  %v3098_v3 = vld [vmem:[%s5210_s0 + $0x4e0] sm:$0xf] }
 0x256   :  { %v1702_v45 = vpop.f32.mrf.mxu1 }
 0x257   :  { %3672 = vst [vmem:[%s5211_s3 + $0x90] sm:$0xff] %v3588_v41   ;;  %v2039_v15 = vadd.f32 %v2038_v39, %v1870_v40  ;;  %v1703_v24 = vadd.f32 %v1702_v45, %v1534_v57  ;;  %v5240_v39 = vld [vmem:[#allocation15_spill] sm:$0xff] }
 0x258   :  { %v2209_v47 = vpop.f32.mrf.mxu0  ;;  %v1542_v45 = vadd.f32 %v4851_v50, %v5240_v39 }
 0x259   :  { %v2208_v17 = vadd.f32 %v2207_v14, %v2039_v15  ;;  %v3059_v14 = vor.u32 %v3444_v18, %v3058_v61  ;;  %v5241_v15 = vld [vmem:[#allocation17_spill] sm:$0xff] }
 0x25b   :  { %v2310_v19 = vmax.f32 %v2208_v17, 0.0 }
 0x25c   :  { %v1871_v55 = vpop.f32.mrf.mxu2 }
 0x25d   :  { %v1872_v27 = vadd.f32 %v1871_v55, %v1703_v24  ;;  %v2040_v11 = vpop.f32.mrf.mxu3  ;;  %v1544_v24 = vadd.f32 %v4851_v50, %v5241_v15  ;;  %v3449_v55 = vld [vmem:[%s5210_s0 + $0x4c8] sm:$0xf0] }
 0x25e   :  { %v1705_v33 = vpop.f32.mrf.mxu1 }
 0x25f   :  { %v2041_v43 = vadd.f32 %v2040_v11, %v1872_v27  ;;  %v1706_v7 = vadd.f32 %v1705_v33, %v1537_v25  ;;  %v3447_v27 = vld [vmem:[%s5210_s0 + $0x4bc] sm:$0xf]  ;;  %v3086_v33 = vld [vmem:[%s5210_s0 + $0x4c0] sm:$0xf] }
 0x260   :  { %v2212_v0 = vpop.f32.mrf.mxu0 }
 0x261   :  { %v2210_v5 = vadd.f32 %v2209_v47, %v2041_v43  ;;  %1744 = vmatmul.bf16.gmra.mxu1 %v3035_v9  ;;  %1913 = vmatmul.bf16.gmra.mxu2 %v3039_v46  ;;  %v3080_v46 = vld [vmem:[%s5210_s0 + $0x4cc] sm:$0xf0] }
 0x262   :  { %2082 = vmatmul.bf16.gmra.mxu3 %v3043_v48  ;;  %v3450_v48 = vld [vmem:[%s5210_s0 + $0x4d0] sm:$0xf0]  ;;  %v3083_v25 = vor.u32 %v3447_v27, %v3080_v46 }
 0x263   :  { %3292 = vmatmul.msk.bf16.gmra.mxu0 %vm1326_vm1, %v3047_v34  ;;  %v2311_v8 = vmax.f32 %v2210_v5, 0.0  ;;  %v3079_v5 = vor.u32 %v3449_v55, %v3078_v42 }
 0x264   :  { %v1874_v52 = vpop.f32.mrf.mxu2 }
 0x265   :  { %v3593_v37 = vpack.c.bf16 %v2311_v8, %v2310_v19  ;;  %v2043_v1 = vpop.f32.mrf.mxu3  ;;  %v1875_v44 = vadd.f32 %v1874_v52, %v1706_v7  ;;  %v3087_v19 = vor.u32 %v3450_v48, %v3086_v33 }
 0x266   :  { %v1707_v16 = vpop.f32.mrf.mxu1 }
 0x267   :  { %3673 = vst [vmem:[%s5211_s3 + $0x98] sm:$0xff] %v3593_v37   ;;  %v2044_v54 = vadd.f32 %v2043_v1, %v1875_v44  ;;  %v1708_v49 = vadd.f32 %v1707_v16, %v1539_v23  ;;  %v5242_v1 = vld [vmem:[#allocation19_spill] sm:$0xff] }
 0x268   :  { %v2214_v38 = vpop.f32.mrf.mxu0  ;;  %v1547_v16 = vadd.f32 %v4851_v50, %v5242_v1 }
 0x269   :  { %v2213_v63 = vadd.f32 %v2212_v0, %v2044_v54  ;;  %v3075_v0 = vor.u32 %v3446_v21, %v3072_v58  ;;  %v5243_v54 = vld [vmem:[#allocation21_spill] sm:$0xff] }
 0x26b   :  { %v2312_v40 = vmax.f32 %v2213_v63, 0.0 }
 0x26c   :  { %v1876_v36 = vpop.f32.mrf.mxu2 }
 0x26d   :  { %v1877_v4 = vadd.f32 %v1876_v36, %v1708_v49  ;;  %v2045_v28 = vpop.f32.mrf.mxu3  ;;  %v1549_v49 = vadd.f32 %v4851_v50, %v5243_v54  ;;  %v3454_v36 = vld [vmem:[%s5210_s0 + $0x4f0] sm:$0xf0] }
 0x26e   :  { %v1710_v31 = vpop.f32.mrf.mxu1 }
 0x26f   :  { %v2046_v2 = vadd.f32 %v2045_v28, %v1877_v4  ;;  %v1711_v22 = vadd.f32 %v1710_v31, %v1542_v45  ;;  %v3452_v4 = vld [vmem:[%s5210_s0 + $0x4e4] sm:$0xf]  ;;  %v3106_v31 = vld [vmem:[%s5210_s0 + $0x4e8] sm:$0xf] }
 0x270   :  { %v2217_v41 = vpop.f32.mrf.mxu0 }
 0x271   :  { %v2215_v10 = vadd.f32 %v2214_v38, %v2046_v2  ;;  %1749 = vmatmul.bf16.gmra.mxu1 %v3055_v60  ;;  %1918 = vmatmul.bf16.gmra.mxu2 %v3059_v14  ;;  %v3100_v14 = vld [vmem:[%s5210_s0 + $0x4f4] sm:$0xf0] }
 0x272   :  { %2087 = vmatmul.bf16.gmra.mxu3 %v3063_v30  ;;  %v3455_v30 = vld [vmem:[%s5210_s0 + $0x4f8] sm:$0xf0]  ;;  %v3103_v45 = vor.u32 %v3452_v4, %v3100_v14 }
 0x273   :  { %3293 = vmatmul.msk.bf16.gmra.mxu0 %vm1326_vm1, %v3067_v62  ;;  %v2313_v47 = vmax.f32 %v2215_v10, 0.0  ;;  %v3099_v10 = vor.u32 %v3454_v36, %v3098_v3 }
 0x274   :  { %v1879_v51 = vpop.f32.mrf.mxu2 }
 0x275   :  { %v3598_v57 = vpack.c.bf16 %v2313_v47, %v2312_v40  ;;  %v2048_v12 = vpop.f32.mrf.mxu3  ;;  %v1880_v59 = vadd.f32 %v1879_v51, %v1711_v22  ;;  %v3107_v40 = vor.u32 %v3455_v30, %v3106_v31 }
 0x276   :  { %v1712_v53 = vpop.f32.mrf.mxu1 }
 0x277   :  { %3674 = vst [vmem:[%s5211_s3 + $0xa0] sm:$0xff] %v3598_v57   ;;  %v2049_v11 = vadd.f32 %v2048_v12, %v1880_v59  ;;  %v1713_v9 = vadd.f32 %v1712_v53, %v1544_v24  ;;  %v5244_v12 = vld [vmem:[#allocation23_spill] sm:$0xff] }
 0x278   :  { %v2219_v56 = vpop.f32.mrf.mxu0  ;;  %v1552_v53 = vadd.f32 %v4851_v50, %v5244_v12 }
 0x279   :  { %v2218_v8 = vadd.f32 %v2217_v41, %v2049_v11  ;;  %v3095_v41 = vor.u32 %v3451_v26, %v3092_v35  ;;  %v5245_v11 = vld [vmem:[#allocation25_spill] sm:$0xff] }
 0x27b   :  { %v2314_v44 = vmax.f32 %v2218_v8, 0.0 }
 0x27c   :  { %v1881_v34 = vpop.f32.mrf.mxu2 }
 0x27d   :  { %v1882_v17 = vadd.f32 %v1881_v34, %v1713_v9  ;;  %v2050_v43 = vpop.f32.mrf.mxu3  ;;  %v1554_v9 = vadd.f32 %v4851_v50, %v5245_v11 }
 0x27e   :  { %v1715_v29 = vpop.f32.mrf.mxu1 }
 0x27f   :  { %v2051_v52 = vadd.f32 %v2050_v43, %v1882_v17  ;;  %v1716_v6 = vadd.f32 %v1715_v29, %v1547_v16 }
 0x280   :  { %v2222_v37 = vpop.f32.mrf.mxu0 }
 0x281   :  { %v2220_v7 = vadd.f32 %v2219_v56, %v2051_v52  ;;  %1754 = vmatmul.bf16.gmra.mxu1 %v3075_v0  ;;  %1923 = vmatmul.bf16.gmra.mxu2 %v3079_v5 }
 0x282   :  { %2092 = vmatmul.bf16.gmra.mxu3 %v3083_v25 }
 0x283   :  { %3294 = vmatmul.msk.bf16.gmra.mxu0 %vm1326_vm1, %v3087_v19  ;;  %v2315_v38 = vmax.f32 %v2220_v7, 0.0  ;;  %v5246_v19 = vld [vmem:[#allocation2_spill] sm:$0xff] }
 0x284   :  { %v1884_v13 = vpop.f32.mrf.mxu2  ;;  %v1557_v8 = vadd.f32 %v4851_v50, %v5246_v19 }
 0x285   :  { %v3603_v23 = vpack.c.bf16 %v2315_v38, %v2314_v44  ;;  %v2053_v32 = vpop.f32.mrf.mxu3  ;;  %v1885_v18 = vadd.f32 %v1884_v13, %v1716_v6  ;;  %v5247_v6 = vld [vmem:[#allocation3_spill] sm:$0xff] }
 0x286   :  { %v1717_v61 = vpop.f32.mrf.mxu1 }
 0x287   :  { %3675 = vst [vmem:[%s5211_s3 + $0xa8] sm:$0xff] %v3603_v23   ;;  %v2054_v28 = vadd.f32 %v2053_v32, %v1885_v18  ;;  %v1718_v60 = vadd.f32 %v1717_v61, %v1549_v49  ;;  %v1559_v32 = vadd.f32 %v4851_v50, %v5247_v6 }
 0x288   :  { %v2224_v20 = vpop.f32.mrf.mxu0 }
 0x289   :  { %v2223_v47 = vadd.f32 %v2222_v37, %v2054_v28  ;;  %v5248_v28 = vld [vmem:[#allocation4_spill] sm:$0xff] }
 0x28b   :  { %v2316_v59 = vmax.f32 %v2223_v47, 0.0 }
 0x28c   :  { %v1886_v62 = vpop.f32.mrf.mxu2 }
 0x28d   :  { %v1887_v63 = vadd.f32 %v1886_v62, %v1718_v60  ;;  %v2055_v2 = vpop.f32.mrf.mxu3  ;;  %v1562_v60 = vadd.f32 %v4851_v50, %v5248_v28 }
 0x28e   :  { %v1720_v39 = vpop.f32.mrf.mxu1 }
 0x28f   :  { %v2056_v51 = vadd.f32 %v2055_v2, %v1887_v63  ;;  %v1721_v21 = vadd.f32 %v1720_v39, %v1552_v53 }
 0x290   :  { %v2227_v57 = vpop.f32.mrf.mxu0 }
 0x291   :  { %v2225_v22 = vadd.f32 %v2224_v20, %v2056_v51  ;;  %1759 = vmatmul.bf16.gmra.mxu1 %v3095_v41  ;;  %1928 = vmatmul.bf16.gmra.mxu2 %v3099_v10 }
 0x292   :  { %2097 = vmatmul.bf16.gmra.mxu3 %v3103_v45  ;;  %v5249_v45 = vld [vmem:[#allocation5_spill] sm:$0xff] }
 0x293   :  { %3295 = vmatmul.msk.bf16.gmra.mxu0 %vm1326_vm1, %v3107_v40  ;;  %v2317_v56 = vmax.f32 %v2225_v22, 0.0  ;;  %v1564_v40 = vadd.f32 %v4851_v50, %v5249_v45 }
 0x294   :  { %v1889_v15 = vpop.f32.mrf.mxu2 }
 0x295   :  { %v3608_v24 = vpack.c.bf16 %v2317_v56, %v2316_v59  ;;  %v2058_v58 = vpop.f32.mrf.mxu3  ;;  %v1890_v55 = vadd.f32 %v1889_v15, %v1721_v21  ;;  %v5250_v21 = vld [vmem:[#allocation6_spill] sm:$0xff] }
 0x296   :  { %v1722_v42 = vpop.f32.mrf.mxu1 }
 0x297   :  { %3676 = vst [vmem:[%s5211_s3 + $0xb0] sm:$0xff] %v3608_v24   ;;  %v2059_v46 = vadd.f32 %v2058_v58, %v1890_v55  ;;  %v1723_v33 = vadd.f32 %v1722_v42, %v1554_v9  ;;  %v1567_v58 = vadd.f32 %v4851_v50, %v5250_v21 }
 0x298   :  { %v2229_v27 = vpop.f32.mrf.mxu0 }
 0x299   :  { %v2228_v0 = vadd.f32 %v2227_v57, %v2059_v46 }
 0x29b   :  { %v2318_v52 = vmax.f32 %v2228_v0, 0.0 }
 0x29c   :  { %v1891_v48 = vpop.f32.mrf.mxu2 }
 0x29d   :  { %v1892_v34 = vadd.f32 %v1891_v48, %v1723_v33  ;;  %v2060_v17 = vpop.f32.mrf.mxu3 }
 0x29e   :  { %v1725_v43 = vpop.f32.mrf.mxu1 }
 0x29f   :  { %v2061_v5 = vadd.f32 %v2060_v17, %v1892_v34  ;;  %v1726_v16 = vadd.f32 %v1725_v43, %v1557_v8  ;;  %v5251_v17 = vld [vmem:[#allocation7_spill] sm:$0xff] }
 0x2a0   :  { %v2232_v29 = vpop.f32.mrf.mxu0  ;;  %v1569_v43 = vadd.f32 %v4851_v50, %v5251_v17 }
 0x2a1   :  { %v2230_v25 = vadd.f32 %v2229_v27, %v2061_v5 }
 0x2a3   :  { %v2319_v37 = vmax.f32 %v2230_v25, 0.0 }
 0x2a4   :  { %v1894_v7 = vpop.f32.mrf.mxu2 }
 0x2a5   :  { %v3613_v1 = vpack.c.bf16 %v2319_v37, %v2318_v52  ;;  %v2063_v44 = vpop.f32.mrf.mxu3  ;;  %v1895_v13 = vadd.f32 %v1894_v7, %v1726_v16  ;;  %v5252_v16 = vld [vmem:[#allocation8_spill] sm:$0xff] }
 0x2a6   :  { %v1727_v38 = vpop.f32.mrf.mxu1 }
 0x2a7   :  { %3677 = vst [vmem:[%s5211_s3 + $0xb8] sm:$0xff] %v3613_v1   ;;  %v2064_v61 = vadd.f32 %v2063_v44, %v1895_v13  ;;  %v1728_v18 = vadd.f32 %v1727_v38, %v1559_v32  ;;  %v1572_v44 = vadd.f32 %v4851_v50, %v5252_v16 }
 0x2a8   :  { %v2234_v23 = vpop.f32.mrf.mxu0 }
 0x2a9   :  { %v2233_v35 = vadd.f32 %v2232_v29, %v2064_v61 }
 0x2ab   :  { %v2320_v14 = vmax.f32 %v2233_v35, 0.0 }
 0x2ac   :  { %v1896_v20 = vpop.f32.mrf.mxu2 }
 0x2ad   :  { %v1897_v54 = vadd.f32 %v1896_v20, %v1728_v18  ;;  %v2065_v49 = vpop.f32.mrf.mxu3 }
 0x2ae   :  { %v1730_v26 = vpop.f32.mrf.mxu1 }
 0x2af   :  { %v2066_v3 = vadd.f32 %v2065_v49, %v1897_v54  ;;  %v1731_v63 = vadd.f32 %v1730_v26, %v1562_v60  ;;  %v5253_v49 = vld [vmem:[#allocation10_spill] sm:$0xff] }
 0x2b0   :  { %v2237_v36 = vpop.f32.mrf.mxu0  ;;  %v1574_v26 = vadd.f32 %v4851_v50, %v5253_v49 }
 0x2b1   :  { %v2235_v4 = vadd.f32 %v2234_v23, %v2066_v3 }
 0x2b3   :  { %v2321_v31 = vmax.f32 %v2235_v4, 0.0 }
 0x2b4   :  { %v1899_v30 = vpop.f32.mrf.mxu2 }
 0x2b5   :  { %v3618_v62 = vpack.c.bf16 %v2321_v31, %v2320_v14  ;;  %v2068_v2 = vpop.f32.mrf.mxu3  ;;  %v1900_v10 = vadd.f32 %v1899_v30, %v1731_v63  ;;  %v5254_v63 = vld [vmem:[#allocation12_spill] sm:$0xff] }
 0x2b6   :  { %v1732_v41 = vpop.f32.mrf.mxu1 }
 0x2b7   :  { %3678 = vst [vmem:[%s5211_s3 + $0xc0] sm:$0xff] %v3618_v62   ;;  %v2069_v47 = vadd.f32 %v2068_v2, %v1900_v10  ;;  %v1733_v51 = vadd.f32 %v1732_v41, %v1564_v40  ;;  %v1577_v2 = vadd.f32 %v4851_v50, %v5254_v63 }
 0x2b8   :  { %v2239_v39 = vpop.f32.mrf.mxu0 }
 0x2b9   :  { %v2238_v59 = vadd.f32 %v2237_v36, %v2069_v47 }
 0x2bb   :  { %v2322_v42 = vmax.f32 %v2238_v59, 0.0 }
 0x2bc   :  { %v1901_v57 = vpop.f32.mrf.mxu2 }
 0x2bd   :  { %v1902_v22 = vadd.f32 %v1901_v57, %v1733_v51  ;;  %v2070_v12 = vpop.f32.mrf.mxu3 }
 0x2be   :  { %v1735_v53 = vpop.f32.mrf.mxu1 }
 0x2bf   :  { %v2071_v56 = vadd.f32 %v2070_v12, %v1902_v22  ;;  %v1736_v9 = vadd.f32 %v1735_v53, %v1567_v58  ;;  %v5255_v12 = vld [vmem:[#allocation14_spill] sm:$0xff] }
 0x2c0   :  { %v2242_v15 = vpop.f32.mrf.mxu0  ;;  %v1579_v53 = vadd.f32 %v4851_v50, %v5255_v12 }
 0x2c1   :  { %v2240_v24 = vadd.f32 %v2239_v39, %v2071_v56 }
 0x2c3   :  { %v2323_v55 = vmax.f32 %v2240_v24, 0.0 }
 0x2c4   :  { %v1904_v27 = vpop.f32.mrf.mxu2 }
 0x2c5   :  { %v3623_v11 = vpack.c.bf16 %v2323_v55, %v2322_v42  ;;  %v2073_v46 = vpop.f32.mrf.mxu3  ;;  %v1905_v48 = vadd.f32 %v1904_v27, %v1736_v9  ;;  %v5256_v9 = vld [vmem:[#allocation16_spill] sm:$0xff] }
 0x2c6   :  { %v1737_v33 = vpop.f32.mrf.mxu1 }
 0x2c7   :  { %3679 = vst [vmem:[%s5211_s3 + $0xc8] sm:$0xff] %v3623_v11   ;;  %v2074_v0 = vadd.f32 %v2073_v46, %v1905_v48  ;;  %v1738_v5 = vadd.f32 %v1737_v33, %v1569_v43  ;;  %v1582_v46 = vadd.f32 %v4851_v50, %v5256_v9 }
 0x2c8   :  { %v2244_v34 = vpop.f32.mrf.mxu0 }
 0x2c9   :  { %v2243_v52 = vadd.f32 %v2242_v15, %v2074_v0 }
 0x2cb   :  { %v2324_v38 = vmax.f32 %v2243_v52, 0.0 }
 0x2cc   :  { %v1906_v29 = vpop.f32.mrf.mxu2 }
 0x2cd   :  { %v1907_v25 = vadd.f32 %v1906_v29, %v1738_v5  ;;  %v2075_v19 = vpop.f32.mrf.mxu3 }
 0x2ce   :  { %v1740_v8 = vpop.f32.mrf.mxu1 }
 0x2cf   :  { %v2076_v37 = vadd.f32 %v2075_v19, %v1907_v25  ;;  %v1741_v32 = vadd.f32 %v1740_v8, %v1572_v44  ;;  %v5257_v19 = vld [vmem:[#allocation18_spill] sm:$0xff] }
 0x2d0   :  { %v2247_v7 = vpop.f32.mrf.mxu0  ;;  %v1584_v8 = vadd.f32 %v4851_v50, %v5257_v19 }
 0x2d1   :  { %v2245_v1 = vadd.f32 %v2244_v34, %v2076_v37 }
 0x2d3   :  { %v2325_v13 = vmax.f32 %v2245_v1, 0.0 }
 0x2d4   :  { %v1909_v23 = vpop.f32.mrf.mxu2 }
 0x2d5   :  { %v3628_v6 = vpack.c.bf16 %v2325_v13, %v2324_v38  ;;  %v2078_v61 = vpop.f32.mrf.mxu3  ;;  %v1910_v20 = vadd.f32 %v1909_v23, %v1741_v32  ;;  %v5258_v32 = vld [vmem:[#allocation20_spill] sm:$0xff] }
 0x2d6   :  { %v1742_v18 = vpop.f32.mrf.mxu1 }
 0x2d7   :  { %3680 = vst [vmem:[%s5211_s3 + $0xd0] sm:$0xff] %v3628_v6   ;;  %v2079_v35 = vadd.f32 %v2078_v61, %v1910_v20  ;;  %v1743_v3 = vadd.f32 %v1742_v18, %v1574_v26  ;;  %v1587_v61 = vadd.f32 %v4851_v50, %v5258_v32 }
 0x2d8   :  { %v2249_v54 = vpop.f32.mrf.mxu0 }
 0x2d9   :  { %v2248_v14 = vadd.f32 %v2247_v7, %v2079_v35 }
 0x2db   :  { %v2326_v41 = vmax.f32 %v2248_v14, 0.0 }
 0x2dc   :  { %v1911_v36 = vpop.f32.mrf.mxu2 }
 0x2dd   :  { %v1912_v4 = vadd.f32 %v1911_v36, %v1743_v3  ;;  %v2080_v28 = vpop.f32.mrf.mxu3 }
 0x2de   :  { %v1745_v60 = vpop.f32.mrf.mxu1 }
 0x2df   :  { %v2081_v31 = vadd.f32 %v2080_v28, %v1912_v4  ;;  %v1746_v40 = vadd.f32 %v1745_v60, %v1577_v2  ;;  %v5259_v4 = vld [vmem:[#allocation22_spill] sm:$0xff] }
 0x2e0   :  { %v2252_v30 = vpop.f32.mrf.mxu0  ;;  %v1589_v28 = vadd.f32 %v4851_v50, %v5259_v4 }
 0x2e1   :  { %v2250_v62 = vadd.f32 %v2249_v54, %v2081_v31 }
 0x2e3   :  { %v2327_v10 = vmax.f32 %v2250_v62, 0.0 }
 0x2e4   :  { %v1914_v39 = vpop.f32.mrf.mxu2 }
 0x2e5   :  { %v3633_v45 = vpack.c.bf16 %v2327_v10, %v2326_v41  ;;  %v2083_v47 = vpop.f32.mrf.mxu3  ;;  %v1915_v57 = vadd.f32 %v1914_v39, %v1746_v40  ;;  %v5260_v40 = vld [vmem:[#allocation24_spill] sm:$0xff] }
 0x2e6   :  { %v1747_v51 = vpop.f32.mrf.mxu1 }
 0x2e7   :  { %3681 = vst [vmem:[%s5211_s3 + $0xd8] sm:$0xff] %v3633_v45   ;;  %v2084_v59 = vadd.f32 %v2083_v47, %v1915_v57  ;;  %v1748_v56 = vadd.f32 %v1747_v51, %v1579_v53  ;;  %v3712_v45 = vld [vmem:[%s5209_s2] ss:$0 sm:$0xff] }
 0x2e8   :  { %v2254_v22 = vpop.f32.mrf.mxu0  ;;  %v1592_v47 = vadd.f32 %v3712_v45, %v5260_v40 }
 0x2e9   :  { %v2253_v42 = vadd.f32 %v2252_v30, %v2084_v59 }
 0x2eb   :  { %v2328_v33 = vmax.f32 %v2253_v42, 0.0 }
 0x2ec   :  { %v1916_v15 = vpop.f32.mrf.mxu2 }
 0x2ed   :  { %v1917_v24 = vadd.f32 %v1916_v15, %v1748_v56  ;;  %v2085_v21 = vpop.f32.mrf.mxu3 }
 0x2ee   :  { %v1750_v58 = vpop.f32.mrf.mxu1 }
 0x2ef   :  { %v2086_v55 = vadd.f32 %v2085_v21, %v1917_v24  ;;  %v1751_v43 = vadd.f32 %v1750_v58, %v1582_v46  ;;  %v5261_v24 = vld [vmem:[#allocation26_spill] sm:$0xff] }
 0x2f0   :  { %v2257_v27 = vpop.f32.mrf.mxu0  ;;  %v1594_v21 = vadd.f32 %v3712_v45, %v5261_v24 }
 0x2f1   :  { %v2255_v11 = vadd.f32 %v2254_v22, %v2086_v55 }
 0x2f3   :  { %v2329_v48 = vmax.f32 %v2255_v11, 0.0 }
 0x2f4   :  { %v1919_v34 = vpop.f32.mrf.mxu2 }
 0x2f5   :  { %v3638_v17 = vpack.c.bf16 %v2329_v48, %v2328_v33  ;;  %v2088_v0 = vpop.f32.mrf.mxu3  ;;  %v1920_v29 = vadd.f32 %v1919_v34, %v1751_v43 }
 0x2f6   :  { %v1752_v5 = vpop.f32.mrf.mxu1 }
 0x2f7   :  { %3682 = vst [vmem:[%s5211_s3 + $0xe0] sm:$0xff] %v3638_v17   ;;  %v2089_v52 = vadd.f32 %v2088_v0, %v1920_v29  ;;  %v1753_v37 = vadd.f32 %v1752_v5, %v1584_v8 }
 0x2f8   :  { %v2259_v25 = vpop.f32.mrf.mxu0 }
 0x2f9   :  { %v2258_v38 = vadd.f32 %v2257_v27, %v2089_v52 }
 0x2fb   :  { %v2330_v18 = vmax.f32 %v2258_v38, 0.0 }
 0x2fc   :  { %v1921_v7 = vpop.f32.mrf.mxu2 }
 0x2fd   :  { %v1922_v1 = vadd.f32 %v1921_v7, %v1753_v37  ;;  %v2090_v16 = vpop.f32.mrf.mxu3 }
 0x2fe   :  { %v1755_v44 = vpop.f32.mrf.mxu1 }
 0x2ff   :  { %v2091_v13 = vadd.f32 %v2090_v16, %v1922_v1  ;;  %v1756_v26 = vadd.f32 %v1755_v44, %v1587_v61 }
 0x300   :  { %v2262_v6 = vpop.f32.mrf.mxu0 }
 0x301   :  { %v2260_v23 = vadd.f32 %v2259_v25, %v2091_v13 }
 0x303   :  { %v2331_v20 = vmax.f32 %v2260_v23, 0.0 }
 0x304   :  { %v1924_v54 = vpop.f32.mrf.mxu2 }
 0x305   :  { %v3643_v49 = vpack.c.bf16 %v2331_v20, %v2330_v18  ;;  %v2093_v35 = vpop.f32.mrf.mxu3  ;;  %v1925_v36 = vadd.f32 %v1924_v54, %v1756_v26 }
 0x306   :  { %v1757_v3 = vpop.f32.mrf.mxu1 }
 0x307   :  { %3683 = vst [vmem:[%s5211_s3 + $0xe8] sm:$0xff] %v3643_v49   ;;  %v2094_v60 = vadd.f32 %v2093_v35, %v1925_v36  ;;  %v1758_v14 = vadd.f32 %v1757_v3, %v1589_v28 }
 0x308   :  { %v2264_v31 = vpop.f32.mrf.mxu0 }
 0x309   :  { %v2263_v41 = vadd.f32 %v2262_v6, %v2094_v60 }
 0x30b   :  { %v2332_v51 = vmax.f32 %v2263_v41, 0.0 }
 0x30c   :  { %v1926_v30 = vpop.f32.mrf.mxu2 }
 0x30d   :  { %v1927_v62 = vadd.f32 %v1926_v30, %v1758_v14  ;;  %v2095_v63 = vpop.f32.mrf.mxu3 }
 0x30e   :  { %v1760_v2 = vpop.f32.mrf.mxu1 }
 0x30f   :  { %v2096_v10 = vadd.f32 %v2095_v63, %v1927_v62  ;;  %v1761_v12 = vadd.f32 %v1760_v2, %v1592_v47 }
 0x310   :  { %v2267_v59 = vpop.f32.mrf.mxu0 }
 0x311   :  { %v2265_v39 = vadd.f32 %v2264_v31, %v2096_v10 }
 0x313   :  { %v2333_v57 = vmax.f32 %v2265_v39, 0.0 }
 0x314   :  { %v1929_v22 = vpop.f32.mrf.mxu2 }
 0x315   :  { %v3648_v50 = vpack.c.bf16 %v2333_v57, %v2332_v51  ;;  %v2098_v53 = vpop.f32.mrf.mxu3  ;;  %v1930_v56 = vadd.f32 %v1929_v22, %v1761_v12 }
 0x316   :  { %v1762_v15 = vpop.f32.mrf.mxu1 }
 0x317   :  { %3684 = vst [vmem:[%s5211_s3 + $0xf0] sm:$0xff] %v3648_v50   ;;  %v2099_v58 = vadd.f32 %v2098_v53, %v1930_v56  ;;  %v1763_v42 = vadd.f32 %v1762_v15, %v1594_v21 }
 0x318   :  { %v2269_v33 = vpop.f32.mrf.mxu0 }
 0x319   :  { %v2268_v9 = vadd.f32 %v2267_v59, %v2099_v58 }
 0x31b   :  { %v2334_v34 = vmax.f32 %v2268_v9, 0.0 }
 0x31c   :  { %v1931_v55 = vpop.f32.mrf.mxu2 }
 0x31d   :  { %v1932_v27 = vadd.f32 %v1931_v55, %v1763_v42  ;;  %v2100_v11 = vpop.f32.mrf.mxu3 }
 0x31f   :  { %v2101_v46 = vadd.f32 %v2100_v11, %v1932_v27 }
 0x321   :  { %v2270_v48 = vadd.f32 %v2269_v33, %v2101_v46 }
 0x323   :  { %v2335_v17 = vmax.f32 %v2270_v48, 0.0 }
 0x325   :  { %v3653_v43 = vpack.c.bf16 %v2335_v17, %v2334_v34 }
 0x327   :  { %3685 = vst [vmem:[%s5211_s3 + $0xf8] sm:$0xff] %v3653_v43  }

</bundles_post_ra>
